<compile_context>
chip_gen: v6e
topology: v6e:2x2x1
jax: 0.10.0
libtpu: 0.0.40
codegen_flags: <defaults>
</compile_context>

<pallas_src>
import functools

import jax
import jax.numpy as jnp
from jax.experimental import pallas as pl
from jax.experimental.pallas import tpu as pltpu

NCLS_PAD = 128  # pad the class dim to one full lane tile for unmasked stores


# ---------------------------------------------------------------------------
# Fused kernel: per grid step = one image, whole forward pass.
# ---------------------------------------------------------------------------
def _simple_cnn_kernel(x4_ref, m1_ref, m2_ref, b1t_ref, b2t_ref, wf3_ref,
                       fb1_ref, w2fc_ref, fb2_ref, o_ref, h1_scr):
    f32 = jnp.float32
    bf16 = jnp.bfloat16

    # Zero the padded-h1 scratch every step (rows 0 and 8 act as conv2's zero
    # row padding; re-zeroed each step so "parallel" megacore sharding is safe).
    h1_scr[...] = jnp.zeros(h1_scr.shape, h1_scr.dtype)

    # ---- Stage 1: conv1(3x3, pad=1) + bias + ReLU + maxpool(2,2) -------------
    # Output h1 (14 x 14 x 32) is produced split by row parity rp, each half as
    # a (7, 512) slab whose lanes are (w_out+1)*32 + c  (one zero 32-lane block
    # on each side = conv2's column padding, already baked into M1/bias).
    b1t = b1t_ref[...]                                      # (1, 512) f32
    for rp in range(2):
        corner_max = None
        for dr in range(2):            # pool-window row offset
            for dc in range(2):        # pool-window col offset (baked into M1)
                acc = None
                for kh in range(3):    # conv kernel row tap
                    t = 2 * rp + dr + kh          # padded-input row phase index
                    p, q = t % 4, t // 4
                    lhs = x4_ref[0, p, q:q + 7, :]            # (7, 30*Cin) bf16
                    part = jnp.dot(lhs, m1_ref[dc, kh],
                                   preferred_element_type=f32)  # (7, 512)
                    acc = part if acc is None else acc + part
                corner_max = acc if corner_max is None else jnp.maximum(corner_max, acc)
        # relu(max_corners(conv) + b) == maxpool(relu(conv + b))  (monotone ReLU)
        h1_rp = jnp.maximum(corner_max + b1t, 0.0)            # (7, 512) f32
        h1_scr[rp, 1:8, :] = h1_rp.astype(bf16)               # rows 0/8 stay zero

    # ---- Stage 2: conv2(3x3, pad=1) + bias + ReLU + maxpool(2,2) -------------
    # Output h2 is (7, 448) with lanes = w_out*64 + c.
    b2t = b2t_ref[...]                                      # (1, 448) f32
    h2_max = None
    for dh in range(2):
        for dw in range(2):
            acc = None
            for kh in range(3):
                v = dh + kh - 1                  # offset into (padded) h1 rows
                rp_v, s_v = v % 2, 1 + (v // 2)  # parity / start row in scratch
                lhs = h1_scr[rp_v, s_v:s_v + 7, :]            # (7, 512) bf16
                part = jnp.dot(lhs, m2_ref[dw, kh],
                               preferred_element_type=f32)    # (7, 448)
                acc = part if acc is None else acc + part
            h2_max = acc if h2_max is None else jnp.maximum(h2_max, acc)
    h2 = jnp.maximum(h2_max + b2t, 0.0).astype(bf16)          # (7, 448)

    # ---- Stage 3: fc1 + ReLU + Dropout(eval) + fc2 ---------------------------
    # PyTorch's (c,h,w) flatten order is folded into wf3 packing, so no
    # transpose/reshape is needed here: y = sum_h  h2[h] @ wf3[h].
    # TODO(synk): Dropout(p=0.25) is inference-mode identity (no PRNG mask).
    y = None
    for h in range(7):
        part = jnp.dot(h2[h:h + 1, :], wf3_ref[h],
                       preferred_element_type=f32)            # (1, 128)
        y = part if y is None else y + part
    y = jnp.maximum(y + fb1_ref[...], 0.0).astype(bf16)       # (1, 128)
    logits = jnp.dot(y, w2fc_ref[...],
                     preferred_element_type=f32) + fb2_ref[...]  # (1, 128) f32
    o_ref[0, :, :] = logits


# ---------------------------------------------------------------------------
# Wrapper: JAX does only padding + row-phase reshape, then one pallas_call.
# ---------------------------------------------------------------------------
def simple_cnn_forward(kparams, x, num_classes=10):
    B, Cin = x.shape[0], x.shape[1]
    # NCHW -> padded rows (1 conv pad + 3 extra zero rows -> 32), 1+1 col pad,
    # channels folded into lanes, rows phase-split by 4: (B, 4, 8, 30*Cin).
    xp = jnp.pad(x.astype(jnp.float32), ((0, 0), (0, 0), (1, 3), (1, 1)))
    xl = jnp.transpose(xp, (0, 2, 3, 1)).reshape(B, 32, 30 * Cin)
    x4 = jnp.transpose(xl.reshape(B, 8, 4, 30 * Cin), (0, 2, 1, 3)).astype(jnp.bfloat16)

    out = pl.pallas_call(
        _simple_cnn_kernel,
        out_shape=jax.ShapeDtypeStruct((B, 1, NCLS_PAD), jnp.float32),
        grid=(B,),
        in_specs=[
            pl.BlockSpec((1, 4, 8, 30 * Cin), lambda i: (i, 0, 0, 0)),   # image
            pl.BlockSpec((2, 3, 30 * Cin, 512), lambda i: (0, 0, 0, 0)),  # M1
            pl.BlockSpec((2, 3, 512, 448), lambda i: (0, 0, 0, 0)),       # M2
            pl.BlockSpec((1, 512), lambda i: (0, 0)),                     # b1 tiled
            pl.BlockSpec((1, 448), lambda i: (0, 0)),                     # b2 tiled
            pl.BlockSpec((7, 448, 128), lambda i: (0, 0, 0)),             # fc1 w
            pl.BlockSpec((1, 128), lambda i: (0, 0)),                     # fc1 b
            pl.BlockSpec((128, 128), lambda i: (0, 0)),                   # fc2 w (padded)
            pl.BlockSpec((1, 128), lambda i: (0, 0)),                     # fc2 b (padded)
        ],
        out_specs=pl.BlockSpec((1, 1, NCLS_PAD), lambda i: (i, 0, 0)),
        scratch_shapes=[pltpu.VMEM((2, 9, 512), jnp.bfloat16)],           # padded h1
        compiler_params=pltpu.CompilerParams(
            dimension_semantics=("parallel",)),
    )(x4, kparams["m1"], kparams["m2"], kparams["b1t"], kparams["b2t"],
      kparams["wf3"], kparams["fb1"], kparams["w2fc"], kparams["fb2"])
    return out[:, 0, :num_classes]


# ---------------------------------------------------------------------------
# Parameter construction (synthetic init in PyTorch layout) + kernel packing.
# ---------------------------------------------------------------------------
def init_torch_params(key, input_channels=1, num_classes=10):
    ks = jax.random.split(key, 8)

    def he(k, shape, fan_in):
        return jax.random.normal(k, shape, jnp.float32) * jnp.sqrt(2.0 / fan_in)

    def unif(k, shape, fan_in):
        b = 1.0 / jnp.sqrt(fan_in)
        return jax.random.uniform(k, shape, jnp.float32, -b, b)

    p = {}
    p["conv1_w"] = he(ks[0], (32, input_channels, 3, 3), 9 * input_channels)
    p["conv1_b"] = unif(ks[1], (32,), 9 * input_channels)
    p["conv2_w"] = he(ks[2], (64, 32, 3, 3), 9 * 32)
    p["conv2_b"] = unif(ks[3], (64,), 9 * 32)
    p["fc1_w"] = he(ks[4], (128, 64 * 7 * 7), 64 * 7 * 7)
    p["fc1_b"] = unif(ks[5], (128,), 64 * 7 * 7)
    p["fc2_w"] = unif(ks[6], (num_classes, 128), 128)
    p["fc2_b"] = unif(ks[7], (num_classes,), 128)
    return p


def pack_params(tp, input_channels=1, num_classes=10):
    """Pack PyTorch-layout weights into the banded / permuted kernel layout."""
    f32, bf16 = jnp.float32, jnp.bfloat16
    rnd = lambda w: w.astype(bf16).astype(f32)   # bf16 rounding (MXU operands)
    Cin = input_channels

    # conv1 banded matrices M1[dc][kh]: (30*Cin, 512).
    #   M1[dc,kh][(2*wo+dc+kw)*Cin+ci, (wo+1)*32+co] = W1[co,ci,kh,kw]
    w1 = rnd(tp["conv1_w"])                                   # (32, Cin, 3, 3)
    xi = jnp.arange(30)[:, None]
    wi = jnp.arange(14)[None, :]

    def m1_block(dc, kh):
        sel = jnp.stack([(xi == 2 * wi + dc + kw).astype(f32) for kw in range(3)])
        m = jnp.einsum("kxw,ock->xcwo", sel, w1[:, :, kh, :])  # (30,Cin,14,32)
        m = m.reshape(30 * Cin, 14 * 32)
        return jnp.pad(m, ((0, 0), (32, 32)))                  # conv2 col-pad blocks

    m1 = jnp.stack([jnp.stack([m1_block(dc, kh) for kh in range(3)])
                    for dc in range(2)])

    # conv2 banded matrices M2[dw][kh]: (512, 448).
    #   M2[dw,kh][(2*j+dw+kw)*32+ci, j*64+co] = W2[co,ci,kh,kw]
    w2 = rnd(tp["conv2_w"])                                   # (64, 32, 3, 3)
    xi2 = jnp.arange(16)[:, None]
    wi2 = jnp.arange(7)[None, :]

    def m2_block(dw, kh):
        sel = jnp.stack([(xi2 == 2 * wi2 + dw + kw).astype(f32) for kw in range(3)])
        m = jnp.einsum("kxw,ock->xcwo", sel, w2[:, :, kh, :])  # (16,32,7,64)
        return m.reshape(512, 448)

    m2 = jnp.stack([jnp.stack([m2_block(dw, kh) for kh in range(3)])
                    for dw in range(2)])

    b1t = jnp.zeros((1, 512), f32).at[0, 32:480].set(jnp.tile(tp["conv1_b"], 14))
    b2t = jnp.tile(tp["conv2_b"], 7).reshape(1, 448)

    # fc1: fold PyTorch's (c,h,w) flatten order into the packing:
    #   wf3[h, w*64+c, n] = fc1_w[n, c*49 + h*7 + w]
    wf = rnd(tp["fc1_w"]).reshape(128, 64, 7, 7)              # (n, c, h, w)
    wf3 = jnp.transpose(wf, (2, 3, 1, 0)).reshape(7, 448, 128)
    fb1 = tp["fc1_b"].reshape(1, 128)

    # fc2: pad class dim to 128 lanes for a lane-dense final store.
    w2fc = jnp.zeros((128, NCLS_PAD), f32).at[:, :num_classes].set(rnd(tp["fc2_w"]).T)
    fb2 = jnp.zeros((1, NCLS_PAD), f32).at[0, :num_classes].set(tp["fc2_b"])

    return dict(m1=m1.astype(bf16), m2=m2.astype(bf16), b1t=b1t, b2t=b2t,
                wf3=wf3.astype(bf16), fb1=fb1, w2fc=w2fc.astype(bf16), fb2=fb2)


# ---------------------------------------------------------------------------
# Plain-JAX reference (same bf16 weight/input rounding) for a correctness check.
# ---------------------------------------------------------------------------
def reference_forward(tp, x, num_classes=10):
    f32, bf16 = jnp.float32, jnp.bfloat16
    rnd = lambda a: a.astype(bf16).astype(f32)
    xq = rnd(x)

    def conv_relu(h, w, b):
        y = jax.lax.conv_general_dilated(
            h, rnd(w), window_strides=(1, 1), padding=((1, 1), (1, 1)),
            dimension_numbers=("NCHW", "OIHW", "NCHW"))
        return jax.nn.relu(y + b.reshape(1, -1, 1, 1))

    def pool(h):
        return jax.lax.reduce_window(h, -jnp.inf, jax.lax.max,
                                     (1, 1, 2, 2), (1, 1, 2, 2), "VALID")

    h = pool(conv_relu(xq, tp["conv1_w"], tp["conv1_b"]))
    h = pool(conv_relu(h, tp["conv2_w"], tp["conv2_b"]))
    h = h.reshape(x.shape[0], -1)
    h = jax.nn.relu(h @ rnd(tp["fc1_w"]).T + tp["fc1_b"])
    return h @ rnd(tp["fc2_w"]).T + tp["fc2_b"]


if __name__ == "__main__":
    key = jax.random.PRNGKey(0)
    pkey, xkey = jax.random.split(key)
    num_classes, cin = 10, 1
    tparams = init_torch_params(pkey, cin, num_classes)
    kparams = pack_params(tparams, cin, num_classes)
    # Input implied by the module: Linear(64*7*7, ...) => 28x28, single channel.
    x = jax.random.normal(xkey, (2, cin, 28, 28), jnp.float32)

    fwd = jax.jit(simple_cnn_forward)
    logits = jax.block_until_ready(fwd(kparams, x))
    assert logits.shape == (2, num_classes), logits.shape
    assert bool(jnp.all(jnp.isfinite(logits)))

    ref = reference_forward(tparams, x, num_classes)
    err = float(jnp.max(jnp.abs(logits - ref.astype(jnp.float32))))
    assert err < 0.2, f"kernel vs reference mismatch: max abs err = {err}"
    print("KERNEL_OK")
</pallas_src>

<mosaic_0001>
module attributes {stable_mosaic.version = 11 : i64} {
  func.func @_simple_cnn_kernel(%arg0: i32, %arg1: memref<1x4x8x30xbf16, #tpu.memory_space<vmem>>, %arg2: memref<2x3x30x512xbf16, #tpu.memory_space<vmem>>, %arg3: memref<2x3x512x448xbf16, #tpu.memory_space<vmem>>, %arg4: memref<1x512xf32, #tpu.memory_space<vmem>>, %arg5: memref<1x448xf32, #tpu.memory_space<vmem>>, %arg6: memref<7x448x128xbf16, #tpu.memory_space<vmem>>, %arg7: memref<1x128xf32, #tpu.memory_space<vmem>>, %arg8: memref<128x128xbf16, #tpu.memory_space<vmem>>, %arg9: memref<1x128xf32, #tpu.memory_space<vmem>>, %arg10: memref<1x1x128xf32, #tpu.memory_space<vmem>>, %arg11: memref<2x9x512xbf16, #tpu.memory_space<vmem>>) attributes {dimension_semantics = [#tpu.dimension_semantics<parallel>], iteration_bounds = array<i64: 2>, scalar_prefetch = 0 : i64, scratch_operands = 1 : i64, tpu.core_type = #tpu.core_type<tc>, window_params = [{transform_indices = @transform_0, window_bounds = array<i64: 1, 4, 8, 30>}, {pipeline_mode = #tpu.pipeline_mode<synchronous>, transform_indices = @transform_1, window_bounds = array<i64: 2, 3, 30, 512>}, {pipeline_mode = #tpu.pipeline_mode<synchronous>, transform_indices = @transform_2, window_bounds = array<i64: 2, 3, 512, 448>}, {pipeline_mode = #tpu.pipeline_mode<synchronous>, transform_indices = @transform_3, window_bounds = array<i64: 1, 512>}, {pipeline_mode = #tpu.pipeline_mode<synchronous>, transform_indices = @transform_4, window_bounds = array<i64: 1, 448>}, {pipeline_mode = #tpu.pipeline_mode<synchronous>, transform_indices = @transform_5, window_bounds = array<i64: 7, 448, 128>}, {pipeline_mode = #tpu.pipeline_mode<synchronous>, transform_indices = @transform_6, window_bounds = array<i64: 1, 128>}, {pipeline_mode = #tpu.pipeline_mode<synchronous>, transform_indices = @transform_7, window_bounds = array<i64: 128, 128>}, {pipeline_mode = #tpu.pipeline_mode<synchronous>, transform_indices = @transform_8, window_bounds = array<i64: 1, 128>}, {transform_indices = @transform_9, window_bounds = array<i64: 1, 1, 128>}]} {
    %cst = arith.constant 0.000000e+00 : bf16
    %0 = vector.broadcast %cst : bf16 to vector<2x9x512xbf16>
    %c0 = arith.constant 0 : index
    %c0_0 = arith.constant 0 : index
    %c0_1 = arith.constant 0 : index
    %1 = vector.load %arg11[%c0, %c0_0, %c0_1] : memref<2x9x512xbf16, #tpu.memory_space<vmem>>, vector<2x9x512xbf16>
    tpu.vector_store %arg11[%c0, %c0_0, %c0_1], %0 {strides = array<i32>} : memref<2x9x512xbf16, #tpu.memory_space<vmem>>, vector<2x9x512xbf16>,
    %c0_2 = arith.constant 0 : index
    %c0_3 = arith.constant 0 : index
    %2 = vector.load %arg4[%c0_2, %c0_3] : memref<1x512xf32, #tpu.memory_space<vmem>>, vector<1x512xf32>
    %c0_4 = arith.constant 0 : index
    %c0_5 = arith.constant 0 : index
    %c0_6 = arith.constant 0 : index
    %c0_7 = arith.constant 0 : index
    %3 = vector.load %arg1[%c0_4, %c0_5, %c0_6, %c0_7] : memref<1x4x8x30xbf16, #tpu.memory_space<vmem>>, vector<1x1x7x30xbf16>
    %4 = vector.shape_cast %3 : vector<1x1x7x30xbf16> to vector<7x30xbf16>
    %c0_8 = arith.constant 0 : index
    %c0_9 = arith.constant 0 : index
    %c0_10 = arith.constant 0 : index
    %c0_11 = arith.constant 0 : index
    %5 = vector.load %arg2[%c0_8, %c0_9, %c0_10, %c0_11] : memref<2x3x30x512xbf16, #tpu.memory_space<vmem>>, vector<1x1x30x512xbf16>
    %6 = vector.shape_cast %5 : vector<1x1x30x512xbf16> to vector<30x512xbf16>
    %cst_12 = arith.constant dense<0.000000e+00> : vector<7x512xf32>
    %7 = tpu.matmul %4, %6, %cst_12 {dimension_numbers = #tpu.dot_dimension_numbers<[1], [0], [0], [1], [0, 0, 1, 1], [], []>} : vector<7x30xbf16>, vector<30x512xbf16>, vector<7x512xf32> -> vector<7x512xf32>
    %c0_13 = arith.constant 0 : index
    %c1 = arith.constant 1 : index
    %c0_14 = arith.constant 0 : index
    %c0_15 = arith.constant 0 : index
    %8 = vector.load %arg1[%c0_13, %c1, %c0_14, %c0_15] : memref<1x4x8x30xbf16, #tpu.memory_space<vmem>>, vector<1x1x7x30xbf16>
    %9 = vector.shape_cast %8 : vector<1x1x7x30xbf16> to vector<7x30xbf16>
    %c0_16 = arith.constant 0 : index
    %c1_17 = arith.constant 1 : index
    %c0_18 = arith.constant 0 : index
    %c0_19 = arith.constant 0 : index
    %10 = vector.load %arg2[%c0_16, %c1_17, %c0_18, %c0_19] : memref<2x3x30x512xbf16, #tpu.memory_space<vmem>>, vector<1x1x30x512xbf16>
    %11 = vector.shape_cast %10 : vector<1x1x30x512xbf16> to vector<30x512xbf16>
    %cst_20 = arith.constant dense<0.000000e+00> : vector<7x512xf32>
    %12 = tpu.matmul %9, %11, %cst_20 {dimension_numbers = #tpu.dot_dimension_numbers<[1], [0], [0], [1], [0, 0, 1, 1], [], []>} : vector<7x30xbf16>, vector<30x512xbf16>, vector<7x512xf32> -> vector<7x512xf32>
    %13 = arith.addf %7, %12 : vector<7x512xf32>
    %c0_21 = arith.constant 0 : index
    %c2 = arith.constant 2 : index
    %c0_22 = arith.constant 0 : index
    %c0_23 = arith.constant 0 : index
    %14 = vector.load %arg1[%c0_21, %c2, %c0_22, %c0_23] : memref<1x4x8x30xbf16, #tpu.memory_space<vmem>>, vector<1x1x7x30xbf16>
    %15 = vector.shape_cast %14 : vector<1x1x7x30xbf16> to vector<7x30xbf16>
    %c0_24 = arith.constant 0 : index
    %c2_25 = arith.constant 2 : index
    %c0_26 = arith.constant 0 : index
    %c0_27 = arith.constant 0 : index
    %16 = vector.load %arg2[%c0_24, %c2_25, %c0_26, %c0_27] : memref<2x3x30x512xbf16, #tpu.memory_space<vmem>>, vector<1x1x30x512xbf16>
    %17 = vector.shape_cast %16 : vector<1x1x30x512xbf16> to vector<30x512xbf16>
    %cst_28 = arith.constant dense<0.000000e+00> : vector<7x512xf32>
    %18 = tpu.matmul %15, %17, %cst_28 {dimension_numbers = #tpu.dot_dimension_numbers<[1], [0], [0], [1], [0, 0, 1, 1], [], []>} : vector<7x30xbf16>, vector<30x512xbf16>, vector<7x512xf32> -> vector<7x512xf32>
    %19 = arith.addf %13, %18 : vector<7x512xf32>
    %c0_29 = arith.constant 0 : index
    %c0_30 = arith.constant 0 : index
    %c0_31 = arith.constant 0 : index
    %c0_32 = arith.constant 0 : index
    %20 = vector.load %arg1[%c0_29, %c0_30, %c0_31, %c0_32] : memref<1x4x8x30xbf16, #tpu.memory_space<vmem>>, vector<1x1x7x30xbf16>
    %21 = vector.shape_cast %20 : vector<1x1x7x30xbf16> to vector<7x30xbf16>
    %c1_33 = arith.constant 1 : index
    %c0_34 = arith.constant 0 : index
    %c0_35 = arith.constant 0 : index
    %c0_36 = arith.constant 0 : index
    %22 = vector.load %arg2[%c1_33, %c0_34, %c0_35, %c0_36] : memref<2x3x30x512xbf16, #tpu.memory_space<vmem>>, vector<1x1x30x512xbf16>
    %23 = vector.shape_cast %22 : vector<1x1x30x512xbf16> to vector<30x512xbf16>
    %cst_37 = arith.constant dense<0.000000e+00> : vector<7x512xf32>
    %24 = tpu.matmul %21, %23, %cst_37 {dimension_numbers = #tpu.dot_dimension_numbers<[1], [0], [0], [1], [0, 0, 1, 1], [], []>} : vector<7x30xbf16>, vector<30x512xbf16>, vector<7x512xf32> -> vector<7x512xf32>
    %c0_38 = arith.constant 0 : index
    %c1_39 = arith.constant 1 : index
    %c0_40 = arith.constant 0 : index
    %c0_41 = arith.constant 0 : index
    %25 = vector.load %arg1[%c0_38, %c1_39, %c0_40, %c0_41] : memref<1x4x8x30xbf16, #tpu.memory_space<vmem>>, vector<1x1x7x30xbf16>
    %26 = vector.shape_cast %25 : vector<1x1x7x30xbf16> to vector<7x30xbf16>
    %c1_42 = arith.constant 1 : index
    %c1_43 = arith.constant 1 : index
    %c0_44 = arith.constant 0 : index
    %c0_45 = arith.constant 0 : index
    %27 = vector.load %arg2[%c1_42, %c1_43, %c0_44, %c0_45] : memref<2x3x30x512xbf16, #tpu.memory_space<vmem>>, vector<1x1x30x512xbf16>
    %28 = vector.shape_cast %27 : vector<1x1x30x512xbf16> to vector<30x512xbf16>
    %cst_46 = arith.constant dense<0.000000e+00> : vector<7x512xf32>
    %29 = tpu.matmul %26, %28, %cst_46 {dimension_numbers = #tpu.dot_dimension_numbers<[1], [0], [0], [1], [0, 0, 1, 1], [], []>} : vector<7x30xbf16>, vector<30x512xbf16>, vector<7x512xf32> -> vector<7x512xf32>
    %30 = arith.addf %24, %29 : vector<7x512xf32>
    %c0_47 = arith.constant 0 : index
    %c2_48 = arith.constant 2 : index
    %c0_49 = arith.constant 0 : index
    %c0_50 = arith.constant 0 : index
    %31 = vector.load %arg1[%c0_47, %c2_48, %c0_49, %c0_50] : memref<1x4x8x30xbf16, #tpu.memory_space<vmem>>, vector<1x1x7x30xbf16>
    %32 = vector.shape_cast %31 : vector<1x1x7x30xbf16> to vector<7x30xbf16>
    %c1_51 = arith.constant 1 : index
    %c2_52 = arith.constant 2 : index
    %c0_53 = arith.constant 0 : index
    %c0_54 = arith.constant 0 : index
    %33 = vector.load %arg2[%c1_51, %c2_52, %c0_53, %c0_54] : memref<2x3x30x512xbf16, #tpu.memory_space<vmem>>, vector<1x1x30x512xbf16>
    %34 = vector.shape_cast %33 : vector<1x1x30x512xbf16> to vector<30x512xbf16>
    %cst_55 = arith.constant dense<0.000000e+00> : vector<7x512xf32>
    %35 = tpu.matmul %32, %34, %cst_55 {dimension_numbers = #tpu.dot_dimension_numbers<[1], [0], [0], [1], [0, 0, 1, 1], [], []>} : vector<7x30xbf16>, vector<30x512xbf16>, vector<7x512xf32> -> vector<7x512xf32>
    %36 = arith.addf %30, %35 : vector<7x512xf32>
    %37 = arith.maximumf %19, %36 : vector<7x512xf32>
    %c0_56 = arith.constant 0 : index
    %c1_57 = arith.constant 1 : index
    %c0_58 = arith.constant 0 : index
    %c0_59 = arith.constant 0 : index
    %38 = vector.load %arg1[%c0_56, %c1_57, %c0_58, %c0_59] : memref<1x4x8x30xbf16, #tpu.memory_space<vmem>>, vector<1x1x7x30xbf16>
    %39 = vector.shape_cast %38 : vector<1x1x7x30xbf16> to vector<7x30xbf16>
    %c0_60 = arith.constant 0 : index
    %c0_61 = arith.constant 0 : index
    %c0_62 = arith.constant 0 : index
    %c0_63 = arith.constant 0 : index
    %40 = vector.load %arg2[%c0_60, %c0_61, %c0_62, %c0_63] : memref<2x3x30x512xbf16, #tpu.memory_space<vmem>>, vector<1x1x30x512xbf16>
    %41 = vector.shape_cast %40 : vector<1x1x30x512xbf16> to vector<30x512xbf16>
    %cst_64 = arith.constant dense<0.000000e+00> : vector<7x512xf32>
    %42 = tpu.matmul %39, %41, %cst_64 {dimension_numbers = #tpu.dot_dimension_numbers<[1], [0], [0], [1], [0, 0, 1, 1], [], []>} : vector<7x30xbf16>, vector<30x512xbf16>, vector<7x512xf32> -> vector<7x512xf32>
    %c0_65 = arith.constant 0 : index
    %c2_66 = arith.constant 2 : index
    %c0_67 = arith.constant 0 : index
    %c0_68 = arith.constant 0 : index
    %43 = vector.load %arg1[%c0_65, %c2_66, %c0_67, %c0_68] : memref<1x4x8x30xbf16, #tpu.memory_space<vmem>>, vector<1x1x7x30xbf16>
    %44 = vector.shape_cast %43 : vector<1x1x7x30xbf16> to vector<7x30xbf16>
    %c0_69 = arith.constant 0 : index
    %c1_70 = arith.constant 1 : index
    %c0_71 = arith.constant 0 : index
    %c0_72 = arith.constant 0 : index
    %45 = vector.load %arg2[%c0_69, %c1_70, %c0_71, %c0_72] : memref<2x3x30x512xbf16, #tpu.memory_space<vmem>>, vector<1x1x30x512xbf16>
    %46 = vector.shape_cast %45 : vector<1x1x30x512xbf16> to vector<30x512xbf16>
    %cst_73 = arith.constant dense<0.000000e+00> : vector<7x512xf32>
    %47 = tpu.matmul %44, %46, %cst_73 {dimension_numbers = #tpu.dot_dimension_numbers<[1], [0], [0], [1], [0, 0, 1, 1], [], []>} : vector<7x30xbf16>, vector<30x512xbf16>, vector<7x512xf32> -> vector<7x512xf32>
    %48 = arith.addf %42, %47 : vector<7x512xf32>
    %c0_74 = arith.constant 0 : index
    %c3 = arith.constant 3 : index
    %c0_75 = arith.constant 0 : index
    %c0_76 = arith.constant 0 : index
    %49 = vector.load %arg1[%c0_74, %c3, %c0_75, %c0_76] : memref<1x4x8x30xbf16, #tpu.memory_space<vmem>>, vector<1x1x7x30xbf16>
    %50 = vector.shape_cast %49 : vector<1x1x7x30xbf16> to vector<7x30xbf16>
    %c0_77 = arith.constant 0 : index
    %c2_78 = arith.constant 2 : index
    %c0_79 = arith.constant 0 : index
    %c0_80 = arith.constant 0 : index
    %51 = vector.load %arg2[%c0_77, %c2_78, %c0_79, %c0_80] : memref<2x3x30x512xbf16, #tpu.memory_space<vmem>>, vector<1x1x30x512xbf16>
    %52 = vector.shape_cast %51 : vector<1x1x30x512xbf16> to vector<30x512xbf16>
    %cst_81 = arith.constant dense<0.000000e+00> : vector<7x512xf32>
    %53 = tpu.matmul %50, %52, %cst_81 {dimension_numbers = #tpu.dot_dimension_numbers<[1], [0], [0], [1], [0, 0, 1, 1], [], []>} : vector<7x30xbf16>, vector<30x512xbf16>, vector<7x512xf32> -> vector<7x512xf32>
    %54 = arith.addf %48, %53 : vector<7x512xf32>
    %55 = arith.maximumf %37, %54 : vector<7x512xf32>
    %c0_82 = arith.constant 0 : index
    %c1_83 = arith.constant 1 : index
    %c0_84 = arith.constant 0 : index
    %c0_85 = arith.constant 0 : index
    %56 = vector.load %arg1[%c0_82, %c1_83, %c0_84, %c0_85] : memref<1x4x8x30xbf16, #tpu.memory_space<vmem>>, vector<1x1x7x30xbf16>
    %57 = vector.shape_cast %56 : vector<1x1x7x30xbf16> to vector<7x30xbf16>
    %c1_86 = arith.constant 1 : index
    %c0_87 = arith.constant 0 : index
    %c0_88 = arith.constant 0 : index
    %c0_89 = arith.constant 0 : index
    %58 = vector.load %arg2[%c1_86, %c0_87, %c0_88, %c0_89] : memref<2x3x30x512xbf16, #tpu.memory_space<vmem>>, vector<1x1x30x512xbf16>
    %59 = vector.shape_cast %58 : vector<1x1x30x512xbf16> to vector<30x512xbf16>
    %cst_90 = arith.constant dense<0.000000e+00> : vector<7x512xf32>
    %60 = tpu.matmul %57, %59, %cst_90 {dimension_numbers = #tpu.dot_dimension_numbers<[1], [0], [0], [1], [0, 0, 1, 1], [], []>} : vector<7x30xbf16>, vector<30x512xbf16>, vector<7x512xf32> -> vector<7x512xf32>
    %c0_91 = arith.constant 0 : index
    %c2_92 = arith.constant 2 : index
    %c0_93 = arith.constant 0 : index
    %c0_94 = arith.constant 0 : index
    %61 = vector.load %arg1[%c0_91, %c2_92, %c0_93, %c0_94] : memref<1x4x8x30xbf16, #tpu.memory_space<vmem>>, vector<1x1x7x30xbf16>
    %62 = vector.shape_cast %61 : vector<1x1x7x30xbf16> to vector<7x30xbf16>
    %c1_95 = arith.constant 1 : index
    %c1_96 = arith.constant 1 : index
    %c0_97 = arith.constant 0 : index
    %c0_98 = arith.constant 0 : index
    %63 = vector.load %arg2[%c1_95, %c1_96, %c0_97, %c0_98] : memref<2x3x30x512xbf16, #tpu.memory_space<vmem>>, vector<1x1x30x512xbf16>
    %64 = vector.shape_cast %63 : vector<1x1x30x512xbf16> to vector<30x512xbf16>
    %cst_99 = arith.constant dense<0.000000e+00> : vector<7x512xf32>
    %65 = tpu.matmul %62, %64, %cst_99 {dimension_numbers = #tpu.dot_dimension_numbers<[1], [0], [0], [1], [0, 0, 1, 1], [], []>} : vector<7x30xbf16>, vector<30x512xbf16>, vector<7x512xf32> -> vector<7x512xf32>
    %66 = arith.addf %60, %65 : vector<7x512xf32>
    %c0_100 = arith.constant 0 : index
    %c3_101 = arith.constant 3 : index
    %c0_102 = arith.constant 0 : index
    %c0_103 = arith.constant 0 : index
    %67 = vector.load %arg1[%c0_100, %c3_101, %c0_102, %c0_103] : memref<1x4x8x30xbf16, #tpu.memory_space<vmem>>, vector<1x1x7x30xbf16>
    %68 = vector.shape_cast %67 : vector<1x1x7x30xbf16> to vector<7x30xbf16>
    %c1_104 = arith.constant 1 : index
    %c2_105 = arith.constant 2 : index
    %c0_106 = arith.constant 0 : index
    %c0_107 = arith.constant 0 : index
    %69 = vector.load %arg2[%c1_104, %c2_105, %c0_106, %c0_107] : memref<2x3x30x512xbf16, #tpu.memory_space<vmem>>, vector<1x1x30x512xbf16>
    %70 = vector.shape_cast %69 : vector<1x1x30x512xbf16> to vector<30x512xbf16>
    %cst_108 = arith.constant dense<0.000000e+00> : vector<7x512xf32>
    %71 = tpu.matmul %68, %70, %cst_108 {dimension_numbers = #tpu.dot_dimension_numbers<[1], [0], [0], [1], [0, 0, 1, 1], [], []>} : vector<7x30xbf16>, vector<30x512xbf16>, vector<7x512xf32> -> vector<7x512xf32>
    %72 = arith.addf %66, %71 : vector<7x512xf32>
    %73 = arith.maximumf %55, %72 : vector<7x512xf32>
    %74 = vector.broadcast %2 : vector<1x512xf32> to vector<7x512xf32>
    %75 = arith.addf %73, %74 : vector<7x512xf32>
    %cst_109 = arith.constant 0.000000e+00 : f32
    %76 = vector.broadcast %cst_109 : f32 to vector<7x512xf32>
    %77 = arith.maximumf %75, %76 : vector<7x512xf32>
    %78 = arith.truncf %77 : vector<7x512xf32> to vector<7x512xbf16>
    %c0_110 = arith.constant 0 : index
    %c1_111 = arith.constant 1 : index
    %c0_112 = arith.constant 0 : index
    %79 = vector.load %arg11[%c0_110, %c1_111, %c0_112] : memref<2x9x512xbf16, #tpu.memory_space<vmem>>, vector<1x7x512xbf16>
    %80 = vector.shape_cast %79 : vector<1x7x512xbf16> to vector<7x512xbf16>
    %81 = vector.shape_cast %78 : vector<7x512xbf16> to vector<1x7x512xbf16>
    tpu.vector_store %arg11[%c0_110, %c1_111, %c0_112], %81 {strides = array<i32>} : memref<2x9x512xbf16, #tpu.memory_space<vmem>>, vector<1x7x512xbf16>,
    %c0_113 = arith.constant 0 : index
    %c2_114 = arith.constant 2 : index
    %c0_115 = arith.constant 0 : index
    %c0_116 = arith.constant 0 : index
    %82 = vector.load %arg1[%c0_113, %c2_114, %c0_115, %c0_116] : memref<1x4x8x30xbf16, #tpu.memory_space<vmem>>, vector<1x1x7x30xbf16>
    %83 = vector.shape_cast %82 : vector<1x1x7x30xbf16> to vector<7x30xbf16>
    %c0_117 = arith.constant 0 : index
    %c0_118 = arith.constant 0 : index
    %c0_119 = arith.constant 0 : index
    %c0_120 = arith.constant 0 : index
    %84 = vector.load %arg2[%c0_117, %c0_118, %c0_119, %c0_120] : memref<2x3x30x512xbf16, #tpu.memory_space<vmem>>, vector<1x1x30x512xbf16>
    %85 = vector.shape_cast %84 : vector<1x1x30x512xbf16> to vector<30x512xbf16>
    %cst_121 = arith.constant dense<0.000000e+00> : vector<7x512xf32>
    %86 = tpu.matmul %83, %85, %cst_121 {dimension_numbers = #tpu.dot_dimension_numbers<[1], [0], [0], [1], [0, 0, 1, 1], [], []>} : vector<7x30xbf16>, vector<30x512xbf16>, vector<7x512xf32> -> vector<7x512xf32>
    %c0_122 = arith.constant 0 : index
    %c3_123 = arith.constant 3 : index
    %c0_124 = arith.constant 0 : index
    %c0_125 = arith.constant 0 : index
    %87 = vector.load %arg1[%c0_122, %c3_123, %c0_124, %c0_125] : memref<1x4x8x30xbf16, #tpu.memory_space<vmem>>, vector<1x1x7x30xbf16>
    %88 = vector.shape_cast %87 : vector<1x1x7x30xbf16> to vector<7x30xbf16>
    %c0_126 = arith.constant 0 : index
    %c1_127 = arith.constant 1 : index
    %c0_128 = arith.constant 0 : index
    %c0_129 = arith.constant 0 : index
    %89 = vector.load %arg2[%c0_126, %c1_127, %c0_128, %c0_129] : memref<2x3x30x512xbf16, #tpu.memory_space<vmem>>, vector<1x1x30x512xbf16>
    %90 = vector.shape_cast %89 : vector<1x1x30x512xbf16> to vector<30x512xbf16>
    %cst_130 = arith.constant dense<0.000000e+00> : vector<7x512xf32>
    %91 = tpu.matmul %88, %90, %cst_130 {dimension_numbers = #tpu.dot_dimension_numbers<[1], [0], [0], [1], [0, 0, 1, 1], [], []>} : vector<7x30xbf16>, vector<30x512xbf16>, vector<7x512xf32> -> vector<7x512xf32>
    %92 = arith.addf %86, %91 : vector<7x512xf32>
    %c0_131 = arith.constant 0 : index
    %c0_132 = arith.constant 0 : index
    %c1_133 = arith.constant 1 : index
    %c0_134 = arith.constant 0 : index
    %93 = vector.load %arg1[%c0_131, %c0_132, %c1_133, %c0_134] : memref<1x4x8x30xbf16, #tpu.memory_space<vmem>>, vector<1x1x7x30xbf16>
    %94 = vector.shape_cast %93 : vector<1x1x7x30xbf16> to vector<7x30xbf16>
    %c0_135 = arith.constant 0 : index
    %c2_136 = arith.constant 2 : index
    %c0_137 = arith.constant 0 : index
    %c0_138 = arith.constant 0 : index
    %95 = vector.load %arg2[%c0_135, %c2_136, %c0_137, %c0_138] : memref<2x3x30x512xbf16, #tpu.memory_space<vmem>>, vector<1x1x30x512xbf16>
    %96 = vector.shape_cast %95 : vector<1x1x30x512xbf16> to vector<30x512xbf16>
    %cst_139 = arith.constant dense<0.000000e+00> : vector<7x512xf32>
    %97 = tpu.matmul %94, %96, %cst_139 {dimension_numbers = #tpu.dot_dimension_numbers<[1], [0], [0], [1], [0, 0, 1, 1], [], []>} : vector<7x30xbf16>, vector<30x512xbf16>, vector<7x512xf32> -> vector<7x512xf32>
    %98 = arith.addf %92, %97 : vector<7x512xf32>
    %c0_140 = arith.constant 0 : index
    %c2_141 = arith.constant 2 : index
    %c0_142 = arith.constant 0 : index
    %c0_143 = arith.constant 0 : index
    %99 = vector.load %arg1[%c0_140, %c2_141, %c0_142, %c0_143] : memref<1x4x8x30xbf16, #tpu.memory_space<vmem>>, vector<1x1x7x30xbf16>
    %100 = vector.shape_cast %99 : vector<1x1x7x30xbf16> to vector<7x30xbf16>
    %c1_144 = arith.constant 1 : index
    %c0_145 = arith.constant 0 : index
    %c0_146 = arith.constant 0 : index
    %c0_147 = arith.constant 0 : index
    %101 = vector.load %arg2[%c1_144, %c0_145, %c0_146, %c0_147] : memref<2x3x30x512xbf16, #tpu.memory_space<vmem>>, vector<1x1x30x512xbf16>
    %102 = vector.shape_cast %101 : vector<1x1x30x512xbf16> to vector<30x512xbf16>
    %cst_148 = arith.constant dense<0.000000e+00> : vector<7x512xf32>
    %103 = tpu.matmul %100, %102, %cst_148 {dimension_numbers = #tpu.dot_dimension_numbers<[1], [0], [0], [1], [0, 0, 1, 1], [], []>} : vector<7x30xbf16>, vector<30x512xbf16>, vector<7x512xf32> -> vector<7x512xf32>
    %c0_149 = arith.constant 0 : index
    %c3_150 = arith.constant 3 : index
    %c0_151 = arith.constant 0 : index
    %c0_152 = arith.constant 0 : index
    %104 = vector.load %arg1[%c0_149, %c3_150, %c0_151, %c0_152] : memref<1x4x8x30xbf16, #tpu.memory_space<vmem>>, vector<1x1x7x30xbf16>
    %105 = vector.shape_cast %104 : vector<1x1x7x30xbf16> to vector<7x30xbf16>
    %c1_153 = arith.constant 1 : index
    %c1_154 = arith.constant 1 : index
    %c0_155 = arith.constant 0 : index
    %c0_156 = arith.constant 0 : index
    %106 = vector.load %arg2[%c1_153, %c1_154, %c0_155, %c0_156] : memref<2x3x30x512xbf16, #tpu.memory_space<vmem>>, vector<1x1x30x512xbf16>
    %107 = vector.shape_cast %106 : vector<1x1x30x512xbf16> to vector<30x512xbf16>
    %cst_157 = arith.constant dense<0.000000e+00> : vector<7x512xf32>
    %108 = tpu.matmul %105, %107, %cst_157 {dimension_numbers = #tpu.dot_dimension_numbers<[1], [0], [0], [1], [0, 0, 1, 1], [], []>} : vector<7x30xbf16>, vector<30x512xbf16>, vector<7x512xf32> -> vector<7x512xf32>
    %109 = arith.addf %103, %108 : vector<7x512xf32>
    %c0_158 = arith.constant 0 : index
    %c0_159 = arith.constant 0 : index
    %c1_160 = arith.constant 1 : index
    %c0_161 = arith.constant 0 : index
    %110 = vector.load %arg1[%c0_158, %c0_159, %c1_160, %c0_161] : memref<1x4x8x30xbf16, #tpu.memory_space<vmem>>, vector<1x1x7x30xbf16>
    %111 = vector.shape_cast %110 : vector<1x1x7x30xbf16> to vector<7x30xbf16>
    %c1_162 = arith.constant 1 : index
    %c2_163 = arith.constant 2 : index
    %c0_164 = arith.constant 0 : index
    %c0_165 = arith.constant 0 : index
    %112 = vector.load %arg2[%c1_162, %c2_163, %c0_164, %c0_165] : memref<2x3x30x512xbf16, #tpu.memory_space<vmem>>, vector<1x1x30x512xbf16>
    %113 = vector.shape_cast %112 : vector<1x1x30x512xbf16> to vector<30x512xbf16>
    %cst_166 = arith.constant dense<0.000000e+00> : vector<7x512xf32>
    %114 = tpu.matmul %111, %113, %cst_166 {dimension_numbers = #tpu.dot_dimension_numbers<[1], [0], [0], [1], [0, 0, 1, 1], [], []>} : vector<7x30xbf16>, vector<30x512xbf16>, vector<7x512xf32> -> vector<7x512xf32>
    %115 = arith.addf %109, %114 : vector<7x512xf32>
    %116 = arith.maximumf %98, %115 : vector<7x512xf32>
    %c0_167 = arith.constant 0 : index
    %c3_168 = arith.constant 3 : index
    %c0_169 = arith.constant 0 : index
    %c0_170 = arith.constant 0 : index
    %117 = vector.load %arg1[%c0_167, %c3_168, %c0_169, %c0_170] : memref<1x4x8x30xbf16, #tpu.memory_space<vmem>>, vector<1x1x7x30xbf16>
    %118 = vector.shape_cast %117 : vector<1x1x7x30xbf16> to vector<7x30xbf16>
    %c0_171 = arith.constant 0 : index
    %c0_172 = arith.constant 0 : index
    %c0_173 = arith.constant 0 : index
    %c0_174 = arith.constant 0 : index
    %119 = vector.load %arg2[%c0_171, %c0_172, %c0_173, %c0_174] : memref<2x3x30x512xbf16, #tpu.memory_space<vmem>>, vector<1x1x30x512xbf16>
    %120 = vector.shape_cast %119 : vector<1x1x30x512xbf16> to vector<30x512xbf16>
    %cst_175 = arith.constant dense<0.000000e+00> : vector<7x512xf32>
    %121 = tpu.matmul %118, %120, %cst_175 {dimension_numbers = #tpu.dot_dimension_numbers<[1], [0], [0], [1], [0, 0, 1, 1], [], []>} : vector<7x30xbf16>, vector<30x512xbf16>, vector<7x512xf32> -> vector<7x512xf32>
    %c0_176 = arith.constant 0 : index
    %c0_177 = arith.constant 0 : index
    %c1_178 = arith.constant 1 : index
    %c0_179 = arith.constant 0 : index
    %122 = vector.load %arg1[%c0_176, %c0_177, %c1_178, %c0_179] : memref<1x4x8x30xbf16, #tpu.memory_space<vmem>>, vector<1x1x7x30xbf16>
    %123 = vector.shape_cast %122 : vector<1x1x7x30xbf16> to vector<7x30xbf16>
    %c0_180 = arith.constant 0 : index
    %c1_181 = arith.constant 1 : index
    %c0_182 = arith.constant 0 : index
    %c0_183 = arith.constant 0 : index
    %124 = vector.load %arg2[%c0_180, %c1_181, %c0_182, %c0_183] : memref<2x3x30x512xbf16, #tpu.memory_space<vmem>>, vector<1x1x30x512xbf16>
    %125 = vector.shape_cast %124 : vector<1x1x30x512xbf16> to vector<30x512xbf16>
    %cst_184 = arith.constant dense<0.000000e+00> : vector<7x512xf32>
    %126 = tpu.matmul %123, %125, %cst_184 {dimension_numbers = #tpu.dot_dimension_numbers<[1], [0], [0], [1], [0, 0, 1, 1], [], []>} : vector<7x30xbf16>, vector<30x512xbf16>, vector<7x512xf32> -> vector<7x512xf32>
    %127 = arith.addf %121, %126 : vector<7x512xf32>
    %c0_185 = arith.constant 0 : index
    %c1_186 = arith.constant 1 : index
    %c1_187 = arith.constant 1 : index
    %c0_188 = arith.constant 0 : index
    %128 = vector.load %arg1[%c0_185, %c1_186, %c1_187, %c0_188] : memref<1x4x8x30xbf16, #tpu.memory_space<vmem>>, vector<1x1x7x30xbf16>
    %129 = vector.shape_cast %128 : vector<1x1x7x30xbf16> to vector<7x30xbf16>
    %c0_189 = arith.constant 0 : index
    %c2_190 = arith.constant 2 : index
    %c0_191 = arith.constant 0 : index
    %c0_192 = arith.constant 0 : index
    %130 = vector.load %arg2[%c0_189, %c2_190, %c0_191, %c0_192] : memref<2x3x30x512xbf16, #tpu.memory_space<vmem>>, vector<1x1x30x512xbf16>
    %131 = vector.shape_cast %130 : vector<1x1x30x512xbf16> to vector<30x512xbf16>
    %cst_193 = arith.constant dense<0.000000e+00> : vector<7x512xf32>
    %132 = tpu.matmul %129, %131, %cst_193 {dimension_numbers = #tpu.dot_dimension_numbers<[1], [0], [0], [1], [0, 0, 1, 1], [], []>} : vector<7x30xbf16>, vector<30x512xbf16>, vector<7x512xf32> -> vector<7x512xf32>
    %133 = arith.addf %127, %132 : vector<7x512xf32>
    %134 = arith.maximumf %116, %133 : vector<7x512xf32>
    %c0_194 = arith.constant 0 : index
    %c3_195 = arith.constant 3 : index
    %c0_196 = arith.constant 0 : index
    %c0_197 = arith.constant 0 : index
    %135 = vector.load %arg1[%c0_194, %c3_195, %c0_196, %c0_197] : memref<1x4x8x30xbf16, #tpu.memory_space<vmem>>, vector<1x1x7x30xbf16>
    %136 = vector.shape_cast %135 : vector<1x1x7x30xbf16> to vector<7x30xbf16>
    %c1_198 = arith.constant 1 : index
    %c0_199 = arith.constant 0 : index
    %c0_200 = arith.constant 0 : index
    %c0_201 = arith.constant 0 : index
    %137 = vector.load %arg2[%c1_198, %c0_199, %c0_200, %c0_201] : memref<2x3x30x512xbf16, #tpu.memory_space<vmem>>, vector<1x1x30x512xbf16>
    %138 = vector.shape_cast %137 : vector<1x1x30x512xbf16> to vector<30x512xbf16>
    %cst_202 = arith.constant dense<0.000000e+00> : vector<7x512xf32>
    %139 = tpu.matmul %136, %138, %cst_202 {dimension_numbers = #tpu.dot_dimension_numbers<[1], [0], [0], [1], [0, 0, 1, 1], [], []>} : vector<7x30xbf16>, vector<30x512xbf16>, vector<7x512xf32> -> vector<7x512xf32>
    %c0_203 = arith.constant 0 : index
    %c0_204 = arith.constant 0 : index
    %c1_205 = arith.constant 1 : index
    %c0_206 = arith.constant 0 : index
    %140 = vector.load %arg1[%c0_203, %c0_204, %c1_205, %c0_206] : memref<1x4x8x30xbf16, #tpu.memory_space<vmem>>, vector<1x1x7x30xbf16>
    %141 = vector.shape_cast %140 : vector<1x1x7x30xbf16> to vector<7x30xbf16>
    %c1_207 = arith.constant 1 : index
    %c1_208 = arith.constant 1 : index
    %c0_209 = arith.constant 0 : index
    %c0_210 = arith.constant 0 : index
    %142 = vector.load %arg2[%c1_207, %c1_208, %c0_209, %c0_210] : memref<2x3x30x512xbf16, #tpu.memory_space<vmem>>, vector<1x1x30x512xbf16>
    %143 = vector.shape_cast %142 : vector<1x1x30x512xbf16> to vector<30x512xbf16>
    %cst_211 = arith.constant dense<0.000000e+00> : vector<7x512xf32>
    %144 = tpu.matmul %141, %143, %cst_211 {dimension_numbers = #tpu.dot_dimension_numbers<[1], [0], [0], [1], [0, 0, 1, 1], [], []>} : vector<7x30xbf16>, vector<30x512xbf16>, vector<7x512xf32> -> vector<7x512xf32>
    %145 = arith.addf %139, %144 : vector<7x512xf32>
    %c0_212 = arith.constant 0 : index
    %c1_213 = arith.constant 1 : index
    %c1_214 = arith.constant 1 : index
    %c0_215 = arith.constant 0 : index
    %146 = vector.load %arg1[%c0_212, %c1_213, %c1_214, %c0_215] : memref<1x4x8x30xbf16, #tpu.memory_space<vmem>>, vector<1x1x7x30xbf16>
    %147 = vector.shape_cast %146 : vector<1x1x7x30xbf16> to vector<7x30xbf16>
    %c1_216 = arith.constant 1 : index
    %c2_217 = arith.constant 2 : index
    %c0_218 = arith.constant 0 : index
    %c0_219 = arith.constant 0 : index
    %148 = vector.load %arg2[%c1_216, %c2_217, %c0_218, %c0_219] : memref<2x3x30x512xbf16, #tpu.memory_space<vmem>>, vector<1x1x30x512xbf16>
    %149 = vector.shape_cast %148 : vector<1x1x30x512xbf16> to vector<30x512xbf16>
    %cst_220 = arith.constant dense<0.000000e+00> : vector<7x512xf32>
    %150 = tpu.matmul %147, %149, %cst_220 {dimension_numbers = #tpu.dot_dimension_numbers<[1], [0], [0], [1], [0, 0, 1, 1], [], []>} : vector<7x30xbf16>, vector<30x512xbf16>, vector<7x512xf32> -> vector<7x512xf32>
    %151 = arith.addf %145, %150 : vector<7x512xf32>
    %152 = arith.maximumf %134, %151 : vector<7x512xf32>
    %153 = vector.broadcast %2 : vector<1x512xf32> to vector<7x512xf32>
    %154 = arith.addf %152, %153 : vector<7x512xf32>
    %cst_221 = arith.constant 0.000000e+00 : f32
    %155 = vector.broadcast %cst_221 : f32 to vector<7x512xf32>
    %156 = arith.maximumf %154, %155 : vector<7x512xf32>
    %157 = arith.truncf %156 : vector<7x512xf32> to vector<7x512xbf16>
    %c1_222 = arith.constant 1 : index
    %c1_223 = arith.constant 1 : index
    %c0_224 = arith.constant 0 : index
    %158 = vector.load %arg11[%c1_222, %c1_223, %c0_224] : memref<2x9x512xbf16, #tpu.memory_space<vmem>>, vector<1x7x512xbf16>
    %159 = vector.shape_cast %158 : vector<1x7x512xbf16> to vector<7x512xbf16>
    %160 = vector.shape_cast %157 : vector<7x512xbf16> to vector<1x7x512xbf16>
    tpu.vector_store %arg11[%c1_222, %c1_223, %c0_224], %160 {strides = array<i32>} : memref<2x9x512xbf16, #tpu.memory_space<vmem>>, vector<1x7x512xbf16>,
    %c0_225 = arith.constant 0 : index
    %c0_226 = arith.constant 0 : index
    %161 = vector.load %arg5[%c0_225, %c0_226] : memref<1x448xf32, #tpu.memory_space<vmem>>, vector<1x448xf32>
    %c1_227 = arith.constant 1 : index
    %c0_228 = arith.constant 0 : index
    %c0_229 = arith.constant 0 : index
    %162 = vector.load %arg11[%c1_227, %c0_228, %c0_229] : memref<2x9x512xbf16, #tpu.memory_space<vmem>>, vector<1x7x512xbf16>
    %163 = vector.shape_cast %162 : vector<1x7x512xbf16> to vector<7x512xbf16>
    %c0_230 = arith.constant 0 : index
    %c0_231 = arith.constant 0 : index
    %c0_232 = arith.constant 0 : index
    %c0_233 = arith.constant 0 : index
    %164 = vector.load %arg3[%c0_230, %c0_231, %c0_232, %c0_233] : memref<2x3x512x448xbf16, #tpu.memory_space<vmem>>, vector<1x1x512x448xbf16>
    %165 = vector.shape_cast %164 : vector<1x1x512x448xbf16> to vector<512x448xbf16>
    %cst_234 = arith.constant dense<0.000000e+00> : vector<7x448xf32>
    %166 = tpu.matmul %163, %165, %cst_234 {dimension_numbers = #tpu.dot_dimension_numbers<[1], [0], [0], [1], [0, 0, 1, 1], [], []>} : vector<7x512xbf16>, vector<512x448xbf16>, vector<7x448xf32> -> vector<7x448xf32>
    %c0_235 = arith.constant 0 : index
    %c1_236 = arith.constant 1 : index
    %c0_237 = arith.constant 0 : index
    %167 = vector.load %arg11[%c0_235, %c1_236, %c0_237] : memref<2x9x512xbf16, #tpu.memory_space<vmem>>, vector<1x7x512xbf16>
    %168 = vector.shape_cast %167 : vector<1x7x512xbf16> to vector<7x512xbf16>
    %c0_238 = arith.constant 0 : index
    %c1_239 = arith.constant 1 : index
    %c0_240 = arith.constant 0 : index
    %c0_241 = arith.constant 0 : index
    %169 = vector.load %arg3[%c0_238, %c1_239, %c0_240, %c0_241] : memref<2x3x512x448xbf16, #tpu.memory_space<vmem>>, vector<1x1x512x448xbf16>
    %170 = vector.shape_cast %169 : vector<1x1x512x448xbf16> to vector<512x448xbf16>
    %cst_242 = arith.constant dense<0.000000e+00> : vector<7x448xf32>
    %171 = tpu.matmul %168, %170, %cst_242 {dimension_numbers = #tpu.dot_dimension_numbers<[1], [0], [0], [1], [0, 0, 1, 1], [], []>} : vector<7x512xbf16>, vector<512x448xbf16>, vector<7x448xf32> -> vector<7x448xf32>
    %172 = arith.addf %166, %171 : vector<7x448xf32>
    %c1_243 = arith.constant 1 : index
    %c1_244 = arith.constant 1 : index
    %c0_245 = arith.constant 0 : index
    %173 = vector.load %arg11[%c1_243, %c1_244, %c0_245] : memref<2x9x512xbf16, #tpu.memory_space<vmem>>, vector<1x7x512xbf16>
    %174 = vector.shape_cast %173 : vector<1x7x512xbf16> to vector<7x512xbf16>
    %c0_246 = arith.constant 0 : index
    %c2_247 = arith.constant 2 : index
    %c0_248 = arith.constant 0 : index
    %c0_249 = arith.constant 0 : index
    %175 = vector.load %arg3[%c0_246, %c2_247, %c0_248, %c0_249] : memref<2x3x512x448xbf16, #tpu.memory_space<vmem>>, vector<1x1x512x448xbf16>
    %176 = vector.shape_cast %175 : vector<1x1x512x448xbf16> to vector<512x448xbf16>
    %cst_250 = arith.constant dense<0.000000e+00> : vector<7x448xf32>
    %177 = tpu.matmul %174, %176, %cst_250 {dimension_numbers = #tpu.dot_dimension_numbers<[1], [0], [0], [1], [0, 0, 1, 1], [], []>} : vector<7x512xbf16>, vector<512x448xbf16>, vector<7x448xf32> -> vector<7x448xf32>
    %178 = arith.addf %172, %177 : vector<7x448xf32>
    %c1_251 = arith.constant 1 : index
    %c0_252 = arith.constant 0 : index
    %c0_253 = arith.constant 0 : index
    %179 = vector.load %arg11[%c1_251, %c0_252, %c0_253] : memref<2x9x512xbf16, #tpu.memory_space<vmem>>, vector<1x7x512xbf16>
    %180 = vector.shape_cast %179 : vector<1x7x512xbf16> to vector<7x512xbf16>
    %c1_254 = arith.constant 1 : index
    %c0_255 = arith.constant 0 : index
    %c0_256 = arith.constant 0 : index
    %c0_257 = arith.constant 0 : index
    %181 = vector.load %arg3[%c1_254, %c0_255, %c0_256, %c0_257] : memref<2x3x512x448xbf16, #tpu.memory_space<vmem>>, vector<1x1x512x448xbf16>
    %182 = vector.shape_cast %181 : vector<1x1x512x448xbf16> to vector<512x448xbf16>
    %cst_258 = arith.constant dense<0.000000e+00> : vector<7x448xf32>
    %183 = tpu.matmul %180, %182, %cst_258 {dimension_numbers = #tpu.dot_dimension_numbers<[1], [0], [0], [1], [0, 0, 1, 1], [], []>} : vector<7x512xbf16>, vector<512x448xbf16>, vector<7x448xf32> -> vector<7x448xf32>
    %c0_259 = arith.constant 0 : index
    %c1_260 = arith.constant 1 : index
    %c0_261 = arith.constant 0 : index
    %184 = vector.load %arg11[%c0_259, %c1_260, %c0_261] : memref<2x9x512xbf16, #tpu.memory_space<vmem>>, vector<1x7x512xbf16>
    %185 = vector.shape_cast %184 : vector<1x7x512xbf16> to vector<7x512xbf16>
    %c1_262 = arith.constant 1 : index
    %c1_263 = arith.constant 1 : index
    %c0_264 = arith.constant 0 : index
    %c0_265 = arith.constant 0 : index
    %186 = vector.load %arg3[%c1_262, %c1_263, %c0_264, %c0_265] : memref<2x3x512x448xbf16, #tpu.memory_space<vmem>>, vector<1x1x512x448xbf16>
    %187 = vector.shape_cast %186 : vector<1x1x512x448xbf16> to vector<512x448xbf16>
    %cst_266 = arith.constant dense<0.000000e+00> : vector<7x448xf32>
    %188 = tpu.matmul %185, %187, %cst_266 {dimension_numbers = #tpu.dot_dimension_numbers<[1], [0], [0], [1], [0, 0, 1, 1], [], []>} : vector<7x512xbf16>, vector<512x448xbf16>, vector<7x448xf32> -> vector<7x448xf32>
    %189 = arith.addf %183, %188 : vector<7x448xf32>
    %c1_267 = arith.constant 1 : index
    %c1_268 = arith.constant 1 : index
    %c0_269 = arith.constant 0 : index
    %190 = vector.load %arg11[%c1_267, %c1_268, %c0_269] : memref<2x9x512xbf16, #tpu.memory_space<vmem>>, vector<1x7x512xbf16>
    %191 = vector.shape_cast %190 : vector<1x7x512xbf16> to vector<7x512xbf16>
    %c1_270 = arith.constant 1 : index
    %c2_271 = arith.constant 2 : index
    %c0_272 = arith.constant 0 : index
    %c0_273 = arith.constant 0 : index
    %192 = vector.load %arg3[%c1_270, %c2_271, %c0_272, %c0_273] : memref<2x3x512x448xbf16, #tpu.memory_space<vmem>>, vector<1x1x512x448xbf16>
    %193 = vector.shape_cast %192 : vector<1x1x512x448xbf16> to vector<512x448xbf16>
    %cst_274 = arith.constant dense<0.000000e+00> : vector<7x448xf32>
    %194 = tpu.matmul %191, %193, %cst_274 {dimension_numbers = #tpu.dot_dimension_numbers<[1], [0], [0], [1], [0, 0, 1, 1], [], []>} : vector<7x512xbf16>, vector<512x448xbf16>, vector<7x448xf32> -> vector<7x448xf32>
    %195 = arith.addf %189, %194 : vector<7x448xf32>
    %196 = arith.maximumf %178, %195 : vector<7x448xf32>
    %c0_275 = arith.constant 0 : index
    %c1_276 = arith.constant 1 : index
    %c0_277 = arith.constant 0 : index
    %197 = vector.load %arg11[%c0_275, %c1_276, %c0_277] : memref<2x9x512xbf16, #tpu.memory_space<vmem>>, vector<1x7x512xbf16>
    %198 = vector.shape_cast %197 : vector<1x7x512xbf16> to vector<7x512xbf16>
    %c0_278 = arith.constant 0 : index
    %c0_279 = arith.constant 0 : index
    %c0_280 = arith.constant 0 : index
    %c0_281 = arith.constant 0 : index
    %199 = vector.load %arg3[%c0_278, %c0_279, %c0_280, %c0_281] : memref<2x3x512x448xbf16, #tpu.memory_space<vmem>>, vector<1x1x512x448xbf16>
    %200 = vector.shape_cast %199 : vector<1x1x512x448xbf16> to vector<512x448xbf16>
    %cst_282 = arith.constant dense<0.000000e+00> : vector<7x448xf32>
    %201 = tpu.matmul %198, %200, %cst_282 {dimension_numbers = #tpu.dot_dimension_numbers<[1], [0], [0], [1], [0, 0, 1, 1], [], []>} : vector<7x512xbf16>, vector<512x448xbf16>, vector<7x448xf32> -> vector<7x448xf32>
    %c1_283 = arith.constant 1 : index
    %c1_284 = arith.constant 1 : index
    %c0_285 = arith.constant 0 : index
    %202 = vector.load %arg11[%c1_283, %c1_284, %c0_285] : memref<2x9x512xbf16, #tpu.memory_space<vmem>>, vector<1x7x512xbf16>
    %203 = vector.shape_cast %202 : vector<1x7x512xbf16> to vector<7x512xbf16>
    %c0_286 = arith.constant 0 : index
    %c1_287 = arith.constant 1 : index
    %c0_288 = arith.constant 0 : index
    %c0_289 = arith.constant 0 : index
    %204 = vector.load %arg3[%c0_286, %c1_287, %c0_288, %c0_289] : memref<2x3x512x448xbf16, #tpu.memory_space<vmem>>, vector<1x1x512x448xbf16>
    %205 = vector.shape_cast %204 : vector<1x1x512x448xbf16> to vector<512x448xbf16>
    %cst_290 = arith.constant dense<0.000000e+00> : vector<7x448xf32>
    %206 = tpu.matmul %203, %205, %cst_290 {dimension_numbers = #tpu.dot_dimension_numbers<[1], [0], [0], [1], [0, 0, 1, 1], [], []>} : vector<7x512xbf16>, vector<512x448xbf16>, vector<7x448xf32> -> vector<7x448xf32>
    %207 = arith.addf %201, %206 : vector<7x448xf32>
    %c0_291 = arith.constant 0 : index
    %c2_292 = arith.constant 2 : index
    %c0_293 = arith.constant 0 : index
    %208 = vector.load %arg11[%c0_291, %c2_292, %c0_293] : memref<2x9x512xbf16, #tpu.memory_space<vmem>>, vector<1x7x512xbf16>
    %209 = vector.shape_cast %208 : vector<1x7x512xbf16> to vector<7x512xbf16>
    %c0_294 = arith.constant 0 : index
    %c2_295 = arith.constant 2 : index
    %c0_296 = arith.constant 0 : index
    %c0_297 = arith.constant 0 : index
    %210 = vector.load %arg3[%c0_294, %c2_295, %c0_296, %c0_297] : memref<2x3x512x448xbf16, #tpu.memory_space<vmem>>, vector<1x1x512x448xbf16>
    %211 = vector.shape_cast %210 : vector<1x1x512x448xbf16> to vector<512x448xbf16>
    %cst_298 = arith.constant dense<0.000000e+00> : vector<7x448xf32>
    %212 = tpu.matmul %209, %211, %cst_298 {dimension_numbers = #tpu.dot_dimension_numbers<[1], [0], [0], [1], [0, 0, 1, 1], [], []>} : vector<7x512xbf16>, vector<512x448xbf16>, vector<7x448xf32> -> vector<7x448xf32>
    %213 = arith.addf %207, %212 : vector<7x448xf32>
    %214 = arith.maximumf %196, %213 : vector<7x448xf32>
    %c0_299 = arith.constant 0 : index
    %c1_300 = arith.constant 1 : index
    %c0_301 = arith.constant 0 : index
    %215 = vector.load %arg11[%c0_299, %c1_300, %c0_301] : memref<2x9x512xbf16, #tpu.memory_space<vmem>>, vector<1x7x512xbf16>
    %216 = vector.shape_cast %215 : vector<1x7x512xbf16> to vector<7x512xbf16>
    %c1_302 = arith.constant 1 : index
    %c0_303 = arith.constant 0 : index
    %c0_304 = arith.constant 0 : index
    %c0_305 = arith.constant 0 : index
    %217 = vector.load %arg3[%c1_302, %c0_303, %c0_304, %c0_305] : memref<2x3x512x448xbf16, #tpu.memory_space<vmem>>, vector<1x1x512x448xbf16>
    %218 = vector.shape_cast %217 : vector<1x1x512x448xbf16> to vector<512x448xbf16>
    %cst_306 = arith.constant dense<0.000000e+00> : vector<7x448xf32>
    %219 = tpu.matmul %216, %218, %cst_306 {dimension_numbers = #tpu.dot_dimension_numbers<[1], [0], [0], [1], [0, 0, 1, 1], [], []>} : vector<7x512xbf16>, vector<512x448xbf16>, vector<7x448xf32> -> vector<7x448xf32>
    %c1_307 = arith.constant 1 : index
    %c1_308 = arith.constant 1 : index
    %c0_309 = arith.constant 0 : index
    %220 = vector.load %arg11[%c1_307, %c1_308, %c0_309] : memref<2x9x512xbf16, #tpu.memory_space<vmem>>, vector<1x7x512xbf16>
    %221 = vector.shape_cast %220 : vector<1x7x512xbf16> to vector<7x512xbf16>
    %c1_310 = arith.constant 1 : index
    %c1_311 = arith.constant 1 : index
    %c0_312 = arith.constant 0 : index
    %c0_313 = arith.constant 0 : index
    %222 = vector.load %arg3[%c1_310, %c1_311, %c0_312, %c0_313] : memref<2x3x512x448xbf16, #tpu.memory_space<vmem>>, vector<1x1x512x448xbf16>
    %223 = vector.shape_cast %222 : vector<1x1x512x448xbf16> to vector<512x448xbf16>
    %cst_314 = arith.constant dense<0.000000e+00> : vector<7x448xf32>
    %224 = tpu.matmul %221, %223, %cst_314 {dimension_numbers = #tpu.dot_dimension_numbers<[1], [0], [0], [1], [0, 0, 1, 1], [], []>} : vector<7x512xbf16>, vector<512x448xbf16>, vector<7x448xf32> -> vector<7x448xf32>
    %225 = arith.addf %219, %224 : vector<7x448xf32>
    %c0_315 = arith.constant 0 : index
    %c2_316 = arith.constant 2 : index
    %c0_317 = arith.constant 0 : index
    %226 = vector.load %arg11[%c0_315, %c2_316, %c0_317] : memref<2x9x512xbf16, #tpu.memory_space<vmem>>, vector<1x7x512xbf16>
    %227 = vector.shape_cast %226 : vector<1x7x512xbf16> to vector<7x512xbf16>
    %c1_318 = arith.constant 1 : index
    %c2_319 = arith.constant 2 : index
    %c0_320 = arith.constant 0 : index
    %c0_321 = arith.constant 0 : index
    %228 = vector.load %arg3[%c1_318, %c2_319, %c0_320, %c0_321] : memref<2x3x512x448xbf16, #tpu.memory_space<vmem>>, vector<1x1x512x448xbf16>
    %229 = vector.shape_cast %228 : vector<1x1x512x448xbf16> to vector<512x448xbf16>
    %cst_322 = arith.constant dense<0.000000e+00> : vector<7x448xf32>
    %230 = tpu.matmul %227, %229, %cst_322 {dimension_numbers = #tpu.dot_dimension_numbers<[1], [0], [0], [1], [0, 0, 1, 1], [], []>} : vector<7x512xbf16>, vector<512x448xbf16>, vector<7x448xf32> -> vector<7x448xf32>
    %231 = arith.addf %225, %230 : vector<7x448xf32>
    %232 = arith.maximumf %214, %231 : vector<7x448xf32>
    %233 = vector.broadcast %161 : vector<1x448xf32> to vector<7x448xf32>
    %234 = arith.addf %232, %233 : vector<7x448xf32>
    %cst_323 = arith.constant 0.000000e+00 : f32
    %235 = vector.broadcast %cst_323 : f32 to vector<7x448xf32>
    %236 = arith.maximumf %234, %235 : vector<7x448xf32>
    %237 = arith.truncf %236 : vector<7x448xf32> to vector<7x448xbf16>
    %238 = vector.extract_strided_slice %237 {offsets = [0, 0], sizes = [1, 448], strides = [1, 1]} : vector<7x448xbf16> to vector<1x448xbf16>
    %c0_324 = arith.constant 0 : index
    %c0_325 = arith.constant 0 : index
    %c0_326 = arith.constant 0 : index
    %239 = vector.load %arg6[%c0_324, %c0_325, %c0_326] : memref<7x448x128xbf16, #tpu.memory_space<vmem>>, vector<1x448x128xbf16>
    %240 = vector.shape_cast %239 : vector<1x448x128xbf16> to vector<448x128xbf16>
    %cst_327 = arith.constant dense<0.000000e+00> : vector<1x128xf32>
    %241 = tpu.matmul %238, %240, %cst_327 {dimension_numbers = #tpu.dot_dimension_numbers<[1], [0], [0], [1], [0, 0, 1, 1], [], []>} : vector<1x448xbf16>, vector<448x128xbf16>, vector<1x128xf32> -> vector<1x128xf32>
    %242 = vector.extract_strided_slice %237 {offsets = [1, 0], sizes = [1, 448], strides = [1, 1]} : vector<7x448xbf16> to vector<1x448xbf16>
    %c1_328 = arith.constant 1 : index
    %c0_329 = arith.constant 0 : index
    %c0_330 = arith.constant 0 : index
    %243 = vector.load %arg6[%c1_328, %c0_329, %c0_330] : memref<7x448x128xbf16, #tpu.memory_space<vmem>>, vector<1x448x128xbf16>
    %244 = vector.shape_cast %243 : vector<1x448x128xbf16> to vector<448x128xbf16>
    %cst_331 = arith.constant dense<0.000000e+00> : vector<1x128xf32>
    %245 = tpu.matmul %242, %244, %cst_331 {dimension_numbers = #tpu.dot_dimension_numbers<[1], [0], [0], [1], [0, 0, 1, 1], [], []>} : vector<1x448xbf16>, vector<448x128xbf16>, vector<1x128xf32> -> vector<1x128xf32>
    %246 = arith.addf %241, %245 : vector<1x128xf32>
    %247 = vector.extract_strided_slice %237 {offsets = [2, 0], sizes = [1, 448], strides = [1, 1]} : vector<7x448xbf16> to vector<1x448xbf16>
    %c2_332 = arith.constant 2 : index
    %c0_333 = arith.constant 0 : index
    %c0_334 = arith.constant 0 : index
    %248 = vector.load %arg6[%c2_332, %c0_333, %c0_334] : memref<7x448x128xbf16, #tpu.memory_space<vmem>>, vector<1x448x128xbf16>
    %249 = vector.shape_cast %248 : vector<1x448x128xbf16> to vector<448x128xbf16>
    %cst_335 = arith.constant dense<0.000000e+00> : vector<1x128xf32>
    %250 = tpu.matmul %247, %249, %cst_335 {dimension_numbers = #tpu.dot_dimension_numbers<[1], [0], [0], [1], [0, 0, 1, 1], [], []>} : vector<1x448xbf16>, vector<448x128xbf16>, vector<1x128xf32> -> vector<1x128xf32>
    %251 = arith.addf %246, %250 : vector<1x128xf32>
    %252 = vector.extract_strided_slice %237 {offsets = [3, 0], sizes = [1, 448], strides = [1, 1]} : vector<7x448xbf16> to vector<1x448xbf16>
    %c3_336 = arith.constant 3 : index
    %c0_337 = arith.constant 0 : index
    %c0_338 = arith.constant 0 : index
    %253 = vector.load %arg6[%c3_336, %c0_337, %c0_338] : memref<7x448x128xbf16, #tpu.memory_space<vmem>>, vector<1x448x128xbf16>
    %254 = vector.shape_cast %253 : vector<1x448x128xbf16> to vector<448x128xbf16>
    %cst_339 = arith.constant dense<0.000000e+00> : vector<1x128xf32>
    %255 = tpu.matmul %252, %254, %cst_339 {dimension_numbers = #tpu.dot_dimension_numbers<[1], [0], [0], [1], [0, 0, 1, 1], [], []>} : vector<1x448xbf16>, vector<448x128xbf16>, vector<1x128xf32> -> vector<1x128xf32>
    %256 = arith.addf %251, %255 : vector<1x128xf32>
    %257 = vector.extract_strided_slice %237 {offsets = [4, 0], sizes = [1, 448], strides = [1, 1]} : vector<7x448xbf16> to vector<1x448xbf16>
    %c4 = arith.constant 4 : index
    %c0_340 = arith.constant 0 : index
    %c0_341 = arith.constant 0 : index
    %258 = vector.load %arg6[%c4, %c0_340, %c0_341] : memref<7x448x128xbf16, #tpu.memory_space<vmem>>, vector<1x448x128xbf16>
    %259 = vector.shape_cast %258 : vector<1x448x128xbf16> to vector<448x128xbf16>
    %cst_342 = arith.constant dense<0.000000e+00> : vector<1x128xf32>
    %260 = tpu.matmul %257, %259, %cst_342 {dimension_numbers = #tpu.dot_dimension_numbers<[1], [0], [0], [1], [0, 0, 1, 1], [], []>} : vector<1x448xbf16>, vector<448x128xbf16>, vector<1x128xf32> -> vector<1x128xf32>
    %261 = arith.addf %256, %260 : vector<1x128xf32>
    %262 = vector.extract_strided_slice %237 {offsets = [5, 0], sizes = [1, 448], strides = [1, 1]} : vector<7x448xbf16> to vector<1x448xbf16>
    %c5 = arith.constant 5 : index
    %c0_343 = arith.constant 0 : index
    %c0_344 = arith.constant 0 : index
    %263 = vector.load %arg6[%c5, %c0_343, %c0_344] : memref<7x448x128xbf16, #tpu.memory_space<vmem>>, vector<1x448x128xbf16>
    %264 = vector.shape_cast %263 : vector<1x448x128xbf16> to vector<448x128xbf16>
    %cst_345 = arith.constant dense<0.000000e+00> : vector<1x128xf32>
    %265 = tpu.matmul %262, %264, %cst_345 {dimension_numbers = #tpu.dot_dimension_numbers<[1], [0], [0], [1], [0, 0, 1, 1], [], []>} : vector<1x448xbf16>, vector<448x128xbf16>, vector<1x128xf32> -> vector<1x128xf32>
    %266 = arith.addf %261, %265 : vector<1x128xf32>
    %267 = vector.extract_strided_slice %237 {offsets = [6, 0], sizes = [1, 448], strides = [1, 1]} : vector<7x448xbf16> to vector<1x448xbf16>
    %c6 = arith.constant 6 : index
    %c0_346 = arith.constant 0 : index
    %c0_347 = arith.constant 0 : index
    %268 = vector.load %arg6[%c6, %c0_346, %c0_347] : memref<7x448x128xbf16, #tpu.memory_space<vmem>>, vector<1x448x128xbf16>
    %269 = vector.shape_cast %268 : vector<1x448x128xbf16> to vector<448x128xbf16>
    %cst_348 = arith.constant dense<0.000000e+00> : vector<1x128xf32>
    %270 = tpu.matmul %267, %269, %cst_348 {dimension_numbers = #tpu.dot_dimension_numbers<[1], [0], [0], [1], [0, 0, 1, 1], [], []>} : vector<1x448xbf16>, vector<448x128xbf16>, vector<1x128xf32> -> vector<1x128xf32>
    %271 = arith.addf %266, %270 : vector<1x128xf32>
    %c0_349 = arith.constant 0 : index
    %c0_350 = arith.constant 0 : index
    %272 = vector.load %arg7[%c0_349, %c0_350] : memref<1x128xf32, #tpu.memory_space<vmem>>, vector<1x128xf32>
    %273 = arith.addf %271, %272 : vector<1x128xf32>
    %cst_351 = arith.constant 0.000000e+00 : f32
    %274 = vector.broadcast %cst_351 : f32 to vector<1x128xf32>
    %275 = arith.maximumf %273, %274 : vector<1x128xf32>
    %276 = arith.truncf %275 : vector<1x128xf32> to vector<1x128xbf16>
    %c0_352 = arith.constant 0 : index
    %c0_353 = arith.constant 0 : index
    %277 = vector.load %arg8[%c0_352, %c0_353] : memref<128x128xbf16, #tpu.memory_space<vmem>>, vector<128x128xbf16>
    %cst_354 = arith.constant dense<0.000000e+00> : vector<1x128xf32>
    %278 = tpu.matmul %276, %277, %cst_354 {dimension_numbers = #tpu.dot_dimension_numbers<[1], [0], [0], [1], [0, 0, 1, 1], [], []>} : vector<1x128xbf16>, vector<128x128xbf16>, vector<1x128xf32> -> vector<1x128xf32>
    %c0_355 = arith.constant 0 : index
    %c0_356 = arith.constant 0 : index
    %279 = vector.load %arg9[%c0_355, %c0_356] : memref<1x128xf32, #tpu.memory_space<vmem>>, vector<1x128xf32>
    %280 = arith.addf %278, %279 : vector<1x128xf32>
    %c0_357 = arith.constant 0 : index
    %c0_358 = arith.constant 0 : index
    %c0_359 = arith.constant 0 : index
    %281 = vector.load %arg10[%c0_357, %c0_358, %c0_359] : memref<1x1x128xf32, #tpu.memory_space<vmem>>, vector<1x1x128xf32>
    %282 = vector.shape_cast %281 : vector<1x1x128xf32> to vector<1x128xf32>
    %283 = vector.shape_cast %280 : vector<1x128xf32> to vector<1x1x128xf32>
    tpu.vector_store %arg10[%c0_357, %c0_358, %c0_359], %283 {strides = array<i32>} : memref<1x1x128xf32, #tpu.memory_space<vmem>>, vector<1x1x128xf32>,
    return
  }
  func.func @transform_0(%arg0: i32) -> (i32, i32, i32, i32) {
    %c0_i32 = arith.constant 0 : i32
    %c0_i32_0 = arith.constant 0 : i32
    %c0_i32_1 = arith.constant 0 : i32
    %c0_i32_2 = arith.constant 0 : i32
    return %arg0, %c0_i32, %c0_i32_0, %c0_i32_1 : i32, i32, i32, i32
  }
  func.func @transform_1(%arg0: i32) -> (i32, i32, i32, i32) {
    %c0_i32 = arith.constant 0 : i32
    %c0_i32_0 = arith.constant 0 : i32
    %c0_i32_1 = arith.constant 0 : i32
    %c0_i32_2 = arith.constant 0 : i32
    %c0_i32_3 = arith.constant 0 : i32
    return %c0_i32, %c0_i32_0, %c0_i32_1, %c0_i32_2 : i32, i32, i32, i32
  }
  func.func @transform_2(%arg0: i32) -> (i32, i32, i32, i32) {
    %c0_i32 = arith.constant 0 : i32
    %c0_i32_0 = arith.constant 0 : i32
    %c0_i32_1 = arith.constant 0 : i32
    %c0_i32_2 = arith.constant 0 : i32
    %c0_i32_3 = arith.constant 0 : i32
    return %c0_i32, %c0_i32_0, %c0_i32_1, %c0_i32_2 : i32, i32, i32, i32
  }
  func.func @transform_3(%arg0: i32) -> (i32, i32) {
    %c0_i32 = arith.constant 0 : i32
    %c0_i32_0 = arith.constant 0 : i32
    %c0_i32_1 = arith.constant 0 : i32
    return %c0_i32, %c0_i32_0 : i32, i32
  }
  func.func @transform_4(%arg0: i32) -> (i32, i32) {
    %c0_i32 = arith.constant 0 : i32
    %c0_i32_0 = arith.constant 0 : i32
    %c0_i32_1 = arith.constant 0 : i32
    return %c0_i32, %c0_i32_0 : i32, i32
  }
  func.func @transform_5(%arg0: i32) -> (i32, i32, i32) {
    %c0_i32 = arith.constant 0 : i32
    %c0_i32_0 = arith.constant 0 : i32
    %c0_i32_1 = arith.constant 0 : i32
    %c0_i32_2 = arith.constant 0 : i32
    return %c0_i32, %c0_i32_0, %c0_i32_1 : i32, i32, i32
  }
  func.func @transform_6(%arg0: i32) -> (i32, i32) {
    %c0_i32 = arith.constant 0 : i32
    %c0_i32_0 = arith.constant 0 : i32
    %c0_i32_1 = arith.constant 0 : i32
    return %c0_i32, %c0_i32_0 : i32, i32
  }
  func.func @transform_7(%arg0: i32) -> (i32, i32) {
    %c0_i32 = arith.constant 0 : i32
    %c0_i32_0 = arith.constant 0 : i32
    %c0_i32_1 = arith.constant 0 : i32
    return %c0_i32, %c0_i32_0 : i32, i32
  }
  func.func @transform_8(%arg0: i32) -> (i32, i32) {
    %c0_i32 = arith.constant 0 : i32
    %c0_i32_0 = arith.constant 0 : i32
    %c0_i32_1 = arith.constant 0 : i32
    return %c0_i32, %c0_i32_0 : i32, i32
  }
  func.func @transform_9(%arg0: i32) -> (i32, i32, i32) {
    %c0_i32 = arith.constant 0 : i32
    %c0_i32_0 = arith.constant 0 : i32
    %c0_i32_1 = arith.constant 0 : i32
    return %arg0, %c0_i32, %c0_i32_0 : i32, i32, i32
  }
}

</mosaic_0001>

<bundles_post_ra>
// kernel: simple_cnn_forward.1
= control target key start
LH: loop header
LB: loop body
LE: loop exit
PB: predicated region body
PF: predicated region fallthrough
CT: control target
= control target key end

     0   :  { %14 = vsyncpa [#allocation4], 0  ;;  %s24124_s0 = inlined_call_operand.vmem [shape: bf16[2,4,8,30], index: 0, kind: input, shape index: {}]   ;;  %s24125_s1 = inlined_call_operand.vmem [shape: bf16[2,3,30,512], index: 1, kind: input, shape index: {}]   ;;  %s24126_s2 = inlined_call_operand.vmem [shape: bf16[2,3,512,448], index: 2, kind: input, shape index: {}]   ;;  %s24127_s3 = inlined_call_operand.vmem [shape: f32[1,512], index: 3, kind: input, shape index: {}]   ;;  %s24128_s4 = inlined_call_operand.vmem [shape: f32[1,448], index: 4, kind: input, shape index: {}]   ;;  %s24129_s5 = inlined_call_operand.vmem [shape: bf16[7,448,128], index: 5, kind: input, shape index: {}]   ;;  %s24130_s6 = inlined_call_operand.vmem [shape: f32[1,128], index: 6, kind: input, shape index: {}]   ;;  %s24131_s7 = inlined_call_operand.vmem [shape: bf16[128,128], index: 7, kind: input, shape index: {}]   ;;  %s24132_s8 = inlined_call_operand.vmem [shape: f32[1,128], index: 8, kind: input, shape index: {}]   ;;  %s24133_s9 = inlined_call_operand.hbm [shape: f32[2,1,128], index: 9, kind: output, shape index: {}]  }
   0x1   :  { %16 = vsyncpa [#allocation4 + $0x1], 0  ;;  %s17231_s30 = smov 0   ;;  %s17233_s10 = smov 0  }
   0x2   :  { %s17235_s11 = smov 0   ;;  %s17237_s12 = smov 0  }
   0x3 LB: > { %s17252_s13 = sadd.s32 4294967295, %s17175_s12   ;;  %s12385_s14 = sadd.s32 4294967294, %s17175_s12   ;;  %s17175_s12 = sphi %s17237_s12, %s24149_s12   ;;  %s17171_s11 = sphi %s17235_s11, %s24148_s11   ;;  %s17167_s10 = sphi %s17233_s10, %s24147_s10   ;;  %s17163_s30 = sphi %s17231_s30, %s24146_s30  }
   0x4   : > { %s17256_s15 = sadd.s32 1, %s17175_s12   ;;  %s223_s16 = sadd.s32 1, %s17171_s11 }
   0x5   : > { %s220_s17 = ssub.s32 %s17175_s12, %s17256_s15  ;;  %p233_p0 = scmp.ne.s32.totalorder %s17171_s11, %s17167_s10 }
   0x6   : > { %p221_p1 = scmp.eq.s32.totalorder %s220_s17, 0  ;;  %p234_p2 = scmp.eq.s32.totalorder %s17252_s13, 1 }
   0x7   : > { %p239_p3 = scmp.ne.s32.totalorder %s17167_s10, %s17163_s30  ;;  %p240_p4 = scmp.eq.s32.totalorder %s12385_s14, 1 }
   0x8   : > { %s17267_s18 = scalar_select %p221_p1, %s17171_s11, %s223_s16  }
   0x9   : > { %p17269_p5 = por %p234_p2, %p233_p0  ;;  %p17273_p6 = por %p240_p4, %p239_p3 }
   0xa   : > { %p12388_p7 = scmp.ge.s32.totalorder %s17175_s12, 1  ;;  %p290_p8 = scmp.lt.s32.totalorder %s17175_s12, 3 }
   0xc   : > { %p291_p9 = pnand %p12388_p7, %p290_p8 }
   0xd   : > { %p325_p10 = scmp.lt.s32.totalorder (!%p291_p9), %s17252_s13, 1  ;;  %s323_s29 = sand.u32 (!%p291_p9), 1, %s17167_s10  }
   0xe   : > { %294 = sbr.rel (%p291_p9) target bundleno = 2651 (0xa5b), region = 56  ;;  %s14642_s16 = sshll.u32 (!%p291_p9), %s17252_s13, 4 }
   0xf   : > { %s324_s17 = scalar_lea.vmem (!%p291_p9), [#allocation3], %s323_s29  ;;  %s24083_s25 = scalar_lea.hbm (!%p291_p9), %s24133_s9, %s14642_s16 }
  0x10   : > { %s12330_s21 = sshll.u32 (!%p291_p9), %s324_s17, 4  ;;  %s12318_s26 = scalar_lea.sflag (!%p291_p9), [#allocation4], %s323_s29  ;;  %s24085_s21 = int_to_ptr.vmem [resolvable:$true] %s12330_s21 }
  0x11   : > { %s17115_s27 = scalar_lea.vmem (!%p291_p9), %s24085_s21, 16 }
  0x12   : > { %p17116_p11 = scmp.ne.s32.totalorder (!%p291_p9), %s24085_s21, %s17115_s27 }
  0x13   : > { %v17282_v0 = vld [vmem:[%s24125_s1 + $0x60] sm:$0xff]  ;;  %v12398_v1 = vld [vmem:[%s24125_s1 + $0x70] sm:$0x77]  ;;  %vm415_vm0 = vcmask 1046528   ;;  %v17177_v6 = vmov 0   ;;  %s326_s23 = scalar_select %p325_p10, %s17252_s13, 1 }
  0x14   : > { %v17290_v2 = vld [vmem:[%s24125_s1 + $0x20] sm:$0xff]  ;;  %v17293_v3 = vcombine.high %v17282_v0, %v12398_v1  ;;  %v362_v4 = vld [vmem:[%s24125_s1 + $0x30] sm:$0x77]  ;;  %v12404_v5 = vcombine.low %v17282_v0, %v12398_v1  ;;  %460 = vmatprep.mubr.bf16.mxu1 %v17177_v6  ;;  %593 = vmatprep.mubr.bf16.mxu0 %v17177_v6  ;;  %v17341_v15 = vld [vmem:[%s24125_s1 + $0x68] sm:$0xff]  ;;  %vm411_vm1 = vcmask 244736   ;;  %vm1788_vm2 = vcmask 1043456   ;;  %p17117_p12 = pnand %p17116_p11, %p17269_p5 }
  0x15   : > { %v17303_v7 = vcombine.high %v17290_v2, %v362_v4  ;;  %v12416_v8 = vcombine.low %v17290_v2, %v362_v4  ;;  %v17309_v9 = vld [vmem:[%s24125_s1 + $0x44] ss:$16 sps:$4 sm:$0xff]   ;;  %v17324_v12 = vld [vmem:[%s24125_s1 + $0x40] ss:$16 sps:$4 sm:$0xff]   ;;  %v12399_v16 = vld [vmem:[%s24125_s1 + $0x78] sm:$0x77] }
  0x16   : > { %12408 = vmatprep.subr.msk.bf16.mxu1 %vm415_vm0, %v17293_v3  ;;  %v17314_v10 = vsel %vm415_vm0, %v12404_v5, 0  ;;  %v17319_v11 = vld [vmem:[%s24125_s1 + $0x4] ss:$16 sps:$4 sm:$0xff]   ;;  %v17336_v14 = vld [vmem:[%s24125_s1] ss:$16 sps:$4 sm:$0xff]   ;;  %s14645_s14 = sshll.u32 %s326_s23, 4  ;;  %v17349_v17 = vcombine.high %v17341_v15, %v12399_v16  ;;  %v12406_v20 = vcombine.low %v17341_v15, %v12399_v16  ;;  %p17118_p13 = pneg %p17117_p12 }
  0x17   : > { %12420 = vmatprep.subr.msk.bf16.mxu0 %vm415_vm0, %v17303_v7  ;;  %441 = vmatpush1.bf16.msra.mxu1 %v17314_v10  ;;  %v17331_v13 = vsel %vm415_vm0, %v12416_v8, 0  ;;  %v17354_v18 = vld [vmem:[%s24125_s1 + $0xa0] sm:$0xff]  ;;  %v12431_v19 = vld [vmem:[%s24125_s1 + $0xb0] sm:$0x77]  ;;  %s17364_s23 = scalar_lea.vmem %s24124_s0, %s14645_s14  ;;  %v17377_v24 = vld [vmem:[%s24125_s1 + $0x4c] ss:$16 sps:$4 sm:$0xff]  }
  0x18   : > { %574 = vmatpush1.bf16.msra.mxu0 %v17331_v13  ;;  %442 = vmatprep.subr.bf16.mxu1 %v17309_v9  ;;  %v17367_v21 = vcombine.high %v17354_v18, %v12431_v19  ;;  %v12437_v22 = vcombine.low %v17354_v18, %v12431_v19  ;;  %v17372_v23 = vld [vmem:[%s17364_s23 + $0x4] sm:$0xf]  ;;  %v17383_v25 = vld [vmem:[%s17364_s23] sm:$0xf]  ;;  %v17386_v26 = vsel %vm415_vm0, %v12406_v20, 0  ;;  %v17401_v29 = vld [vmem:[%s24125_s1 + $0x28] sm:$0xff] }
  0x19   : > { %575 = vmatprep.subr.bf16.mxu0 %v17319_v11  ;;  %v17391_v27 = vld [vmem:[%s24125_s1 + $0x84] ss:$16 sps:$4 sm:$0xff]   ;;  %v363_v30 = vld [vmem:[%s24125_s1 + $0x38] sm:$0x77]  ;;  %v17429_v34 = vld [vmem:[%s24125_s1 + $0x80] ss:$16 sps:$4 sm:$0xff]  }
  0x1a   : > { %v17396_v28 = vsel %vm415_vm0, %v12437_v22, 0  ;;  %v17411_v31 = vld [vmem:[%s24125_s1 + $0x120] sm:$0xff]  ;;  %v12459_v32 = vld [vmem:[%s24125_s1 + $0x130] sm:$0x77]  ;;  %v17422_v33 = vld [vmem:[%s24125_s1 + $0x48] ss:$16 sps:$4 sm:$0xff]   ;;  %v17432_v35 = vcombine.high %v17401_v29, %v363_v30  ;;  %v12418_v36 = vcombine.low %v17401_v29, %v363_v30 }
  0x1b   : > { %443 = vmatpush1.bf16.msra.mxu1 %v17324_v12  ;;  %v17438_v37 = vcombine.high %v17411_v31, %v12459_v32  ;;  %v12465_v38 = vcombine.low %v17411_v31, %v12459_v32  ;;  %v17444_v39 = vld [vmem:[%s17364_s23 + $0x8] sm:$0xf]  ;;  %v17455_v41 = vld [vmem:[%s24125_s1 + $0xc] ss:$16 sps:$4 sm:$0xff]   ;;  %v17460_v42 = vld [vmem:[%s24125_s1 + $0x104] ss:$16 sps:$4 sm:$0xff]  }
  0x1c   : > { %576 = vmatpush1.bf16.msra.mxu0 %v17336_v14  ;;  %12410 = vmatprep.subr.msk.bf16.mxu1 %vm415_vm0, %v17349_v17  ;;  %v17450_v40 = vsel %vm415_vm0, %v12418_v36, 0  ;;  %v17470_v44 = vld [vmem:[%s24125_s1 + $0xa8] sm:$0xff]  ;;  %v12432_v45 = vld [vmem:[%s24125_s1 + $0xb8] sm:$0x77]  ;;  %v17480_v46 = vld [vmem:[%s24125_s1 + $0xe0] sm:$0xff]  ;;  %vm1791_vm4 = vcmask 1047556  }
  0x1d   : > { %12441 = vmatprep.subr.msk.bf16.mxu0 %vm415_vm0, %v17367_v21  ;;  %v17465_v43 = vsel %vm415_vm0, %v12465_v38, 0  ;;  %v12451_v47 = vld [vmem:[%s24125_s1 + $0xf0] sm:$0x77]  ;;  %v17491_v48 = vld [vmem:[%s24125_s1 + $0x8] ss:$16 sps:$4 sm:$0xff]   ;;  %v17501_v50 = vcombine.high %v17470_v44, %v12432_v45  ;;  %v12439_v51 = vcombine.low %v17470_v44, %v12432_v45  ;;  %v17546_v60 = vld [vmem:[%s24125_s1 + $0x160] sm:$0xff] }
  0x1e   : > { %12409 = vmatmul.mubr.msk.bf16.vlgmr.msra.gmra.mxu1 %vm411_vm1, %v17372_v23  ;;  %v17498_v49 = vld [vmem:[%s24125_s1 + $0x100] ss:$16 sps:$4 sm:$0xff]   ;;  %v17507_v52 = vcombine.high %v17480_v46, %v12451_v47  ;;  %v12477_v53 = vcombine.low %v17480_v46, %v12451_v47  ;;  %v17521_v55 = vld [vmem:[%s24125_s1 + $0x8c] ss:$16 sps:$4 sm:$0xff]   ;;  %v17526_v56 = vld [vmem:[%s24125_s1 + $0xc4] ss:$16 sps:$4 sm:$0xff]  }
  0x1f   : > { %12421 = vmatmul.mubr.msk.bf16.vlgmr.msra.gmra.mxu0 %vm411_vm1, %v17383_v25  ;;  %482 = vmatpush1.bf16.msra.mxu1 %v17386_v26  ;;  %v17516_v54 = vsel %vm415_vm0, %v12439_v51, 0  ;;  %v17536_v58 = vld [vmem:[%s24125_s1 + $0x128] sm:$0xff]  ;;  %v12460_v59 = vld [vmem:[%s24125_s1 + $0x138] sm:$0x77]  ;;  %v12491_v61 = vld [vmem:[%s24125_s1 + $0x170] sm:$0x77] }
  0x20   : > { %718 = vmatpush1.bf16.msra.mxu0 %v17396_v28  ;;  %483 = vmatprep.subr.bf16.mxu1 %v17377_v24  ;;  %v17531_v57 = vsel %vm415_vm0, %v12477_v53, 0  ;;  %v17557_v62 = vld [vmem:[%s24125_s1 + $0x88] ss:$16 sps:$4 sm:$0xff]   ;;  %v17564_v63 = vld [vmem:[%s24125_s1 + $0xc0] ss:$16 sps:$4 sm:$0xff]   ;;  %v17567_v1 = vcombine.high %v17536_v58, %v12460_v59  ;;  %v12467_v4 = vcombine.low %v17536_v58, %v12460_v59  ;;  %v17573_v5 = vcombine.high %v17546_v60, %v12491_v61  ;;  %s17180_s13 = smov [#allocation3]  }
  0x21   : > { %719 = vmatprep.subr.bf16.mxu0 %v17391_v27  ;;  %501 = vmatprep.mubr.bf16.mxu1 %v17177_v6  ;;  %v12497_v8 = vcombine.low %v17546_v60, %v12491_v61  ;;  %v17581_v16 = vld [vmem:[%s24125_s1 + $0x10c] ss:$16 sps:$4 sm:$0xff]   ;;  %v17586_v19 = vld [vmem:[%s24125_s1 + $0x144] ss:$16 sps:$4 sm:$0xff]   ;;  %v17607_v32 = vld [vmem:[%s24125_s1 + $0x108] ss:$16 sps:$4 sm:$0xff]  }
  0x22   : > { %737 = vmatprep.mubr.bf16.mxu0 %v17177_v6  ;;  %v17592_v20 = vsel %vm415_vm0, %v12467_v4, 0  ;;  %v17597_v22 = vld [vmem:[%s24125_s1 + $0xe8] sm:$0xff]  ;;  %v12452_v36 = vld [vmem:[%s24125_s1 + $0xf8] sm:$0x77]  ;;  %v17617_v38 = vld [vmem:[%s24125_s1 + $0x140] ss:$16 sps:$4 sm:$0xff]  }
  0x23   : > { %484 = vmatpush1.bf16.msra.mxu1 %v17422_v33  ;;  %v17602_v30 = vsel %vm415_vm0, %v12497_v8, 0  ;;  %v17625_v45 = vcombine.high %v17597_v22, %v12452_v36  ;;  %v12479_v47 = vcombine.low %v17597_v22, %v12452_v36  ;;  %v17634_v51 = vld [vmem:[%s24125_s1 + $0xcc] ss:$16 sps:$4 sm:$0xff]   ;;  %v17656_v4 = vld [vmem:[%s24125_s1 + $0xc8] ss:$16 sps:$4 sm:$0xff]   ;;  %vm333_vm10 = vcmask 1040384  }
  0x24   : > { %720 = vmatpush1.bf16.msra.mxu0 %v17429_v34  ;;  %12422 = vmatprep.subr.msk.bf16.mxu1 %vm415_vm0, %v17432_v35  ;;  %v17640_v53 = vld [vmem:[%s24125_s1 + $0x168] sm:$0xff]  ;;  %v12492_v59 = vld [vmem:[%s24125_s1 + $0x178] sm:$0x77]  ;;  %vm1789_vm3 = vsmask.f32 7938  ;;  %vm336_vm11 = vcmask 1044484  }
  0x25   : > { %12469 = vmatprep.subr.msk.bf16.mxu0 %vm415_vm0, %v17438_v37  ;;  %v17649_v61 = vsel %vm415_vm0, %v12479_v47, 0  ;;  %v17666_v8 = vcombine.high %v17640_v53, %v12492_v59  ;;  %v17675_v36 = vld [vmem:[%s24125_s1 + $0x14c] ss:$16 sps:$4 sm:$0xff]   ;;  %v17689_v47 = vld [vmem:[%s24125_s1 + $0x148] ss:$16 sps:$4 sm:$0xff]   ;;  %vm18444_vm6 = vmand %vm1788_vm2, %vm1789_vm3  ;;  %s17119_s28 = sshll.u32 %s17180_s13, 4  ;;  %s17120_s28 = int_to_ptr.vmem [resolvable:$false] %s17119_s28 }
  0x26   : > { %12411 = vmatmul.mubr.msk.bf16.vlgmr.msra.gmra.mxu1 %vm411_vm1, %v17372_v23  ;;  %vm1792_vm5 = vsmask.f32 7954  ;;  %vm334_vm9 = vsmask.f32 256  ;;  %vm337_vm12 = vsmask.f32 4352  ;;  %p17122_p0 = scmp.lt.s32.totalorder %s24085_s21, %s17120_s28 }
  0x27   : > { %12442 = vmatmul.mubr.msk.bf16.vlgmr.msra.gmra.mxu0 %vm411_vm1, %v17444_v39  ;;  %615 = vmatpush1.bf16.msra.mxu1 %v17450_v40  ;;  %vm18448_vm7 = vmand %vm1791_vm4, %vm1792_vm5  ;;  %s17121_s14 = scalar_lea.vmem %s17120_s28, 32 }
  0x28   : > { %870 = vmatpush1.bf16.msra.mxu0 %v17465_v43  ;;  %616 = vmatprep.subr.bf16.mxu1 %v17455_v41  ;;  %vm18463_vm8 = vmor %vm18448_vm7, %vm18444_vm6  ;;  %p17123_p1 = scmp.lt.s32.totalorder %s17121_s14, %s17115_s27 }
  0x29   : > { %871 = vmatprep.subr.bf16.mxu0 %v17460_v42  ;;  %634 = vmatprep.mubr.bf16.mxu1 %v17177_v6  ;;  %vm18707_vm13 = vmand %vm333_vm10, %vm334_vm9 }
  0x2a   : > { %889 = vmatprep.mubr.bf16.mxu0 %v17177_v6  ;;  %vm338_vm14 = vmand %vm336_vm11, %vm337_vm12  ;;  %p17124_p2 = por %p17123_p1, %p17122_p0 }
  0x2b   : > { %617 = vmatpush1.bf16.msra.mxu1 %v17491_v48  ;;  %vm18732_vm15 = vmor %vm338_vm14, %vm18707_vm13 }
  0x2c   : > { %872 = vmatpush1.bf16.msra.mxu0 %v17498_v49  ;;  %12443 = vmatprep.subr.msk.bf16.mxu1 %vm415_vm0, %v17501_v50  ;;  %p17125_p3 = pnand %p17124_p2, %p17118_p13 }
  0x2d   : > { %12481 = vmatprep.subr.msk.bf16.mxu0 %vm415_vm0, %v17507_v52 }
  0x2e   : > { %12423 = vmatmul.mubr.msk.bf16.vlgmr.msra.gmra.mxu1 %vm411_vm1, %v17383_v25 }
  0x2f   : > { %12470 = vmatmul.mubr.msk.bf16.vlgmr.msra.gmra.mxu0 %vm411_vm1, %v17372_v23  ;;  %759 = vmatpush1.bf16.msra.mxu1 %v17516_v54 }
  0x30   : > { %1000 = vmatpush1.bf16.msra.mxu0 %v17531_v57  ;;  %760 = vmatprep.subr.bf16.mxu1 %v17521_v55 }
  0x31   : > { %1001 = vmatprep.subr.bf16.mxu0 %v17526_v56  ;;  %778 = vmatprep.mubr.bf16.mxu1 %v17177_v6 }
  0x32   : > { %1019 = vmatprep.mubr.bf16.mxu0 %v17177_v6 }
  0x33   : > { %761 = vmatpush1.bf16.msra.mxu1 %v17557_v62 }
  0x34   : > { %1002 = vmatpush1.bf16.msra.mxu0 %v17564_v63  ;;  %12471 = vmatprep.subr.msk.bf16.mxu1 %vm415_vm0, %v17567_v1 }
  0x35   : > { %12501 = vmatprep.subr.msk.bf16.mxu0 %vm415_vm0, %v17573_v5 }
  0x36   : > { %12444 = vmatmul.mubr.msk.bf16.vlgmr.msra.gmra.mxu1 %vm411_vm1, %v17444_v39 }
  0x37   : > { %12482 = vmatmul.mubr.msk.bf16.vlgmr.msra.gmra.mxu0 %vm411_vm1, %v17383_v25  ;;  %911 = vmatpush1.bf16.msra.mxu1 %v17592_v20 }
  0x38   : > { %1139 = vmatpush1.bf16.msra.mxu0 %v17602_v30  ;;  %912 = vmatprep.subr.bf16.mxu1 %v17581_v16 }
  0x39   : > { %1140 = vmatprep.subr.bf16.mxu0 %v17586_v19  ;;  %930 = vmatprep.mubr.bf16.mxu1 %v17177_v6 }
  0x3a   : > { %1158 = vmatprep.mubr.bf16.mxu0 %v17177_v6 }
  0x3b   : > { %913 = vmatpush1.bf16.msra.mxu1 %v17607_v32 }
  0x3c   : > { %1141 = vmatpush1.bf16.msra.mxu0 %v17617_v38  ;;  %12483 = vmatprep.subr.msk.bf16.mxu1 %vm415_vm0, %v17625_v45 }
  0x3d   : > { %12505 = vmatprep.subr.msk.bf16.mxu0 %vm415_vm0, %v17293_v3  ;;  %v12499_v3 = vcombine.low %v17640_v53, %v12492_v59 }
  0x3e   : > { %12472 = vmatmul.mubr.msk.bf16.vlgmr.msra.gmra.mxu1 %vm411_vm1, %v17372_v23 }
  0x3f   : > { %12502 = vmatmul.mubr.msk.bf16.vlgmr.msra.gmra.mxu0 %vm411_vm1, %v17444_v39  ;;  %1041 = vmatpush1.bf16.msra.mxu1 %v17649_v61 }
  0x40   : > { %1229 = vmatpush1.bf16.msra.mxu0 %v17314_v10  ;;  %1042 = vmatprep.subr.bf16.mxu1 %v17634_v51  ;;  %v17682_v10 = vsel %vm415_vm0, %v12499_v3, 0  ;;  %v16324_v3 = vld [vmem:[%s24125_s1 + $0x44] ss:$16 sps:$4 sm:$0xff]  }
  0x41   : > { %1230 = vmatprep.subr.bf16.mxu0 %v17309_v9  ;;  %1060 = vmatprep.mubr.bf16.mxu1 %v17177_v6 }
  0x42   : > { %1248 = vmatprep.mubr.bf16.mxu0 %v17177_v6 }
  0x43   : > { %1043 = vmatpush1.bf16.msra.mxu1 %v17656_v4 }
  0x44   : > { %1231 = vmatpush1.bf16.msra.mxu0 %v17324_v12  ;;  %12503 = vmatprep.subr.msk.bf16.mxu1 %vm415_vm0, %v17666_v8 }
  0x45   : > { %12509 = vmatprep.subr.msk.bf16.mxu0 %vm415_vm0, %v17303_v7  ;;  %v17718_v7 = vld [vmem:[%s17364_s23 + $0xc] sm:$0xf] }
  0x46   : > { %12484 = vmatmul.mubr.msk.bf16.vlgmr.msra.gmra.mxu1 %vm411_vm1, %v17383_v25  ;;  %v1808_v25 = vld [vmem:[%s24125_s1 + $0x30] sm:$0x77] }
  0x47   : > { %12506 = vmatmul.mubr.msk.bf16.vlgmr.msra.gmra.mxu0 %vm411_vm1, %v17444_v39  ;;  %1180 = vmatpush1.bf16.msra.mxu1 %v17682_v10 }
  0x48   : > { %1311 = vmatpush1.bf16.msra.mxu0 %v17331_v13  ;;  %1181 = vmatprep.subr.bf16.mxu1 %v17675_v36  ;;  %v12540_v13 = vld [vmem:[%s24125_s1 + $0x70] sm:$0x77] }
  0x49   : > { %1312 = vmatprep.subr.bf16.mxu0 %v17319_v11  ;;  %1199 = vmatprep.mubr.bf16.mxu1 %v17177_v6 }
  0x4a   : > { %1330 = vmatprep.mubr.bf16.mxu0 %v17177_v6 }
  0x4b   : > { %1182 = vmatpush1.bf16.msra.mxu1 %v17689_v47 }
  0x4c   : > { %1313 = vmatpush1.bf16.msra.mxu0 %v17336_v14  ;;  %12507 = vmatprep.subr.msk.bf16.mxu1 %vm415_vm0, %v17349_v17  ;;  %v17771_v17 = vcombine.high %v17282_v0, %v12540_v13 }
  0x4d   : > { %12514 = vmatprep.subr.msk.bf16.mxu0 %vm415_vm0, %v17367_v21  ;;  %v12546_v21 = vcombine.low %v17282_v0, %v12540_v13  ;;  %v17797_v0 = vcombine.high %v17290_v2, %v1808_v25  ;;  %v16327_v13 = vld [vmem:[%s24125_s1] ss:$16 sps:$4 sm:$0xff]  }
  0x4e   : > { %12504 = vmatmul.mubr.msk.bf16.vlgmr.msra.gmra.mxu1 %vm411_vm1, %v17444_v39 }
  0x4f   : > { %12510 = vmatmul.mubr.msk.bf16.vlgmr.msra.gmra.mxu0 %vm411_vm1, %v17372_v23  ;;  %1270 = vmatpush1.bf16.msra.mxu1 %v17386_v26  ;;  %v17785_v26 = vsel %vm415_vm0, %v12546_v21, 0  ;;  %v16329_v21 = vld [vmem:[%s24125_s1 + $0x84] ss:$16 sps:$4 sm:$0xff]  }
  0x50   : > { %1398 = vmatpush1.bf16.msra.mxu0 %v17396_v28  ;;  %1271 = vmatprep.subr.bf16.mxu1 %v17377_v24  ;;  %v12558_v28 = vcombine.low %v17290_v2, %v1808_v25  ;;  %v16330_v25 = vld [vmem:[%s24125_s1 + $0x48] ss:$16 sps:$4 sm:$0xff]  }
  0x51   : > { %1399 = vmatprep.subr.bf16.mxu0 %v17391_v27  ;;  %1289 = vmatprep.mubr.bf16.mxu1 %v17177_v6 }
  0x52   : > { %1417 = vmatprep.mubr.bf16.mxu0 %v17177_v6  ;;  %v17817_v2 = vsel %vm415_vm0, %v12558_v28, 0  ;;  %v16332_v28 = vld [vmem:[%s24125_s1 + $0xc] ss:$16 sps:$4 sm:$0xff]  }
  0x53   : > { %1272 = vmatpush1.bf16.msra.mxu1 %v17422_v33 }
  0x54   : > { %1400 = vmatpush1.bf16.msra.mxu0 %v17429_v34  ;;  %12511 = vmatprep.subr.msk.bf16.mxu1 %vm415_vm0, %v17432_v35  ;;  %v17802_v35 = vld [vmem:[%s17364_s23 + $0xc] sm:$0xf] }
  0x55   : > { %12518 = vmatprep.subr.msk.bf16.mxu0 %vm415_vm0, %v17438_v37  ;;  %v12541_v37 = vld [vmem:[%s24125_s1 + $0x78] sm:$0x77] }
  0x56   : > { %12508 = vmatmul.mubr.msk.bf16.vlgmr.msra.gmra.mxu1 %vm411_vm1, %v17444_v39 }
  0x57   : > { %12515 = vmatmul.mubr.msk.bf16.vlgmr.msra.gmra.mxu0 %vm411_vm1, %v17718_v7  ;;  %1352 = vmatpush1.bf16.msra.mxu1 %v17450_v40  ;;  %v12548_v40 = vcombine.low %v17341_v15, %v12541_v37 }
  0x58   : > { %1488 = vmatpush1.bf16.msra.mxu0 %v17465_v43  ;;  %1353 = vmatprep.subr.bf16.mxu1 %v17455_v41 }
  0x59   : > { %1489 = vmatprep.subr.bf16.mxu0 %v17460_v42  ;;  %1371 = vmatprep.mubr.bf16.mxu1 %v17177_v6 }
  0x5a   : > { %1507 = vmatprep.mubr.bf16.mxu0 %v17177_v6 }
  0x5b   : > { %1354 = vmatpush1.bf16.msra.mxu1 %v17491_v48 }
  0x5c   : > { %1490 = vmatpush1.bf16.msra.mxu0 %v17498_v49  ;;  %12516 = vmatprep.subr.msk.bf16.mxu1 %vm415_vm0, %v17501_v50  ;;  %v17839_v50 = vld [vmem:[%s17364_s23 + $0x8] sm:$0xf] }
  0x5d   : > { %12522 = vmatprep.subr.msk.bf16.mxu0 %vm415_vm0, %v17507_v52  ;;  %v1809_v52 = vld [vmem:[%s24125_s1 + $0x38] sm:$0x77] }
  0x5e   : > { %12512 = vmatmul.mubr.msk.bf16.vlgmr.msra.gmra.mxu1 %vm411_vm1, %v17372_v23 }
  0x5f   : > { %12519 = vmatmul.mubr.msk.bf16.vlgmr.msra.gmra.mxu0 %vm411_vm1, %v17444_v39  ;;  %1439 = vmatpush1.bf16.msra.mxu1 %v17516_v54 }
  0x60   : > { %1570 = vmatpush1.bf16.msra.mxu0 %v17531_v57  ;;  %1440 = vmatprep.subr.bf16.mxu1 %v17521_v55 }
  0x61   : > { %1571 = vmatprep.subr.bf16.mxu0 %v17526_v56  ;;  %1458 = vmatprep.mubr.bf16.mxu1 %v17177_v6 }
  0x62   : > { %1589 = vmatprep.mubr.bf16.mxu0 %v17177_v6 }
  0x63   : > { %1441 = vmatpush1.bf16.msra.mxu1 %v17557_v62 }
  0x64   : > { %1572 = vmatpush1.bf16.msra.mxu0 %v17564_v63  ;;  %12520 = vmatprep.subr.msk.bf16.mxu1 %vm415_vm0, %v17567_v1  ;;  %v17867_v1 = vcombine.high %v17401_v29, %v1809_v52 }
  0x65   : > { %12526 = vmatprep.subr.msk.bf16.mxu0 %vm415_vm0, %v17573_v5  ;;  %v12560_v5 = vcombine.low %v17401_v29, %v1809_v52  ;;  %v12593_v29 = vld [vmem:[%s24125_s1 + $0xf0] sm:$0x77]  ;;  %v16341_v52 = vld [vmem:[%s24125_s1 + $0x108] ss:$16 sps:$4 sm:$0xff]  }
  0x66   : > { %12517 = vmatmul.mubr.msk.bf16.vlgmr.msra.gmra.mxu1 %vm411_vm1, %v17718_v7  ;;  %v12619_v59 = vcombine.low %v17480_v46, %v12593_v29 }
  0x67   : > { %12523 = vmatmul.mubr.msk.bf16.vlgmr.msra.gmra.mxu0 %vm411_vm1, %v17372_v23  ;;  %1529 = vmatpush1.bf16.msra.mxu1 %v17592_v20 }
  0x68   : > { %1652 = vmatpush1.bf16.msra.mxu0 %v17602_v30  ;;  %1530 = vmatprep.subr.bf16.mxu1 %v17581_v16 }
  0x69   : > { %1653 = vmatprep.subr.bf16.mxu0 %v17586_v19  ;;  %1548 = vmatprep.mubr.bf16.mxu1 %v17177_v6 }
  0x6a   : > { %1671 = vmatprep.mubr.bf16.mxu0 %v17177_v6 }
  0x6b   : > { %1531 = vmatpush1.bf16.msra.mxu1 %v17607_v32 }
  0x6c   : > { %1654 = vmatpush1.bf16.msra.mxu0 %v17617_v38  ;;  %12524 = vmatprep.subr.msk.bf16.mxu1 %vm415_vm0, %v17625_v45  ;;  %v17911_v45 = vcombine.high %v17480_v46, %v12593_v29  ;;  %v12633_v46 = vld [vmem:[%s24125_s1 + $0x170] sm:$0x77] }
  0x6d   : > { %12550 = vmatprep.subr.msk.bf16.mxu0 %vm415_vm0, %v17771_v17  ;;  %v14973_v29 = vld [vmem:[%s24126_s2 + $0x460] ss:$16 sps:$4 sm:$0xff]  }
  0x6e   : > { %12521 = vmatmul.mubr.msk.bf16.vlgmr.msra.gmra.mxu1 %vm411_vm1, %v17444_v39  ;;  %v14944_v39 = vld [vmem:[%s17364_s23] ss:$0 sps:$4 sm:$0xff]  }
  0x6f   : > { %12527 = vmatmul.mubr.msk.bf16.vlgmr.msra.gmra.mxu0 %vm411_vm1, %v17718_v7  ;;  %1611 = vmatpush1.bf16.msra.mxu1 %v17649_v61  ;;  %v17947_v61 = vcombine.high %v17546_v60, %v12633_v46 }
  0x70   : > { %1883 = vmatpush1.bf16.msra.mxu0 %v17785_v26  ;;  %1612 = vmatprep.subr.bf16.mxu1 %v17634_v51 }
  0x71   : > { %1884 = vmatprep.subr.bf16.mxu0 %v17309_v9  ;;  %1630 = vmatprep.mubr.bf16.mxu1 %v17177_v6  ;;  %v12572_v9 = vld [vmem:[%s24125_s1 + $0xb0] sm:$0x77] }
  0x72   : > { %1902 = vmatprep.mubr.bf16.mxu0 %v17177_v6  ;;  %v12579_v43 = vcombine.low %v17354_v18, %v12572_v9 }
  0x73   : > { %1613 = vmatpush1.bf16.msra.mxu1 %v17656_v4 }
  0x74   : > { %1885 = vmatpush1.bf16.msra.mxu0 %v17324_v12  ;;  %12528 = vmatprep.subr.msk.bf16.mxu1 %vm415_vm0, %v17666_v8  ;;  %v17828_v12 = vcombine.high %v17341_v15, %v12541_v37  ;;  %v2100_v15 = vshll.u32 %v14944_v39, 16  ;;  %v17857_v54 = vsel %vm415_vm0, %v12579_v43, 0  ;;  %v12639_v8 = vcombine.low %v17546_v60, %v12633_v46  ;;  %v16333_v37 = vld [vmem:[%s24125_s1 + $0x104] ss:$16 sps:$4 sm:$0xff]   ;;  %v16340_v43 = vld [vmem:[%s24125_s1 + $0x10c] ss:$16 sps:$4 sm:$0xff]  }
  0x75   : > { %12562 = vmatprep.subr.msk.bf16.mxu0 %vm415_vm0, %v17797_v0 }
  0x76   : > { %12525 = vmatmul.mubr.msk.bf16.vlgmr.msra.gmra.mxu1 %vm411_vm1, %v17372_v23  ;;  %v17834_v23 = vcombine.high %v17354_v18, %v12572_v9  ;;  %v12601_v18 = vld [vmem:[%s24125_s1 + $0x130] sm:$0x77]  ;;  %v2102_v57 = vrot.slane %v2100_v15, 1  ;;  %v16334_v9 = vld [vmem:[%s24125_s1 + $0x8] ss:$16 sps:$4 sm:$0xff]  }
  0x77   : > { %12551 = vmatmul.mubr.msk.bf16.vlgmr.msra.gmra.mxu0 %vm411_vm1, %v17802_v35  ;;  %1693 = vmatpush1.bf16.msra.mxu1 %v17682_v10  ;;  %v17873_v19 = vcombine.high %v17411_v31, %v12601_v18  ;;  %v12607_v20 = vcombine.low %v17411_v31, %v12601_v18  ;;  %v14960_v10 = vld [vmem:[%s17364_s23 + $0x4] ss:$0 sps:$4 sm:$0xff]   ;;  %v14961_v15 = vld [vmem:[%s24126_s2 + $0x4e0] ss:$16 sps:$4 sm:$0xff]  }
  0x78   : > { %2016 = vmatpush1.bf16.msra.mxu0 %v17817_v2  ;;  %1694 = vmatprep.subr.bf16.mxu1 %v17675_v36  ;;  %v14966_v18 = vld [vmem:[%s24126_s2 + $0x4c4] ss:$16 sps:$4 sm:$0xff]  }
  0x79   : > { %2017 = vmatprep.subr.bf16.mxu0 %v17319_v11  ;;  %1712 = vmatprep.mubr.bf16.mxu1 %v17177_v6  ;;  %v17849_v11 = vsel %vm415_vm0, %v12548_v40, 0  ;;  %v17895_v31 = vsel %vm415_vm0, %v12607_v20, 0  ;;  %v16338_v40 = vld [vmem:[%s24125_s1 + $0x88] ss:$16 sps:$4 sm:$0xff]   ;;  %v14970_v20 = vld [vmem:[%s24126_s2 + $0x480] ss:$16 sps:$4 sm:$0xff]  }
  0x7a   : > { %2035 = vmatprep.mubr.bf16.mxu0 %v17177_v6 }
  0x7b   : > { %1695 = vmatpush1.bf16.msra.mxu1 %v17689_v47 }
  0x7c   : > { %2018 = vmatpush1.bf16.msra.mxu0 %v17336_v14  ;;  %12552 = vmatprep.subr.msk.bf16.mxu1 %vm415_vm0, %v17828_v12  ;;  %v2098_v14 = vshrl.u32 %v14944_v39, 16  ;;  %v16336_v39 = vld [vmem:[%s24125_s1 + $0x8c] ss:$16 sps:$4 sm:$0xff]  }
  0x7d   : > { %12583 = vmatprep.subr.msk.bf16.mxu0 %vm415_vm0, %v17834_v23 }
  0x7e   : > { %12529 = vmatmul.mubr.msk.bf16.vlgmr.msra.gmra.mxu1 %vm411_vm1, %v17718_v7  ;;  %v17878_v30 = vor.u32 %v2102_v57, %v2098_v14  ;;  %v2834_v7 = vshll.u32 %v14960_v10, 16  ;;  %v16343_v14 = vld [vmem:[%s24125_s1 + $0xcc] ss:$16 sps:$4 sm:$0xff]   ;;  %v14969_v57 = vld [vmem:[%s24126_s2 + $0x4a4] ss:$16 sps:$4 sm:$0xff]  }
  0x7f   : > { %12563 = vmatmul.mubr.msk.bf16.vlgmr.msra.gmra.mxu0 %vm411_vm1, %v17839_v50  ;;  %1924 = vmatpush1.bf16.msra.mxu1 %v17849_v11 }
  0x80   : > { %2168 = vmatpush1.bf16.msra.mxu0 %v17857_v54  ;;  %1925 = vmatprep.subr.bf16.mxu1 %v17377_v24  ;;  %v12573_v24 = vld [vmem:[%s24125_s1 + $0xb8] sm:$0x77] }
  0x81   : > { %2169 = vmatprep.subr.bf16.mxu0 %v17391_v27  ;;  %1943 = vmatprep.mubr.bf16.mxu1 %v17177_v6  ;;  %v17887_v27 = vsel %vm415_vm0, %v12560_v5, 0  ;;  %v14967_v5 = vld [vmem:[%s24126_s2 + $0x4a0] ss:$16 sps:$4 sm:$0xff]  }
  0x82   : > { %2187 = vmatprep.mubr.bf16.mxu0 %v17177_v6 }
  0x83   : > { %1926 = vmatpush1.bf16.msra.mxu1 %v17422_v33  ;;  %v17905_v33 = vcombine.high %v17470_v44, %v12573_v24 }
  0x84   : > { %2170 = vmatpush1.bf16.msra.mxu0 %v17429_v34  ;;  %12564 = vmatprep.subr.msk.bf16.mxu1 %vm415_vm0, %v17867_v1  ;;  %v12581_v34 = vcombine.low %v17470_v44, %v12573_v24  ;;  %v12602_v44 = vld [vmem:[%s24125_s1 + $0x138] sm:$0x77]  ;;  %v14975_v24 = vld [vmem:[%s24126_s2 + $0x464] ss:$16 sps:$4 sm:$0xff]  }
  0x85   : > { %12611 = vmatprep.subr.msk.bf16.mxu0 %vm415_vm0, %v17873_v19 }
  0x86   : > { %12553 = vmatmul.mubr.msk.bf16.vlgmr.msra.gmra.mxu1 %vm411_vm1, %v17802_v35 }
  0x87   : > { %12584 = vmatmul.mubr.msk.bf16.vlgmr.msra.gmra.mxu0 %vm411_vm1, %v17878_v30  ;;  %2057 = vmatpush1.bf16.msra.mxu1 %v17887_v27 }
  0x88   : > { %2318 = vmatpush1.bf16.msra.mxu0 %v17895_v31  ;;  %2058 = vmatprep.subr.bf16.mxu1 %v17455_v41  ;;  %v17920_v41 = vsel %vm415_vm0, %v12581_v34, 0 }
  0x89   : > { %2319 = vmatprep.subr.bf16.mxu0 %v17460_v42  ;;  %2076 = vmatprep.mubr.bf16.mxu1 %v17177_v6  ;;  %v17925_v42 = vsel %vm415_vm0, %v12619_v59, 0 }
  0x8a   : > { %2337 = vmatprep.mubr.bf16.mxu0 %v17177_v6 }
  0x8b   : > { %2059 = vmatpush1.bf16.msra.mxu1 %v17491_v48  ;;  %v17941_v48 = vcombine.high %v17536_v58, %v12602_v44 }
  0x8c   : > { %2320 = vmatpush1.bf16.msra.mxu0 %v17498_v49  ;;  %12585 = vmatprep.subr.msk.bf16.mxu1 %vm415_vm0, %v17905_v33  ;;  %v12609_v49 = vcombine.low %v17536_v58, %v12602_v44  ;;  %v12594_v58 = vld [vmem:[%s24125_s1 + $0xf8] sm:$0x77]  ;;  %v14990_v44 = vld [vmem:[%s24126_s2 + $0x6a4] ss:$16 sps:$4 sm:$0xff]  }
  0x8d   : > { %12623 = vmatprep.subr.msk.bf16.mxu0 %vm415_vm0, %v17911_v45  ;;  %v17974_v60 = vcombine.high %v17597_v22, %v12594_v58 }
  0x8e   : > { %12565 = vmatmul.mubr.msk.bf16.vlgmr.msra.gmra.mxu1 %vm411_vm1, %v17839_v50 }
  0x8f   : > { %12612 = vmatmul.mubr.msk.bf16.vlgmr.msra.gmra.mxu0 %vm411_vm1, %v17802_v35  ;;  %2209 = vmatpush1.bf16.msra.mxu1 %v17920_v41 }
  0x90   : > { %2448 = vmatpush1.bf16.msra.mxu0 %v17925_v42  ;;  %2210 = vmatprep.subr.bf16.mxu1 %v17521_v55  ;;  %v17956_v55 = vsel %vm415_vm0, %v12609_v49, 0 }
  0x91   : > { %2449 = vmatprep.subr.bf16.mxu0 %v17526_v56  ;;  %2228 = vmatprep.mubr.bf16.mxu1 %v17177_v6  ;;  %v17961_v56 = vsel %vm415_vm0, %v12639_v8, 0 }
  0x92   : > { %2467 = vmatprep.mubr.bf16.mxu0 %v17177_v6 }
  0x93   : > { %2211 = vmatpush1.bf16.msra.mxu1 %v17557_v62  ;;  %v12621_v62 = vcombine.low %v17597_v22, %v12594_v58  ;;  %v12634_v22 = vld [vmem:[%s24125_s1 + $0x178] sm:$0x77]  ;;  %v14985_v58 = vld [vmem:[%s24126_s2 + $0x420] ss:$16 sps:$4 sm:$0xff]  }
  0x94   : > { %2450 = vmatpush1.bf16.msra.mxu0 %v17564_v63  ;;  %12613 = vmatprep.subr.msk.bf16.mxu1 %vm415_vm0, %v17941_v48  ;;  %v17980_v63 = vld [vmem:[%s24125_s1 + $0x144] ss:$16 sps:$4 sm:$0xff]  }
  0x95   : > { %12643 = vmatprep.subr.msk.bf16.mxu0 %vm415_vm0, %v17947_v61 }
  0x96   : > { %12586 = vmatmul.mubr.msk.bf16.vlgmr.msra.gmra.mxu1 %vm411_vm1, %v17878_v30 }
  0x97   : > { %12624 = vmatmul.mubr.msk.bf16.vlgmr.msra.gmra.mxu0 %vm411_vm1, %v17839_v50  ;;  %2359 = vmatpush1.bf16.msra.mxu1 %v17956_v55 }
  0x98   : > { %2586 = vmatpush1.bf16.msra.mxu0 %v17961_v56  ;;  %2360 = vmatprep.subr.bf16.mxu1 %v17581_v16  ;;  %v17990_v16 = vsel %vm415_vm0, %v12621_v62, 0  ;;  %v14996_v62 = vld [vmem:[%s24126_s2 + $0x684] ss:$16 sps:$4 sm:$0xff]  }
  0x99   : > { %2587 = vmatprep.subr.bf16.mxu0 %v17980_v63  ;;  %2378 = vmatprep.mubr.bf16.mxu1 %v17177_v6 }
  0x9a   : > { %2605 = vmatprep.mubr.bf16.mxu0 %v17177_v6 }
  0x9b   : > { %2361 = vmatpush1.bf16.msra.mxu1 %v17607_v32  ;;  %v18005_v32 = vcombine.high %v17640_v53, %v12634_v22 }
  0x9c   : > { %2588 = vmatpush1.bf16.msra.mxu0 %v17617_v38  ;;  %12625 = vmatprep.subr.msk.bf16.mxu1 %vm415_vm0, %v17974_v60  ;;  %v12641_v38 = vcombine.low %v17640_v53, %v12634_v22 }
  0x9d   : > { %12647 = vmatprep.subr.msk.bf16.mxu0 %vm415_vm0, %v17771_v17  ;;  %v16328_v17 = vld [vmem:[%s24125_s1 + $0x4c] ss:$16 sps:$4 sm:$0xff]  }
  0x9e   : > { %12614 = vmatmul.mubr.msk.bf16.vlgmr.msra.gmra.mxu1 %vm411_vm1, %v17802_v35  ;;  %v18020_v53 = vsel %vm415_vm0, %v12641_v38, 0 }
  0x9f   : > { %12644 = vmatmul.mubr.msk.bf16.vlgmr.msra.gmra.mxu0 %vm411_vm1, %v17878_v30  ;;  %2489 = vmatpush1.bf16.msra.mxu1 %v17990_v16 }
  0xa0   : > { %2676 = vmatpush1.bf16.msra.mxu0 %v17785_v26  ;;  %2490 = vmatprep.subr.bf16.mxu1 %v17634_v51  ;;  %v16325_v51 = vld [vmem:[%s24125_s1 + $0x40] ss:$16 sps:$4 sm:$0xff]  }
  0xa1   : > { %2677 = vmatprep.subr.bf16.mxu0 %v16324_v3  ;;  %2508 = vmatprep.mubr.bf16.mxu1 %v17177_v6  ;;  %v14991_v3 = vld [vmem:[%s24126_s2 + $0x400] ss:$16 sps:$4 sm:$0xff]  }
  0xa2   : > { %2695 = vmatprep.mubr.bf16.mxu0 %v17177_v6 }
  0xa3   : > { %2491 = vmatpush1.bf16.msra.mxu1 %v17656_v4  ;;  %v16326_v4 = vld [vmem:[%s24125_s1 + $0x4] ss:$16 sps:$4 sm:$0xff]  }
  0xa4   : > { %2678 = vmatpush1.bf16.msra.mxu0 %v16325_v51  ;;  %12645 = vmatprep.subr.msk.bf16.mxu1 %vm415_vm0, %v18005_v32  ;;  %v14994_v51 = vld [vmem:[%s24126_s2 + $0x680] ss:$16 sps:$4 sm:$0xff]  }
  0xa5   : > { %12651 = vmatprep.subr.msk.bf16.mxu0 %vm415_vm0, %v17797_v0  ;;  %v16331_v0 = vld [vmem:[%s24125_s1 + $0x80] ss:$16 sps:$4 sm:$0xff]  }
  0xa6   : > { %12626 = vmatmul.mubr.msk.bf16.vlgmr.msra.gmra.mxu1 %vm411_vm1, %v17839_v50  ;;  %v14963_v50 = vld [vmem:[%s24126_s2 + $0x4e4] ss:$16 sps:$4 sm:$0xff]  }
  0xa7   : > { %12648 = vmatmul.mubr.msk.bf16.vlgmr.msra.gmra.mxu0 %vm411_vm1, %v17878_v30  ;;  %2627 = vmatpush1.bf16.msra.mxu1 %v18020_v53 }
  0xa8   : > { %2758 = vmatpush1.bf16.msra.mxu0 %v17817_v2  ;;  %2628 = vmatprep.subr.bf16.mxu1 %v17675_v36  ;;  %v2832_v36 = vshrl.u32 %v14960_v10, 16  ;;  %v16335_v2 = vld [vmem:[%s24125_s1 + $0x100] ss:$16 sps:$4 sm:$0xff]  }
  0xa9   : > { %2759 = vmatprep.subr.bf16.mxu0 %v16326_v4  ;;  %2646 = vmatprep.mubr.bf16.mxu1 %v17177_v6 }
  0xaa   : > { %2777 = vmatprep.mubr.bf16.mxu0 %v17177_v6 }
  0xab   : > { %2629 = vmatpush1.bf16.msra.mxu1 %v17689_v47  ;;  %v2836_v47 = vrot.slane %v2834_v7, 1 }
  0xac   : > { %2760 = vmatpush1.bf16.msra.mxu0 %v16327_v13  ;;  %12649 = vmatprep.subr.msk.bf16.mxu1 %vm415_vm0, %v17828_v12  ;;  %v16337_v12 = vld [vmem:[%s24125_s1 + $0xc4] ss:$16 sps:$4 sm:$0xff]  }
  0xad   : > { %12657 = vmatprep.subr.msk.bf16.mxu0 %vm415_vm0, %v17834_v23  ;;  %v18062_v26 = vor.u32 %v2836_v47, %v2832_v36  ;;  %v16339_v23 = vld [vmem:[%s24125_s1 + $0xc0] ss:$16 sps:$4 sm:$0xff]   ;;  %v14999_v47 = vld [vmem:[%s24126_s2 + $0x5e4] ss:$16 sps:$4 sm:$0xff]  }
  0xae   : > { %12646 = vmatmul.mubr.msk.bf16.vlgmr.msra.gmra.mxu1 %vm411_vm1, %v17878_v30 }
  0xaf   : > { %12652 = vmatmul.mubr.msk.bf16.vlgmr.msra.gmra.mxu0 %vm411_vm1, %v17802_v35  ;;  %2717 = vmatpush1.bf16.msra.mxu1 %v17849_v11  ;;  %v16342_v11 = vld [vmem:[%s24125_s1 + $0x140] ss:$16 sps:$4 sm:$0xff]  }
  0xb0   : > { %2854 = vmatpush1.bf16.msra.mxu0 %v17857_v54  ;;  %2718 = vmatprep.subr.bf16.mxu1 %v16328_v17  ;;  %v14964_v54 = vld [vmem:[%s24126_s2 + $0x4c0] ss:$16 sps:$4 sm:$0xff]  }
  0xb1   : > { %2855 = vmatprep.subr.bf16.mxu0 %v16329_v21  ;;  %2736 = vmatprep.mubr.bf16.mxu1 %v17177_v6  ;;  %v14997_v21 = vld [vmem:[%s24126_s2 + $0x5e0] ss:$16 sps:$4 sm:$0xff]  }
  0xb2   : > { %2873 = vmatprep.mubr.bf16.mxu0 %v17177_v6 }
  0xb3   : > { %2719 = vmatpush1.bf16.msra.mxu1 %v16330_v25  ;;  %v15000_v25 = vld [vmem:[%s24126_s2 + $0x660] ss:$16 sps:$4 sm:$0xff]  }
  0xb4   : > { %2856 = vmatpush1.bf16.msra.mxu0 %v16331_v0  ;;  %12653 = vmatprep.subr.msk.bf16.mxu1 %vm415_vm0, %v17867_v1  ;;  %v16344_v1 = vld [vmem:[%s24125_s1 + $0xc8] ss:$16 sps:$4 sm:$0xff]  }
  0xb5   : > { %12661 = vmatprep.subr.msk.bf16.mxu0 %vm415_vm0, %v17873_v19  ;;  %v14972_v19 = vld [vmem:[%s24126_s2 + $0x484] ss:$16 sps:$4 sm:$0xff]  }
  0xb6   : > { %12650 = vmatmul.mubr.msk.bf16.vlgmr.msra.gmra.mxu1 %vm411_vm1, %v17878_v30 }
  0xb7   : > { %12658 = vmatmul.mubr.msk.bf16.vlgmr.msra.gmra.mxu0 %vm411_vm1, %v18062_v26  ;;  %2799 = vmatpush1.bf16.msra.mxu1 %v17887_v27  ;;  %v16346_v27 = vld [vmem:[%s24125_s1 + $0x148] ss:$16 sps:$4 sm:$0xff]  }
  0xb8   : > { %2944 = vmatpush1.bf16.msra.mxu0 %v17895_v31  ;;  %2800 = vmatprep.subr.bf16.mxu1 %v16332_v28  ;;  %v14976_v31 = vld [vmem:[%s24126_s2 + $0x6e0] ss:$16 sps:$4 sm:$0xff]  }
  0xb9   : > { %2945 = vmatprep.subr.bf16.mxu0 %v16333_v37  ;;  %2818 = vmatprep.mubr.bf16.mxu1 %v17177_v6 }
  0xba   : > { %2963 = vmatprep.mubr.bf16.mxu0 %v17177_v6 }
  0xbb   : > { %2801 = vmatpush1.bf16.msra.mxu1 %v16334_v9  ;;  %v15005_v9 = vld [vmem:[%s24126_s2 + $0x5c4] ss:$16 sps:$4 sm:$0xff]  }
  0xbc   : > { %2946 = vmatpush1.bf16.msra.mxu0 %v16335_v2  ;;  %12659 = vmatprep.subr.msk.bf16.mxu1 %vm415_vm0, %v17905_v33  ;;  %v14984_v33 = vld [vmem:[%s24126_s2 + $0x6c4] ss:$16 sps:$4 sm:$0xff]  }
  0xbd   : > { %12665 = vmatprep.subr.msk.bf16.mxu0 %vm415_vm0, %v17911_v45  ;;  %v14981_v45 = vld [vmem:[%s24126_s2 + $0x444] ss:$16 sps:$4 sm:$0xff]  }
  0xbe   : > { %12654 = vmatmul.mubr.msk.bf16.vlgmr.msra.gmra.mxu1 %vm411_vm1, %v17802_v35 }
  0xbf   : > { %12662 = vmatmul.mubr.msk.bf16.vlgmr.msra.gmra.mxu0 %vm411_vm1, %v17878_v30  ;;  %2895 = vmatpush1.bf16.msra.mxu1 %v17920_v41  ;;  %v14979_v41 = vld [vmem:[%s24126_s2 + $0x440] ss:$16 sps:$4 sm:$0xff]  }
  0xc0   : > { %3026 = vmatpush1.bf16.msra.mxu0 %v17925_v42  ;;  %2896 = vmatprep.subr.bf16.mxu1 %v16336_v39  ;;  %v14982_v42 = vld [vmem:[%s24126_s2 + $0x6c0] ss:$16 sps:$4 sm:$0xff]  }
  0xc1   : > { %3027 = vmatprep.subr.bf16.mxu0 %v16337_v12  ;;  %2914 = vmatprep.mubr.bf16.mxu1 %v17177_v6  ;;  %v15003_v12 = vld [vmem:[%s24126_s2 + $0x5c0] ss:$16 sps:$4 sm:$0xff]  }
  0xc2   : > { %3045 = vmatprep.mubr.bf16.mxu0 %v17177_v6 }
  0xc3   : > { %2897 = vmatpush1.bf16.msra.mxu1 %v16338_v40  ;;  %v15006_v40 = vld [vmem:[%s24126_s2 + $0x640] ss:$16 sps:$4 sm:$0xff]  }
  0xc4   : > { %3028 = vmatpush1.bf16.msra.mxu0 %v16339_v23  ;;  %12663 = vmatprep.subr.msk.bf16.mxu1 %vm415_vm0, %v17941_v48  ;;  %v15014_v23 = vld [vmem:[%s24126_s2 + $0x624] ss:$16 sps:$4 sm:$0xff]  }
  0xc5   : > { %12669 = vmatprep.subr.msk.bf16.mxu0 %vm415_vm0, %v17947_v61 }
  0xc6   : > { %12660 = vmatmul.mubr.msk.bf16.vlgmr.msra.gmra.mxu1 %vm411_vm1, %v18062_v26 }
  0xc7   : > { %12666 = vmatmul.mubr.msk.bf16.vlgmr.msra.gmra.mxu0 %vm411_vm1, %v17802_v35  ;;  %2985 = vmatpush1.bf16.msra.mxu1 %v17956_v55  ;;  %v14987_v55 = vld [vmem:[%s24126_s2 + $0x424] ss:$16 sps:$4 sm:$0xff]  }
  0xc8   : > { %3108 = vmatpush1.bf16.msra.mxu0 %v17961_v56  ;;  %2986 = vmatprep.subr.bf16.mxu1 %v16340_v43 }
  0xc9   : > { %3109 = vmatprep.subr.bf16.mxu0 %v17980_v63  ;;  %3004 = vmatprep.mubr.bf16.mxu1 %v17177_v6 }
  0xca   : > { %3127 = vmatprep.mubr.bf16.mxu0 %v17177_v6 }
  0xcb   : > { %2987 = vmatpush1.bf16.msra.mxu1 %v16341_v52 }
  0xcc   : > { %3110 = vmatpush1.bf16.msra.mxu0 %v16342_v11  ;;  %12667 = vmatprep.subr.msk.bf16.mxu1 %vm415_vm0, %v17974_v60  ;;  %v14988_v60 = vld [vmem:[%s24126_s2 + $0x6a0] ss:$16 sps:$4 sm:$0xff]   ;;  %v15011_v11 = vld [vmem:[%s24126_s2 + $0x5a4] ss:$16 sps:$4 sm:$0xff]  }
  0xcd   : > { %4174 = vmatprep.subr.bf16.mxu0 %v14963_v50 }
  0xce   : > { %12664 = vmatmul.mubr.msk.bf16.vlgmr.msra.gmra.mxu1 %vm411_vm1, %v17878_v30  ;;  %v14978_v30 = vld [vmem:[%s24126_s2 + $0x6e4] ss:$16 sps:$4 sm:$0xff]  }
  0xcf   : > { %12670 = vmatmul.mubr.msk.bf16.vlgmr.msra.gmra.mxu0 %vm411_vm1, %v18062_v26  ;;  %3067 = vmatpush1.bf16.msra.mxu1 %v17990_v16 }
  0xd0   : > { %3068 = vmatprep.subr.bf16.mxu1 %v16343_v14  ;;  %3086 = vmatprep.mubr.bf16.mxu1 %v17177_v6  ;;  %v15012_v14 = vld [vmem:[%s24126_s2 + $0x620] ss:$16 sps:$4 sm:$0xff]  }
  0xd1   : > { %4175 = vmatpush1.bf16.msra.mxu0 %v14961_v15 }
  0xd2   : > { %4176 = vmatprep.subr.bf16.mxu0 %v14966_v18 }
  0xd3   : > { %3069 = vmatpush1.bf16.msra.mxu1 %v16344_v1 }
  0xd4   : > { %12671 = vmatprep.subr.msk.bf16.mxu1 %vm415_vm0, %v18005_v32  ;;  %v14993_v32 = vld [vmem:[%s24126_s2 + $0x404] ss:$16 sps:$4 sm:$0xff]   ;;  %vm10289_vm0 = vcmask 523264  }
  0xd5   : > { %4177 = vmatpush1.bf16.msra.mxu0 %v14964_v54  ;;  %v15009_v54 = vld [vmem:[%s24126_s2 + $0x5a0] ss:$16 sps:$4 sm:$0xff]  }
  0xd6   : > { %12668 = vmatmul.mubr.msk.bf16.vlgmr.msra.gmra.mxu1 %vm411_vm1, %v17802_v35  ;;  %4178 = vmatprep.subr.bf16.mxu0 %v14969_v57  ;;  %v16345_v35 = vld [vmem:[%s24125_s1 + $0x14c] ss:$16 sps:$4 sm:$0xff]   ;;  %v15020_v57 = vld [vmem:[%s24126_s2 + $0x604] ss:$16 sps:$4 sm:$0xff]  }
  0xd7   : > { %3149 = vmatpush1.bf16.msra.mxu1 %v18020_v53  ;;  %3168 = vmatprep.mubr.bf16.mxu1 %v17177_v6  ;;  %v15002_v53 = vld [vmem:[%s24126_s2 + $0x664] ss:$16 sps:$4 sm:$0xff]  }
  0xd8   : > { %3150 = vmatprep.subr.bf16.mxu1 %v16345_v35 }
  0xd9   : > { %4179 = vmatpush1.bf16.msra.mxu0 %v14967_v5 }
  0xda   : > { %4180 = vmatprep.subr.bf16.mxu0 %v14972_v19 }
  0xdb   : > { %3151 = vmatpush1.bf16.msra.mxu1 %v16346_v27  ;;  %v15018_v27 = vld [vmem:[%s24126_s2 + $0x600] ss:$16 sps:$4 sm:$0xff]  }
  0xdc   : > { %4215 = vmatprep.subr.bf16.mxu1 %v14978_v30 }
  0xdd   : > { %4181 = vmatpush1.bf16.msra.mxu0 %v14970_v20  ;;  %v15017_v20 = vld [vmem:[%s24126_s2 + $0x584] ss:$16 sps:$4 sm:$0xff]  }
  0xde   : > { %v462_v34 = vpop.f32.mrf.mxu1  ;;  %12672 = vmatmul.mubr.msk.bf16.vlgmr.msra.gmra.mxu1 %vm411_vm1, %v18062_v26  ;;  %4182 = vmatprep.subr.bf16.mxu0 %v14975_v24  ;;  %v15008_v26 = vld [vmem:[%s24126_s2 + $0x644] ss:$16 sps:$4 sm:$0xff]   ;;  %v15015_v24 = vld [vmem:[%s24126_s2 + $0x580] ss:$16 sps:$4 sm:$0xff]   ;;  %vm17179_vm1 = vmmov 0  }
  0xdf   : > { %v595_v59 = vpop.f32.mrf.mxu0  ;;  %4216 = vmatpush1.bf16.msra.mxu1 %v14976_v31 }
  0xe0   : > { %v596_v46 = vadd.f32 %v595_v59, %v462_v34  ;;  %v464_v48 = vpop.f32.mrf.mxu1  ;;  %4217 = vmatprep.subr.bf16.mxu1 %v14984_v33  ;;  %v15023_v59 = vld [vmem:[%s24126_s2 + $0x564] ss:$16 sps:$4 sm:$0xff]  }
  0xe1   : > { %v597_v49 = vpop.f32.mrf.mxu0  ;;  %4183 = vmatpush1.bf16.msra.mxu0 %v14973_v29  ;;  %v15026_v29 = vld [vmem:[%s24126_s2 + $0x7e4] ss:$16 sps:$4 sm:$0xff]  }
  0xe2   : > { %v598_v61 = vadd.f32 %v597_v49, %v464_v48  ;;  %v466_v8 = vpop.f32.mrf.mxu1  ;;  %4184 = vmatprep.subr.bf16.mxu0 %v14981_v45 }
  0xe3   : > { %v599_v56 = vpop.f32.mrf.mxu0  ;;  %4218 = vmatpush1.bf16.msra.mxu1 %v14982_v42  ;;  %v15021_v42 = vld [vmem:[%s24126_s2 + $0x560] ss:$16 sps:$4 sm:$0xff]   ;;  %v15029_v8 = vld [vmem:[%s24126_s2 + $0x544] ss:$16 sps:$4 sm:$0xff]  }
  0xe4   : > { %v467_v63 = vpop.f32.mrf.mxu1  ;;  %4219 = vmatprep.subr.bf16.mxu1 %v14990_v44  ;;  %v15024_v44 = vld [vmem:[%s24126_s2 + $0x7e0] ss:$16 sps:$4 sm:$0xff]  }
  0xe5   : > { %v600_v16 = vpop.f32.mrf.mxu0  ;;  %4185 = vmatpush1.bf16.msra.mxu0 %v14979_v41  ;;  %v15027_v56 = vld [vmem:[%s24126_s2 + $0x540] ss:$16 sps:$4 sm:$0xff]  }
  0xe6   : > { %v503_v22 = vpop.f32.mrf.mxu1  ;;  %4186 = vmatprep.subr.bf16.mxu0 %v14987_v55 }
  0xe7   : > { %v739_v38 = vpop.f32.mrf.mxu0  ;;  %4220 = vmatpush1.bf16.msra.mxu1 %v14988_v60  ;;  %v15038_v60 = vld [vmem:[%s24126_s2 + $0x7a4] ss:$16 sps:$4 sm:$0xff]  }
  0xe8   : > { %v18240_v10 = vadd.f32 %v739_v38, %v596_v46  ;;  %v505_v4 = vpop.f32.mrf.mxu1  ;;  %4221 = vmatprep.subr.bf16.mxu1 %v14996_v62  ;;  %v15032_v46 = vld [vmem:[%s24126_s2 + $0x7c4] ss:$16 sps:$4 sm:$0xff]   ;;  %v15033_v38 = vld [vmem:[%s24126_s2 + $0x520] ss:$16 sps:$4 sm:$0xff]  }
  0xe9   : > { %v741_v7 = vpop.f32.mrf.mxu0  ;;  %4187 = vmatpush1.bf16.msra.mxu0 %v14985_v58  ;;  %v15030_v58 = vld [vmem:[%s24126_s2 + $0x7c0] ss:$16 sps:$4 sm:$0xff]  }
  0xea   : > { %v18242_v13 = vadd.f32 %v741_v7, %v598_v61  ;;  %v507_v36 = vpop.f32.mrf.mxu1  ;;  %4188 = vmatprep.subr.bf16.mxu0 %v14993_v32 }
  0xeb   : > { %v743_v17 = vpop.f32.mrf.mxu0  ;;  %4222 = vmatpush1.bf16.msra.mxu1 %v14994_v51  ;;  %v15044_v51 = vld [vmem:[%s24126_s2 + $0x784] ss:$16 sps:$4 sm:$0xff]  }
  0xec   : > { %v508_v0 = vpop.f32.mrf.mxu1  ;;  %4223 = vmatprep.subr.bf16.mxu1 %v15002_v53  ;;  %v15041_v36 = vld [vmem:[%s24126_s2 + $0x504] ss:$16 sps:$4 sm:$0xff]   ;;  %v15039_v17 = vld [vmem:[%s24126_s2 + $0x500] ss:$16 sps:$4 sm:$0xff]  }
  0xed   : > { %v744_v28 = vpop.f32.mrf.mxu0  ;;  %4189 = vmatpush1.bf16.msra.mxu0 %v14991_v3  ;;  %v15036_v3 = vld [vmem:[%s24126_s2 + $0x7a0] ss:$16 sps:$4 sm:$0xff]  }
  0xee   : > { %v636_v37 = vpop.f32.mrf.mxu1  ;;  %4190 = vmatprep.subr.bf16.mxu0 %v14999_v47 }
  0xef   : > { %v637_v2 = vadd.f32 %v636_v37, %v503_v22  ;;  %v18259_v39 = vpop.f32.mrf.mxu0  ;;  %4224 = vmatpush1.bf16.msra.mxu1 %v15000_v25  ;;  %v15035_v22 = vld [vmem:[%s24126_s2 + $0x524] ss:$16 sps:$4 sm:$0xff]   ;;  %v15050_v37 = vld [vmem:[%s24126_s2 + $0x4ec] ss:$16 sps:$4 sm:$0xff]  }
  0xf0   : > { %v638_v43 = vpop.f32.mrf.mxu1  ;;  %4225 = vmatprep.subr.bf16.mxu1 %v15008_v26  ;;  %v15047_v25 = vld [vmem:[%s24126_s2 + $0x764] ss:$16 sps:$4 sm:$0xff]  }
  0xf1   : > { %v639_v50 = vadd.f32 %v638_v43, %v505_v4  ;;  %v18270_v52 = vpop.f32.mrf.mxu0  ;;  %4191 = vmatpush2.bf16.msra.mxu0 %v14997_v21  ;;  %v15042_v21 = vld [vmem:[%s24126_s2 + $0x780] ss:$16 sps:$4 sm:$0xff]  }
  0xf2   : > { %v640_v15 = vpop.f32.mrf.mxu1  ;;  %4192 = vmatprep.subr.bf16.mxu0 %v15005_v9 }
  0xf3   : > { %v895_v18 = vpop.f32.mrf.mxu0  ;;  %4226 = vmatpush1.bf16.msra.mxu1 %v15006_v40  ;;  %v15051_v15 = vld [vmem:[%s24126_s2 + $0x740] ss:$16 sps:$4 sm:$0xff]  }
  0xf4   : > { %v641_v1 = vpop.f32.mrf.mxu1  ;;  %4227 = vmatprep.subr.bf16.mxu1 %v15014_v23 }
  0xf5   : > { %v896_v5 = vpop.f32.mrf.mxu0  ;;  %4193 = vmatpush2.bf16.msra.mxu0 %v15003_v12  ;;  %v15053_v12 = vld [vmem:[%s24126_s2 + $0x744] ss:$16 sps:$4 sm:$0xff]   ;;  %v15057_v1 = vld [vmem:[%s24126_s2 + $0x720] ss:$16 sps:$4 sm:$0xff]  }
  0xf6   : > { %v780_v19 = vpop.f32.mrf.mxu1  ;;  %4194 = vmatprep.subr.bf16.mxu0 %v15011_v11  ;;  %v15059_v11 = vld [vmem:[%s24126_s2 + $0x724] ss:$16 sps:$4 sm:$0xff]  }
  0xf7   : > { %v18287_v30 = vadd.f32 %v780_v19, %v637_v2  ;;  %v18289_v35 = vpop.f32.mrf.mxu0  ;;  %4228 = vmatpush1.bf16.msra.mxu1 %v15012_v14  ;;  %v15045_v2 = vld [vmem:[%s24126_s2 + $0x760] ss:$16 sps:$4 sm:$0xff]   ;;  %v15065_v5 = vld [vmem:[%s24126_s2 + $0x704] ss:$16 sps:$4 sm:$0xff]  }
  0xf8   : > { %v782_v31 = vpop.f32.mrf.mxu1  ;;  %4229 = vmatprep.subr.bf16.mxu1 %v15020_v57 }
  0xf9   : > { %v18300_v33 = vadd.f32 %v782_v31, %v639_v50  ;;  %v18302_v34 = vpop.f32.mrf.mxu0  ;;  %4195 = vmatpush2.bf16.msra.mxu0 %v15009_v54  ;;  %v15074_v31 = vld [vmem:[%s24126_s2 + $0x6ec] ss:$16 sps:$4 sm:$0xff]  }
  0xfa   : > { %v784_v45 = vpop.f32.mrf.mxu1  ;;  %4196 = vmatprep.subr.bf16.mxu0 %v15017_v20 }
  0xfb   : > { %v1025_v41 = vpop.f32.mrf.mxu0  ;;  %4230 = vmatpush1.bf16.msra.mxu1 %v15018_v27 }
  0xfc   : > { %v785_v48 = vpop.f32.mrf.mxu1  ;;  %4231 = vmatprep.subr.bf16.mxu1 %v15026_v29  ;;  %v15063_v29 = vld [vmem:[%s24126_s2 + $0x700] ss:$16 sps:$4 sm:$0xff]  }
  0xfd   : > { %v1026_v49 = vpop.f32.mrf.mxu0  ;;  %4197 = vmatpush2.bf16.msra.mxu0 %v15015_v24 }
  0xfe   : > { %v18316_v61 = vpop.f32.mrf.mxu1  ;;  %4198 = vmatprep.subr.bf16.mxu0 %v15023_v59 }
  0xff   : > { %v18321_v55 = vpop.f32.mrf.mxu0  ;;  %4232 = vmatpush2.bf16.msra.mxu1 %v15024_v44 }
 0x100   : > { %v18332_v62 = vpop.f32.mrf.mxu1  ;;  %4233 = vmatprep.subr.bf16.mxu1 %v15032_v46 }
 0x101   : > { %v18334_v63 = vpop.f32.mrf.mxu0  ;;  %4199 = vmatpush2.bf16.msra.mxu0 %v15021_v42 }
 0x102   : > { %v936_v16 = vpop.f32.mrf.mxu1  ;;  %4200 = vmatprep.subr.bf16.mxu0 %v15029_v8 }
 0x103   : > { %v1164_v32 = vpop.f32.mrf.mxu0  ;;  %4234 = vmatpush2.bf16.msra.mxu1 %v15030_v58 }
 0x104   : > { %v937_v53 = vpop.f32.mrf.mxu1  ;;  %4235 = vmatprep.subr.bf16.mxu1 %v15038_v60 }
 0x105   : > { %v1165_v4 = vpop.f32.mrf.mxu0  ;;  %4201 = vmatpush2.bf16.msra.mxu0 %v15027_v56  ;;  %v1024_v53 = vadd.f32 %v18302_v34, %v18270_v52 }
 0x106   : > { %v18348_v7 = vpop.f32.mrf.mxu1  ;;  %4202 = vmatprep.subr.bf16.mxu0 %v15035_v22  ;;  %v1730_v22 = vlaneseq }
 0x107   : > { %v18353_v47 = vpop.f32.mrf.mxu0  ;;  %4236 = vmatpush2.bf16.msra.mxu1 %v15036_v3 }
 0x108   : > { %v18364_v26 = vpop.f32.mrf.mxu1  ;;  %4237 = vmatprep.subr.bf16.mxu1 %v15044_v51 }
 0x109   : > { %v1252_v0 = vpop.f32.mrf.mxu0  ;;  %4203 = vmatpush2.bf16.msra.mxu0 %v15033_v38  ;;  %v1022_v38 = vadd.f32 %v18289_v35, %v18259_v39  ;;  %v18418_v39 = vld [vmem:[%s24127_s3] sm:$0xf]  ;;  %v1209_v35 = vadd.f32 %v18334_v63, %v1024_v53 }
 0x10a   : > { %v1066_v28 = vpop.f32.mrf.mxu1  ;;  %4204 = vmatprep.subr.bf16.mxu0 %v15041_v36 }
 0x10b   : > { %v1254_v9 = vpop.f32.mrf.mxu0  ;;  %4238 = vmatpush2.bf16.msra.mxu1 %v15042_v21 }
 0x10c   : > { %v1067_v40 = vpop.f32.mrf.mxu1  ;;  %4239 = vmatprep.subr.bf16.mxu1 %v15047_v25  ;;  %v1208_v25 = vadd.f32 %v18321_v55, %v1022_v38 }
 0x10d   : > { %v1255_v23 = vpop.f32.mrf.mxu0  ;;  %4205 = vmatpush2.bf16.msra.mxu0 %v15039_v17  ;;  %v18412_v17 = vshrl.u32 %v1730_v22, 7 }
 0x10e   : > { %v18375_v43 = vpop.f32.mrf.mxu1  ;;  %4256 = vmatprep.subr.bf16.mxu0 %v15050_v37  ;;  %v1212_v40 = vmax.f32 %v18240_v10, %v1208_v25 }
 0x10f   : > { %v1332_v50 = vpop.f32.mrf.mxu0  ;;  %4240 = vmatpush2.bf16.msra.mxu1 %v15045_v2  ;;  %v1732_v2 = vsub.s32 0, %v18412_v17 }
 0x110   : > { %v18383_v18 = vpop.f32.mrf.mxu1  ;;  %4241 = vmatprep.subr.bf16.mxu1 %v15053_v12  ;;  %v1333_v4 = vadd.f32 %v1332_v50, %v18353_v47  ;;  %v1736_v50 = vsub.s32 1, %v18412_v17 }
 0x111   : > { %v1334_v54 = vpop.f32.mrf.mxu0  ;;  %v18428_v63 = vrot.slane %v18418_v39, %v1732_v2 }
 0x112   : > { %v1205_v14 = vpop.f32.mrf.mxu1  ;;  %v1335_v28 = vadd.f32 %v1334_v54, %v1252_v0 }
 0x113   : > { %v1336_v57 = vpop.f32.mrf.mxu0  ;;  %4242 = vmatpush2.bf16.msra.mxu1 %v15051_v15 }
 0x114   : > { %v1206_v19 = vpop.f32.mrf.mxu1  ;;  %4243 = vmatprep.subr.bf16.mxu1 %v15059_v11  ;;  %v1213_v11 = vmax.f32 %v18242_v13, %v1209_v35  ;;  %v1744_v35 = vsub.s32 3, %v18412_v17 }
 0x115   : > { %v1337_v20 = vpop.f32.mrf.mxu0 }
 0x116   : > { %v18391_v24 = vpop.f32.mrf.mxu1  ;;  %v18433_v20 = vrot.slane %v18418_v39, %v1736_v50 }
 0x117   : > { %v1419_v27 = vpop.f32.mrf.mxu0  ;;  %4244 = vmatpush2.bf16.msra.mxu1 %v15057_v1 }
 0x118   : > { %v18399_v45 = vpop.f32.mrf.mxu1  ;;  %4245 = vmatprep.subr.bf16.mxu1 %v15065_v5  ;;  %v1467_v52 = vadd.f32 %v1419_v27, %v1333_v4  ;;  %v1740_v4 = vsub.s32 2, %v18412_v17  ;;  %v16178_v17 = vld [vmem:[%s24129_s5 + $0x1c0] sm:$0xff]  }
 0x119   : > { %v1421_v59 = vpop.f32.mrf.mxu0 }
 0x11a   : > { %v1295_v41 = vpop.f32.mrf.mxu1  ;;  %v1468_v23 = vadd.f32 %v1421_v59, %v1335_v28  ;;  %v1471_v54 = vmax.f32 %v1212_v40, %v1467_v52 }
 0x11b   : > { %v1423_v42 = vpop.f32.mrf.mxu0  ;;  %4246 = vmatpush2.bf16.msra.mxu1 %v15063_v29 }
 0x11c   : > { %v1296_v44 = vpop.f32.mrf.mxu1  ;;  %4297 = vmatprep.subr.bf16.mxu1 %v15074_v31  ;;  %v1472_v5 = vmax.f32 %v1213_v11, %v1468_v23 }
 0x11d   : > { %v1424_v46 = vpop.f32.mrf.mxu0 }
 0x11e   : > { %v18401_v48 = vpop.f32.mrf.mxu1  ;;  %v1063_v46 = vadd.f32 %v18348_v7, %v18316_v61 }
 0x11f   : > { %v1509_v49 = vpop.f32.mrf.mxu0 }
 0x120   : > { %v18403_v8 = vpop.f32.mrf.mxu1  ;;  %v1210_v22 = vadd.f32 %v18375_v43, %v1063_v46 }
 0x121   : > { %v1511_v56 = vpop.f32.mrf.mxu0 }
 0x122   : > { %v1377_v58 = vpop.f32.mrf.mxu1  ;;  %v1214_v25 = vmax.f32 %v18287_v30, %v1210_v22  ;;  %v18470_v30 = vrot.slane %v18418_v39, %v1740_v4 }
 0x123   : > { %v1513_v60 = vpop.f32.mrf.mxu0 }
 0x124   : > { %v1378_v16 = vpop.f32.mrf.mxu1 }
 0x125   : > { %v1514_v32 = vpop.f32.mrf.mxu0  ;;  %v1065_v16 = vadd.f32 %v18364_v26, %v18332_v62  ;;  %v1376_v26 = vadd.f32 %v18403_v8, %v18399_v45 }
 0x126   : > { %v1460_v3 = vpop.f32.mrf.mxu1  ;;  %v1374_v32 = vadd.f32 %v18401_v48, %v18391_v24 }
 0x127   : > { %v1591_v51 = vpop.f32.mrf.mxu0  ;;  %v1211_v62 = vadd.f32 %v18383_v18, %v1065_v16  ;;  %v15209_v18 = vld [vmem:[%s24126_s2 + $0x184] ss:$16 sps:$4 sm:$0xff]  }
 0x128   : > { %v18410_v36 = vpop.f32.mrf.mxu1  ;;  %v1592_v34 = vadd.f32 %v1591_v51, %v1509_v49  ;;  %v1469_v43 = vadd.f32 %v1460_v3, %v1374_v32 }
 0x129   : > { %v1593_v21 = vpop.f32.mrf.mxu0  ;;  %v1470_v28 = vadd.f32 %v18410_v36, %v1376_v26  ;;  %v1215_v8 = vmax.f32 %v18300_v33, %v1211_v62 }
 0x12a   : > { %v1464_v37 = vpop.f32.mrf.mxu1  ;;  %v1594_v55 = vadd.f32 %v1593_v21, %v1511_v56  ;;  %v1473_v3 = vmax.f32 %v1214_v25, %v1469_v43  ;;  %v15056_v43 = vld [vmem:[%s24126_s2 + $0x4cc] ss:$16 sps:$4 sm:$0xff]  }
 0x12b   : > { %v1595_v9 = vpop.f32.mrf.mxu0 }
 0x12c   : > { %v1465_v47 = vpop.f32.mrf.mxu1 }
 0x12d   : > { %v1596_v12 = vpop.f32.mrf.mxu0 }
 0x12e   : > { %v1550_v0 = vpop.f32.mrf.mxu1 }
 0x12f   : > { %v1673_v15 = vpop.f32.mrf.mxu0 }
 0x130   : > { %v1721_v14 = vadd.f32 %v1673_v15, %v1592_v34  ;;  %v1552_v57 = vpop.f32.mrf.mxu1 }
 0x131   : > { %v1675_v1 = vpop.f32.mrf.mxu0 }
 0x132   : > { %v1725_v19 = vmax.f32 %v1471_v54, %v1721_v14  ;;  %v1722_v10 = vadd.f32 %v1675_v1, %v1594_v55  ;;  %v1554_v27 = vpop.f32.mrf.mxu1  ;;  %v18476_v54 = vrot.slane %v18418_v39, %v1744_v35 }
 0x133   : > { %v1677_v29 = vpop.f32.mrf.mxu0 }
 0x134   : > { %v1750_v13 = vadd.f32 %v18428_v63, %v1725_v19  ;;  %v1726_v31 = vmax.f32 %v1472_v5, %v1722_v10  ;;  %v1555_v59 = vpop.f32.mrf.mxu1 }
 0x135   : > { %v1678_v41 = vpop.f32.mrf.mxu0 }
 0x136   : > { %v1751_v42 = vadd.f32 %v18433_v20, %v1726_v31  ;;  %v1632_v44 = vpop.f32.mrf.mxu1  ;;  %v1754_v56 = vmax.f32 %v1750_v13, 0.0 }
 0x137   : > { %v1904_v49 = vpop.f32.mrf.mxu0  ;;  %v1633_v37 = vadd.f32 %v1632_v44, %v1550_v0  ;;  %v1474_v0 = vmax.f32 %v1215_v8, %v1470_v28 }
 0x138   : > { %v1755_v58 = vmax.f32 %v1751_v42, 0.0  ;;  %v1634_v60 = vpop.f32.mrf.mxu1 }
 0x139   : > { %v1906_v51 = vpop.f32.mrf.mxu0  ;;  %v1635_v36 = vadd.f32 %v1634_v60, %v1552_v57  ;;  %v15048_v60 = vld [vmem:[%s24126_s2 + $0x4e8] ss:$16 sps:$4 sm:$0xff]  }
 0x13a   : > { %v14646_v61 = vpack.c.bf16 %v1755_v58, %v1754_v56  ;;  %v1636_v53 = vpop.f32.mrf.mxu1 }
 0x13b   : > { %v1908_v24 = vpop.f32.mrf.mxu0 }
 0x13c   : > { %v1773_v48 = vshrl.u32 %v14646_v61, 16  ;;  %v1637_v21 = vpop.f32.mrf.mxu1  ;;  %v1776_v34 = vshll.u32 %v14646_v61, 16 }
 0x13d   : > { %v1909_v9 = vpop.f32.mrf.mxu0 }
 0x13e   : > { %v1775_v52 = vrot.slane %v1773_v48, 7  ;;  %v1714_v45 = vpop.f32.mrf.mxu1  ;;  %v15054_v9 = vld [vmem:[%s24126_s2 + $0x4c8] ss:$16 sps:$4 sm:$0xff]  }
 0x13f   : > { %v1723_v47 = vadd.f32 %v1714_v45, %v1633_v37  ;;  %v2037_v12 = vpop.f32.mrf.mxu0 }
 0x140   : > { %v1778_v40 = vor.u32 %v1776_v34, %v1775_v52  ;;  %v2038_v23 = vadd.f32 %v2037_v12, %v1904_v49  ;;  %v1716_v55 = vpop.f32.mrf.mxu1  ;;  %v15062_v34 = vld [vmem:[%s24126_s2 + $0x4ac] ss:$16 sps:$4 sm:$0xff]  }
 0x141   : > { %v1727_v15 = vmax.f32 %v1473_v3, %v1723_v47  ;;  %v1724_v11 = vadd.f32 %v1716_v55, %v1635_v36  ;;  %v2039_v14 = vpop.f32.mrf.mxu0 }
 0x142   : > { %v1796_v1 = vsel %vm18463_vm8, %v1778_v40, 0  ;;  %v2040_v33 = vadd.f32 %v2039_v14, %v1906_v51  ;;  %v1718_v5 = vpop.f32.mrf.mxu1 }
 0x143   : > { %1797 = vst [vmem:[#allocation2 + $0x30] sm:$0xff] %v1796_v1  ;;  %v1752_v57 = vadd.f32 %v18470_v30, %v1727_v15  ;;  %v1728_v19 = vmax.f32 %v1474_v0, %v1724_v11  ;;  %v2041_v10 = vpop.f32.mrf.mxu0  ;;  %v12804_v27 = vcombine.high %v1796_v1, %v1796_v1  ;;  %v12803_v29 = vcombine.low %v1796_v1, %v1796_v1  ;;  %v15068_v0 = vld [vmem:[%s24126_s2 + $0x48c] ss:$16 sps:$4 sm:$0xff]  }
 0x144   : > { %v1719_v13 = vpop.f32.mrf.mxu1  ;;  %v15071_v10 = vld [vmem:[%s24126_s2 + $0x46c] ss:$16 sps:$4 sm:$0xff]  }
 0x145   : > { %v1753_v31 = vadd.f32 %v18476_v54, %v1728_v19  ;;  %v2042_v59 = vpop.f32.mrf.mxu0  ;;  %v3512_v41 = vshll.u32 %v12804_v27, 16  ;;  %v3505_v42 = vshll.u32 %v12803_v29, 16  ;;  %v1756_v44 = vmax.f32 %v1752_v57, 0.0  ;;  %v15066_v19 = vld [vmem:[%s24126_s2 + $0x488] ss:$16 sps:$4 sm:$0xff]  }
 0x146   : > { %v1945_v39 = vpop.f32.mrf.mxu1  ;;  %v3510_v56 = vshrl.u32 %v12804_v27, 16  ;;  %v3503_v32 = vshrl.u32 %v12803_v29, 16 }
 0x147   : > { %v1757_v46 = vmax.f32 %v1753_v31, 0.0  ;;  %v2189_v49 = vpop.f32.mrf.mxu0  ;;  %v3514_v58 = vrot.slane %v3512_v41, 1  ;;  %v3507_v38 = vrot.slane %v3505_v42, 1  ;;  %v15072_v31 = vld [vmem:[%s24126_s2 + $0x6e8] ss:$16 sps:$4 sm:$0xff]  }
 0x148   : > { %v18485_v16 = vadd.f32 %v2189_v49, %v2038_v23  ;;  %v1947_v22 = vpop.f32.mrf.mxu1  ;;  %v15060_v23 = vld [vmem:[%s24126_s2 + $0x4a8] ss:$16 sps:$4 sm:$0xff]  }
 0x149   : > { %v14647_v51 = vpack.c.bf16 %v1757_v46, %v1756_v44  ;;  %v2191_v61 = vpop.f32.mrf.mxu0  ;;  %v18487_v7 = vor.u32 %v3514_v58, %v3510_v56  ;;  %v18491_v26 = vor.u32 %v3507_v38, %v3503_v32  ;;  %v15069_v44 = vld [vmem:[%s24126_s2 + $0x468] ss:$16 sps:$4 sm:$0xff]   ;;  %v15080_v46 = vld [vmem:[%s24126_s2 + $0x6cc] ss:$16 sps:$4 sm:$0xff]  }
 0x14a   : > { %v18489_v53 = vadd.f32 %v2191_v61, %v2040_v33  ;;  %v1949_v62 = vpop.f32.mrf.mxu1  ;;  %v15077_v38 = vld [vmem:[%s24126_s2 + $0x44c] ss:$16 sps:$4 sm:$0xff]   ;;  %v15078_v61 = vld [vmem:[%s24126_s2 + $0x6c8] ss:$16 sps:$4 sm:$0xff]  }
 0x14b   : > { %v1780_v24 = vshrl.u32 %v14647_v51, 16  ;;  %v2193_v48 = vpop.f32.mrf.mxu0  ;;  %4206 = vmatprep.mubr.bf16.mxu0 %v18487_v7  ;;  %v1783_v28 = vshll.u32 %v14647_v51, 16 }
 0x14c   : > { %v1950_v21 = vpop.f32.mrf.mxu1  ;;  %4207 = vmatmul.mubr.bf16.vlgmr.msra.gmra.mxu0 %v18491_v26  ;;  %v15086_v48 = vld [vmem:[%s24126_s2 + $0x6ac] ss:$16 sps:$4 sm:$0xff]  }
 0x14d   : > { %v1782_v25 = vrot.slane %v1780_v24, 7  ;;  %v2194_v37 = vpop.f32.mrf.mxu0  ;;  %4257 = vmatpush1.bf16.msra.mxu0 %v15048_v60  ;;  %4288 = vmatprep.mubr.bf16.mxu0 %v18487_v7  ;;  %v15075_v24 = vld [vmem:[%s24126_s2 + $0x448] ss:$16 sps:$4 sm:$0xff]  }
 0x14e   : > { %v2078_v52 = vpop.f32.mrf.mxu1  ;;  %4258 = vmatprep.subr.bf16.mxu0 %v15056_v43 }
 0x14f   : > { %v1785_v45 = vor.u32 %v1783_v28, %v1782_v25  ;;  %v2079_v8 = vadd.f32 %v2078_v52, %v1945_v39  ;;  %v18505_v3 = vpop.f32.mrf.mxu0  ;;  %v15083_v25 = vld [vmem:[%s24126_s2 + $0x42c] ss:$16 sps:$4 sm:$0xff]   ;;  %v15084_v28 = vld [vmem:[%s24126_s2 + $0x6a8] ss:$16 sps:$4 sm:$0xff]  }
 0x150   : > { %v2080_v36 = vpop.f32.mrf.mxu1 }
 0x151   : > { %v1799_v47 = vsel %vm18463_vm8, %v1785_v45, 0  ;;  %v2081_v12 = vadd.f32 %v2080_v36, %v1947_v22  ;;  %v18509_v40 = vpop.f32.mrf.mxu0  ;;  %4259 = vmatpush1.bf16.msra.mxu0 %v15054_v9  ;;  %v15092_v45 = vld [vmem:[%s24126_s2 + $0x68c] ss:$16 sps:$4 sm:$0xff]  }
 0x152   : > { %1800 = vst [vmem:[#allocation2] sm:$0xff] %v1799_v47  ;;  %v2082_v55 = vpop.f32.mrf.mxu1  ;;  %4260 = vmatprep.subr.bf16.mxu0 %v15062_v34  ;;  %v12806_v15 = vcombine.high %v1799_v47, %v1799_v47  ;;  %v12805_v11 = vcombine.low %v1799_v47, %v1799_v47  ;;  %v15081_v34 = vld [vmem:[%s24126_s2 + $0x428] ss:$16 sps:$4 sm:$0xff]   ;;  %v15089_v36 = vld [vmem:[%s24126_s2 + $0x40c] ss:$16 sps:$4 sm:$0xff]  }
 0x153   : > { %v2343_v14 = vpop.f32.mrf.mxu0  ;;  %v15090_v47 = vld [vmem:[%s24126_s2 + $0x688] ss:$16 sps:$4 sm:$0xff]  }
 0x154   : > { %v2083_v1 = vpop.f32.mrf.mxu1  ;;  %v3526_v33 = vshll.u32 %v12806_v15, 16  ;;  %v3519_v5 = vshll.u32 %v12805_v11, 16  ;;  %v3524_v29 = vshrl.u32 %v12806_v15, 16  ;;  %v3517_v59 = vshrl.u32 %v12805_v11, 16  ;;  %v15098_v15 = vld [vmem:[%s24126_s2 + $0x66c] ss:$16 sps:$4 sm:$0xff]  }
 0x155   : > { %v2344_v57 = vpop.f32.mrf.mxu0  ;;  %4261 = vmatpush1.bf16.msra.mxu0 %v15060_v23  ;;  %v15095_v14 = vld [vmem:[%s24126_s2 + $0x5ec] ss:$16 sps:$4 sm:$0xff]   ;;  %v15096_v1 = vld [vmem:[%s24126_s2 + $0x668] ss:$16 sps:$4 sm:$0xff]  }
 0x156   : > { %v2230_v27 = vpop.f32.mrf.mxu1  ;;  %4262 = vmatprep.subr.bf16.mxu0 %v15068_v0  ;;  %v3528_v13 = vrot.slane %v3526_v33, 1  ;;  %v3521_v41 = vrot.slane %v3519_v5, 1  ;;  %v15087_v0 = vld [vmem:[%s24126_s2 + $0x408] ss:$16 sps:$4 sm:$0xff]  }
 0x157   : > { %v18526_v39 = vadd.f32 %v2230_v27, %v2079_v8  ;;  %v18528_v42 = vpop.f32.mrf.mxu0 }
 0x158   : > { %v2232_v49 = vpop.f32.mrf.mxu1  ;;  %v18536_v56 = vor.u32 %v3528_v13, %v3524_v29  ;;  %v18538_v58 = vor.u32 %v3521_v41, %v3517_v59  ;;  %v15101_v29 = vld [vmem:[%s24126_s2 + $0x5cc] ss:$16 sps:$4 sm:$0xff]   ;;  %v15102_v13 = vld [vmem:[%s24126_s2 + $0x648] ss:$16 sps:$4 sm:$0xff]  }
 0x159   : > { %v18540_v60 = vadd.f32 %v2232_v49, %v2081_v12  ;;  %v18542_v22 = vpop.f32.mrf.mxu0  ;;  %4263 = vmatpush1.bf16.msra.mxu0 %v15066_v19  ;;  %v15093_v19 = vld [vmem:[%s24126_s2 + $0x5e8] ss:$16 sps:$4 sm:$0xff]  }
 0x15a   : > { %v2234_v32 = vpop.f32.mrf.mxu1  ;;  %4247 = vmatprep.mubr.bf16.mxu1 %v18536_v56  ;;  %4264 = vmatprep.subr.bf16.mxu0 %v15071_v10  ;;  %v15104_v10 = vld [vmem:[%s24126_s2 + $0x64c] ss:$16 sps:$4 sm:$0xff]  }
 0x15b   : > { %v2473_v51 = vpop.f32.mrf.mxu0  ;;  %4248 = vmatmul.mubr.bf16.vlgmr.msra.gmra.mxu1 %v18538_v58  ;;  %v15107_v32 = vld [vmem:[%s24126_s2 + $0x5ac] ss:$16 sps:$4 sm:$0xff]  }
 0x15c   : > { %v2235_v62 = vpop.f32.mrf.mxu1  ;;  %4298 = vmatpush1.bf16.msra.mxu1 %v15072_v31  ;;  %4329 = vmatprep.mubr.bf16.mxu1 %v18536_v56 }
 0x15d   : > { %v2474_v43 = vpop.f32.mrf.mxu0  ;;  %4265 = vmatpush1.bf16.msra.mxu0 %v15069_v44  ;;  %4299 = vmatprep.subr.bf16.mxu1 %v15080_v46  ;;  %v15099_v44 = vld [vmem:[%s24126_s2 + $0x5c8] ss:$16 sps:$4 sm:$0xff]   ;;  %v15110_v46 = vld [vmem:[%s24126_s2 + $0x62c] ss:$16 sps:$4 sm:$0xff]  }
 0x15e   : > { %v18559_v21 = vpop.f32.mrf.mxu1  ;;  %4266 = vmatprep.subr.bf16.mxu0 %v15077_v38  ;;  %v15108_v38 = vld [vmem:[%s24126_s2 + $0x628] ss:$16 sps:$4 sm:$0xff]  }
 0x15f   : > { %v18567_v37 = vpop.f32.mrf.mxu0  ;;  %v15105_v43 = vld [vmem:[%s24126_s2 + $0x5a8] ss:$16 sps:$4 sm:$0xff]  }
 0x160   : > { %v18569_v9 = vpop.f32.mrf.mxu1  ;;  %4300 = vmatpush1.bf16.msra.mxu1 %v15078_v61 }
 0x161   : > { %v18571_v52 = vpop.f32.mrf.mxu0  ;;  %4267 = vmatpush1.bf16.msra.mxu0 %v15075_v24  ;;  %4301 = vmatprep.subr.bf16.mxu1 %v15086_v48  ;;  %v15116_v24 = vld [vmem:[%s24126_s2 + $0x60c] ss:$16 sps:$4 sm:$0xff]  }
 0x162   : > { %v2384_v8 = vpop.f32.mrf.mxu1  ;;  %4268 = vmatprep.subr.bf16.mxu0 %v15083_v25  ;;  %v15113_v25 = vld [vmem:[%s24126_s2 + $0x58c] ss:$16 sps:$4 sm:$0xff]  }
 0x163   : > { %v2611_v12 = vpop.f32.mrf.mxu0 }
 0x164   : > { %v2385_v23 = vpop.f32.mrf.mxu1  ;;  %4302 = vmatpush1.bf16.msra.mxu1 %v15084_v28  ;;  %v15114_v28 = vld [vmem:[%s24126_s2 + $0x608] ss:$16 sps:$4 sm:$0xff]  }
 0x165   : > { %v2612_v55 = vpop.f32.mrf.mxu0  ;;  %4269 = vmatpush1.bf16.msra.mxu0 %v15081_v34  ;;  %4303 = vmatprep.subr.bf16.mxu1 %v15092_v45  ;;  %v15119_v23 = vld [vmem:[%s24126_s2 + $0x56c] ss:$16 sps:$4 sm:$0xff]  }
 0x166   : > { %v18591_v11 = vpop.f32.mrf.mxu1  ;;  %4270 = vmatprep.subr.bf16.mxu0 %v15089_v36  ;;  %v15111_v36 = vld [vmem:[%s24126_s2 + $0x588] ss:$16 sps:$4 sm:$0xff]  }
 0x167   : > { %v18599_v33 = vpop.f32.mrf.mxu0  ;;  %v15120_v55 = vld [vmem:[%s24126_s2 + $0x7e8] ss:$16 sps:$4 sm:$0xff]  }
 0x168   : > { %v18601_v5 = vpop.f32.mrf.mxu1  ;;  %4304 = vmatpush1.bf16.msra.mxu1 %v15090_v47  ;;  %v15122_v47 = vld [vmem:[%s24126_s2 + $0x7ec] ss:$16 sps:$4 sm:$0xff]  }
 0x169   : > { %v18603_v57 = vpop.f32.mrf.mxu0  ;;  %4271 = vmatpush1.bf16.msra.mxu0 %v15087_v0  ;;  %4305 = vmatprep.subr.bf16.mxu1 %v15098_v15 }
 0x16a   : > { %v2514_v27 = vpop.f32.mrf.mxu1  ;;  %4272 = vmatprep.subr.bf16.mxu0 %v15095_v14 }
 0x16b   : > { %v2701_v31 = vpop.f32.mrf.mxu0  ;;  %v15125_v27 = vld [vmem:[%s24126_s2 + $0x54c] ss:$16 sps:$4 sm:$0xff]  }
 0x16c   : > { %v2515_v59 = vpop.f32.mrf.mxu1  ;;  %4306 = vmatpush1.bf16.msra.mxu1 %v15096_v1  ;;  %v15117_v1 = vld [vmem:[%s24126_s2 + $0x568] ss:$16 sps:$4 sm:$0xff]  }
 0x16d   : > { %v2702_v41 = vpop.f32.mrf.mxu0  ;;  %4273 = vmatpush2.bf16.msra.mxu0 %v15093_v19  ;;  %4307 = vmatprep.subr.bf16.mxu1 %v15104_v10  ;;  %v15128_v19 = vld [vmem:[%s24126_s2 + $0x7cc] ss:$16 sps:$4 sm:$0xff]  }
 0x16e   : > { %v18623_v49 = vpop.f32.mrf.mxu1  ;;  %4274 = vmatprep.subr.bf16.mxu0 %v15101_v29  ;;  %v15126_v29 = vld [vmem:[%s24126_s2 + $0x7c8] ss:$16 sps:$4 sm:$0xff]  }
 0x16f   : > { %v18631_v51 = vpop.f32.mrf.mxu0  ;;  %v15123_v41 = vld [vmem:[%s24126_s2 + $0x548] ss:$16 sps:$4 sm:$0xff]  }
 0x170   : > { %v18633_v61 = vpop.f32.mrf.mxu1  ;;  %4308 = vmatpush1.bf16.msra.mxu1 %v15102_v13 }
 0x171   : > { %v18635_v62 = vpop.f32.mrf.mxu0  ;;  %4275 = vmatpush2.bf16.msra.mxu0 %v15099_v44  ;;  %4309 = vmatprep.subr.bf16.mxu1 %v15110_v46  ;;  %v15134_v44 = vld [vmem:[%s24126_s2 + $0x7ac] ss:$16 sps:$4 sm:$0xff]  }
 0x172   : > { %v2652_v48 = vpop.f32.mrf.mxu1  ;;  %4276 = vmatprep.subr.bf16.mxu0 %v15107_v32  ;;  %v15131_v32 = vld [vmem:[%s24126_s2 + $0x52c] ss:$16 sps:$4 sm:$0xff]  }
 0x173   : > { %v2783_v34 = vpop.f32.mrf.mxu0 }
 0x174   : > { %v2653_v45 = vpop.f32.mrf.mxu1  ;;  %4310 = vmatpush1.bf16.msra.mxu1 %v15108_v38  ;;  %v15132_v38 = vld [vmem:[%s24126_s2 + $0x7a8] ss:$16 sps:$4 sm:$0xff]   ;;  %v15140_v34 = vld [vmem:[%s24126_s2 + $0x78c] ss:$16 sps:$4 sm:$0xff]  }
 0x175   : > { %v2784_v8 = vpop.f32.mrf.mxu0  ;;  %4277 = vmatpush2.bf16.msra.mxu0 %v15105_v43  ;;  %4311 = vmatprep.subr.bf16.mxu1 %v15116_v24  ;;  %v15129_v24 = vld [vmem:[%s24126_s2 + $0x528] ss:$16 sps:$4 sm:$0xff]  }
 0x176   : > { %v18655_v12 = vpop.f32.mrf.mxu1  ;;  %4278 = vmatprep.subr.bf16.mxu0 %v15113_v25  ;;  %v15137_v25 = vld [vmem:[%s24126_s2 + $0x50c] ss:$16 sps:$4 sm:$0xff]  }
 0x177   : > { %v18663_v0 = vpop.f32.mrf.mxu0 }
 0x178   : > { %v18665_v15 = vpop.f32.mrf.mxu1  ;;  %4312 = vmatpush1.bf16.msra.mxu1 %v15114_v28 }
 0x179   : > { %v18667_v14 = vpop.f32.mrf.mxu0  ;;  %4279 = vmatpush2.bf16.msra.mxu0 %v15111_v36  ;;  %4313 = vmatprep.subr.bf16.mxu1 %v15122_v47  ;;  %v15138_v36 = vld [vmem:[%s24126_s2 + $0x788] ss:$16 sps:$4 sm:$0xff]  }
 0x17a   : > { %v2742_v10 = vpop.f32.mrf.mxu1  ;;  %4280 = vmatprep.subr.bf16.mxu0 %v15119_v23  ;;  %v15135_v23 = vld [vmem:[%s24126_s2 + $0x508] ss:$16 sps:$4 sm:$0xff]  }
 0x17b   : > { %v2879_v13 = vpop.f32.mrf.mxu0  ;;  %v15146_v10 = vld [vmem:[%s24126_s2 + $0xe4] ss:$16 sps:$4 sm:$0xff]  }
 0x17c   : > { %v2743_v31 = vpop.f32.mrf.mxu1  ;;  %4314 = vmatpush2.bf16.msra.mxu1 %v15120_v55  ;;  %v15141_v13 = vld [vmem:[%s24126_s2 + $0x768] ss:$16 sps:$4 sm:$0xff]  }
 0x17d   : > { %v2880_v59 = vpop.f32.mrf.mxu0  ;;  %4281 = vmatpush2.bf16.msra.mxu0 %v15117_v1  ;;  %4315 = vmatprep.subr.bf16.mxu1 %v15128_v19  ;;  %v15143_v19 = vld [vmem:[%s24126_s2 + $0x76c] ss:$16 sps:$4 sm:$0xff]  }
 0x17e   : > { %v18687_v46 = vpop.f32.mrf.mxu1  ;;  %4282 = vmatprep.subr.bf16.mxu0 %v15125_v27  ;;  %v2470_v27 = vadd.f32 %v18528_v42, %v18505_v3  ;;  %v15149_v3 = vld [vmem:[%s24126_s2 + $0x74c] ss:$16 sps:$4 sm:$0xff]   ;;  %v2472_v42 = vadd.f32 %v18542_v22, %v18509_v40  ;;  %v15147_v40 = vld [vmem:[%s24126_s2 + $0x748] ss:$16 sps:$4 sm:$0xff]   ;;  %v15152_v22 = vld [vmem:[%s24126_s2 + $0xc4] ss:$16 sps:$4 sm:$0xff]  }
 0x17f   : > { %v2965_v43 = vpop.f32.mrf.mxu0 }
 0x180   : > { %v18698_v48 = vpop.f32.mrf.mxu1  ;;  %4316 = vmatpush2.bf16.msra.mxu1 %v15126_v29 }
 0x181   : > { %v2967_v28 = vpop.f32.mrf.mxu0  ;;  %4283 = vmatpush2.bf16.msra.mxu0 %v15123_v41  ;;  %4317 = vmatprep.subr.bf16.mxu1 %v15134_v44  ;;  %v15144_v41 = vld [vmem:[%s24126_s2 + $0xe0] ss:$16 sps:$4 sm:$0xff]   ;;  %v2780_v44 = vadd.f32 %v18631_v51, %v18599_v33 }
 0x182   : > { %v2824_v8 = vpop.f32.mrf.mxu1  ;;  %4284 = vmatprep.subr.bf16.mxu0 %v15131_v32 }
 0x183   : > { %v2969_v47 = vpop.f32.mrf.mxu0  ;;  %v2923_v8 = vadd.f32 %v18663_v0, %v2780_v44  ;;  %v15153_v0 = vld [vmem:[%s24126_s2 + $0x728] ss:$16 sps:$4 sm:$0xff]  }
 0x184   : > { %v2825_v55 = vpop.f32.mrf.mxu1  ;;  %4318 = vmatpush2.bf16.msra.mxu1 %v15132_v38 }
 0x185   : > { %v2970_v1 = vpop.f32.mrf.mxu0  ;;  %4285 = vmatpush2.bf16.msra.mxu0 %v15129_v24  ;;  %4319 = vmatprep.subr.bf16.mxu1 %v15140_v34  ;;  %v340_v24 = vld [vmem:[#allocation2 + $0x18] sm:$0x11]  ;;  %v2782_v34 = vadd.f32 %v18635_v62, %v18603_v57  ;;  %v2656_v62 = vadd.f32 %v18571_v52, %v2472_v42 }
 0x186   : > { %v18725_v29 = vpop.f32.mrf.mxu1  ;;  %4286 = vmatprep.subr.bf16.mxu0 %v15137_v25  ;;  %v2655_v25 = vadd.f32 %v18567_v37, %v2470_v27  ;;  %v341_v33 = vsel %vm18732_vm15, 0, %v340_v24  ;;  %v15150_v37 = vld [vmem:[%s24126_s2 + $0xc0] ss:$16 sps:$4 sm:$0xff]   ;;  %v15155_v57 = vld [vmem:[%s24126_s2 + $0x72c] ss:$16 sps:$4 sm:$0xff]  }
 0x187   : > { %v3047_v59 = vpop.f32.mrf.mxu0  ;;  %342 = vst [vmem:[#allocation2 + $0x18] sm:$0x11] %v341_v33 }
 0x188   : > { %v18746_v32 = vpop.f32.mrf.mxu1  ;;  %4320 = vmatpush2.bf16.msra.mxu1 %v15138_v36  ;;  %v3048_v36 = vadd.f32 %v3047_v59, %v2965_v43  ;;  %v15158_v43 = vld [vmem:[%s24126_s2 + $0xa4] ss:$16 sps:$4 sm:$0xff]   ;;  %v15156_v59 = vld [vmem:[%s24126_s2 + $0xa0] ss:$16 sps:$4 sm:$0xff]  }
 0x189   : > { %v3049_v38 = vpop.f32.mrf.mxu0  ;;  %4287 = vmatpush2.bf16.msra.mxu0 %v15135_v23  ;;  %4321 = vmatprep.subr.bf16.mxu1 %v15143_v19  ;;  %v343_v23 = vld [vmem:[#allocation2 + $0x10] sm:$0x11]  ;;  %v2659_v19 = vmax.f32 %v18485_v16, %v2655_v25  ;;  %v15161_v16 = vld [vmem:[%s24126_s2 + $0x70c] ss:$16 sps:$4 sm:$0xff]  }
 0x18a   : > { %v2920_v45 = vpop.f32.mrf.mxu1  ;;  %4992 = vmatprep.subr.bf16.mxu0 %v15146_v10  ;;  %v344_v1 = vsel %vm18732_vm15, 0, %v343_v23  ;;  %v2924_v10 = vadd.f32 %v18667_v14, %v2782_v34  ;;  %v3050_v27 = vadd.f32 %v3049_v38, %v2967_v28  ;;  %v2660_v14 = vmax.f32 %v18489_v53, %v2656_v62  ;;  %v15164_v34 = vld [vmem:[%s24126_s2 + $0x84] ss:$16 sps:$4 sm:$0xff]  }
 0x18b   : > { %v3051_v51 = vpop.f32.mrf.mxu0  ;;  %345 = vst [vmem:[#allocation2 + $0x10] sm:$0x11] %v344_v1  ;;  %v2927_v28 = vmax.f32 %v2659_v19, %v2923_v8 }
 0x18c   : > { %v2921_v47 = vpop.f32.mrf.mxu1  ;;  %4289 = vmatmul.mubr.bf16.vlgmr.msra.gmra.mxu0 %v18491_v26  ;;  %4322 = vmatpush2.bf16.msra.mxu1 %v15141_v13  ;;  %v2928_v44 = vmax.f32 %v2660_v14, %v2924_v10  ;;  %v2511_v51 = vadd.f32 %v18591_v11, %v18559_v21  ;;  %v2513_v21 = vadd.f32 %v18601_v5, %v18569_v9  ;;  %v15176_v5 = vld [vmem:[%s24126_s2 + $0x2c4] ss:$16 sps:$4 sm:$0xff]  }
 0x18d   : > { %v3052_v55 = vpop.f32.mrf.mxu0  ;;  %4993 = vmatpush1.bf16.msra.mxu0 %v15144_v41  ;;  %4323 = vmatprep.subr.bf16.mxu1 %v15149_v3  ;;  %v2821_v11 = vadd.f32 %v18687_v46, %v18655_v12  ;;  %v15165_v47 = vld [vmem:[%s24126_s2 + $0x60] ss:$16 sps:$4 sm:$0xff]   ;;  %v2823_v9 = vadd.f32 %v18698_v48, %v18665_v15  ;;  %v15173_v10 = vld [vmem:[%s24126_s2 + $0x44] ss:$16 sps:$4 sm:$0xff]  }
 0x18e   : > { %v3006_v52 = vpop.f32.mrf.mxu1  ;;  %4994 = vmatprep.subr.bf16.mxu0 %v15152_v22  ;;  %v2657_v19 = vadd.f32 %v18623_v49, %v2511_v51  ;;  %v15171_v15 = vld [vmem:[%s24126_s2 + $0x40] ss:$16 sps:$4 sm:$0xff]  }
 0x18f   : > { %v3129_v13 = vpop.f32.mrf.mxu0  ;;  %v2925_v49 = vadd.f32 %v18725_v29, %v2821_v11  ;;  %v15174_v48 = vld [vmem:[%s24126_s2 + $0x2c0] ss:$16 sps:$4 sm:$0xff]   ;;  %v2926_v29 = vadd.f32 %v18746_v32, %v2823_v9 }
 0x190   : > { %v3177_v41 = vadd.f32 %v3129_v13, %v3048_v36  ;;  %v3008_v3 = vpop.f32.mrf.mxu1  ;;  %4324 = vmatpush2.bf16.msra.mxu1 %v15147_v40  ;;  %v15159_v40 = vld [vmem:[%s24126_s2 + $0x708] ss:$16 sps:$4 sm:$0xff]   ;;  %v15167_v36 = vld [vmem:[%s24126_s2 + $0x64] ss:$16 sps:$4 sm:$0xff]  }
 0x191   : > { %v3131_v42 = vpop.f32.mrf.mxu0  ;;  %4995 = vmatpush1.bf16.msra.mxu0 %v15150_v37  ;;  %4325 = vmatprep.subr.bf16.mxu1 %v15155_v57  ;;  %v15162_v37 = vld [vmem:[%s24126_s2 + $0x80] ss:$16 sps:$4 sm:$0xff]  }
 0x192   : > { %v3181_v38 = vmax.f32 %v2927_v28, %v3177_v41  ;;  %v3178_v24 = vadd.f32 %v3131_v42, %v3050_v27  ;;  %v3010_v25 = vpop.f32.mrf.mxu1  ;;  %4996 = vmatprep.subr.bf16.mxu0 %v15158_v43  ;;  %v2658_v27 = vadd.f32 %v18633_v61, %v2513_v21  ;;  %v15182_v43 = vld [vmem:[%s24126_s2 + $0x2a4] ss:$16 sps:$4 sm:$0xff]   ;;  %v2661_v61 = vmax.f32 %v18526_v39, %v2657_v19  ;;  %v15180_v39 = vld [vmem:[%s24126_s2 + $0x2a0] ss:$16 sps:$4 sm:$0xff]  }
 0x193   : > { %v3133_v45 = vpop.f32.mrf.mxu0  ;;  %v15179_v41 = vld [vmem:[%s24126_s2 + $0x24] ss:$16 sps:$4 sm:$0xff]  }
 0x194   : > { %v3185_v22 = vadd.f32 %v3181_v38, %v18428_v63  ;;  %v3182_v53 = vmax.f32 %v2928_v44, %v3178_v24  ;;  %v3011_v33 = vpop.f32.mrf.mxu1  ;;  %4326 = vmatpush2.bf16.msra.mxu1 %v15153_v0  ;;  %v15170_v63 = vld [vmem:[%s24126_s2 + $0x2e4] ss:$16 sps:$4 sm:$0xff]   ;;  %v2662_v42 = vmax.f32 %v18540_v60, %v2658_v27  ;;  %v2929_v44 = vmax.f32 %v2661_v61, %v2925_v49  ;;  %v15177_v45 = vld [vmem:[%s24126_s2 + $0x20] ss:$16 sps:$4 sm:$0xff]  }
 0x195   : > { %4997 = vmatpush1.bf16.msra.mxu0 %v15156_v59  ;;  %4327 = vmatprep.subr.bf16.mxu1 %v15161_v16  ;;  %v3134_v57 = vpop.f32.mrf.mxu0  ;;  %v15185_v60 = vld [vmem:[%s24126_s2 + $0x4] ss:$16 sps:$4 sm:$0xff]   ;;  %v15204_v27 = vld [vmem:[%s24126_s2 + $0x220] ss:$16 sps:$4 sm:$0xff]  }
 0x196   : > { %v3186_v62 = vadd.f32 %v3182_v53, %v18433_v20  ;;  %v3088_v8 = vpop.f32.mrf.mxu1  ;;  %4998 = vmatprep.subr.bf16.mxu0 %v15164_v34  ;;  %v3189_v23 = vmax.f32 %v3185_v22, 0.0  ;;  %v15168_v20 = vld [vmem:[%s24126_s2 + $0x2e0] ss:$16 sps:$4 sm:$0xff]   ;;  %v2930_v24 = vmax.f32 %v2662_v42, %v2926_v29  ;;  %v15188_v33 = vld [vmem:[%s24126_s2 + $0x284] ss:$16 sps:$4 sm:$0xff]  }
 0x197   : > { %v3089_v0 = vadd.f32 %v3088_v8, %v3006_v52  ;;  %v15186_v53 = vld [vmem:[%s24126_s2 + $0x280] ss:$16 sps:$4 sm:$0xff]   ;;  %v15218_v61 = vld [vmem:[%s24126_s2 + $0x3e4] ss:$16 sps:$4 sm:$0xff]  }
 0x198   : > { %v3190_v55 = vmax.f32 %v3186_v62, 0.0  ;;  %v3090_v1 = vpop.f32.mrf.mxu1  ;;  %4328 = vmatpush2.bf16.msra.mxu1 %v15159_v40  ;;  %v15183_v8 = vld [vmem:[%s24126_s2] ss:$16 sps:$4 sm:$0xff]   ;;  %v15215_v29 = vld [vmem:[%s24126_s2 + $0x164] ss:$16 sps:$4 sm:$0xff]  }
 0x199   : > { %4999 = vmatpush1.bf16.msra.mxu0 %v15162_v37  ;;  %5033 = vmatprep.subr.bf16.mxu1 %v15170_v63  ;;  %v3091_v52 = vadd.f32 %v3090_v1, %v3008_v3  ;;  %v15197_v1 = vld [vmem:[%s24126_s2 + $0x1c4] ss:$16 sps:$4 sm:$0xff]   ;;  %v15219_v42 = vld [vmem:[%s24126_s2 + $0x140] ss:$16 sps:$4 sm:$0xff]  }
 0x19a   : > { %v14648_v12 = vpack.c.bf16 %v3190_v55, %v3189_v23  ;;  %v3092_v46 = vpop.f32.mrf.mxu1  ;;  %5000 = vmatprep.subr.bf16.mxu0 %v15167_v36  ;;  %v15191_v36 = vld [vmem:[%s24126_s2 + $0x1e4] ss:$16 sps:$4 sm:$0xff]   ;;  %v15189_v23 = vld [vmem:[%s24126_s2 + $0x1e0] ss:$16 sps:$4 sm:$0xff]  }
 0x19b   : > { %4330 = vmatmul.mubr.bf16.vlgmr.msra.gmra.mxu1 %v18538_v58  ;;  %v15200_v55 = vld [vmem:[%s24126_s2 + $0x244] ss:$16 sps:$4 sm:$0xff]  }
 0x19c   : > { %v3208_v13 = vshrl.u32 %v14648_v12, 16  ;;  %v3093_v59 = vpop.f32.mrf.mxu1  ;;  %5034 = vmatpush1.bf16.msra.mxu1 %v15168_v20  ;;  %v3211_v14 = vshll.u32 %v14648_v12, 16  ;;  %v15198_v20 = vld [vmem:[%s24126_s2 + $0x240] ss:$16 sps:$4 sm:$0xff]   ;;  %v15206_v46 = vld [vmem:[%s24126_s2 + $0x224] ss:$16 sps:$4 sm:$0xff]  }
 0x19d   : > { %5001 = vmatpush1.bf16.msra.mxu0 %v15165_v47  ;;  %5035 = vmatprep.subr.bf16.mxu1 %v15176_v5  ;;  %v15195_v12 = vld [vmem:[%s24126_s2 + $0x1c0] ss:$16 sps:$4 sm:$0xff]  }
 0x19e   : > { %v3210_v16 = vrot.slane %v3208_v13, 7  ;;  %v3170_v28 = vpop.f32.mrf.mxu1  ;;  %5002 = vmatprep.subr.bf16.mxu0 %v15173_v10  ;;  %v15203_v10 = vld [vmem:[%s24126_s2 + $0x1a4] ss:$16 sps:$4 sm:$0xff]   ;;  %v15210_v13 = vld [vmem:[%s24126_s2 + $0x200] ss:$16 sps:$4 sm:$0xff]  }
 0x19f   : > { %v3179_v38 = vadd.f32 %v3170_v28, %v3089_v0  ;;  %v15207_v59 = vld [vmem:[%s24126_s2 + $0x180] ss:$16 sps:$4 sm:$0xff]   ;;  %v15221_v28 = vld [vmem:[%s24126_s2 + $0x144] ss:$16 sps:$4 sm:$0xff]  }
 0x1a0   : > { %v3213_v32 = vor.u32 %v3211_v14, %v3210_v16  ;;  %v3172_v3 = vpop.f32.mrf.mxu1  ;;  %5036 = vmatpush1.bf16.msra.mxu1 %v15174_v48  ;;  %v15212_v48 = vld [vmem:[%s24126_s2 + $0x204] ss:$16 sps:$4 sm:$0xff]   ;;  %v15213_v16 = vld [vmem:[%s24126_s2 + $0x160] ss:$16 sps:$4 sm:$0xff]  }
 0x1a1   : > { %v3183_v25 = vmax.f32 %v2929_v44, %v3179_v38  ;;  %v3180_v34 = vadd.f32 %v3172_v3, %v3091_v52  ;;  %5003 = vmatpush1.bf16.msra.mxu0 %v15171_v15  ;;  %5037 = vmatprep.subr.bf16.mxu1 %v15182_v43  ;;  %v15201_v15 = vld [vmem:[%s24126_s2 + $0x1a0] ss:$16 sps:$4 sm:$0xff]   ;;  %v15224_v14 = vld [vmem:[%s24126_s2 + $0x3c4] ss:$16 sps:$4 sm:$0xff]  }
 0x1a2   : > { %v18852_v22 = vsel %vm18463_vm8, %v3213_v32, 0  ;;  %5004 = vmatprep.subr.bf16.mxu0 %v15179_v41  ;;  %v3174_v40 = vpop.f32.mrf.mxu1  ;;  %v15216_v52 = vld [vmem:[%s24126_s2 + $0x3e0] ss:$16 sps:$4 sm:$0xff]   ;;  %v15230_v44 = vld [vmem:[%s24126_s2 + $0x3a4] ss:$16 sps:$4 sm:$0xff]  }
 0x1a3   : > { %v3187_v51 = vadd.f32 %v3183_v25, %v18470_v30  ;;  %v3184_v37 = vmax.f32 %v2930_v24, %v3180_v34  ;;  %v18863_v63 = vcombine.high %v18852_v22, %v18852_v22  ;;  %v15194_v30 = vld [vmem:[%s24126_s2 + $0x264] ss:$16 sps:$4 sm:$0xff]   ;;  %v15222_v41 = vld [vmem:[%s24126_s2 + $0x3c0] ss:$16 sps:$4 sm:$0xff]  }
 0x1a4   : > { %5038 = vmatpush1.bf16.msra.mxu1 %v15180_v39  ;;  %v3175_v57 = vpop.f32.mrf.mxu1  ;;  %v15227_v38 = vld [vmem:[%s24126_s2 + $0x124] ss:$16 sps:$4 sm:$0xff]   ;;  %v15228_v39 = vld [vmem:[%s24126_s2 + $0x3a0] ss:$16 sps:$4 sm:$0xff]  }
 0x1a5   : > { %v3188_v62 = vadd.f32 %v3184_v37, %v18476_v54  ;;  %5005 = vmatpush1.bf16.msra.mxu0 %v15177_v45  ;;  %5024 = vmatprep.mubr.bf16.mxu0 %v18863_v63  ;;  %v3191_v21 = vmax.f32 %v3187_v51, 0.0  ;;  %v15192_v54 = vld [vmem:[%s24126_s2 + $0x260] ss:$16 sps:$4 sm:$0xff]   ;;  %v15236_v3 = vld [vmem:[%s24126_s2 + $0x384] ss:$16 sps:$4 sm:$0xff]   ;;  %v18995_v37 = vcombine.low %v18852_v22, %v18852_v22 }
 0x1a6   : > { %5006 = vmatprep.subr.bf16.mxu0 %v15185_v60  ;;  %5039 = vmatprep.subr.bf16.mxu1 %v15188_v33  ;;  %v15225_v32 = vld [vmem:[%s24126_s2 + $0x120] ss:$16 sps:$4 sm:$0xff]   ;;  %v15233_v24 = vld [vmem:[%s24126_s2 + $0x104] ss:$16 sps:$4 sm:$0xff]   ;;  %v15240_v33 = vld [vmem:[%s24126_s2 + $0xe8] ss:$16 sps:$4 sm:$0xff]  }
 0x1a7   : > { %v3192_v11 = vmax.f32 %v3188_v62, 0.0  ;;  %v15234_v25 = vld [vmem:[%s24126_s2 + $0x380] ss:$16 sps:$4 sm:$0xff]   ;;  %v15239_v45 = vld [vmem:[%s24126_s2 + $0x364] ss:$16 sps:$4 sm:$0xff]  }
 0x1a8   : > { %5040 = vmatpush1.bf16.msra.mxu1 %v15186_v53  ;;  %v15231_v34 = vld [vmem:[%s24126_s2 + $0x100] ss:$16 sps:$4 sm:$0xff]   ;;  %v15242_v53 = vld [vmem:[%s24126_s2 + $0xec] ss:$16 sps:$4 sm:$0xff]   ;;  %v15245_v40 = vld [vmem:[%s24126_s2 + $0x344] ss:$16 sps:$4 sm:$0xff]  }
 0x1a9   : > { %v14649_v47 = vpack.c.bf16 %v3192_v11, %v3191_v21  ;;  %5007 = vmatpush1.bf16.msra.mxu0 %v15183_v8  ;;  %5041 = vmatprep.subr.bf16.mxu1 %v15194_v30  ;;  %v15237_v60 = vld [vmem:[%s24126_s2 + $0x360] ss:$16 sps:$4 sm:$0xff]   ;;  %v15248_v51 = vld [vmem:[%s24126_s2 + $0xcc] ss:$16 sps:$4 sm:$0xff]   ;;  %v15246_v62 = vld [vmem:[%s24126_s2 + $0xc8] ss:$16 sps:$4 sm:$0xff]  }
 0x1aa   : > { %5008 = vmatprep.subr.bf16.mxu0 %v15191_v36  ;;  %v15243_v57 = vld [vmem:[%s24126_s2 + $0x340] ss:$16 sps:$4 sm:$0xff]   ;;  %v15251_v8 = vld [vmem:[%s24126_s2 + $0x324] ss:$16 sps:$4 sm:$0xff]   ;;  %v15254_v22 = vld [vmem:[%s24126_s2 + $0xac] ss:$16 sps:$4 sm:$0xff]  }
 0x1ab   : > { %v3215_v19 = vshrl.u32 %v14649_v47, 16  ;;  %v3218_v5 = vshll.u32 %v14649_v47, 16  ;;  %v15249_v30 = vld [vmem:[%s24126_s2 + $0x320] ss:$16 sps:$4 sm:$0xff]   ;;  %v15252_v36 = vld [vmem:[%s24126_s2 + $0xa8] ss:$16 sps:$4 sm:$0xff]  }
 0x1ac   : > { %5042 = vmatpush1.bf16.msra.mxu1 %v15192_v54  ;;  %v15257_v21 = vld [vmem:[%s24126_s2 + $0x304] ss:$16 sps:$4 sm:$0xff]   ;;  %v15260_v11 = vld [vmem:[%s24126_s2 + $0x8c] ss:$16 sps:$4 sm:$0xff]   ;;  %v15255_v54 = vld [vmem:[%s24126_s2 + $0x300] ss:$16 sps:$4 sm:$0xff]  }
 0x1ad   : > { %v3217_v9 = vrot.slane %v3215_v19, 7  ;;  %5009 = vmatpush2.bf16.msra.mxu0 %v15189_v23  ;;  %5043 = vmatprep.subr.bf16.mxu1 %v15200_v55  ;;  %v15258_v47 = vld [vmem:[%s24126_s2 + $0x88] ss:$16 sps:$4 sm:$0xff]   ;;  %v15263_v23 = vld [vmem:[%s24126_s2 + $0x6c] ss:$16 sps:$4 sm:$0xff]  }
 0x1ae   : > { %5010 = vmatprep.subr.bf16.mxu0 %v15197_v1  ;;  %v15266_v55 = vld [vmem:[%s24126_s2 + $0x2ec] ss:$16 sps:$4 sm:$0xff]   ;;  %v15264_v1 = vld [vmem:[%s24126_s2 + $0x2e8] ss:$16 sps:$4 sm:$0xff]  }
 0x1af   : > { %v3220_v49 = vor.u32 %v3218_v5, %v3217_v9  ;;  %v15272_v19 = vld [vmem:[%s24126_s2 + $0x2cc] ss:$16 sps:$4 sm:$0xff]  }
 0x1b0   : > { %5044 = vmatpush1.bf16.msra.mxu1 %v15198_v20  ;;  %v15261_v20 = vld [vmem:[%s24126_s2 + $0x68] ss:$16 sps:$4 sm:$0xff]   ;;  %v15269_v9 = vld [vmem:[%s24126_s2 + $0x4c] ss:$16 sps:$4 sm:$0xff]  }
 0x1b1   : > { %v18905_v0 = vsel %vm18463_vm8, %v3220_v49, 0  ;;  %5011 = vmatpush2.bf16.msra.mxu0 %v15195_v12  ;;  %5045 = vmatprep.subr.bf16.mxu1 %v15206_v46  ;;  %v15267_v12 = vld [vmem:[%s24126_s2 + $0x48] ss:$16 sps:$4 sm:$0xff]  }
 0x1b2   : > { %5012 = vmatprep.subr.bf16.mxu0 %v15203_v10  ;;  %v18915_v43 = vcombine.high %v18905_v0, %v18905_v0  ;;  %v19049_v5 = vcombine.low %v18905_v0, %v18905_v0  ;;  %v15270_v46 = vld [vmem:[%s24126_s2 + $0x2c8] ss:$16 sps:$4 sm:$0xff]   ;;  %v15275_v10 = vld [vmem:[%s24126_s2 + $0x2c] ss:$16 sps:$4 sm:$0xff]  }
 0x1b3   : > { %v15276_v49 = vld [vmem:[%s24126_s2 + $0x2a8] ss:$16 sps:$4 sm:$0xff]  }
 0x1b4   : > { %5046 = vmatpush1.bf16.msra.mxu1 %v15204_v27  ;;  %5065 = vmatprep.mubr.bf16.mxu1 %v18915_v43  ;;  %v15278_v27 = vld [vmem:[%s24126_s2 + $0x2ac] ss:$16 sps:$4 sm:$0xff]   ;;  %v15273_v0 = vld [vmem:[%s24126_s2 + $0x28] ss:$16 sps:$4 sm:$0xff]  }
 0x1b5   : > { %5013 = vmatpush2.bf16.msra.mxu0 %v15201_v15  ;;  %5047 = vmatprep.subr.bf16.mxu1 %v15212_v48  ;;  %v15284_v15 = vld [vmem:[%s24126_s2 + $0x28c] ss:$16 sps:$4 sm:$0xff]  }
 0x1b6   : > { %5014 = vmatprep.subr.bf16.mxu0 %v15209_v18  ;;  %v15281_v48 = vld [vmem:[%s24126_s2 + $0xc] ss:$16 sps:$4 sm:$0xff]   ;;  %v15282_v18 = vld [vmem:[%s24126_s2 + $0x288] ss:$16 sps:$4 sm:$0xff]  }
 0x1b8   : > { %5048 = vmatpush1.bf16.msra.mxu1 %v15210_v13  ;;  %v15279_v13 = vld [vmem:[%s24126_s2 + $0x8] ss:$16 sps:$4 sm:$0xff]  }
 0x1b9   : > { %5015 = vmatpush2.bf16.msra.mxu0 %v15207_v59  ;;  %5049 = vmatprep.subr.bf16.mxu1 %v15218_v61  ;;  %v15290_v59 = vld [vmem:[%s24126_s2 + $0x26c] ss:$16 sps:$4 sm:$0xff]  }
 0x1ba   : > { %5016 = vmatprep.subr.bf16.mxu0 %v15215_v29  ;;  %v15287_v61 = vld [vmem:[%s24126_s2 + $0x1ec] ss:$16 sps:$4 sm:$0xff]   ;;  %v15288_v29 = vld [vmem:[%s24126_s2 + $0x268] ss:$16 sps:$4 sm:$0xff]  }
 0x1bc   : > { %5050 = vmatpush2.bf16.msra.mxu1 %v15216_v52  ;;  %v15285_v52 = vld [vmem:[%s24126_s2 + $0x1e8] ss:$16 sps:$4 sm:$0xff]  }
 0x1bd   : > { %5017 = vmatpush2.bf16.msra.mxu0 %v15213_v16  ;;  %5051 = vmatprep.subr.bf16.mxu1 %v15224_v14  ;;  %v15296_v16 = vld [vmem:[%s24126_s2 + $0x24c] ss:$16 sps:$4 sm:$0xff]  }
 0x1be   : > { %5018 = vmatprep.subr.bf16.mxu0 %v15221_v28  ;;  %v15293_v14 = vld [vmem:[%s24126_s2 + $0x1cc] ss:$16 sps:$4 sm:$0xff]   ;;  %v15294_v28 = vld [vmem:[%s24126_s2 + $0x248] ss:$16 sps:$4 sm:$0xff]  }
 0x1c0   : > { %5052 = vmatpush2.bf16.msra.mxu1 %v15222_v41  ;;  %v15291_v41 = vld [vmem:[%s24126_s2 + $0x1c8] ss:$16 sps:$4 sm:$0xff]  }
 0x1c1   : > { %5019 = vmatpush2.bf16.msra.mxu0 %v15219_v42  ;;  %5053 = vmatprep.subr.bf16.mxu1 %v15230_v44  ;;  %v15302_v42 = vld [vmem:[%s24126_s2 + $0x22c] ss:$16 sps:$4 sm:$0xff]  }
 0x1c2   : > { %5020 = vmatprep.subr.bf16.mxu0 %v15227_v38  ;;  %v15299_v44 = vld [vmem:[%s24126_s2 + $0x1ac] ss:$16 sps:$4 sm:$0xff]   ;;  %v15300_v38 = vld [vmem:[%s24126_s2 + $0x228] ss:$16 sps:$4 sm:$0xff]  }
 0x1c4   : > { %5054 = vmatpush2.bf16.msra.mxu1 %v15228_v39  ;;  %v15297_v39 = vld [vmem:[%s24126_s2 + $0x1a8] ss:$16 sps:$4 sm:$0xff]  }
 0x1c5   : > { %5021 = vmatpush2.bf16.msra.mxu0 %v15225_v32  ;;  %5055 = vmatprep.subr.bf16.mxu1 %v15236_v3  ;;  %v15308_v32 = vld [vmem:[%s24126_s2 + $0x20c] ss:$16 sps:$4 sm:$0xff]  }
 0x1c6   : > { %5022 = vmatprep.subr.bf16.mxu0 %v15233_v24  ;;  %v15305_v3 = vld [vmem:[%s24126_s2 + $0x18c] ss:$16 sps:$4 sm:$0xff]   ;;  %v15306_v24 = vld [vmem:[%s24126_s2 + $0x208] ss:$16 sps:$4 sm:$0xff]  }
 0x1c8   : > { %5056 = vmatpush2.bf16.msra.mxu1 %v15234_v25  ;;  %v15303_v25 = vld [vmem:[%s24126_s2 + $0x188] ss:$16 sps:$4 sm:$0xff]  }
 0x1c9   : > { %5023 = vmatpush2.bf16.msra.mxu0 %v15231_v34  ;;  %5057 = vmatprep.subr.bf16.mxu1 %v15239_v45  ;;  %v15314_v34 = vld [vmem:[%s24126_s2 + $0x3ec] ss:$16 sps:$4 sm:$0xff]  }
 0x1ca   : > { %5074 = vmatprep.subr.bf16.mxu0 %v15242_v53  ;;  %v15311_v45 = vld [vmem:[%s24126_s2 + $0x16c] ss:$16 sps:$4 sm:$0xff]   ;;  %v15309_v53 = vld [vmem:[%s24126_s2 + $0x168] ss:$16 sps:$4 sm:$0xff]  }
 0x1cc   : > { %5025 = vmatmul.mubr.bf16.vlgmr.msra.gmra.mxu0 %v18995_v37  ;;  %5058 = vmatpush2.bf16.msra.mxu1 %v15237_v60  ;;  %v15312_v60 = vld [vmem:[%s24126_s2 + $0x3e8] ss:$16 sps:$4 sm:$0xff]  }
 0x1cd   : > { %5075 = vmatpush1.bf16.msra.mxu0 %v15240_v33  ;;  %5106 = vmatprep.mubr.bf16.mxu0 %v18863_v63  ;;  %v15320_v33 = vld [vmem:[%s24126_s2 + $0x3cc] ss:$16 sps:$4 sm:$0xff]  }
 0x1ce   : > { %5059 = vmatprep.subr.bf16.mxu1 %v15245_v40  ;;  %5076 = vmatprep.subr.bf16.mxu0 %v15248_v51  ;;  %v15317_v40 = vld [vmem:[%s24126_s2 + $0x14c] ss:$16 sps:$4 sm:$0xff]   ;;  %v15318_v51 = vld [vmem:[%s24126_s2 + $0x3c8] ss:$16 sps:$4 sm:$0xff]  }
 0x1d0   : > { %5060 = vmatpush2.bf16.msra.mxu1 %v15243_v57  ;;  %v15315_v57 = vld [vmem:[%s24126_s2 + $0x148] ss:$16 sps:$4 sm:$0xff]  }
 0x1d1   : > { %5077 = vmatpush1.bf16.msra.mxu0 %v15246_v62  ;;  %5061 = vmatprep.subr.bf16.mxu1 %v15251_v8  ;;  %v15326_v62 = vld [vmem:[%s24126_s2 + $0x3ac] ss:$16 sps:$4 sm:$0xff]  }
 0x1d2   : > { %5078 = vmatprep.subr.bf16.mxu0 %v15254_v22  ;;  %v15323_v8 = vld [vmem:[%s24126_s2 + $0x12c] ss:$16 sps:$4 sm:$0xff]   ;;  %v15324_v22 = vld [vmem:[%s24126_s2 + $0x3a8] ss:$16 sps:$4 sm:$0xff]  }
 0x1d4   : > { %5062 = vmatpush2.bf16.msra.mxu1 %v15249_v30  ;;  %v15321_v30 = vld [vmem:[%s24126_s2 + $0x128] ss:$16 sps:$4 sm:$0xff]  }
 0x1d5   : > { %5079 = vmatpush1.bf16.msra.mxu0 %v15252_v36  ;;  %5063 = vmatprep.subr.bf16.mxu1 %v15257_v21  ;;  %v15329_v36 = vld [vmem:[%s24126_s2 + $0x10c] ss:$16 sps:$4 sm:$0xff]  }
 0x1d6   : > { %5080 = vmatprep.subr.bf16.mxu0 %v15260_v11  ;;  %v15332_v21 = vld [vmem:[%s24126_s2 + $0x38c] ss:$16 sps:$4 sm:$0xff]   ;;  %v15330_v11 = vld [vmem:[%s24126_s2 + $0x388] ss:$16 sps:$4 sm:$0xff]  }
 0x1d8   : > { %5064 = vmatpush2.bf16.msra.mxu1 %v15255_v54  ;;  %v5295_v54 = vshll.u32 %v18863_v63, 16 }
 0x1d9   : > { %5081 = vmatpush1.bf16.msra.mxu0 %v15258_v47  ;;  %5115 = vmatprep.subr.bf16.mxu1 %v15266_v55  ;;  %v15327_v47 = vld [vmem:[%s24126_s2 + $0x108] ss:$16 sps:$4 sm:$0xff]   ;;  %v15338_v55 = vld [vmem:[%s24126_s2 + $0x8e4] ss:$16 sps:$4 sm:$0xff]  }
 0x1da   : > { %5082 = vmatprep.subr.bf16.mxu0 %v15263_v23  ;;  %v15335_v23 = vld [vmem:[%s24126_s2 + $0x36c] ss:$16 sps:$4 sm:$0xff]  }
 0x1db   : > { %5066 = vmatmul.mubr.bf16.vlgmr.msra.gmra.mxu1 %v19049_v5 }
 0x1dc   : > { %5116 = vmatpush1.bf16.msra.mxu1 %v15264_v1  ;;  %5147 = vmatprep.mubr.bf16.mxu1 %v18915_v43  ;;  %v15333_v1 = vld [vmem:[%s24126_s2 + $0x368] ss:$16 sps:$4 sm:$0xff]  }
 0x1dd   : > { %5083 = vmatpush1.bf16.msra.mxu0 %v15261_v20  ;;  %5117 = vmatprep.subr.bf16.mxu1 %v15272_v19  ;;  %v5293_v20 = vshrl.u32 %v18863_v63, 16  ;;  %v5297_v19 = vrot.slane %v5295_v54, 1  ;;  %v15378_v54 = vld [vmem:[%s24126_s2 + $0xa80] ss:$16 sps:$4 sm:$0xff]  }
 0x1de   : > { %5084 = vmatprep.subr.bf16.mxu0 %v15269_v9  ;;  %v15336_v9 = vld [vmem:[%s24126_s2 + $0x8e0] ss:$16 sps:$4 sm:$0xff]  }
 0x1e0   : > { %5118 = vmatpush1.bf16.msra.mxu1 %v15270_v46  ;;  %v15344_v46 = vld [vmem:[%s24126_s2 + $0x8c4] ss:$16 sps:$4 sm:$0xff]  }
 0x1e1   : > { %5085 = vmatpush1.bf16.msra.mxu0 %v15267_v12  ;;  %5119 = vmatprep.subr.bf16.mxu1 %v15278_v27  ;;  %v15341_v12 = vld [vmem:[%s24126_s2 + $0x34c] ss:$16 sps:$4 sm:$0xff]   ;;  %v15339_v27 = vld [vmem:[%s24126_s2 + $0x348] ss:$16 sps:$4 sm:$0xff]  }
 0x1e2   : > { %5086 = vmatprep.subr.bf16.mxu0 %v15275_v10  ;;  %v19199_v10 = vor.u32 %v5297_v19, %v5293_v20  ;;  %v15383_v20 = vld [vmem:[%s24126_s2 + $0x9e4] ss:$16 sps:$4 sm:$0xff]   ;;  %v15384_v19 = vld [vmem:[%s24126_s2 + $0xa60] ss:$16 sps:$4 sm:$0xff]  }
 0x1e4   : > { %5120 = vmatpush1.bf16.msra.mxu1 %v15276_v49  ;;  %v15342_v49 = vld [vmem:[%s24126_s2 + $0x8c0] ss:$16 sps:$4 sm:$0xff]  }
 0x1e5   : > { %5087 = vmatpush1.bf16.msra.mxu0 %v15273_v0  ;;  %5121 = vmatprep.subr.bf16.mxu1 %v15284_v15  ;;  %v15347_v15 = vld [vmem:[%s24126_s2 + $0x32c] ss:$16 sps:$4 sm:$0xff]  }
 0x1e6   : > { %5088 = vmatprep.subr.bf16.mxu0 %v15281_v48  ;;  %v15350_v48 = vld [vmem:[%s24126_s2 + $0x8a4] ss:$16 sps:$4 sm:$0xff]  }
 0x1e8   : > { %5122 = vmatpush1.bf16.msra.mxu1 %v15282_v18 }
 0x1e9   : > { %5089 = vmatpush1.bf16.msra.mxu0 %v15279_v13  ;;  %5123 = vmatprep.subr.bf16.mxu1 %v15290_v59  ;;  %v15345_v13 = vld [vmem:[%s24126_s2 + $0x328] ss:$16 sps:$4 sm:$0xff]  }
 0x1ea   : > { %5090 = vmatprep.subr.bf16.mxu0 %v15287_v61  ;;  %v15348_v61 = vld [vmem:[%s24126_s2 + $0x8a0] ss:$16 sps:$4 sm:$0xff]  }
 0x1ec   : > { %5124 = vmatpush1.bf16.msra.mxu1 %v15288_v29  ;;  %v15353_v29 = vld [vmem:[%s24126_s2 + $0x30c] ss:$16 sps:$4 sm:$0xff]  }
 0x1ed   : > { %5091 = vmatpush2.bf16.msra.mxu0 %v15285_v52  ;;  %5125 = vmatprep.subr.bf16.mxu1 %v15296_v16  ;;  %v15356_v16 = vld [vmem:[%s24126_s2 + $0x884] ss:$16 sps:$4 sm:$0xff]  }
 0x1ee   : > { %5092 = vmatprep.subr.bf16.mxu0 %v15293_v14  ;;  %v5309_v14 = vshll.u32 %v18915_v43, 16 }
 0x1f0   : > { %5126 = vmatpush1.bf16.msra.mxu1 %v15294_v28  ;;  %v15351_v28 = vld [vmem:[%s24126_s2 + $0x308] ss:$16 sps:$4 sm:$0xff]  }
 0x1f1   : > { %5093 = vmatpush2.bf16.msra.mxu0 %v15291_v41  ;;  %5127 = vmatprep.subr.bf16.mxu1 %v15302_v42  ;;  %v15354_v41 = vld [vmem:[%s24126_s2 + $0x880] ss:$16 sps:$4 sm:$0xff]   ;;  %v15359_v42 = vld [vmem:[%s24126_s2 + $0x864] ss:$16 sps:$4 sm:$0xff]  }
 0x1f2   : > { %5094 = vmatprep.subr.bf16.mxu0 %v15299_v44  ;;  %v15362_v44 = vld [vmem:[%s24126_s2 + $0xae4] ss:$16 sps:$4 sm:$0xff]  }
 0x1f4   : > { %5128 = vmatpush1.bf16.msra.mxu1 %v15300_v38  ;;  %v15360_v38 = vld [vmem:[%s24126_s2 + $0xae0] ss:$16 sps:$4 sm:$0xff]  }
 0x1f5   : > { %5095 = vmatpush2.bf16.msra.mxu0 %v15297_v39  ;;  %5129 = vmatprep.subr.bf16.mxu1 %v15308_v32  ;;  %v5307_v39 = vshrl.u32 %v18915_v43, 16  ;;  %v5311_v32 = vrot.slane %v5309_v14, 1  ;;  %v15410_v14 = vld [vmem:[%s24126_s2 + $0xbe4] ss:$16 sps:$4 sm:$0xff]  }
 0x1f6   : > { %5096 = vmatprep.subr.bf16.mxu0 %v15305_v3  ;;  %v15357_v3 = vld [vmem:[%s24126_s2 + $0x860] ss:$16 sps:$4 sm:$0xff]  }
 0x1f8   : > { %5130 = vmatpush1.bf16.msra.mxu1 %v15306_v24  ;;  %v15368_v24 = vld [vmem:[%s24126_s2 + $0xac4] ss:$16 sps:$4 sm:$0xff]  }
 0x1f9   : > { %5097 = vmatpush2.bf16.msra.mxu0 %v15303_v25  ;;  %5131 = vmatprep.subr.bf16.mxu1 %v15314_v34  ;;  %v15365_v25 = vld [vmem:[%s24126_s2 + $0x844] ss:$16 sps:$4 sm:$0xff]   ;;  %v19253_v34 = vor.u32 %v5311_v32, %v5307_v39  ;;  %v15414_v39 = vld [vmem:[%s24126_s2 + $0xbc0] ss:$16 sps:$4 sm:$0xff]  }
 0x1fa   : > { %5098 = vmatprep.subr.bf16.mxu0 %v15311_v45  ;;  %v15411_v32 = vld [vmem:[%s24126_s2 + $0x940] ss:$16 sps:$4 sm:$0xff]  }
 0x1fc   : > { %5132 = vmatpush2.bf16.msra.mxu1 %v15312_v60  ;;  %v15363_v60 = vld [vmem:[%s24126_s2 + $0x840] ss:$16 sps:$4 sm:$0xff]  }
 0x1fd   : > { %5099 = vmatpush2.bf16.msra.mxu0 %v15309_v53  ;;  %5133 = vmatprep.subr.bf16.mxu1 %v15320_v33  ;;  %v15366_v53 = vld [vmem:[%s24126_s2 + $0xac0] ss:$16 sps:$4 sm:$0xff]  }
 0x1fe   : > { %5100 = vmatprep.subr.bf16.mxu0 %v15317_v40  ;;  %v15371_v40 = vld [vmem:[%s24126_s2 + $0x824] ss:$16 sps:$4 sm:$0xff]  }
 0x200   : > { %5134 = vmatpush2.bf16.msra.mxu1 %v15318_v51  ;;  %v15374_v51 = vld [vmem:[%s24126_s2 + $0xaa4] ss:$16 sps:$4 sm:$0xff]  }
 0x201   : > { %5101 = vmatpush2.bf16.msra.mxu0 %v15315_v57  ;;  %5135 = vmatprep.subr.bf16.mxu1 %v15326_v62 }
 0x202   : > { %5102 = vmatprep.subr.bf16.mxu0 %v15323_v8 }
 0x204   : > { %5136 = vmatpush2.bf16.msra.mxu1 %v15324_v22  ;;  %v15372_v22 = vld [vmem:[%s24126_s2 + $0xaa0] ss:$16 sps:$4 sm:$0xff]  }
 0x205   : > { %5103 = vmatpush2.bf16.msra.mxu0 %v15321_v30  ;;  %5137 = vmatprep.subr.bf16.mxu1 %v15332_v21  ;;  %v15380_v21 = vld [vmem:[%s24126_s2 + $0xa84] ss:$16 sps:$4 sm:$0xff]  }
 0x206   : > { %5104 = vmatprep.subr.bf16.mxu0 %v15329_v36  ;;  %v15369_v36 = vld [vmem:[%s24126_s2 + $0x820] ss:$16 sps:$4 sm:$0xff]  }
 0x208   : > { %5138 = vmatpush2.bf16.msra.mxu1 %v15330_v11  ;;  %v15377_v11 = vld [vmem:[%s24126_s2 + $0x804] ss:$16 sps:$4 sm:$0xff]  }
 0x209   : > { %5105 = vmatpush2.bf16.msra.mxu0 %v15327_v47  ;;  %5139 = vmatprep.subr.bf16.mxu1 %v15335_v23  ;;  %v15375_v47 = vld [vmem:[%s24126_s2 + $0x800] ss:$16 sps:$4 sm:$0xff]   ;;  %v15386_v23 = vld [vmem:[%s24126_s2 + $0xa64] ss:$16 sps:$4 sm:$0xff]  }
 0x20a   : > { %5957 = vmatprep.subr.bf16.mxu0 %v15338_v55  ;;  %v5286_v55 = vshrl.u32 %v18995_v37, 16 }
 0x20c   : > { %5107 = vmatmul.mubr.bf16.vlgmr.msra.gmra.mxu0 %v18995_v37  ;;  %v4208_v0 = vpop.f32.mrf.mxu0  ;;  %5140 = vmatpush2.bf16.msra.mxu1 %v15333_v1  ;;  %v5288_v1 = vshll.u32 %v18995_v37, 16 }
 0x20d   : > { %5958 = vmatpush1.bf16.msra.mxu0 %v15336_v9  ;;  %5989 = vmatprep.mubr.bf16.mxu0 %v19199_v10  ;;  %v15381_v9 = vld [vmem:[%s24126_s2 + $0x9e0] ss:$16 sps:$4 sm:$0xff]  }
 0x20e   : > { %v4210_v18 = vpop.f32.mrf.mxu0  ;;  %5141 = vmatprep.subr.bf16.mxu1 %v15341_v12  ;;  %5959 = vmatprep.subr.bf16.mxu0 %v15344_v46  ;;  %v15392_v12 = vld [vmem:[%s24126_s2 + $0xa44] ss:$16 sps:$4 sm:$0xff]  }
 0x20f   : > { %v15389_v46 = vld [vmem:[%s24126_s2 + $0x9c4] ss:$16 sps:$4 sm:$0xff]  }
 0x210   : > { %v4212_v59 = vpop.f32.mrf.mxu0  ;;  %5142 = vmatpush2.bf16.msra.mxu1 %v15339_v27  ;;  %v15390_v27 = vld [vmem:[%s24126_s2 + $0xa40] ss:$16 sps:$4 sm:$0xff]  }
 0x211   : > { %5960 = vmatpush1.bf16.msra.mxu0 %v15342_v49  ;;  %5143 = vmatprep.subr.bf16.mxu1 %v15347_v15  ;;  %v15387_v49 = vld [vmem:[%s24126_s2 + $0x9c0] ss:$16 sps:$4 sm:$0xff]   ;;  %v15395_v15 = vld [vmem:[%s24126_s2 + $0x9a4] ss:$16 sps:$4 sm:$0xff]   ;;  %v5290_v59 = vrot.slane %v5288_v1, 1 }
 0x212   : > { %v4213_v52 = vpop.f32.mrf.mxu0  ;;  %5961 = vmatprep.subr.bf16.mxu0 %v15350_v48  ;;  %v15396_v48 = vld [vmem:[%s24126_s2 + $0xa20] ss:$16 sps:$4 sm:$0xff]   ;;  %v15443_v1 = vld [vmem:[%s24126_s2 + $0xb24] ss:$16 sps:$4 sm:$0xff]  }
 0x213   : > { %v15402_v52 = vld [vmem:[%s24126_s2 + $0xa00] ss:$16 sps:$4 sm:$0xff]  }
 0x214   : > { %5144 = vmatpush2.bf16.msra.mxu1 %v15345_v13  ;;  %v15404_v13 = vld [vmem:[%s24126_s2 + $0xa04] ss:$16 sps:$4 sm:$0xff]  }
 0x215   : > { %5962 = vmatpush1.bf16.msra.mxu0 %v15348_v61  ;;  %5145 = vmatprep.subr.bf16.mxu1 %v15353_v29  ;;  %v5302_v61 = vshll.u32 %v19049_v5, 16  ;;  %v15401_v29 = vld [vmem:[%s24126_s2 + $0x984] ss:$16 sps:$4 sm:$0xff]  }
 0x216   : > { %5963 = vmatprep.subr.bf16.mxu0 %v15356_v16  ;;  %v15399_v16 = vld [vmem:[%s24126_s2 + $0x980] ss:$16 sps:$4 sm:$0xff]  }
 0x218   : > { %5146 = vmatpush2.bf16.msra.mxu1 %v15351_v28  ;;  %v15407_v28 = vld [vmem:[%s24126_s2 + $0x964] ss:$16 sps:$4 sm:$0xff]  }
 0x219   : > { %5964 = vmatpush1.bf16.msra.mxu0 %v15354_v41  ;;  %5998 = vmatprep.subr.bf16.mxu1 %v15362_v44  ;;  %v15408_v41 = vld [vmem:[%s24126_s2 + $0xbe0] ss:$16 sps:$4 sm:$0xff]   ;;  %v15416_v44 = vld [vmem:[%s24126_s2 + $0xbc4] ss:$16 sps:$4 sm:$0xff]  }
 0x21a   : > { %5965 = vmatprep.subr.bf16.mxu0 %v15359_v42  ;;  %v15405_v42 = vld [vmem:[%s24126_s2 + $0x960] ss:$16 sps:$4 sm:$0xff]  }
 0x21b   : > { %5148 = vmatmul.mubr.bf16.vlgmr.msra.gmra.mxu1 %v19049_v5  ;;  %v4249_v45 = vpop.f32.mrf.mxu1 }
 0x21c   : > { %v19262_v33 = vadd.f32 %v4249_v45, %v4208_v0  ;;  %5999 = vmatpush1.bf16.msra.mxu1 %v15360_v38  ;;  %6030 = vmatprep.mubr.bf16.mxu1 %v19253_v34  ;;  %v15398_v0 = vld [vmem:[%s24126_s2 + $0xa24] ss:$16 sps:$4 sm:$0xff]   ;;  %v15417_v45 = vld [vmem:[%s24126_s2 + $0x920] ss:$16 sps:$4 sm:$0xff]  }
 0x21d   : > { %5966 = vmatpush1.bf16.msra.mxu0 %v15357_v3  ;;  %v4251_v57 = vpop.f32.mrf.mxu1  ;;  %6000 = vmatprep.subr.bf16.mxu1 %v15368_v24  ;;  %v15413_v38 = vld [vmem:[%s24126_s2 + $0x944] ss:$16 sps:$4 sm:$0xff]  }
 0x21e   : > { %v19271_v62 = vadd.f32 %v4251_v57, %v4210_v18  ;;  %5967 = vmatprep.subr.bf16.mxu0 %v15365_v25  ;;  %v15393_v18 = vld [vmem:[%s24126_s2 + $0x9a0] ss:$16 sps:$4 sm:$0xff]   ;;  %v15422_v3 = vld [vmem:[%s24126_s2 + $0xba4] ss:$16 sps:$4 sm:$0xff]  }
 0x21f   : > { %v4253_v8 = vpop.f32.mrf.mxu1  ;;  %v15419_v24 = vld [vmem:[%s24126_s2 + $0x924] ss:$16 sps:$4 sm:$0xff]   ;;  %v15420_v25 = vld [vmem:[%s24126_s2 + $0xba0] ss:$16 sps:$4 sm:$0xff]  }
 0x220   : > { %6001 = vmatpush1.bf16.msra.mxu1 %v15366_v53  ;;  %v15425_v53 = vld [vmem:[%s24126_s2 + $0x904] ss:$16 sps:$4 sm:$0xff]   ;;  %v15429_v8 = vld [vmem:[%s24126_s2 + $0xb60] ss:$16 sps:$4 sm:$0xff]  }
 0x221   : > { %5968 = vmatpush1.bf16.msra.mxu0 %v15363_v60  ;;  %v4254_v30 = vpop.f32.mrf.mxu1  ;;  %6002 = vmatprep.subr.bf16.mxu1 %v15374_v51  ;;  %v15428_v60 = vld [vmem:[%s24126_s2 + $0xb84] ss:$16 sps:$4 sm:$0xff]   ;;  %v15423_v51 = vld [vmem:[%s24126_s2 + $0x900] ss:$16 sps:$4 sm:$0xff]  }
 0x222   : > { %5969 = vmatprep.subr.bf16.mxu0 %v15371_v40  ;;  %v15426_v40 = vld [vmem:[%s24126_s2 + $0xb80] ss:$16 sps:$4 sm:$0xff]   ;;  %v15431_v57 = vld [vmem:[%s24126_s2 + $0xb64] ss:$16 sps:$4 sm:$0xff]   ;;  %v15432_v30 = vld [vmem:[%s24126_s2 + $0x8e8] ss:$16 sps:$4 sm:$0xff]  }
 0x224   : > { %6003 = vmatpush1.bf16.msra.mxu1 %v15372_v22  ;;  %v15434_v22 = vld [vmem:[%s24126_s2 + $0x8ec] ss:$16 sps:$4 sm:$0xff]  }
 0x225   : > { %5970 = vmatpush1.bf16.msra.mxu0 %v15369_v36  ;;  %6004 = vmatprep.subr.bf16.mxu1 %v15380_v21  ;;  %v15437_v36 = vld [vmem:[%s24126_s2 + $0xb44] ss:$16 sps:$4 sm:$0xff]   ;;  %v15440_v21 = vld [vmem:[%s24126_s2 + $0x8cc] ss:$16 sps:$4 sm:$0xff]  }
 0x226   : > { %5971 = vmatprep.subr.bf16.mxu0 %v15377_v11  ;;  %v19410_v11 = vor.u32 %v5290_v59, %v5286_v55  ;;  %v15446_v55 = vld [vmem:[%s24126_s2 + $0x8ac] ss:$16 sps:$4 sm:$0xff]  }
 0x227   : > { %v15458_v59 = vld [vmem:[%s24126_s2 + $0xaec] ss:$16 sps:$4 sm:$0xff]  }
 0x228   : > { %6005 = vmatpush1.bf16.msra.mxu1 %v15378_v54  ;;  %v15435_v54 = vld [vmem:[%s24126_s2 + $0xb40] ss:$16 sps:$4 sm:$0xff]  }
 0x229   : > { %5972 = vmatpush1.bf16.msra.mxu0 %v15375_v47  ;;  %6006 = vmatprep.subr.bf16.mxu1 %v15386_v23  ;;  %v15438_v47 = vld [vmem:[%s24126_s2 + $0x8c8] ss:$16 sps:$4 sm:$0xff]  }
 0x22a   : > { %5973 = vmatprep.subr.bf16.mxu0 %v15383_v20 }
 0x22c   : > { %6007 = vmatpush1.bf16.msra.mxu1 %v15384_v19  ;;  %v15441_v19 = vld [vmem:[%s24126_s2 + $0xb20] ss:$16 sps:$4 sm:$0xff]  }
 0x22d   : > { %5974 = vmatpush2.bf16.msra.mxu0 %v15381_v9  ;;  %6008 = vmatprep.subr.bf16.mxu1 %v15392_v12  ;;  %v15444_v12 = vld [vmem:[%s24126_s2 + $0x8a8] ss:$16 sps:$4 sm:$0xff]  }
 0x22e   : > { %5975 = vmatprep.subr.bf16.mxu0 %v15389_v46  ;;  %v15449_v46 = vld [vmem:[%s24126_s2 + $0xb04] ss:$16 sps:$4 sm:$0xff]  }
 0x230   : > { %6009 = vmatpush1.bf16.msra.mxu1 %v15390_v27 }
 0x231   : > { %5976 = vmatpush2.bf16.msra.mxu0 %v15387_v49  ;;  %6010 = vmatprep.subr.bf16.mxu1 %v15398_v0  ;;  %v15452_v49 = vld [vmem:[%s24126_s2 + $0x88c] ss:$16 sps:$4 sm:$0xff]   ;;  %v5300_v0 = vshrl.u32 %v19049_v5, 16 }
 0x232   : > { %5977 = vmatprep.subr.bf16.mxu0 %v15395_v15  ;;  %v5304_v15 = vrot.slane %v5302_v61, 1  ;;  %v15456_v61 = vld [vmem:[%s24126_s2 + $0xae8] ss:$16 sps:$4 sm:$0xff]  }
 0x234   : > { %6011 = vmatpush1.bf16.msra.mxu1 %v15396_v48  ;;  %v15447_v48 = vld [vmem:[%s24126_s2 + $0xb00] ss:$16 sps:$4 sm:$0xff]  }
 0x235   : > { %5978 = vmatpush2.bf16.msra.mxu0 %v15393_v18  ;;  %6012 = vmatprep.subr.bf16.mxu1 %v15404_v13  ;;  %v15450_v18 = vld [vmem:[%s24126_s2 + $0x888] ss:$16 sps:$4 sm:$0xff]   ;;  %v15455_v13 = vld [vmem:[%s24126_s2 + $0x86c] ss:$16 sps:$4 sm:$0xff]  }
 0x236   : > { %5979 = vmatprep.subr.bf16.mxu0 %v15401_v29  ;;  %v15453_v29 = vld [vmem:[%s24126_s2 + $0x868] ss:$16 sps:$4 sm:$0xff]  }
 0x238   : > { %6013 = vmatpush1.bf16.msra.mxu1 %v15402_v52  ;;  %v15464_v52 = vld [vmem:[%s24126_s2 + $0xacc] ss:$16 sps:$4 sm:$0xff]  }
 0x239   : > { %5980 = vmatpush2.bf16.msra.mxu0 %v15399_v16  ;;  %6014 = vmatprep.subr.bf16.mxu1 %v15410_v14  ;;  %v15461_v16 = vld [vmem:[%s24126_s2 + $0x84c] ss:$16 sps:$4 sm:$0xff]   ;;  %v19465_v14 = vor.u32 %v5304_v15, %v5300_v0  ;;  %v15504_v15 = vld [vmem:[%s24126_s2 + $0xbe8] ss:$16 sps:$4 sm:$0xff]  }
 0x23a   : > { %5981 = vmatprep.subr.bf16.mxu0 %v15407_v28  ;;  %v15503_v0 = vld [vmem:[%s24126_s2 + $0x96c] ss:$16 sps:$4 sm:$0xff]  }
 0x23c   : > { %6015 = vmatpush2.bf16.msra.mxu1 %v15408_v41  ;;  %v15459_v41 = vld [vmem:[%s24126_s2 + $0x848] ss:$16 sps:$4 sm:$0xff]  }
 0x23d   : > { %5982 = vmatpush2.bf16.msra.mxu0 %v15405_v42  ;;  %6016 = vmatprep.subr.bf16.mxu1 %v15416_v44  ;;  %v15462_v42 = vld [vmem:[%s24126_s2 + $0xac8] ss:$16 sps:$4 sm:$0xff]  }
 0x23e   : > { %5983 = vmatprep.subr.bf16.mxu0 %v15413_v38  ;;  %v15467_v38 = vld [vmem:[%s24126_s2 + $0x82c] ss:$16 sps:$4 sm:$0xff]  }
 0x240   : > { %6017 = vmatpush2.bf16.msra.mxu1 %v15414_v39  ;;  %v15470_v39 = vld [vmem:[%s24126_s2 + $0xaac] ss:$16 sps:$4 sm:$0xff]  }
 0x241   : > { %5984 = vmatpush2.bf16.msra.mxu0 %v15411_v32  ;;  %6018 = vmatprep.subr.bf16.mxu1 %v15422_v3 }
 0x242   : > { %5985 = vmatprep.subr.bf16.mxu0 %v15419_v24 }
 0x244   : > { %6019 = vmatpush2.bf16.msra.mxu1 %v15420_v25  ;;  %v15468_v25 = vld [vmem:[%s24126_s2 + $0xaa8] ss:$16 sps:$4 sm:$0xff]  }
 0x245   : > { %5986 = vmatpush2.bf16.msra.mxu0 %v15417_v45  ;;  %6020 = vmatprep.subr.bf16.mxu1 %v15428_v60  ;;  %v15465_v60 = vld [vmem:[%s24126_s2 + $0x828] ss:$16 sps:$4 sm:$0xff]  }
 0x246   : > { %5987 = vmatprep.subr.bf16.mxu0 %v15425_v53  ;;  %v15476_v53 = vld [vmem:[%s24126_s2 + $0xa8c] ss:$16 sps:$4 sm:$0xff]  }
 0x248   : > { %6021 = vmatpush2.bf16.msra.mxu1 %v15426_v40  ;;  %v15473_v40 = vld [vmem:[%s24126_s2 + $0x80c] ss:$16 sps:$4 sm:$0xff]  }
 0x249   : > { %5988 = vmatpush2.bf16.msra.mxu0 %v15423_v51  ;;  %6022 = vmatprep.subr.bf16.mxu1 %v15431_v57  ;;  %v15474_v51 = vld [vmem:[%s24126_s2 + $0xa88] ss:$16 sps:$4 sm:$0xff]  }
 0x24a   : > { %6039 = vmatprep.subr.bf16.mxu0 %v15434_v22  ;;  %v15471_v57 = vld [vmem:[%s24126_s2 + $0x808] ss:$16 sps:$4 sm:$0xff]   ;;  %v15479_v22 = vld [vmem:[%s24126_s2 + $0x9ec] ss:$16 sps:$4 sm:$0xff]  }
 0x24c   : > { %v4290_v23 = vpop.f32.mrf.mxu0  ;;  %5990 = vmatmul.mubr.bf16.vlgmr.msra.gmra.mxu0 %v19410_v11  ;;  %6023 = vmatpush2.bf16.msra.mxu1 %v15429_v8  ;;  %v15482_v8 = vld [vmem:[%s24126_s2 + $0xa6c] ss:$16 sps:$4 sm:$0xff]  }
 0x24d   : > { %6040 = vmatpush1.bf16.msra.mxu0 %v15432_v30  ;;  %6071 = vmatprep.mubr.bf16.mxu0 %v19199_v10  ;;  %v15480_v30 = vld [vmem:[%s24126_s2 + $0xa68] ss:$16 sps:$4 sm:$0xff]  }
 0x24e   : > { %v4292_v20 = vpop.f32.mrf.mxu0  ;;  %6024 = vmatprep.subr.bf16.mxu1 %v15437_v36  ;;  %6041 = vmatprep.subr.bf16.mxu0 %v15440_v21  ;;  %v15477_v36 = vld [vmem:[%s24126_s2 + $0x9e8] ss:$16 sps:$4 sm:$0xff]   ;;  %v15488_v21 = vld [vmem:[%s24126_s2 + $0xa4c] ss:$16 sps:$4 sm:$0xff]  }
 0x250   : > { %v4294_v9 = vpop.f32.mrf.mxu0  ;;  %6025 = vmatpush2.bf16.msra.mxu1 %v15435_v54  ;;  %v15485_v54 = vld [vmem:[%s24126_s2 + $0x9cc] ss:$16 sps:$4 sm:$0xff]  }
 0x251   : > { %6042 = vmatpush1.bf16.msra.mxu0 %v15438_v47  ;;  %6026 = vmatprep.subr.bf16.mxu1 %v15443_v1  ;;  %v15486_v47 = vld [vmem:[%s24126_s2 + $0xa48] ss:$16 sps:$4 sm:$0xff]   ;;  %v15494_v1 = vld [vmem:[%s24126_s2 + $0xa2c] ss:$16 sps:$4 sm:$0xff]  }
 0x252   : > { %v4295_v27 = vpop.f32.mrf.mxu0  ;;  %6043 = vmatprep.subr.bf16.mxu0 %v15446_v55  ;;  %v15491_v55 = vld [vmem:[%s24126_s2 + $0x9ac] ss:$16 sps:$4 sm:$0xff]  }
 0x253   : > { %v15500_v9 = vld [vmem:[%s24126_s2 + $0xa0c] ss:$16 sps:$4 sm:$0xff]   ;;  %v15495_v27 = vld [vmem:[%s24126_s2 + $0x988] ss:$16 sps:$4 sm:$0xff]  }
 0x254   : > { %6027 = vmatpush2.bf16.msra.mxu1 %v15441_v19  ;;  %v15489_v19 = vld [vmem:[%s24126_s2 + $0x9a8] ss:$16 sps:$4 sm:$0xff]  }
 0x255   : > { %6044 = vmatpush1.bf16.msra.mxu0 %v15444_v12  ;;  %6028 = vmatprep.subr.bf16.mxu1 %v15449_v46  ;;  %v15497_v12 = vld [vmem:[%s24126_s2 + $0x98c] ss:$16 sps:$4 sm:$0xff]   ;;  %v15498_v46 = vld [vmem:[%s24126_s2 + $0xa08] ss:$16 sps:$4 sm:$0xff]  }
 0x256   : > { %6045 = vmatprep.subr.bf16.mxu0 %v15452_v49  ;;  %v15506_v49 = vld [vmem:[%s24126_s2 + $0xbec] ss:$16 sps:$4 sm:$0xff]  }
 0x258   : > { %6029 = vmatpush2.bf16.msra.mxu1 %v15447_v48  ;;  %v15501_v48 = vld [vmem:[%s24126_s2 + $0x968] ss:$16 sps:$4 sm:$0xff]  }
 0x259   : > { %6046 = vmatpush1.bf16.msra.mxu0 %v15450_v18  ;;  %6080 = vmatprep.subr.bf16.mxu1 %v15458_v59  ;;  %v15512_v18 = vld [vmem:[%s24126_s2 + $0xbcc] ss:$16 sps:$4 sm:$0xff]   ;;  %v15510_v59 = vld [vmem:[%s24126_s2 + $0xbc8] ss:$16 sps:$4 sm:$0xff]  }
 0x25a   : > { %6047 = vmatprep.subr.bf16.mxu0 %v15455_v13  ;;  %v15509_v13 = vld [vmem:[%s24126_s2 + $0x94c] ss:$16 sps:$4 sm:$0xff]  }
 0x25b   : > { %v4331_v28 = vpop.f32.mrf.mxu1  ;;  %6031 = vmatmul.mubr.bf16.vlgmr.msra.gmra.mxu1 %v19465_v14 }
 0x25c   : > { %v19474_v44 = vadd.f32 %v4331_v28, %v4290_v23  ;;  %6081 = vmatpush1.bf16.msra.mxu1 %v15456_v61  ;;  %6112 = vmatprep.mubr.bf16.mxu1 %v19253_v34  ;;  %v15483_v23 = vld [vmem:[%s24126_s2 + $0x9c8] ss:$16 sps:$4 sm:$0xff]  }
 0x25d   : > { %6048 = vmatpush1.bf16.msra.mxu0 %v15453_v29  ;;  %v4333_v32 = vpop.f32.mrf.mxu1  ;;  %6082 = vmatprep.subr.bf16.mxu1 %v15464_v52  ;;  %v15507_v61 = vld [vmem:[%s24126_s2 + $0x948] ss:$16 sps:$4 sm:$0xff]   ;;  %v15518_v29 = vld [vmem:[%s24126_s2 + $0xbac] ss:$16 sps:$4 sm:$0xff]  }
 0x25e   : > { %v19483_v3 = vadd.f32 %v4333_v32, %v4292_v20  ;;  %6049 = vmatprep.subr.bf16.mxu0 %v15461_v16  ;;  %v15492_v20 = vld [vmem:[%s24126_s2 + $0xa28] ss:$16 sps:$4 sm:$0xff]   ;;  %v15515_v52 = vld [vmem:[%s24126_s2 + $0x92c] ss:$16 sps:$4 sm:$0xff]  }
 0x25f   : > { %v4335_v24 = vpop.f32.mrf.mxu1  ;;  %v15516_v16 = vld [vmem:[%s24126_s2 + $0xba8] ss:$16 sps:$4 sm:$0xff]   ;;  %v15527_v32 = vld [vmem:[%s24126_s2 + $0xb6c] ss:$16 sps:$4 sm:$0xff]  }
 0x260   : > { %6083 = vmatpush1.bf16.msra.mxu1 %v15462_v42  ;;  %v15513_v28 = vld [vmem:[%s24126_s2 + $0x928] ss:$16 sps:$4 sm:$0xff]   ;;  %v15521_v42 = vld [vmem:[%s24126_s2 + $0x90c] ss:$16 sps:$4 sm:$0xff]   ;;  %v15530_v24 = vld [vmem:[%s24126_s2 + $0x10e4] ss:$16 sps:$4 sm:$0xff]  }
 0x261   : > { %6050 = vmatpush1.bf16.msra.mxu0 %v15459_v41  ;;  %v4336_v45 = vpop.f32.mrf.mxu1  ;;  %6084 = vmatprep.subr.bf16.mxu1 %v15470_v39  ;;  %v15524_v41 = vld [vmem:[%s24126_s2 + $0xb8c] ss:$16 sps:$4 sm:$0xff]   ;;  %v15519_v39 = vld [vmem:[%s24126_s2 + $0x908] ss:$16 sps:$4 sm:$0xff]  }
 0x262   : > { %6051 = vmatprep.subr.bf16.mxu0 %v15467_v38  ;;  %v15522_v38 = vld [vmem:[%s24126_s2 + $0xb88] ss:$16 sps:$4 sm:$0xff]   ;;  %v15528_v45 = vld [vmem:[%s24126_s2 + $0x10e0] ss:$16 sps:$4 sm:$0xff]  }
 0x264   : > { %6085 = vmatpush1.bf16.msra.mxu1 %v15468_v25  ;;  %v15525_v25 = vld [vmem:[%s24126_s2 + $0xb68] ss:$16 sps:$4 sm:$0xff]  }
 0x265   : > { %6052 = vmatpush1.bf16.msra.mxu0 %v15465_v60  ;;  %6086 = vmatprep.subr.bf16.mxu1 %v15476_v53  ;;  %v15533_v60 = vld [vmem:[%s24126_s2 + $0xb4c] ss:$16 sps:$4 sm:$0xff]   ;;  %v15536_v53 = vld [vmem:[%s24126_s2 + $0x10c4] ss:$16 sps:$4 sm:$0xff]  }
 0x266   : > { %6053 = vmatprep.subr.bf16.mxu0 %v15473_v40 }
 0x268   : > { %6087 = vmatpush1.bf16.msra.mxu1 %v15474_v51  ;;  %v15531_v51 = vld [vmem:[%s24126_s2 + $0xb48] ss:$16 sps:$4 sm:$0xff]  }
 0x269   : > { %6054 = vmatpush1.bf16.msra.mxu0 %v15471_v57  ;;  %6088 = vmatprep.subr.bf16.mxu1 %v15482_v8  ;;  %v15534_v8 = vld [vmem:[%s24126_s2 + $0x10c0] ss:$16 sps:$4 sm:$0xff]  }
 0x26a   : > { %6055 = vmatprep.subr.bf16.mxu0 %v15479_v22  ;;  %v15539_v22 = vld [vmem:[%s24126_s2 + $0xb2c] ss:$16 sps:$4 sm:$0xff]  }
 0x26c   : > { %6089 = vmatpush1.bf16.msra.mxu1 %v15480_v30 }
 0x26d   : > { %6056 = vmatpush2.bf16.msra.mxu0 %v15477_v36  ;;  %6090 = vmatprep.subr.bf16.mxu1 %v15488_v21  ;;  %v15542_v36 = vld [vmem:[%s24126_s2 + $0x10a4] ss:$16 sps:$4 sm:$0xff]  }
 0x26e   : > { %6057 = vmatprep.subr.bf16.mxu0 %v15485_v54  ;;  %v15537_v54 = vld [vmem:[%s24126_s2 + $0xb28] ss:$16 sps:$4 sm:$0xff]  }
 0x270   : > { %6091 = vmatpush1.bf16.msra.mxu1 %v15486_v47  ;;  %v15540_v47 = vld [vmem:[%s24126_s2 + $0x10a0] ss:$16 sps:$4 sm:$0xff]  }
 0x271   : > { %6058 = vmatpush2.bf16.msra.mxu0 %v15483_v23  ;;  %6092 = vmatprep.subr.bf16.mxu1 %v15494_v1  ;;  %v15545_v23 = vld [vmem:[%s24126_s2 + $0xb0c] ss:$16 sps:$4 sm:$0xff]  }
 0x272   : > { %6059 = vmatprep.subr.bf16.mxu0 %v15491_v55  ;;  %v15543_v55 = vld [vmem:[%s24126_s2 + $0xb08] ss:$16 sps:$4 sm:$0xff]  }
 0x274   : > { %6093 = vmatpush1.bf16.msra.mxu1 %v15492_v20  ;;  %v15546_v20 = vld [vmem:[%s24126_s2 + $0x1080] ss:$16 sps:$4 sm:$0xff]  }
 0x275   : > { %6060 = vmatpush2.bf16.msra.mxu0 %v15489_v19  ;;  %6094 = vmatprep.subr.bf16.mxu1 %v15500_v9  ;;  %v15554_v19 = vld [vmem:[%s24126_s2 + $0x12e4] ss:$16 sps:$4 sm:$0xff]  }
 0x276   : > { %6061 = vmatprep.subr.bf16.mxu0 %v15497_v12  ;;  %v15551_v9 = vld [vmem:[%s24126_s2 + $0x1064] ss:$16 sps:$4 sm:$0xff]   ;;  %v15552_v12 = vld [vmem:[%s24126_s2 + $0x12e0] ss:$16 sps:$4 sm:$0xff]  }
 0x278   : > { %6095 = vmatpush1.bf16.msra.mxu1 %v15498_v46  ;;  %v15549_v46 = vld [vmem:[%s24126_s2 + $0x1060] ss:$16 sps:$4 sm:$0xff]  }
 0x279   : > { %6062 = vmatpush2.bf16.msra.mxu0 %v15495_v27  ;;  %6096 = vmatprep.subr.bf16.mxu1 %v15506_v49  ;;  %v15560_v27 = vld [vmem:[%s24126_s2 + $0x12c4] ss:$16 sps:$4 sm:$0xff]  }
 0x27a   : > { %6063 = vmatprep.subr.bf16.mxu0 %v15503_v0  ;;  %v15557_v49 = vld [vmem:[%s24126_s2 + $0x1044] ss:$16 sps:$4 sm:$0xff]  }
 0x27c   : > { %6097 = vmatpush2.bf16.msra.mxu1 %v15504_v15 }
 0x27d   : > { %6064 = vmatpush2.bf16.msra.mxu0 %v15501_v48  ;;  %6098 = vmatprep.subr.bf16.mxu1 %v15512_v18  ;;  %v15558_v48 = vld [vmem:[%s24126_s2 + $0x12c0] ss:$16 sps:$4 sm:$0xff]  }
 0x27e   : > { %6065 = vmatprep.subr.bf16.mxu0 %v15509_v13  ;;  %v15555_v13 = vld [vmem:[%s24126_s2 + $0x1040] ss:$16 sps:$4 sm:$0xff]  }
 0x280   : > { %6099 = vmatpush2.bf16.msra.mxu1 %v15510_v59  ;;  %v15566_v59 = vld [vmem:[%s24126_s2 + $0x12a4] ss:$16 sps:$4 sm:$0xff]  }
 0x281   : > { %6066 = vmatpush2.bf16.msra.mxu0 %v15507_v61  ;;  %6100 = vmatprep.subr.bf16.mxu1 %v15518_v29  ;;  %v15563_v29 = vld [vmem:[%s24126_s2 + $0x1024] ss:$16 sps:$4 sm:$0xff]  }
 0x282   : > { %6067 = vmatprep.subr.bf16.mxu0 %v15515_v52 }
 0x284   : > { %6101 = vmatpush2.bf16.msra.mxu1 %v15516_v16  ;;  %v15564_v16 = vld [vmem:[%s24126_s2 + $0x12a0] ss:$16 sps:$4 sm:$0xff]  }
 0x285   : > { %6068 = vmatpush2.bf16.msra.mxu0 %v15513_v28  ;;  %6102 = vmatprep.subr.bf16.mxu1 %v15524_v41  ;;  %v15561_v41 = vld [vmem:[%s24126_s2 + $0x1020] ss:$16 sps:$4 sm:$0xff]  }
 0x286   : > { %6069 = vmatprep.subr.bf16.mxu0 %v15521_v42  ;;  %v15572_v42 = vld [vmem:[%s24126_s2 + $0x1284] ss:$16 sps:$4 sm:$0xff]  }
 0x288   : > { %6103 = vmatpush2.bf16.msra.mxu1 %v15522_v38  ;;  %v15569_v38 = vld [vmem:[%s24126_s2 + $0x1004] ss:$16 sps:$4 sm:$0xff]  }
 0x289   : > { %6070 = vmatpush2.bf16.msra.mxu0 %v15519_v39  ;;  %6104 = vmatprep.subr.bf16.mxu1 %v15527_v32  ;;  %v15570_v39 = vld [vmem:[%s24126_s2 + $0x1280] ss:$16 sps:$4 sm:$0xff]  }
 0x28a   : > { %7023 = vmatprep.subr.bf16.mxu0 %v15530_v24  ;;  %v15567_v32 = vld [vmem:[%s24126_s2 + $0x1000] ss:$16 sps:$4 sm:$0xff]   ;;  %v15578_v24 = vld [vmem:[%s24126_s2 + $0x1264] ss:$16 sps:$4 sm:$0xff]  }
 0x28c   : > { %v5026_v40 = vpop.f32.mrf.mxu0  ;;  %6072 = vmatmul.mubr.bf16.vlgmr.msra.gmra.mxu0 %v19410_v11  ;;  %6105 = vmatpush2.bf16.msra.mxu1 %v15525_v25  ;;  %v15575_v25 = vld [vmem:[%s24126_s2 + $0x11e4] ss:$16 sps:$4 sm:$0xff]  }
 0x28d   : > { %v5027_v57 = vadd.f32 %v5026_v40, %v19262_v33  ;;  %7024 = vmatpush1.bf16.msra.mxu0 %v15528_v45  ;;  %7055 = vmatprep.mubr.bf16.mxu0 %v18487_v7  ;;  %v15576_v45 = vld [vmem:[%s24126_s2 + $0x1260] ss:$16 sps:$4 sm:$0xff]   ;;  %v15581_v40 = vld [vmem:[%s24126_s2 + $0x11c4] ss:$16 sps:$4 sm:$0xff]  }
 0x28e   : > { %v5028_v30 = vpop.f32.mrf.mxu0  ;;  %6106 = vmatprep.subr.bf16.mxu1 %v15533_v60  ;;  %7025 = vmatprep.subr.bf16.mxu0 %v15536_v53  ;;  %v15573_v60 = vld [vmem:[%s24126_s2 + $0x11e0] ss:$16 sps:$4 sm:$0xff]   ;;  %v15584_v53 = vld [vmem:[%s24126_s2 + $0x1244] ss:$16 sps:$4 sm:$0xff]  }
 0x28f   : > { %v5029_v33 = vadd.f32 %v5028_v30, %v19271_v62  ;;  %v15548_v62 = vld [vmem:[%s24126_s2 + $0x1084] ss:$16 sps:$4 sm:$0xff]   ;;  %v15588_v30 = vld [vmem:[%s24126_s2 + $0x1220] ss:$16 sps:$4 sm:$0xff]  }
 0x290   : > { %v5030_v21 = vpop.f32.mrf.mxu0  ;;  %6107 = vmatpush2.bf16.msra.mxu1 %v15531_v51  ;;  %v15582_v51 = vld [vmem:[%s24126_s2 + $0x1240] ss:$16 sps:$4 sm:$0xff]  }
 0x291   : > { %7026 = vmatpush1.bf16.msra.mxu0 %v15534_v8  ;;  %6108 = vmatprep.subr.bf16.mxu1 %v15539_v22  ;;  %v15590_v8 = vld [vmem:[%s24126_s2 + $0x1224] ss:$16 sps:$4 sm:$0xff]  }
 0x292   : > { %v5031_v1 = vpop.f32.mrf.mxu0  ;;  %7027 = vmatprep.subr.bf16.mxu0 %v15542_v36  ;;  %v15587_v22 = vld [vmem:[%s24126_s2 + $0x11a4] ss:$16 sps:$4 sm:$0xff]   ;;  %v15585_v36 = vld [vmem:[%s24126_s2 + $0x11a0] ss:$16 sps:$4 sm:$0xff]  }
 0x293   : > { %v15593_v21 = vld [vmem:[%s24126_s2 + $0x1184] ss:$16 sps:$4 sm:$0xff]  }
 0x294   : > { %6109 = vmatpush2.bf16.msra.mxu1 %v15537_v54  ;;  %v15594_v54 = vld [vmem:[%s24126_s2 + $0x1200] ss:$16 sps:$4 sm:$0xff]   ;;  %v15599_v1 = vld [vmem:[%s24126_s2 + $0x1164] ss:$16 sps:$4 sm:$0xff]  }
 0x295   : > { %7028 = vmatpush1.bf16.msra.mxu0 %v15540_v47  ;;  %6110 = vmatprep.subr.bf16.mxu1 %v15545_v23  ;;  %v15591_v47 = vld [vmem:[%s24126_s2 + $0x1180] ss:$16 sps:$4 sm:$0xff]   ;;  %v15602_v23 = vld [vmem:[%s24126_s2 + $0x13e4] ss:$16 sps:$4 sm:$0xff]  }
 0x296   : > { %7029 = vmatprep.subr.bf16.mxu0 %v15548_v62  ;;  %v15600_v62 = vld [vmem:[%s24126_s2 + $0x13e0] ss:$16 sps:$4 sm:$0xff]  }
 0x298   : > { %6111 = vmatpush2.bf16.msra.mxu1 %v15543_v55  ;;  %v15597_v55 = vld [vmem:[%s24126_s2 + $0x1160] ss:$16 sps:$4 sm:$0xff]  }
 0x299   : > { %7030 = vmatpush1.bf16.msra.mxu0 %v15546_v20  ;;  %7064 = vmatprep.subr.bf16.mxu1 %v15554_v19  ;;  %v15608_v20 = vld [vmem:[%s24126_s2 + $0x13c4] ss:$16 sps:$4 sm:$0xff]  }
 0x29a   : > { %7031 = vmatprep.subr.bf16.mxu0 %v15551_v9  ;;  %v15605_v19 = vld [vmem:[%s24126_s2 + $0x1144] ss:$16 sps:$4 sm:$0xff]   ;;  %v15606_v9 = vld [vmem:[%s24126_s2 + $0x13c0] ss:$16 sps:$4 sm:$0xff]  }
 0x29b   : > { %v5067_v0 = vpop.f32.mrf.mxu1  ;;  %6113 = vmatmul.mubr.bf16.vlgmr.msra.gmra.mxu1 %v19465_v14 }
 0x29c   : > { %v19670_v15 = vadd.f32 %v5067_v0, %v5027_v57  ;;  %7065 = vmatpush1.bf16.msra.mxu1 %v15552_v12  ;;  %7096 = vmatprep.mubr.bf16.mxu1 %v18536_v56  ;;  %v15579_v57 = vld [vmem:[%s24126_s2 + $0x11c0] ss:$16 sps:$4 sm:$0xff]  }
 0x29d   : > { %7032 = vmatpush1.bf16.msra.mxu0 %v15549_v46  ;;  %v5069_v18 = vpop.f32.mrf.mxu1  ;;  %7066 = vmatprep.subr.bf16.mxu1 %v15560_v27  ;;  %v15603_v12 = vld [vmem:[%s24126_s2 + $0x1140] ss:$16 sps:$4 sm:$0xff]   ;;  %v15614_v46 = vld [vmem:[%s24126_s2 + $0x13a4] ss:$16 sps:$4 sm:$0xff]  }
 0x29e   : > { %v19682_v61 = vadd.f32 %v5069_v18, %v5029_v33  ;;  %7033 = vmatprep.subr.bf16.mxu0 %v15557_v49  ;;  %v15596_v33 = vld [vmem:[%s24126_s2 + $0x1204] ss:$16 sps:$4 sm:$0xff]   ;;  %v15612_v49 = vld [vmem:[%s24126_s2 + $0x13a0] ss:$16 sps:$4 sm:$0xff]  }
 0x29f   : > { %v5071_v52 = vpop.f32.mrf.mxu1  ;;  %v15611_v27 = vld [vmem:[%s24126_s2 + $0x1124] ss:$16 sps:$4 sm:$0xff]   ;;  %v15609_v0 = vld [vmem:[%s24126_s2 + $0x1120] ss:$16 sps:$4 sm:$0xff]  }
 0x2a0   : > { %7067 = vmatpush1.bf16.msra.mxu1 %v15558_v48  ;;  %v15620_v48 = vld [vmem:[%s24126_s2 + $0x1384] ss:$16 sps:$4 sm:$0xff]   ;;  %v15626_v52 = vld [vmem:[%s24126_s2 + $0x10ec] ss:$16 sps:$4 sm:$0xff]  }
 0x2a1   : > { %7034 = vmatpush1.bf16.msra.mxu0 %v15555_v13  ;;  %v5072_v28 = vpop.f32.mrf.mxu1  ;;  %7068 = vmatprep.subr.bf16.mxu1 %v15566_v59  ;;  %v15617_v18 = vld [vmem:[%s24126_s2 + $0x1104] ss:$16 sps:$4 sm:$0xff]   ;;  %v15618_v13 = vld [vmem:[%s24126_s2 + $0x1380] ss:$16 sps:$4 sm:$0xff]  }
 0x2a2   : > { %7035 = vmatprep.subr.bf16.mxu0 %v15563_v29  ;;  %v15615_v59 = vld [vmem:[%s24126_s2 + $0x1100] ss:$16 sps:$4 sm:$0xff]   ;;  %v15623_v29 = vld [vmem:[%s24126_s2 + $0x1364] ss:$16 sps:$4 sm:$0xff]   ;;  %v15624_v28 = vld [vmem:[%s24126_s2 + $0x10e8] ss:$16 sps:$4 sm:$0xff]  }
 0x2a4   : > { %7069 = vmatpush1.bf16.msra.mxu1 %v15564_v16  ;;  %v15621_v16 = vld [vmem:[%s24126_s2 + $0x1360] ss:$16 sps:$4 sm:$0xff]  }
 0x2a5   : > { %7036 = vmatpush1.bf16.msra.mxu0 %v15561_v41  ;;  %7070 = vmatprep.subr.bf16.mxu1 %v15572_v42  ;;  %v15629_v41 = vld [vmem:[%s24126_s2 + $0x1344] ss:$16 sps:$4 sm:$0xff]   ;;  %v15632_v42 = vld [vmem:[%s24126_s2 + $0x10cc] ss:$16 sps:$4 sm:$0xff]  }
 0x2a6   : > { %7037 = vmatprep.subr.bf16.mxu0 %v15569_v38 }
 0x2a8   : > { %7071 = vmatpush1.bf16.msra.mxu1 %v15570_v39  ;;  %v15627_v39 = vld [vmem:[%s24126_s2 + $0x1340] ss:$16 sps:$4 sm:$0xff]  }
 0x2a9   : > { %7038 = vmatpush1.bf16.msra.mxu0 %v15567_v32  ;;  %7072 = vmatprep.subr.bf16.mxu1 %v15578_v24  ;;  %v15630_v24 = vld [vmem:[%s24126_s2 + $0x10c8] ss:$16 sps:$4 sm:$0xff]  }
 0x2aa   : > { %7039 = vmatprep.subr.bf16.mxu0 %v15575_v25  ;;  %v15635_v25 = vld [vmem:[%s24126_s2 + $0x1324] ss:$16 sps:$4 sm:$0xff]  }
 0x2ac   : > { %7073 = vmatpush1.bf16.msra.mxu1 %v15576_v45 }
 0x2ad   : > { %7040 = vmatpush2.bf16.msra.mxu0 %v15573_v60  ;;  %7074 = vmatprep.subr.bf16.mxu1 %v15584_v53  ;;  %v15638_v60 = vld [vmem:[%s24126_s2 + $0x10ac] ss:$16 sps:$4 sm:$0xff]  }
 0x2ae   : > { %7041 = vmatprep.subr.bf16.mxu0 %v15581_v40  ;;  %v15633_v40 = vld [vmem:[%s24126_s2 + $0x1320] ss:$16 sps:$4 sm:$0xff]  }
 0x2b0   : > { %7075 = vmatpush1.bf16.msra.mxu1 %v15582_v51  ;;  %v15636_v51 = vld [vmem:[%s24126_s2 + $0x10a8] ss:$16 sps:$4 sm:$0xff]  }
 0x2b1   : > { %7042 = vmatpush2.bf16.msra.mxu0 %v15579_v57  ;;  %7076 = vmatprep.subr.bf16.mxu1 %v15590_v8  ;;  %v15641_v57 = vld [vmem:[%s24126_s2 + $0x1304] ss:$16 sps:$4 sm:$0xff]  }
 0x2b2   : > { %7043 = vmatprep.subr.bf16.mxu0 %v15587_v22  ;;  %v15639_v22 = vld [vmem:[%s24126_s2 + $0x1300] ss:$16 sps:$4 sm:$0xff]  }
 0x2b4   : > { %7077 = vmatpush1.bf16.msra.mxu1 %v15588_v30  ;;  %v15642_v30 = vld [vmem:[%s24126_s2 + $0x1088] ss:$16 sps:$4 sm:$0xff]  }
 0x2b5   : > { %7044 = vmatpush2.bf16.msra.mxu0 %v15585_v36  ;;  %7078 = vmatprep.subr.bf16.mxu1 %v15596_v33  ;;  %v15650_v36 = vld [vmem:[%s24126_s2 + $0x12ec] ss:$16 sps:$4 sm:$0xff]  }
 0x2b6   : > { %7045 = vmatprep.subr.bf16.mxu0 %v15593_v21  ;;  %v15647_v33 = vld [vmem:[%s24126_s2 + $0x106c] ss:$16 sps:$4 sm:$0xff]   ;;  %v15648_v21 = vld [vmem:[%s24126_s2 + $0x12e8] ss:$16 sps:$4 sm:$0xff]  }
 0x2b8   : > { %7079 = vmatpush1.bf16.msra.mxu1 %v15594_v54  ;;  %v15645_v54 = vld [vmem:[%s24126_s2 + $0x1068] ss:$16 sps:$4 sm:$0xff]  }
 0x2b9   : > { %7046 = vmatpush2.bf16.msra.mxu0 %v15591_v47  ;;  %7080 = vmatprep.subr.bf16.mxu1 %v15602_v23  ;;  %v15656_v47 = vld [vmem:[%s24126_s2 + $0x12cc] ss:$16 sps:$4 sm:$0xff]  }
 0x2ba   : > { %7047 = vmatprep.subr.bf16.mxu0 %v15599_v1  ;;  %v15653_v23 = vld [vmem:[%s24126_s2 + $0x104c] ss:$16 sps:$4 sm:$0xff]  }
 0x2bc   : > { %7081 = vmatpush2.bf16.msra.mxu1 %v15600_v62 }
 0x2bd   : > { %7048 = vmatpush2.bf16.msra.mxu0 %v15597_v55  ;;  %7082 = vmatprep.subr.bf16.mxu1 %v15608_v20  ;;  %v15654_v55 = vld [vmem:[%s24126_s2 + $0x12c8] ss:$16 sps:$4 sm:$0xff]  }
 0x2be   : > { %7049 = vmatprep.subr.bf16.mxu0 %v15605_v19  ;;  %v15651_v19 = vld [vmem:[%s24126_s2 + $0x1048] ss:$16 sps:$4 sm:$0xff]  }
 0x2c0   : > { %7083 = vmatpush2.bf16.msra.mxu1 %v15606_v9  ;;  %v15662_v9 = vld [vmem:[%s24126_s2 + $0x12ac] ss:$16 sps:$4 sm:$0xff]  }
 0x2c1   : > { %7050 = vmatpush2.bf16.msra.mxu0 %v15603_v12  ;;  %7084 = vmatprep.subr.bf16.mxu1 %v15614_v46  ;;  %v15659_v46 = vld [vmem:[%s24126_s2 + $0x102c] ss:$16 sps:$4 sm:$0xff]  }
 0x2c2   : > { %7051 = vmatprep.subr.bf16.mxu0 %v15611_v27 }
 0x2c4   : > { %7085 = vmatpush2.bf16.msra.mxu1 %v15612_v49  ;;  %v15660_v49 = vld [vmem:[%s24126_s2 + $0x12a8] ss:$16 sps:$4 sm:$0xff]  }
 0x2c5   : > { %7052 = vmatpush2.bf16.msra.mxu0 %v15609_v0  ;;  %7086 = vmatprep.subr.bf16.mxu1 %v15620_v48  ;;  %v15657_v48 = vld [vmem:[%s24126_s2 + $0x1028] ss:$16 sps:$4 sm:$0xff]  }
 0x2c6   : > { %7053 = vmatprep.subr.bf16.mxu0 %v15617_v18  ;;  %v15668_v18 = vld [vmem:[%s24126_s2 + $0x128c] ss:$16 sps:$4 sm:$0xff]  }
 0x2c8   : > { %7087 = vmatpush2.bf16.msra.mxu1 %v15618_v13  ;;  %v15665_v13 = vld [vmem:[%s24126_s2 + $0x100c] ss:$16 sps:$4 sm:$0xff]  }
 0x2c9   : > { %7054 = vmatpush2.bf16.msra.mxu0 %v15615_v59  ;;  %7088 = vmatprep.subr.bf16.mxu1 %v15623_v29  ;;  %v15666_v59 = vld [vmem:[%s24126_s2 + $0x1288] ss:$16 sps:$4 sm:$0xff]  }
 0x2ca   : > { %7105 = vmatprep.subr.bf16.mxu0 %v15626_v52  ;;  %v15663_v29 = vld [vmem:[%s24126_s2 + $0x1008] ss:$16 sps:$4 sm:$0xff]   ;;  %v15674_v52 = vld [vmem:[%s24126_s2 + $0x126c] ss:$16 sps:$4 sm:$0xff]  }
 0x2cc   : > { %v5108_v38 = vpop.f32.mrf.mxu0  ;;  %7056 = vmatmul.mubr.bf16.vlgmr.msra.gmra.mxu0 %v18491_v26  ;;  %7089 = vmatpush2.bf16.msra.mxu1 %v15621_v16  ;;  %v15671_v16 = vld [vmem:[%s24126_s2 + $0x11ec] ss:$16 sps:$4 sm:$0xff]  }
 0x2cd   : > { %v5109_v32 = vadd.f32 %v5108_v38, %v19474_v44  ;;  %7106 = vmatpush1.bf16.msra.mxu0 %v15624_v28  ;;  %7137 = vmatprep.mubr.bf16.mxu0 %v18487_v7  ;;  %v15672_v28 = vld [vmem:[%s24126_s2 + $0x1268] ss:$16 sps:$4 sm:$0xff]   ;;  %v15677_v38 = vld [vmem:[%s24126_s2 + $0x11cc] ss:$16 sps:$4 sm:$0xff]  }
 0x2ce   : > { %v5110_v45 = vpop.f32.mrf.mxu0  ;;  %7090 = vmatprep.subr.bf16.mxu1 %v15629_v41  ;;  %7107 = vmatprep.subr.bf16.mxu0 %v15632_v42  ;;  %v15669_v41 = vld [vmem:[%s24126_s2 + $0x11e8] ss:$16 sps:$4 sm:$0xff]   ;;  %v15680_v42 = vld [vmem:[%s24126_s2 + $0x124c] ss:$16 sps:$4 sm:$0xff]  }
 0x2cf   : > { %v5111_v44 = vadd.f32 %v5110_v45, %v19483_v3  ;;  %v15644_v3 = vld [vmem:[%s24126_s2 + $0x108c] ss:$16 sps:$4 sm:$0xff]   ;;  %v15684_v45 = vld [vmem:[%s24126_s2 + $0x1228] ss:$16 sps:$4 sm:$0xff]  }
 0x2d0   : > { %v5112_v53 = vpop.f32.mrf.mxu0  ;;  %7091 = vmatpush2.bf16.msra.mxu1 %v15627_v39  ;;  %v15678_v39 = vld [vmem:[%s24126_s2 + $0x1248] ss:$16 sps:$4 sm:$0xff]  }
 0x2d1   : > { %7108 = vmatpush1.bf16.msra.mxu0 %v15630_v24  ;;  %7092 = vmatprep.subr.bf16.mxu1 %v15635_v25  ;;  %v15686_v24 = vld [vmem:[%s24126_s2 + $0x122c] ss:$16 sps:$4 sm:$0xff]  }
 0x2d2   : > { %v5113_v8 = vpop.f32.mrf.mxu0  ;;  %7109 = vmatprep.subr.bf16.mxu0 %v15638_v60  ;;  %v15683_v25 = vld [vmem:[%s24126_s2 + $0x11ac] ss:$16 sps:$4 sm:$0xff]   ;;  %v15681_v60 = vld [vmem:[%s24126_s2 + $0x11a8] ss:$16 sps:$4 sm:$0xff]  }
 0x2d3   : > { %v15689_v53 = vld [vmem:[%s24126_s2 + $0x118c] ss:$16 sps:$4 sm:$0xff]  }
 0x2d4   : > { %7093 = vmatpush2.bf16.msra.mxu1 %v15633_v40  ;;  %v15690_v40 = vld [vmem:[%s24126_s2 + $0x1208] ss:$16 sps:$4 sm:$0xff]   ;;  %v15695_v8 = vld [vmem:[%s24126_s2 + $0x116c] ss:$16 sps:$4 sm:$0xff]  }
 0x2d5   : > { %7110 = vmatpush1.bf16.msra.mxu0 %v15636_v51  ;;  %7094 = vmatprep.subr.bf16.mxu1 %v15641_v57  ;;  %v15687_v51 = vld [vmem:[%s24126_s2 + $0x1188] ss:$16 sps:$4 sm:$0xff]   ;;  %v15698_v57 = vld [vmem:[%s24126_s2 + $0x13ec] ss:$16 sps:$4 sm:$0xff]  }
 0x2d6   : > { %7111 = vmatprep.subr.bf16.mxu0 %v15644_v3  ;;  %v15696_v3 = vld [vmem:[%s24126_s2 + $0x13e8] ss:$16 sps:$4 sm:$0xff]  }
 0x2d8   : > { %7095 = vmatpush2.bf16.msra.mxu1 %v15639_v22  ;;  %v15693_v22 = vld [vmem:[%s24126_s2 + $0x1168] ss:$16 sps:$4 sm:$0xff]  }
 0x2d9   : > { %7112 = vmatpush1.bf16.msra.mxu0 %v15642_v30  ;;  %7146 = vmatprep.subr.bf16.mxu1 %v15650_v36  ;;  %v15704_v30 = vld [vmem:[%s24126_s2 + $0x13cc] ss:$16 sps:$4 sm:$0xff]  }
 0x2da   : > { %7113 = vmatprep.subr.bf16.mxu0 %v15647_v33  ;;  %v15701_v36 = vld [vmem:[%s24126_s2 + $0x114c] ss:$16 sps:$4 sm:$0xff]   ;;  %v15702_v33 = vld [vmem:[%s24126_s2 + $0x13c8] ss:$16 sps:$4 sm:$0xff]  }
 0x2db   : > { %v5149_v1 = vpop.f32.mrf.mxu1  ;;  %7097 = vmatmul.mubr.bf16.vlgmr.msra.gmra.mxu1 %v18538_v58 }
 0x2dc   : > { %v19872_v62 = vadd.f32 %v5149_v1, %v5109_v32  ;;  %7147 = vmatpush1.bf16.msra.mxu1 %v15648_v21  ;;  %7178 = vmatprep.mubr.bf16.mxu1 %v18536_v56  ;;  %v15675_v32 = vld [vmem:[%s24126_s2 + $0x11c8] ss:$16 sps:$4 sm:$0xff]  }
 0x2dd   : > { %7114 = vmatpush1.bf16.msra.mxu0 %v15645_v54  ;;  %v5151_v20 = vpop.f32.mrf.mxu1  ;;  %7148 = vmatprep.subr.bf16.mxu1 %v15656_v47  ;;  %v15699_v21 = vld [vmem:[%s24126_s2 + $0x1148] ss:$16 sps:$4 sm:$0xff]   ;;  %v15710_v54 = vld [vmem:[%s24126_s2 + $0x13ac] ss:$16 sps:$4 sm:$0xff]  }
 0x2de   : > { %v19884_v12 = vadd.f32 %v5151_v20, %v5111_v44  ;;  %7115 = vmatprep.subr.bf16.mxu0 %v15653_v23  ;;  %v15692_v44 = vld [vmem:[%s24126_s2 + $0x120c] ss:$16 sps:$4 sm:$0xff]   ;;  %v15708_v23 = vld [vmem:[%s24126_s2 + $0x13a8] ss:$16 sps:$4 sm:$0xff]  }
 0x2df   : > { %v5153_v27 = vpop.f32.mrf.mxu1  ;;  %v15707_v47 = vld [vmem:[%s24126_s2 + $0x112c] ss:$16 sps:$4 sm:$0xff]   ;;  %v15705_v1 = vld [vmem:[%s24126_s2 + $0x1128] ss:$16 sps:$4 sm:$0xff]  }
 0x2e0   : > { %7149 = vmatpush1.bf16.msra.mxu1 %v15654_v55  ;;  %v15716_v55 = vld [vmem:[%s24126_s2 + $0x138c] ss:$16 sps:$4 sm:$0xff]   ;;  %v15722_v27 = vld [vmem:[%s24126_s2 + $0xce4] ss:$16 sps:$4 sm:$0xff]  }
 0x2e1   : > { %7116 = vmatpush1.bf16.msra.mxu0 %v15651_v19  ;;  %v5154_v0 = vpop.f32.mrf.mxu1  ;;  %7150 = vmatprep.subr.bf16.mxu1 %v15662_v9  ;;  %v15713_v20 = vld [vmem:[%s24126_s2 + $0x110c] ss:$16 sps:$4 sm:$0xff]   ;;  %v15714_v19 = vld [vmem:[%s24126_s2 + $0x1388] ss:$16 sps:$4 sm:$0xff]  }
 0x2e2   : > { %7117 = vmatprep.subr.bf16.mxu0 %v15659_v46  ;;  %v15711_v9 = vld [vmem:[%s24126_s2 + $0x1108] ss:$16 sps:$4 sm:$0xff]   ;;  %v15719_v46 = vld [vmem:[%s24126_s2 + $0x136c] ss:$16 sps:$4 sm:$0xff]   ;;  %v15720_v0 = vld [vmem:[%s24126_s2 + $0xce0] ss:$16 sps:$4 sm:$0xff]  }
 0x2e4   : > { %7151 = vmatpush1.bf16.msra.mxu1 %v15660_v49  ;;  %v15717_v49 = vld [vmem:[%s24126_s2 + $0x1368] ss:$16 sps:$4 sm:$0xff]  }
 0x2e5   : > { %7118 = vmatpush1.bf16.msra.mxu0 %v15657_v48  ;;  %7152 = vmatprep.subr.bf16.mxu1 %v15668_v18  ;;  %v15725_v48 = vld [vmem:[%s24126_s2 + $0x134c] ss:$16 sps:$4 sm:$0xff]   ;;  %v15728_v18 = vld [vmem:[%s24126_s2 + $0xcc4] ss:$16 sps:$4 sm:$0xff]  }
 0x2e6   : > { %7119 = vmatprep.subr.bf16.mxu0 %v15665_v13 }
 0x2e8   : > { %7153 = vmatpush1.bf16.msra.mxu1 %v15666_v59  ;;  %v15723_v59 = vld [vmem:[%s24126_s2 + $0x1348] ss:$16 sps:$4 sm:$0xff]  }
 0x2e9   : > { %7120 = vmatpush1.bf16.msra.mxu0 %v15663_v29  ;;  %7154 = vmatprep.subr.bf16.mxu1 %v15674_v52  ;;  %v15726_v29 = vld [vmem:[%s24126_s2 + $0xcc0] ss:$16 sps:$4 sm:$0xff]   ;;  %v15731_v52 = vld [vmem:[%s24126_s2 + $0x132c] ss:$16 sps:$4 sm:$0xff]  }
 0x2ea   : > { %7121 = vmatprep.subr.bf16.mxu0 %v15671_v16 }
 0x2ec   : > { %7155 = vmatpush1.bf16.msra.mxu1 %v15672_v28  ;;  %v15734_v28 = vld [vmem:[%s24126_s2 + $0xca4] ss:$16 sps:$4 sm:$0xff]  }
 0x2ed   : > { %7122 = vmatpush2.bf16.msra.mxu0 %v15669_v41  ;;  %7156 = vmatprep.subr.bf16.mxu1 %v15680_v42  ;;  %v15729_v42 = vld [vmem:[%s24126_s2 + $0x1328] ss:$16 sps:$4 sm:$0xff]  }
 0x2ee   : > { %7123 = vmatprep.subr.bf16.mxu0 %v15677_v38  ;;  %v15732_v38 = vld [vmem:[%s24126_s2 + $0xca0] ss:$16 sps:$4 sm:$0xff]  }
 0x2f0   : > { %7157 = vmatpush1.bf16.msra.mxu1 %v15678_v39  ;;  %v15737_v39 = vld [vmem:[%s24126_s2 + $0x130c] ss:$16 sps:$4 sm:$0xff]  }
 0x2f1   : > { %7124 = vmatpush2.bf16.msra.mxu0 %v15675_v32  ;;  %7158 = vmatprep.subr.bf16.mxu1 %v15686_v24  ;;  %v15740_v24 = vld [vmem:[%s24126_s2 + $0xc84] ss:$16 sps:$4 sm:$0xff]  }
 0x2f2   : > { %7125 = vmatprep.subr.bf16.mxu0 %v15683_v25  ;;  %v15735_v25 = vld [vmem:[%s24126_s2 + $0x1308] ss:$16 sps:$4 sm:$0xff]  }
 0x2f4   : > { %7159 = vmatpush1.bf16.msra.mxu1 %v15684_v45  ;;  %v15738_v45 = vld [vmem:[%s24126_s2 + $0xc80] ss:$16 sps:$4 sm:$0xff]  }
 0x2f5   : > { %7126 = vmatpush2.bf16.msra.mxu0 %v15681_v60  ;;  %7160 = vmatprep.subr.bf16.mxu1 %v15692_v44  ;;  %v15746_v60 = vld [vmem:[%s24126_s2 + $0xee4] ss:$16 sps:$4 sm:$0xff]  }
 0x2f6   : > { %7127 = vmatprep.subr.bf16.mxu0 %v15689_v53  ;;  %v15743_v44 = vld [vmem:[%s24126_s2 + $0xc64] ss:$16 sps:$4 sm:$0xff]   ;;  %v15744_v53 = vld [vmem:[%s24126_s2 + $0xee0] ss:$16 sps:$4 sm:$0xff]  }
 0x2f8   : > { %7161 = vmatpush1.bf16.msra.mxu1 %v15690_v40  ;;  %v15741_v40 = vld [vmem:[%s24126_s2 + $0xc60] ss:$16 sps:$4 sm:$0xff]  }
 0x2f9   : > { %7128 = vmatpush2.bf16.msra.mxu0 %v15687_v51  ;;  %7162 = vmatprep.subr.bf16.mxu1 %v15698_v57  ;;  %v15752_v51 = vld [vmem:[%s24126_s2 + $0xec4] ss:$16 sps:$4 sm:$0xff]  }
 0x2fa   : > { %7129 = vmatprep.subr.bf16.mxu0 %v15695_v8  ;;  %v15749_v57 = vld [vmem:[%s24126_s2 + $0xc44] ss:$16 sps:$4 sm:$0xff]  }
 0x2fc   : > { %7163 = vmatpush2.bf16.msra.mxu1 %v15696_v3 }
 0x2fd   : > { %7130 = vmatpush2.bf16.msra.mxu0 %v15693_v22  ;;  %7164 = vmatprep.subr.bf16.mxu1 %v15704_v30  ;;  %v15750_v22 = vld [vmem:[%s24126_s2 + $0xec0] ss:$16 sps:$4 sm:$0xff]  }
 0x2fe   : > { %7131 = vmatprep.subr.bf16.mxu0 %v15701_v36  ;;  %v15747_v36 = vld [vmem:[%s24126_s2 + $0xc40] ss:$16 sps:$4 sm:$0xff]  }
 0x300   : > { %7165 = vmatpush2.bf16.msra.mxu1 %v15702_v33  ;;  %v15758_v33 = vld [vmem:[%s24126_s2 + $0xea4] ss:$16 sps:$4 sm:$0xff]  }
 0x301   : > { %7132 = vmatpush2.bf16.msra.mxu0 %v15699_v21  ;;  %7166 = vmatprep.subr.bf16.mxu1 %v15710_v54 }
 0x302   : > { %7133 = vmatprep.subr.bf16.mxu0 %v15707_v47  ;;  %v15755_v47 = vld [vmem:[%s24126_s2 + $0xc24] ss:$16 sps:$4 sm:$0xff]  }
 0x304   : > { %7167 = vmatpush2.bf16.msra.mxu1 %v15708_v23 }
 0x305   : > { %7134 = vmatpush2.bf16.msra.mxu0 %v15705_v1  ;;  %7168 = vmatprep.subr.bf16.mxu1 %v15716_v55  ;;  %v15756_v55 = vld [vmem:[%s24126_s2 + $0xea0] ss:$16 sps:$4 sm:$0xff]  }
 0x306   : > { %7135 = vmatprep.subr.bf16.mxu0 %v15713_v20 }
 0x308   : > { %7169 = vmatpush2.bf16.msra.mxu1 %v15714_v19  ;;  %v15764_v19 = vld [vmem:[%s24126_s2 + $0xe84] ss:$16 sps:$4 sm:$0xff]  }
 0x309   : > { %7136 = vmatpush2.bf16.msra.mxu0 %v15711_v9  ;;  %7170 = vmatprep.subr.bf16.mxu1 %v15719_v46  ;;  %v15762_v9 = vld [vmem:[%s24126_s2 + $0xe80] ss:$16 sps:$4 sm:$0xff]  }
 0x30a   : > { %7827 = vmatprep.subr.bf16.mxu0 %v15722_v27  ;;  %v15759_v46 = vld [vmem:[%s24126_s2 + $0xc00] ss:$16 sps:$4 sm:$0xff]   ;;  %v15770_v27 = vld [vmem:[%s24126_s2 + $0xe64] ss:$16 sps:$4 sm:$0xff]  }
 0x30c   : > { %v5991_v13 = vpop.f32.mrf.mxu0  ;;  %7138 = vmatmul.mubr.bf16.vlgmr.msra.gmra.mxu0 %v18491_v26  ;;  %7171 = vmatpush2.bf16.msra.mxu1 %v15717_v49  ;;  %v15767_v49 = vld [vmem:[%s24126_s2 + $0xde4] ss:$16 sps:$4 sm:$0xff]  }
 0x30d   : > { %7828 = vmatpush1.bf16.msra.mxu0 %v15720_v0  ;;  %7859 = vmatprep.mubr.bf16.mxu0 %v18863_v63  ;;  %v15768_v0 = vld [vmem:[%s24126_s2 + $0xe60] ss:$16 sps:$4 sm:$0xff]  }
 0x30e   : > { %v5993_v16 = vpop.f32.mrf.mxu0  ;;  %7172 = vmatprep.subr.bf16.mxu1 %v15725_v48  ;;  %7829 = vmatprep.subr.bf16.mxu0 %v15728_v18  ;;  %v15765_v48 = vld [vmem:[%s24126_s2 + $0xde0] ss:$16 sps:$4 sm:$0xff]   ;;  %v15776_v18 = vld [vmem:[%s24126_s2 + $0xe44] ss:$16 sps:$4 sm:$0xff]  }
 0x310   : > { %v5995_v41 = vpop.f32.mrf.mxu0  ;;  %7173 = vmatpush2.bf16.msra.mxu1 %v15723_v59  ;;  %v15774_v59 = vld [vmem:[%s24126_s2 + $0xe40] ss:$16 sps:$4 sm:$0xff]  }
 0x311   : > { %7830 = vmatpush1.bf16.msra.mxu0 %v15726_v29  ;;  %7174 = vmatprep.subr.bf16.mxu1 %v15731_v52  ;;  %v15771_v29 = vld [vmem:[%s24126_s2 + $0xdc0] ss:$16 sps:$4 sm:$0xff]   ;;  %v15782_v52 = vld [vmem:[%s24126_s2 + $0xe24] ss:$16 sps:$4 sm:$0xff]  }
 0x312   : > { %v5996_v32 = vpop.f32.mrf.mxu0  ;;  %7831 = vmatprep.subr.bf16.mxu0 %v15734_v28  ;;  %v15780_v28 = vld [vmem:[%s24126_s2 + $0xe20] ss:$16 sps:$4 sm:$0xff]  }
 0x313   : > { %v15777_v41 = vld [vmem:[%s24126_s2 + $0xda0] ss:$16 sps:$4 sm:$0xff]  }
 0x314   : > { %7175 = vmatpush2.bf16.msra.mxu1 %v15729_v42  ;;  %v15788_v42 = vld [vmem:[%s24126_s2 + $0xe04] ss:$16 sps:$4 sm:$0xff]   ;;  %v15783_v32 = vld [vmem:[%s24126_s2 + $0xd80] ss:$16 sps:$4 sm:$0xff]  }
 0x315   : > { %7832 = vmatpush1.bf16.msra.mxu0 %v15732_v38  ;;  %7176 = vmatprep.subr.bf16.mxu1 %v15737_v39  ;;  %v15785_v38 = vld [vmem:[%s24126_s2 + $0xd84] ss:$16 sps:$4 sm:$0xff]   ;;  %v15786_v39 = vld [vmem:[%s24126_s2 + $0xe00] ss:$16 sps:$4 sm:$0xff]  }
 0x316   : > { %7833 = vmatprep.subr.bf16.mxu0 %v15740_v24  ;;  %v15794_v24 = vld [vmem:[%s24126_s2 + $0xfe4] ss:$16 sps:$4 sm:$0xff]  }
 0x318   : > { %7177 = vmatpush2.bf16.msra.mxu1 %v15735_v25  ;;  %v15791_v25 = vld [vmem:[%s24126_s2 + $0xd64] ss:$16 sps:$4 sm:$0xff]  }
 0x319   : > { %7834 = vmatpush1.bf16.msra.mxu0 %v15738_v45  ;;  %7868 = vmatprep.subr.bf16.mxu1 %v15746_v60  ;;  %v15792_v45 = vld [vmem:[%s24126_s2 + $0xfe0] ss:$16 sps:$4 sm:$0xff]  }
 0x31a   : > { %7835 = vmatprep.subr.bf16.mxu0 %v15743_v44  ;;  %v15789_v60 = vld [vmem:[%s24126_s2 + $0xd60] ss:$16 sps:$4 sm:$0xff]   ;;  %v15800_v44 = vld [vmem:[%s24126_s2 + $0xfc4] ss:$16 sps:$4 sm:$0xff]  }
 0x31b   : > { %v6032_v8 = vpop.f32.mrf.mxu1  ;;  %7179 = vmatmul.mubr.bf16.vlgmr.msra.gmra.mxu1 %v18538_v58 }
 0x31c   : > { %v6033_v3 = vadd.f32 %v6032_v8, %v5991_v13  ;;  %7869 = vmatpush1.bf16.msra.mxu1 %v15744_v53  ;;  %7900 = vmatprep.mubr.bf16.mxu1 %v18915_v43  ;;  %v15773_v13 = vld [vmem:[%s24126_s2 + $0xdc4] ss:$16 sps:$4 sm:$0xff]  }
 0x31d   : > { %7836 = vmatpush1.bf16.msra.mxu0 %v15741_v40  ;;  %v6034_v30 = vpop.f32.mrf.mxu1  ;;  %7870 = vmatprep.subr.bf16.mxu1 %v15752_v51  ;;  %v15797_v53 = vld [vmem:[%s24126_s2 + $0xd44] ss:$16 sps:$4 sm:$0xff]   ;;  %v15798_v40 = vld [vmem:[%s24126_s2 + $0xfc0] ss:$16 sps:$4 sm:$0xff]  }
 0x31e   : > { %v20083_v21 = vadd.f32 %v6033_v3, %v19670_v15  ;;  %v6035_v54 = vadd.f32 %v6034_v30, %v5993_v16  ;;  %7837 = vmatprep.subr.bf16.mxu0 %v15749_v57  ;;  %v15753_v15 = vld [vmem:[%s24126_s2 + $0xc20] ss:$16 sps:$4 sm:$0xff]   ;;  %v15779_v16 = vld [vmem:[%s24126_s2 + $0xda4] ss:$16 sps:$4 sm:$0xff]  }
 0x31f   : > { %v6036_v23 = vpop.f32.mrf.mxu1  ;;  %v15795_v51 = vld [vmem:[%s24126_s2 + $0xd40] ss:$16 sps:$4 sm:$0xff]   ;;  %v15806_v57 = vld [vmem:[%s24126_s2 + $0xfa4] ss:$16 sps:$4 sm:$0xff]  }
 0x320   : > { %v20089_v1 = vadd.f32 %v6035_v54, %v19682_v61  ;;  %7871 = vmatpush1.bf16.msra.mxu1 %v15750_v22  ;;  %v15761_v61 = vld [vmem:[%s24126_s2 + $0xc04] ss:$16 sps:$4 sm:$0xff]   ;;  %v15804_v3 = vld [vmem:[%s24126_s2 + $0xfa0] ss:$16 sps:$4 sm:$0xff]   ;;  %v15818_v23 = vld [vmem:[%s24126_s2 + $0xcec] ss:$16 sps:$4 sm:$0xff]  }
 0x321   : > { %7838 = vmatpush1.bf16.msra.mxu0 %v15747_v36  ;;  %v6037_v20 = vpop.f32.mrf.mxu1  ;;  %7872 = vmatprep.subr.bf16.mxu1 %v15758_v33  ;;  %v15803_v8 = vld [vmem:[%s24126_s2 + $0xd24] ss:$16 sps:$4 sm:$0xff]   ;;  %v15801_v22 = vld [vmem:[%s24126_s2 + $0xd20] ss:$16 sps:$4 sm:$0xff]  }
 0x322   : > { %7839 = vmatprep.subr.bf16.mxu0 %v15755_v47  ;;  %v15812_v30 = vld [vmem:[%s24126_s2 + $0xf84] ss:$16 sps:$4 sm:$0xff]   ;;  %v15810_v33 = vld [vmem:[%s24126_s2 + $0xf80] ss:$16 sps:$4 sm:$0xff]   ;;  %v15816_v20 = vld [vmem:[%s24126_s2 + $0xce8] ss:$16 sps:$4 sm:$0xff]  }
 0x323   : > { %v15809_v36 = vld [vmem:[%s24126_s2 + $0xd04] ss:$16 sps:$4 sm:$0xff]   ;;  %v15807_v54 = vld [vmem:[%s24126_s2 + $0xd00] ss:$16 sps:$4 sm:$0xff]  }
 0x324   : > { %7873 = vmatpush1.bf16.msra.mxu1 %v15756_v55  ;;  %v15815_v47 = vld [vmem:[%s24126_s2 + $0xf64] ss:$16 sps:$4 sm:$0xff]   ;;  %v15813_v55 = vld [vmem:[%s24126_s2 + $0xf60] ss:$16 sps:$4 sm:$0xff]  }
 0x325   : > { %7840 = vmatpush1.bf16.msra.mxu0 %v15753_v15  ;;  %7874 = vmatprep.subr.bf16.mxu1 %v15764_v19  ;;  %v15821_v15 = vld [vmem:[%s24126_s2 + $0xf44] ss:$16 sps:$4 sm:$0xff]   ;;  %v15824_v19 = vld [vmem:[%s24126_s2 + $0xccc] ss:$16 sps:$4 sm:$0xff]  }
 0x326   : > { %7841 = vmatprep.subr.bf16.mxu0 %v15761_v61 }
 0x328   : > { %7875 = vmatpush1.bf16.msra.mxu1 %v15762_v9  ;;  %v15819_v9 = vld [vmem:[%s24126_s2 + $0xf40] ss:$16 sps:$4 sm:$0xff]  }
 0x329   : > { %7842 = vmatpush1.bf16.msra.mxu0 %v15759_v46  ;;  %7876 = vmatprep.subr.bf16.mxu1 %v15770_v27  ;;  %v15822_v46 = vld [vmem:[%s24126_s2 + $0xcc8] ss:$16 sps:$4 sm:$0xff]   ;;  %v15827_v27 = vld [vmem:[%s24126_s2 + $0xf24] ss:$16 sps:$4 sm:$0xff]  }
 0x32a   : > { %7843 = vmatprep.subr.bf16.mxu0 %v15767_v49 }
 0x32c   : > { %7877 = vmatpush1.bf16.msra.mxu1 %v15768_v0  ;;  %v15830_v0 = vld [vmem:[%s24126_s2 + $0xcac] ss:$16 sps:$4 sm:$0xff]  }
 0x32d   : > { %7844 = vmatpush2.bf16.msra.mxu0 %v15765_v48  ;;  %7878 = vmatprep.subr.bf16.mxu1 %v15776_v18  ;;  %v15828_v18 = vld [vmem:[%s24126_s2 + $0xca8] ss:$16 sps:$4 sm:$0xff]  }
 0x32e   : > { %7845 = vmatprep.subr.bf16.mxu0 %v15773_v13  ;;  %v15833_v13 = vld [vmem:[%s24126_s2 + $0xf04] ss:$16 sps:$4 sm:$0xff]  }
 0x330   : > { %7879 = vmatpush1.bf16.msra.mxu1 %v15774_v59 }
 0x331   : > { %7846 = vmatpush2.bf16.msra.mxu0 %v15771_v29  ;;  %7880 = vmatprep.subr.bf16.mxu1 %v15782_v52  ;;  %v15836_v29 = vld [vmem:[%s24126_s2 + $0xc8c] ss:$16 sps:$4 sm:$0xff]   ;;  %v15831_v52 = vld [vmem:[%s24126_s2 + $0xf00] ss:$16 sps:$4 sm:$0xff]  }
 0x332   : > { %7847 = vmatprep.subr.bf16.mxu0 %v15779_v16  ;;  %v15834_v16 = vld [vmem:[%s24126_s2 + $0xc88] ss:$16 sps:$4 sm:$0xff]  }
 0x334   : > { %7881 = vmatpush1.bf16.msra.mxu1 %v15780_v28  ;;  %v15842_v28 = vld [vmem:[%s24126_s2 + $0xeec] ss:$16 sps:$4 sm:$0xff]  }
 0x335   : > { %7848 = vmatpush2.bf16.msra.mxu0 %v15777_v41  ;;  %7882 = vmatprep.subr.bf16.mxu1 %v15788_v42  ;;  %v15839_v41 = vld [vmem:[%s24126_s2 + $0xc6c] ss:$16 sps:$4 sm:$0xff]   ;;  %v15840_v42 = vld [vmem:[%s24126_s2 + $0xee8] ss:$16 sps:$4 sm:$0xff]  }
 0x336   : > { %7849 = vmatprep.subr.bf16.mxu0 %v15785_v38  ;;  %v15837_v38 = vld [vmem:[%s24126_s2 + $0xc68] ss:$16 sps:$4 sm:$0xff]  }
 0x338   : > { %7883 = vmatpush1.bf16.msra.mxu1 %v15786_v39  ;;  %v15848_v39 = vld [vmem:[%s24126_s2 + $0xecc] ss:$16 sps:$4 sm:$0xff]  }
 0x339   : > { %7850 = vmatpush2.bf16.msra.mxu0 %v15783_v32  ;;  %7884 = vmatprep.subr.bf16.mxu1 %v15794_v24  ;;  %v15845_v32 = vld [vmem:[%s24126_s2 + $0xc4c] ss:$16 sps:$4 sm:$0xff]  }
 0x33a   : > { %7851 = vmatprep.subr.bf16.mxu0 %v15791_v25 }
 0x33c   : > { %7885 = vmatpush2.bf16.msra.mxu1 %v15792_v45  ;;  %v15846_v45 = vld [vmem:[%s24126_s2 + $0xec8] ss:$16 sps:$4 sm:$0xff]  }
 0x33d   : > { %7852 = vmatpush2.bf16.msra.mxu0 %v15789_v60  ;;  %7886 = vmatprep.subr.bf16.mxu1 %v15800_v44  ;;  %v15843_v44 = vld [vmem:[%s24126_s2 + $0xc48] ss:$16 sps:$4 sm:$0xff]  }
 0x33e   : > { %7853 = vmatprep.subr.bf16.mxu0 %v15797_v53  ;;  %v15854_v53 = vld [vmem:[%s24126_s2 + $0xeac] ss:$16 sps:$4 sm:$0xff]  }
 0x340   : > { %7887 = vmatpush2.bf16.msra.mxu1 %v15798_v40 }
 0x341   : > { %7854 = vmatpush2.bf16.msra.mxu0 %v15795_v51  ;;  %7888 = vmatprep.subr.bf16.mxu1 %v15806_v57 }
 0x342   : > { %7855 = vmatprep.subr.bf16.mxu0 %v15803_v8 }
 0x344   : > { %7889 = vmatpush2.bf16.msra.mxu1 %v15804_v3  ;;  %v15852_v3 = vld [vmem:[%s24126_s2 + $0xea8] ss:$16 sps:$4 sm:$0xff]  }
 0x345   : > { %7856 = vmatpush2.bf16.msra.mxu0 %v15801_v22  ;;  %7890 = vmatprep.subr.bf16.mxu1 %v15812_v30  ;;  %v15860_v30 = vld [vmem:[%s24126_s2 + $0xe8c] ss:$16 sps:$4 sm:$0xff]  }
 0x346   : > { %7857 = vmatprep.subr.bf16.mxu0 %v15809_v36  ;;  %v15858_v36 = vld [vmem:[%s24126_s2 + $0xe88] ss:$16 sps:$4 sm:$0xff]  }
 0x348   : > { %7891 = vmatpush2.bf16.msra.mxu1 %v15810_v33  ;;  %v15855_v33 = vld [vmem:[%s24126_s2 + $0xc08] ss:$16 sps:$4 sm:$0xff]  }
 0x349   : > { %7858 = vmatpush2.bf16.msra.mxu0 %v15807_v54  ;;  %7892 = vmatprep.subr.bf16.mxu1 %v15815_v47  ;;  %v15866_v54 = vld [vmem:[%s24126_s2 + $0xe6c] ss:$16 sps:$4 sm:$0xff]  }
 0x34a   : > { %7909 = vmatprep.subr.bf16.mxu0 %v15818_v23  ;;  %v15863_v47 = vld [vmem:[%s24126_s2 + $0xdec] ss:$16 sps:$4 sm:$0xff]   ;;  %v15864_v23 = vld [vmem:[%s24126_s2 + $0xe68] ss:$16 sps:$4 sm:$0xff]  }
 0x34c   : > { %v6073_v61 = vpop.f32.mrf.mxu0  ;;  %7860 = vmatmul.mubr.bf16.vlgmr.msra.gmra.mxu0 %v18995_v37  ;;  %7893 = vmatpush2.bf16.msra.mxu1 %v15813_v55  ;;  %v15861_v55 = vld [vmem:[%s24126_s2 + $0xde8] ss:$16 sps:$4 sm:$0xff]  }
 0x34d   : > { %7910 = vmatpush1.bf16.msra.mxu0 %v15816_v20  ;;  %7941 = vmatprep.mubr.bf16.mxu0 %v18863_v63  ;;  %v15825_v63 = vld [vmem:[%s24126_s2 + $0xf20] ss:$16 sps:$4 sm:$0xff]   ;;  %v15872_v20 = vld [vmem:[%s24126_s2 + $0xe4c] ss:$16 sps:$4 sm:$0xff]  }
 0x34e   : > { %v6075_v49 = vpop.f32.mrf.mxu0  ;;  %7894 = vmatprep.subr.bf16.mxu1 %v15821_v15  ;;  %7911 = vmatprep.subr.bf16.mxu0 %v15824_v19  ;;  %v15869_v15 = vld [vmem:[%s24126_s2 + $0xdcc] ss:$16 sps:$4 sm:$0xff]   ;;  %v15870_v19 = vld [vmem:[%s24126_s2 + $0xe48] ss:$16 sps:$4 sm:$0xff]  }
 0x350   : > { %v6077_v48 = vpop.f32.mrf.mxu0  ;;  %7895 = vmatpush2.bf16.msra.mxu1 %v15819_v9  ;;  %v15878_v9 = vld [vmem:[%s24126_s2 + $0xe2c] ss:$16 sps:$4 sm:$0xff]  }
 0x351   : > { %7912 = vmatpush1.bf16.msra.mxu0 %v15822_v46  ;;  %7896 = vmatprep.subr.bf16.mxu1 %v15827_v27  ;;  %v15875_v46 = vld [vmem:[%s24126_s2 + $0xdac] ss:$16 sps:$4 sm:$0xff]   ;;  %v15876_v27 = vld [vmem:[%s24126_s2 + $0xe28] ss:$16 sps:$4 sm:$0xff]  }
 0x352   : > { %v6078_v59 = vpop.f32.mrf.mxu0  ;;  %7913 = vmatprep.subr.bf16.mxu0 %v15830_v0  ;;  %v15884_v0 = vld [vmem:[%s24126_s2 + $0xe0c] ss:$16 sps:$4 sm:$0xff]  }
 0x353   : > { %v15881_v48 = vld [vmem:[%s24126_s2 + $0xd8c] ss:$16 sps:$4 sm:$0xff]  }
 0x354   : > { %7897 = vmatpush2.bf16.msra.mxu1 %v15825_v63  ;;  %v15882_v63 = vld [vmem:[%s24126_s2 + $0xe08] ss:$16 sps:$4 sm:$0xff]   ;;  %v15887_v59 = vld [vmem:[%s24126_s2 + $0xd6c] ss:$16 sps:$4 sm:$0xff]  }
 0x355   : > { %7914 = vmatpush1.bf16.msra.mxu0 %v15828_v18  ;;  %7898 = vmatprep.subr.bf16.mxu1 %v15833_v13  ;;  %v15879_v18 = vld [vmem:[%s24126_s2 + $0xd88] ss:$16 sps:$4 sm:$0xff]   ;;  %v15890_v13 = vld [vmem:[%s24126_s2 + $0xfec] ss:$16 sps:$4 sm:$0xff]  }
 0x356   : > { %7915 = vmatprep.subr.bf16.mxu0 %v15836_v29  ;;  %v15888_v29 = vld [vmem:[%s24126_s2 + $0xfe8] ss:$16 sps:$4 sm:$0xff]  }
 0x358   : > { %7899 = vmatpush2.bf16.msra.mxu1 %v15831_v52  ;;  %v15885_v52 = vld [vmem:[%s24126_s2 + $0xd68] ss:$16 sps:$4 sm:$0xff]  }
 0x359   : > { %7916 = vmatpush1.bf16.msra.mxu0 %v15834_v16  ;;  %7950 = vmatprep.subr.bf16.mxu1 %v15842_v28  ;;  %v15896_v16 = vld [vmem:[%s24126_s2 + $0xfcc] ss:$16 sps:$4 sm:$0xff]  }
 0x35a   : > { %7917 = vmatprep.subr.bf16.mxu0 %v15839_v41  ;;  %v15893_v28 = vld [vmem:[%s24126_s2 + $0xd4c] ss:$16 sps:$4 sm:$0xff]   ;;  %v15894_v41 = vld [vmem:[%s24126_s2 + $0xfc8] ss:$16 sps:$4 sm:$0xff]  }
 0x35b   : > { %v6114_v24 = vpop.f32.mrf.mxu1  ;;  %7901 = vmatmul.mubr.bf16.vlgmr.msra.gmra.mxu1 %v19049_v5 }
 0x35c   : > { %v6115_v25 = vadd.f32 %v6114_v24, %v6073_v61  ;;  %7951 = vmatpush1.bf16.msra.mxu1 %v15840_v42  ;;  %7982 = vmatprep.mubr.bf16.mxu1 %v18915_v43  ;;  %v15851_v43 = vld [vmem:[%s24126_s2 + $0xc2c] ss:$16 sps:$4 sm:$0xff]   ;;  %v15867_v61 = vld [vmem:[%s24126_s2 + $0xdc8] ss:$16 sps:$4 sm:$0xff]  }
 0x35d   : > { %7918 = vmatpush1.bf16.msra.mxu0 %v15837_v38  ;;  %v6116_v60 = vpop.f32.mrf.mxu1  ;;  %7952 = vmatprep.subr.bf16.mxu1 %v15848_v39  ;;  %v15891_v42 = vld [vmem:[%s24126_s2 + $0xd48] ss:$16 sps:$4 sm:$0xff]   ;;  %v15902_v38 = vld [vmem:[%s24126_s2 + $0xfac] ss:$16 sps:$4 sm:$0xff]  }
 0x35e   : > { %v20285_v40 = vadd.f32 %v6115_v25, %v19872_v62  ;;  %v6117_v51 = vadd.f32 %v6116_v60, %v6075_v49  ;;  %7919 = vmatprep.subr.bf16.mxu0 %v15845_v32  ;;  %v15849_v62 = vld [vmem:[%s24126_s2 + $0xc28] ss:$16 sps:$4 sm:$0xff]   ;;  %v15899_v39 = vld [vmem:[%s24126_s2 + $0xd2c] ss:$16 sps:$4 sm:$0xff]  }
 0x35f   : > { %v6118_v57 = vpop.f32.mrf.mxu1  ;;  %v15873_v49 = vld [vmem:[%s24126_s2 + $0xda8] ss:$16 sps:$4 sm:$0xff]   ;;  %v15908_v25 = vld [vmem:[%s24126_s2 + $0xf8c] ss:$16 sps:$4 sm:$0xff]  }
 0x360   : > { %v20291_v8 = vadd.f32 %v6117_v51, %v19884_v12  ;;  %7953 = vmatpush1.bf16.msra.mxu1 %v15846_v45  ;;  %v15857_v12 = vld [vmem:[%s24126_s2 + $0xc0c] ss:$16 sps:$4 sm:$0xff]   ;;  %v15900_v32 = vld [vmem:[%s24126_s2 + $0xfa8] ss:$16 sps:$4 sm:$0xff]   ;;  %v15914_v51 = vld [vmem:[%s24126_s2 + $0x14e4] ss:$16 sps:$4 sm:$0xff]  }
 0x361   : > { %7920 = vmatpush1.bf16.msra.mxu0 %v15843_v44  ;;  %v6119_v22 = vpop.f32.mrf.mxu1  ;;  %7954 = vmatprep.subr.bf16.mxu1 %v15854_v53  ;;  %v15897_v24 = vld [vmem:[%s24126_s2 + $0xd28] ss:$16 sps:$4 sm:$0xff]   ;;  %v15905_v45 = vld [vmem:[%s24126_s2 + $0xd0c] ss:$16 sps:$4 sm:$0xff]   ;;  %v15912_v57 = vld [vmem:[%s24126_s2 + $0x14e0] ss:$16 sps:$4 sm:$0xff]  }
 0x362   : > { %7921 = vmatprep.subr.bf16.mxu0 %v15851_v43  ;;  %v15906_v60 = vld [vmem:[%s24126_s2 + $0xf88] ss:$16 sps:$4 sm:$0xff]   ;;  %v15911_v53 = vld [vmem:[%s24126_s2 + $0xf6c] ss:$16 sps:$4 sm:$0xff]   ;;  %v15920_v22 = vld [vmem:[%s24126_s2 + $0x14c4] ss:$16 sps:$4 sm:$0xff]  }
 0x363   : > { %v15903_v44 = vld [vmem:[%s24126_s2 + $0xd08] ss:$16 sps:$4 sm:$0xff]  }
 0x364   : > { %7955 = vmatpush1.bf16.msra.mxu1 %v15852_v3  ;;  %v15909_v43 = vld [vmem:[%s24126_s2 + $0xf68] ss:$16 sps:$4 sm:$0xff]   ;;  %v15917_v3 = vld [vmem:[%s24126_s2 + $0xf4c] ss:$16 sps:$4 sm:$0xff]  }
 0x365   : > { %7922 = vmatpush1.bf16.msra.mxu0 %v15849_v62  ;;  %7956 = vmatprep.subr.bf16.mxu1 %v15860_v30  ;;  %v15915_v30 = vld [vmem:[%s24126_s2 + $0xf48] ss:$16 sps:$4 sm:$0xff]  }
 0x366   : > { %7923 = vmatprep.subr.bf16.mxu0 %v15857_v12  ;;  %v15918_v12 = vld [vmem:[%s24126_s2 + $0x14c0] ss:$16 sps:$4 sm:$0xff]  }
 0x368   : > { %7957 = vmatpush1.bf16.msra.mxu1 %v15858_v36  ;;  %v15923_v36 = vld [vmem:[%s24126_s2 + $0xf2c] ss:$16 sps:$4 sm:$0xff]  }
 0x369   : > { %7924 = vmatpush1.bf16.msra.mxu0 %v15855_v33  ;;  %7958 = vmatprep.subr.bf16.mxu1 %v15866_v54 }
 0x36a   : > { %7925 = vmatprep.subr.bf16.mxu0 %v15863_v47  ;;  %v15921_v47 = vld [vmem:[%s24126_s2 + $0xf28] ss:$16 sps:$4 sm:$0xff]  }
 0x36c   : > { %7959 = vmatpush1.bf16.msra.mxu1 %v15864_v23  ;;  %v15924_v23 = vld [vmem:[%s24126_s2 + $0x14a0] ss:$16 sps:$4 sm:$0xff]  }
 0x36d   : > { %7926 = vmatpush2.bf16.msra.mxu0 %v15861_v55  ;;  %7960 = vmatprep.subr.bf16.mxu1 %v15872_v20  ;;  %v15929_v55 = vld [vmem:[%s24126_s2 + $0xf0c] ss:$16 sps:$4 sm:$0xff]  }
 0x36e   : > { %7927 = vmatprep.subr.bf16.mxu0 %v15869_v15  ;;  %v15932_v15 = vld [vmem:[%s24126_s2 + $0x1484] ss:$16 sps:$4 sm:$0xff]  }
 0x370   : > { %7961 = vmatpush1.bf16.msra.mxu1 %v15870_v19  ;;  %v15927_v19 = vld [vmem:[%s24126_s2 + $0xf08] ss:$16 sps:$4 sm:$0xff]  }
 0x371   : > { %7928 = vmatpush2.bf16.msra.mxu0 %v15867_v61  ;;  %7962 = vmatprep.subr.bf16.mxu1 %v15878_v9  ;;  %v15930_v61 = vld [vmem:[%s24126_s2 + $0x1480] ss:$16 sps:$4 sm:$0xff]   ;;  %v15938_v9 = vld [vmem:[%s24126_s2 + $0x16e4] ss:$16 sps:$4 sm:$0xff]  }
 0x372   : > { %7929 = vmatprep.subr.bf16.mxu0 %v15875_v46  ;;  %v15935_v46 = vld [vmem:[%s24126_s2 + $0x1464] ss:$16 sps:$4 sm:$0xff]  }
 0x374   : > { %7963 = vmatpush1.bf16.msra.mxu1 %v15876_v27  ;;  %v15936_v27 = vld [vmem:[%s24126_s2 + $0x16e0] ss:$16 sps:$4 sm:$0xff]  }
 0x375   : > { %7930 = vmatpush2.bf16.msra.mxu0 %v15873_v49  ;;  %7964 = vmatprep.subr.bf16.mxu1 %v15884_v0  ;;  %v15933_v49 = vld [vmem:[%s24126_s2 + $0x1460] ss:$16 sps:$4 sm:$0xff]   ;;  %v15944_v0 = vld [vmem:[%s24126_s2 + $0x16c4] ss:$16 sps:$4 sm:$0xff]  }
 0x376   : > { %7931 = vmatprep.subr.bf16.mxu0 %v15881_v48  ;;  %v15941_v48 = vld [vmem:[%s24126_s2 + $0x1444] ss:$16 sps:$4 sm:$0xff]  }
 0x378   : > { %7965 = vmatpush1.bf16.msra.mxu1 %v15882_v63 }
 0x379   : > { %7932 = vmatpush2.bf16.msra.mxu0 %v15879_v18  ;;  %7966 = vmatprep.subr.bf16.mxu1 %v15890_v13  ;;  %v15942_v13 = vld [vmem:[%s24126_s2 + $0x16c0] ss:$16 sps:$4 sm:$0xff]  }
 0x37a   : > { %7933 = vmatprep.subr.bf16.mxu0 %v15887_v59 }
 0x37c   : > { %7967 = vmatpush2.bf16.msra.mxu1 %v15888_v29  ;;  %v15939_v29 = vld [vmem:[%s24126_s2 + $0x1440] ss:$16 sps:$4 sm:$0xff]  }
 0x37d   : > { %7934 = vmatpush2.bf16.msra.mxu0 %v15885_v52  ;;  %7968 = vmatprep.subr.bf16.mxu1 %v15896_v16  ;;  %v15947_v16 = vld [vmem:[%s24126_s2 + $0x1424] ss:$16 sps:$4 sm:$0xff]  }
 0x37e   : > { %7935 = vmatprep.subr.bf16.mxu0 %v15893_v28 }
 0x380   : > { %7969 = vmatpush2.bf16.msra.mxu1 %v15894_v41  ;;  %v15948_v41 = vld [vmem:[%s24126_s2 + $0x16a0] ss:$16 sps:$4 sm:$0xff]  }
 0x381   : > { %7936 = vmatpush2.bf16.msra.mxu0 %v15891_v42  ;;  %7970 = vmatprep.subr.bf16.mxu1 %v15902_v38  ;;  %v15945_v38 = vld [vmem:[%s24126_s2 + $0x1420] ss:$16 sps:$4 sm:$0xff]  }
 0x382   : > { %7937 = vmatprep.subr.bf16.mxu0 %v15899_v39  ;;  %v15956_v39 = vld [vmem:[%s24126_s2 + $0x1684] ss:$16 sps:$4 sm:$0xff]  }
 0x384   : > { %7971 = vmatpush2.bf16.msra.mxu1 %v15900_v32  ;;  %v15953_v32 = vld [vmem:[%s24126_s2 + $0x1404] ss:$16 sps:$4 sm:$0xff]  }
 0x385   : > { %7938 = vmatpush2.bf16.msra.mxu0 %v15897_v24  ;;  %7972 = vmatprep.subr.bf16.mxu1 %v15908_v25  ;;  %v15954_v24 = vld [vmem:[%s24126_s2 + $0x1680] ss:$16 sps:$4 sm:$0xff]  }
 0x386   : > { %7939 = vmatprep.subr.bf16.mxu0 %v15905_v45  ;;  %v15951_v25 = vld [vmem:[%s24126_s2 + $0x1400] ss:$16 sps:$4 sm:$0xff]   ;;  %v15962_v45 = vld [vmem:[%s24126_s2 + $0x1664] ss:$16 sps:$4 sm:$0xff]  }
 0x388   : > { %7973 = vmatpush2.bf16.msra.mxu1 %v15906_v60  ;;  %v15959_v60 = vld [vmem:[%s24126_s2 + $0x15e4] ss:$16 sps:$4 sm:$0xff]  }
 0x389   : > { %7940 = vmatpush2.bf16.msra.mxu0 %v15903_v44  ;;  %7974 = vmatprep.subr.bf16.mxu1 %v15911_v53  ;;  %v15960_v44 = vld [vmem:[%s24126_s2 + $0x1660] ss:$16 sps:$4 sm:$0xff]  }
 0x38a   : > { %8760 = vmatprep.subr.bf16.mxu0 %v15914_v51  ;;  %v15957_v53 = vld [vmem:[%s24126_s2 + $0x15e0] ss:$16 sps:$4 sm:$0xff]   ;;  %v15968_v51 = vld [vmem:[%s24126_s2 + $0x1644] ss:$16 sps:$4 sm:$0xff]  }
 0x38c   : > { %v7057_v62 = vpop.f32.mrf.mxu0  ;;  %7942 = vmatmul.mubr.bf16.vlgmr.msra.gmra.mxu0 %v18995_v37  ;;  %7975 = vmatpush2.bf16.msra.mxu1 %v15909_v43  ;;  %v15926_v37 = vld [vmem:[%s24126_s2 + $0x14a4] ss:$16 sps:$4 sm:$0xff]  }
 0x38d   : > { %8761 = vmatpush1.bf16.msra.mxu0 %v15912_v57  ;;  %8792 = vmatprep.mubr.bf16.mxu0 %v19199_v10  ;;  %v15965_v43 = vld [vmem:[%s24126_s2 + $0x15c4] ss:$16 sps:$4 sm:$0xff]   ;;  %v15966_v57 = vld [vmem:[%s24126_s2 + $0x1640] ss:$16 sps:$4 sm:$0xff]  }
 0x38e   : > { %v7059_v33 = vpop.f32.mrf.mxu0  ;;  %7976 = vmatprep.subr.bf16.mxu1 %v15917_v3  ;;  %8762 = vmatprep.subr.bf16.mxu0 %v15920_v22  ;;  %v15963_v3 = vld [vmem:[%s24126_s2 + $0x15c0] ss:$16 sps:$4 sm:$0xff]   ;;  %v15974_v22 = vld [vmem:[%s24126_s2 + $0x1624] ss:$16 sps:$4 sm:$0xff]  }
 0x390   : > { %v7061_v54 = vpop.f32.mrf.mxu0  ;;  %7977 = vmatpush2.bf16.msra.mxu1 %v15915_v30  ;;  %v15972_v30 = vld [vmem:[%s24126_s2 + $0x1620] ss:$16 sps:$4 sm:$0xff]  }
 0x391   : > { %8763 = vmatpush1.bf16.msra.mxu0 %v15918_v12  ;;  %7978 = vmatprep.subr.bf16.mxu1 %v15923_v36  ;;  %v15969_v12 = vld [vmem:[%s24126_s2 + $0x15a0] ss:$16 sps:$4 sm:$0xff]   ;;  %v15980_v36 = vld [vmem:[%s24126_s2 + $0x1604] ss:$16 sps:$4 sm:$0xff]  }
 0x392   : > { %v7062_v20 = vpop.f32.mrf.mxu0  ;;  %8764 = vmatprep.subr.bf16.mxu0 %v15926_v37  ;;  %v15978_v37 = vld [vmem:[%s24126_s2 + $0x1600] ss:$16 sps:$4 sm:$0xff]  }
 0x393   : > { %v15975_v54 = vld [vmem:[%s24126_s2 + $0x1580] ss:$16 sps:$4 sm:$0xff]  }
 0x394   : > { %7979 = vmatpush2.bf16.msra.mxu1 %v15921_v47  ;;  %v15986_v47 = vld [vmem:[%s24126_s2 + $0x17e4] ss:$16 sps:$4 sm:$0xff]   ;;  %v15981_v20 = vld [vmem:[%s24126_s2 + $0x1560] ss:$16 sps:$4 sm:$0xff]  }
 0x395   : > { %8765 = vmatpush1.bf16.msra.mxu0 %v15924_v23  ;;  %7980 = vmatprep.subr.bf16.mxu1 %v15929_v55  ;;  %v15983_v23 = vld [vmem:[%s24126_s2 + $0x1564] ss:$16 sps:$4 sm:$0xff]   ;;  %v15984_v55 = vld [vmem:[%s24126_s2 + $0x17e0] ss:$16 sps:$4 sm:$0xff]  }
 0x396   : > { %8766 = vmatprep.subr.bf16.mxu0 %v15932_v15  ;;  %v15992_v15 = vld [vmem:[%s24126_s2 + $0x17c4] ss:$16 sps:$4 sm:$0xff]  }
 0x398   : > { %7981 = vmatpush2.bf16.msra.mxu1 %v15927_v19  ;;  %v15989_v19 = vld [vmem:[%s24126_s2 + $0x1544] ss:$16 sps:$4 sm:$0xff]  }
 0x399   : > { %8767 = vmatpush1.bf16.msra.mxu0 %v15930_v61  ;;  %8801 = vmatprep.subr.bf16.mxu1 %v15938_v9  ;;  %v15990_v61 = vld [vmem:[%s24126_s2 + $0x17c0] ss:$16 sps:$4 sm:$0xff]  }
 0x39a   : > { %8768 = vmatprep.subr.bf16.mxu0 %v15935_v46  ;;  %v15987_v9 = vld [vmem:[%s24126_s2 + $0x1540] ss:$16 sps:$4 sm:$0xff]   ;;  %v15998_v46 = vld [vmem:[%s24126_s2 + $0x17a4] ss:$16 sps:$4 sm:$0xff]  }
 0x39b   : > { %v7098_v63 = vpop.f32.mrf.mxu1  ;;  %7983 = vmatmul.mubr.bf16.vlgmr.msra.gmra.mxu1 %v19049_v5  ;;  %v15950_v5 = vld [vmem:[%s24126_s2 + $0x16a4] ss:$16 sps:$4 sm:$0xff]  }
 0x39c   : > { %v20476_v18 = vadd.f32 %v7098_v63, %v7057_v62  ;;  %8802 = vmatpush1.bf16.msra.mxu1 %v15936_v27  ;;  %8833 = vmatprep.mubr.bf16.mxu1 %v19253_v34  ;;  %v15971_v62 = vld [vmem:[%s24126_s2 + $0x15a4] ss:$16 sps:$4 sm:$0xff]  }
 0x39d   : > { %8769 = vmatpush1.bf16.msra.mxu0 %v15933_v49  ;;  %v7100_v59 = vpop.f32.mrf.mxu1  ;;  %8803 = vmatprep.subr.bf16.mxu1 %v15944_v0  ;;  %v15995_v27 = vld [vmem:[%s24126_s2 + $0x1524] ss:$16 sps:$4 sm:$0xff]   ;;  %v15996_v49 = vld [vmem:[%s24126_s2 + $0x17a0] ss:$16 sps:$4 sm:$0xff]  }
 0x39e   : > { %v20488_v52 = vadd.f32 %v7100_v59, %v7059_v33  ;;  %8770 = vmatprep.subr.bf16.mxu0 %v15941_v48  ;;  %v15977_v33 = vld [vmem:[%s24126_s2 + $0x1584] ss:$16 sps:$4 sm:$0xff]   ;;  %v15993_v0 = vld [vmem:[%s24126_s2 + $0x1520] ss:$16 sps:$4 sm:$0xff]  }
 0x39f   : > { %v7102_v28 = vpop.f32.mrf.mxu1  ;;  %v16004_v48 = vld [vmem:[%s24126_s2 + $0x1784] ss:$16 sps:$4 sm:$0xff]   ;;  %v15999_v59 = vld [vmem:[%s24126_s2 + $0x1500] ss:$16 sps:$4 sm:$0xff]  }
 0x3a0   : > { %8804 = vmatpush1.bf16.msra.mxu1 %v15942_v13  ;;  %v16001_v63 = vld [vmem:[%s24126_s2 + $0x1504] ss:$16 sps:$4 sm:$0xff]   ;;  %v16002_v13 = vld [vmem:[%s24126_s2 + $0x1780] ss:$16 sps:$4 sm:$0xff]   ;;  %v16008_v28 = vld [vmem:[%s24126_s2 + $0x14e8] ss:$16 sps:$4 sm:$0xff]  }
 0x3a1   : > { %8771 = vmatpush1.bf16.msra.mxu0 %v15939_v29  ;;  %v7103_v42 = vpop.f32.mrf.mxu1  ;;  %8805 = vmatprep.subr.bf16.mxu1 %v15950_v5  ;;  %v16007_v29 = vld [vmem:[%s24126_s2 + $0x1764] ss:$16 sps:$4 sm:$0xff]   ;;  %v16010_v5 = vld [vmem:[%s24126_s2 + $0x14ec] ss:$16 sps:$4 sm:$0xff]  }
 0x3a2   : > { %8772 = vmatprep.subr.bf16.mxu0 %v15947_v16  ;;  %v16005_v16 = vld [vmem:[%s24126_s2 + $0x1760] ss:$16 sps:$4 sm:$0xff]   ;;  %v16016_v42 = vld [vmem:[%s24126_s2 + $0x14cc] ss:$16 sps:$4 sm:$0xff]  }
 0x3a4   : > { %8806 = vmatpush1.bf16.msra.mxu1 %v15948_v41  ;;  %v16013_v41 = vld [vmem:[%s24126_s2 + $0x1744] ss:$16 sps:$4 sm:$0xff]  }
 0x3a5   : > { %8773 = vmatpush1.bf16.msra.mxu0 %v15945_v38  ;;  %8807 = vmatprep.subr.bf16.mxu1 %v15956_v39  ;;  %v16011_v39 = vld [vmem:[%s24126_s2 + $0x1740] ss:$16 sps:$4 sm:$0xff]  }
 0x3a6   : > { %8774 = vmatprep.subr.bf16.mxu0 %v15953_v32  ;;  %v16014_v32 = vld [vmem:[%s24126_s2 + $0x14c8] ss:$16 sps:$4 sm:$0xff]  }
 0x3a8   : > { %8808 = vmatpush1.bf16.msra.mxu1 %v15954_v24  ;;  %v16019_v24 = vld [vmem:[%s24126_s2 + $0x1724] ss:$16 sps:$4 sm:$0xff]  }
 0x3a9   : > { %8775 = vmatpush1.bf16.msra.mxu0 %v15951_v25  ;;  %8809 = vmatprep.subr.bf16.mxu1 %v15962_v45  ;;  %v16022_v45 = vld [vmem:[%s24126_s2 + $0x14ac] ss:$16 sps:$4 sm:$0xff]  }
 0x3aa   : > { %8776 = vmatprep.subr.bf16.mxu0 %v15959_v60 }
 0x3ac   : > { %8810 = vmatpush1.bf16.msra.mxu1 %v15960_v44  ;;  %v16017_v44 = vld [vmem:[%s24126_s2 + $0x1720] ss:$16 sps:$4 sm:$0xff]  }
 0x3ad   : > { %8777 = vmatpush2.bf16.msra.mxu0 %v15957_v53  ;;  %8811 = vmatprep.subr.bf16.mxu1 %v15968_v51  ;;  %v16020_v53 = vld [vmem:[%s24126_s2 + $0x14a8] ss:$16 sps:$4 sm:$0xff]   ;;  %v16025_v51 = vld [vmem:[%s24126_s2 + $0x1704] ss:$16 sps:$4 sm:$0xff]  }
 0x3ae   : > { %8778 = vmatprep.subr.bf16.mxu0 %v15965_v43 }
 0x3b0   : > { %8812 = vmatpush1.bf16.msra.mxu1 %v15966_v57  ;;  %v16028_v57 = vld [vmem:[%s24126_s2 + $0x148c] ss:$16 sps:$4 sm:$0xff]  }
 0x3b1   : > { %8779 = vmatpush2.bf16.msra.mxu0 %v15963_v3  ;;  %8813 = vmatprep.subr.bf16.mxu1 %v15974_v22  ;;  %v16023_v3 = vld [vmem:[%s24126_s2 + $0x1700] ss:$16 sps:$4 sm:$0xff]   ;;  %v16026_v22 = vld [vmem:[%s24126_s2 + $0x1488] ss:$16 sps:$4 sm:$0xff]  }
 0x3b2   : > { %8780 = vmatprep.subr.bf16.mxu0 %v15971_v62  ;;  %v16034_v62 = vld [vmem:[%s24126_s2 + $0x16ec] ss:$16 sps:$4 sm:$0xff]  }
 0x3b4   : > { %8814 = vmatpush1.bf16.msra.mxu1 %v15972_v30  ;;  %v16031_v30 = vld [vmem:[%s24126_s2 + $0x146c] ss:$16 sps:$4 sm:$0xff]  }
 0x3b5   : > { %8781 = vmatpush2.bf16.msra.mxu0 %v15969_v12  ;;  %8815 = vmatprep.subr.bf16.mxu1 %v15980_v36  ;;  %v16032_v12 = vld [vmem:[%s24126_s2 + $0x16e8] ss:$16 sps:$4 sm:$0xff]  }
 0x3b6   : > { %8782 = vmatprep.subr.bf16.mxu0 %v15977_v33  ;;  %v16029_v36 = vld [vmem:[%s24126_s2 + $0x1468] ss:$16 sps:$4 sm:$0xff]   ;;  %v16040_v33 = vld [vmem:[%s24126_s2 + $0x16cc] ss:$16 sps:$4 sm:$0xff]  }
 0x3b8   : > { %8816 = vmatpush1.bf16.msra.mxu1 %v15978_v37  ;;  %v16037_v37 = vld [vmem:[%s24126_s2 + $0x144c] ss:$16 sps:$4 sm:$0xff]  }
 0x3b9   : > { %8783 = vmatpush2.bf16.msra.mxu0 %v15975_v54  ;;  %8817 = vmatprep.subr.bf16.mxu1 %v15986_v47 }
 0x3ba   : > { %8784 = vmatprep.subr.bf16.mxu0 %v15983_v23  ;;  %v16038_v23 = vld [vmem:[%s24126_s2 + $0x16c8] ss:$16 sps:$4 sm:$0xff]  }
 0x3bc   : > { %8818 = vmatpush2.bf16.msra.mxu1 %v15984_v55 }
 0x3bd   : > { %8785 = vmatpush2.bf16.msra.mxu0 %v15981_v20  ;;  %8819 = vmatprep.subr.bf16.mxu1 %v15992_v15  ;;  %v16035_v20 = vld [vmem:[%s24126_s2 + $0x1448] ss:$16 sps:$4 sm:$0xff]   ;;  %v16046_v15 = vld [vmem:[%s24126_s2 + $0x16ac] ss:$16 sps:$4 sm:$0xff]  }
 0x3be   : > { %8786 = vmatprep.subr.bf16.mxu0 %v15989_v19 }
 0x3c0   : > { %8820 = vmatpush2.bf16.msra.mxu1 %v15990_v61  ;;  %v16043_v61 = vld [vmem:[%s24126_s2 + $0x142c] ss:$16 sps:$4 sm:$0xff]  }
 0x3c1   : > { %8787 = vmatpush2.bf16.msra.mxu0 %v15987_v9  ;;  %8821 = vmatprep.subr.bf16.mxu1 %v15998_v46  ;;  %v16044_v46 = vld [vmem:[%s24126_s2 + $0x16a8] ss:$16 sps:$4 sm:$0xff]  }
 0x3c2   : > { %8788 = vmatprep.subr.bf16.mxu0 %v15995_v27 }
 0x3c4   : > { %8822 = vmatpush2.bf16.msra.mxu1 %v15996_v49  ;;  %v16041_v49 = vld [vmem:[%s24126_s2 + $0x1428] ss:$16 sps:$4 sm:$0xff]  }
 0x3c5   : > { %8789 = vmatpush2.bf16.msra.mxu0 %v15993_v0  ;;  %8823 = vmatprep.subr.bf16.mxu1 %v16004_v48  ;;  %v16052_v0 = vld [vmem:[%s24126_s2 + $0x168c] ss:$16 sps:$4 sm:$0xff]  }
 0x3c6   : > { %8790 = vmatprep.subr.bf16.mxu0 %v16001_v63  ;;  %v16049_v48 = vld [vmem:[%s24126_s2 + $0x140c] ss:$16 sps:$4 sm:$0xff]   ;;  %v16050_v63 = vld [vmem:[%s24126_s2 + $0x1688] ss:$16 sps:$4 sm:$0xff]  }
 0x3c8   : > { %8824 = vmatpush2.bf16.msra.mxu1 %v16002_v13  ;;  %v16047_v13 = vld [vmem:[%s24126_s2 + $0x1408] ss:$16 sps:$4 sm:$0xff]  }
 0x3c9   : > { %8791 = vmatpush2.bf16.msra.mxu0 %v15999_v59  ;;  %8825 = vmatprep.subr.bf16.mxu1 %v16007_v29  ;;  %v16058_v59 = vld [vmem:[%s24126_s2 + $0x166c] ss:$16 sps:$4 sm:$0xff]  }
 0x3ca   : > { %8842 = vmatprep.subr.bf16.mxu0 %v16010_v5  ;;  %v16055_v29 = vld [vmem:[%s24126_s2 + $0x15ec] ss:$16 sps:$4 sm:$0xff]   ;;  %v16056_v5 = vld [vmem:[%s24126_s2 + $0x1668] ss:$16 sps:$4 sm:$0xff]  }
 0x3cc   : > { %v7139_v38 = vpop.f32.mrf.mxu0  ;;  %8793 = vmatmul.mubr.bf16.vlgmr.msra.gmra.mxu0 %v19410_v11  ;;  %8826 = vmatpush2.bf16.msra.mxu1 %v16005_v16  ;;  %v16053_v16 = vld [vmem:[%s24126_s2 + $0x15e8] ss:$16 sps:$4 sm:$0xff]  }
 0x3cd   : > { %8843 = vmatpush1.bf16.msra.mxu0 %v16008_v28  ;;  %8874 = vmatprep.mubr.bf16.mxu0 %v19199_v10  ;;  %v16064_v28 = vld [vmem:[%s24126_s2 + $0x164c] ss:$16 sps:$4 sm:$0xff]  }
 0x3ce   : > { %v7141_v25 = vpop.f32.mrf.mxu0  ;;  %8827 = vmatprep.subr.bf16.mxu1 %v16013_v41  ;;  %8844 = vmatprep.subr.bf16.mxu0 %v16016_v42  ;;  %v16061_v41 = vld [vmem:[%s24126_s2 + $0x15cc] ss:$16 sps:$4 sm:$0xff]   ;;  %v16062_v42 = vld [vmem:[%s24126_s2 + $0x1648] ss:$16 sps:$4 sm:$0xff]  }
 0x3d0   : > { %v7143_v60 = vpop.f32.mrf.mxu0  ;;  %8828 = vmatpush2.bf16.msra.mxu1 %v16011_v39  ;;  %v16070_v39 = vld [vmem:[%s24126_s2 + $0x162c] ss:$16 sps:$4 sm:$0xff]  }
 0x3d1   : > { %8845 = vmatpush1.bf16.msra.mxu0 %v16014_v32  ;;  %8829 = vmatprep.subr.bf16.mxu1 %v16019_v24  ;;  %v16067_v32 = vld [vmem:[%s24126_s2 + $0x15ac] ss:$16 sps:$4 sm:$0xff]   ;;  %v16068_v24 = vld [vmem:[%s24126_s2 + $0x1628] ss:$16 sps:$4 sm:$0xff]  }
 0x3d2   : > { %v7144_v43 = vpop.f32.mrf.mxu0  ;;  %8846 = vmatprep.subr.bf16.mxu0 %v16022_v45  ;;  %v16076_v45 = vld [vmem:[%s24126_s2 + $0x160c] ss:$16 sps:$4 sm:$0xff]  }
 0x3d3   : > { %v16073_v60 = vld [vmem:[%s24126_s2 + $0x158c] ss:$16 sps:$4 sm:$0xff]  }
 0x3d4   : > { %8830 = vmatpush2.bf16.msra.mxu1 %v16017_v44  ;;  %v16074_v44 = vld [vmem:[%s24126_s2 + $0x1608] ss:$16 sps:$4 sm:$0xff]   ;;  %v16079_v43 = vld [vmem:[%s24126_s2 + $0x156c] ss:$16 sps:$4 sm:$0xff]  }
 0x3d5   : > { %8847 = vmatpush1.bf16.msra.mxu0 %v16020_v53  ;;  %8831 = vmatprep.subr.bf16.mxu1 %v16025_v51  ;;  %v16071_v53 = vld [vmem:[%s24126_s2 + $0x1588] ss:$16 sps:$4 sm:$0xff]   ;;  %v16082_v51 = vld [vmem:[%s24126_s2 + $0x17ec] ss:$16 sps:$4 sm:$0xff]  }
 0x3d6   : > { %8848 = vmatprep.subr.bf16.mxu0 %v16028_v57  ;;  %v16080_v57 = vld [vmem:[%s24126_s2 + $0x17e8] ss:$16 sps:$4 sm:$0xff]  }
 0x3d8   : > { %8832 = vmatpush2.bf16.msra.mxu1 %v16023_v3  ;;  %v16077_v3 = vld [vmem:[%s24126_s2 + $0x1568] ss:$16 sps:$4 sm:$0xff]  }
 0x3d9   : > { %8849 = vmatpush1.bf16.msra.mxu0 %v16026_v22  ;;  %8883 = vmatprep.subr.bf16.mxu1 %v16034_v62  ;;  %v16088_v22 = vld [vmem:[%s24126_s2 + $0x17cc] ss:$16 sps:$4 sm:$0xff]  }
 0x3da   : > { %8850 = vmatprep.subr.bf16.mxu0 %v16031_v30  ;;  %v16085_v62 = vld [vmem:[%s24126_s2 + $0x154c] ss:$16 sps:$4 sm:$0xff]   ;;  %v16086_v30 = vld [vmem:[%s24126_s2 + $0x17c8] ss:$16 sps:$4 sm:$0xff]  }
 0x3db   : > { %v7180_v54 = vpop.f32.mrf.mxu1  ;;  %8834 = vmatmul.mubr.bf16.vlgmr.msra.gmra.mxu1 %v19465_v14 }
 0x3dc   : > { %v20676_v47 = vadd.f32 %v7180_v54, %v7139_v38  ;;  %8884 = vmatpush1.bf16.msra.mxu1 %v16032_v12  ;;  %8915 = vmatprep.mubr.bf16.mxu1 %v19253_v34  ;;  %v16059_v38 = vld [vmem:[%s24126_s2 + $0x15c8] ss:$16 sps:$4 sm:$0xff]  }
 0x3dd   : > { %8851 = vmatpush1.bf16.msra.mxu0 %v16029_v36  ;;  %v7182_v55 = vpop.f32.mrf.mxu1  ;;  %8885 = vmatprep.subr.bf16.mxu1 %v16040_v33  ;;  %v16083_v12 = vld [vmem:[%s24126_s2 + $0x1548] ss:$16 sps:$4 sm:$0xff]   ;;  %v16094_v36 = vld [vmem:[%s24126_s2 + $0x17ac] ss:$16 sps:$4 sm:$0xff]  }
 0x3de   : > { %v20688_v19 = vadd.f32 %v7182_v55, %v7141_v25  ;;  %8852 = vmatprep.subr.bf16.mxu0 %v16037_v37  ;;  %v16065_v25 = vld [vmem:[%s24126_s2 + $0x15a8] ss:$16 sps:$4 sm:$0xff]   ;;  %v16091_v33 = vld [vmem:[%s24126_s2 + $0x152c] ss:$16 sps:$4 sm:$0xff]  }
 0x3df   : > { %v7184_v9 = vpop.f32.mrf.mxu1  ;;  %v16092_v37 = vld [vmem:[%s24126_s2 + $0x17a8] ss:$16 sps:$4 sm:$0xff]   ;;  %v16097_v55 = vld [vmem:[%s24126_s2 + $0x150c] ss:$16 sps:$4 sm:$0xff]  }
 0x3e0   : > { %8886 = vmatpush1.bf16.msra.mxu1 %v16038_v23  ;;  %v16089_v54 = vld [vmem:[%s24126_s2 + $0x1528] ss:$16 sps:$4 sm:$0xff]   ;;  %v16100_v23 = vld [vmem:[%s24126_s2 + $0x178c] ss:$16 sps:$4 sm:$0xff]  }
 0x3e1   : > { %8853 = vmatpush1.bf16.msra.mxu0 %v16035_v20  ;;  %v7185_v27 = vpop.f32.mrf.mxu1  ;;  %8887 = vmatprep.subr.bf16.mxu1 %v16046_v15  ;;  %v16098_v20 = vld [vmem:[%s24126_s2 + $0x1788] ss:$16 sps:$4 sm:$0xff]  }
 0x3e2   : > { %8854 = vmatprep.subr.bf16.mxu0 %v16043_v61  ;;  %v16095_v15 = vld [vmem:[%s24126_s2 + $0x1508] ss:$16 sps:$4 sm:$0xff]   ;;  %v16103_v61 = vld [vmem:[%s24126_s2 + $0x176c] ss:$16 sps:$4 sm:$0xff]  }
 0x3e3   : > { %v16101_v9 = vld [vmem:[%s24126_s2 + $0x1768] ss:$16 sps:$4 sm:$0xff]   ;;  %v16106_v27 = vld [vmem:[%s24126_s2 + $0x174c] ss:$16 sps:$4 sm:$0xff]  }
 0x3e4   : > { %8888 = vmatpush1.bf16.msra.mxu1 %v16044_v46  ;;  %v16347_v46 = vld [vmem:[%s24126_s2 + $0x4e4] ss:$16 sps:$4 sm:$0xff]  }
 0x3e5   : > { %8855 = vmatpush1.bf16.msra.mxu0 %v16041_v49  ;;  %8889 = vmatprep.subr.bf16.mxu1 %v16052_v0  ;;  %v16104_v0 = vld [vmem:[%s24126_s2 + $0x1748] ss:$16 sps:$4 sm:$0xff]  }
 0x3e6   : > { %8856 = vmatprep.subr.bf16.mxu0 %v16049_v48 }
 0x3e8   : > { %8890 = vmatpush1.bf16.msra.mxu1 %v16050_v63  ;;  %v16348_v63 = vld [vmem:[%s24126_s2 + $0x4e0] ss:$16 sps:$4 sm:$0xff]  }
 0x3e9   : > { %8857 = vmatpush1.bf16.msra.mxu0 %v16047_v13  ;;  %8891 = vmatprep.subr.bf16.mxu1 %v16058_v59  ;;  %v16109_v13 = vld [vmem:[%s24126_s2 + $0x172c] ss:$16 sps:$4 sm:$0xff]  }
 0x3ea   : > { %8858 = vmatprep.subr.bf16.mxu0 %v16055_v29  ;;  %v16349_v29 = vld [vmem:[%s24126_s2 + $0x4c4] ss:$16 sps:$4 sm:$0xff]  }
 0x3ec   : > { %8892 = vmatpush1.bf16.msra.mxu1 %v16056_v5 }
 0x3ed   : > { %8859 = vmatpush2.bf16.msra.mxu0 %v16053_v16  ;;  %8893 = vmatprep.subr.bf16.mxu1 %v16064_v28  ;;  %v16107_v16 = vld [vmem:[%s24126_s2 + $0x1728] ss:$16 sps:$4 sm:$0xff]   ;;  %v16350_v28 = vld [vmem:[%s24126_s2 + $0x4c0] ss:$16 sps:$4 sm:$0xff]  }
 0x3ee   : > { %8860 = vmatprep.subr.bf16.mxu0 %v16061_v41  ;;  %v16112_v41 = vld [vmem:[%s24126_s2 + $0x170c] ss:$16 sps:$4 sm:$0xff]  }
 0x3f0   : > { %8894 = vmatpush1.bf16.msra.mxu1 %v16062_v42 }
 0x3f1   : > { %8861 = vmatpush2.bf16.msra.mxu0 %v16059_v38  ;;  %8895 = vmatprep.subr.bf16.mxu1 %v16070_v39  ;;  %v16110_v38 = vld [vmem:[%s24126_s2 + $0x1708] ss:$16 sps:$4 sm:$0xff]   ;;  %v16352_v39 = vld [vmem:[%s24126_s2 + $0x4a0] ss:$16 sps:$4 sm:$0xff]  }
 0x3f2   : > { %8862 = vmatprep.subr.bf16.mxu0 %v16067_v32  ;;  %v16353_v32 = vld [vmem:[%s24126_s2 + $0x484] ss:$16 sps:$4 sm:$0xff]  }
 0x3f4   : > { %8896 = vmatpush1.bf16.msra.mxu1 %v16068_v24  ;;  %v16354_v24 = vld [vmem:[%s24126_s2 + $0x480] ss:$16 sps:$4 sm:$0xff]  }
 0x3f5   : > { %8863 = vmatpush2.bf16.msra.mxu0 %v16065_v25  ;;  %8897 = vmatprep.subr.bf16.mxu1 %v16076_v45  ;;  %v16355_v25 = vld [vmem:[%s24126_s2 + $0x6e4] ss:$16 sps:$4 sm:$0xff]  }
 0x3f6   : > { %8864 = vmatprep.subr.bf16.mxu0 %v16073_v60  ;;  %v16356_v45 = vld [vmem:[%s24126_s2 + $0x464] ss:$16 sps:$4 sm:$0xff]  }
 0x3f8   : > { %8898 = vmatpush1.bf16.msra.mxu1 %v16074_v44 }
 0x3f9   : > { %8865 = vmatpush2.bf16.msra.mxu0 %v16071_v53  ;;  %8899 = vmatprep.subr.bf16.mxu1 %v16082_v51  ;;  %v16357_v53 = vld [vmem:[%s24126_s2 + $0x6e0] ss:$16 sps:$4 sm:$0xff]  }
 0x3fa   : > { %8866 = vmatprep.subr.bf16.mxu0 %v16079_v43  ;;  %v16358_v51 = vld [vmem:[%s24126_s2 + $0x460] ss:$16 sps:$4 sm:$0xff]  }
 0x3fc   : > { %8900 = vmatpush2.bf16.msra.mxu1 %v16080_v57  ;;  %v16359_v57 = vld [vmem:[%s24126_s2 + $0x6c4] ss:$16 sps:$4 sm:$0xff]  }
 0x3fd   : > { %8867 = vmatpush2.bf16.msra.mxu0 %v16077_v3  ;;  %8901 = vmatprep.subr.bf16.mxu1 %v16088_v22  ;;  %v16360_v22 = vld [vmem:[%s24126_s2 + $0x444] ss:$16 sps:$4 sm:$0xff]  }
 0x3fe   : > { %8868 = vmatprep.subr.bf16.mxu0 %v16085_v62 }
 0x400   : > { %8902 = vmatpush2.bf16.msra.mxu1 %v16086_v30  ;;  %v16361_v30 = vld [vmem:[%s24126_s2 + $0x6c0] ss:$16 sps:$4 sm:$0xff]  }
 0x401   : > { %8869 = vmatpush2.bf16.msra.mxu0 %v16083_v12  ;;  %8903 = vmatprep.subr.bf16.mxu1 %v16094_v36  ;;  %v16362_v12 = vld [vmem:[%s24126_s2 + $0x440] ss:$16 sps:$4 sm:$0xff]  }
 0x402   : > { %8870 = vmatprep.subr.bf16.mxu0 %v16091_v33  ;;  %v16363_v33 = vld [vmem:[%s24126_s2 + $0x6a4] ss:$16 sps:$4 sm:$0xff]  }
 0x404   : > { %8904 = vmatpush2.bf16.msra.mxu1 %v16092_v37  ;;  %v16364_v37 = vld [vmem:[%s24126_s2 + $0x424] ss:$16 sps:$4 sm:$0xff]  }
 0x405   : > { %8871 = vmatpush2.bf16.msra.mxu0 %v16089_v54  ;;  %8905 = vmatprep.subr.bf16.mxu1 %v16100_v23  ;;  %v16365_v54 = vld [vmem:[%s24126_s2 + $0x6a0] ss:$16 sps:$4 sm:$0xff]  }
 0x406   : > { %8872 = vmatprep.subr.bf16.mxu0 %v16097_v55  ;;  %v16366_v23 = vld [vmem:[%s24126_s2 + $0x420] ss:$16 sps:$4 sm:$0xff]   ;;  %v16367_v55 = vld [vmem:[%s24126_s2 + $0x684] ss:$16 sps:$4 sm:$0xff]  }
 0x408   : > { %8906 = vmatpush2.bf16.msra.mxu1 %v16098_v20  ;;  %v16368_v20 = vld [vmem:[%s24126_s2 + $0x404] ss:$16 sps:$4 sm:$0xff]  }
 0x409   : > { %8873 = vmatpush2.bf16.msra.mxu0 %v16095_v15  ;;  %8907 = vmatprep.subr.bf16.mxu1 %v16103_v61  ;;  %v16369_v15 = vld [vmem:[%s24126_s2 + $0x680] ss:$16 sps:$4 sm:$0xff]  }
 0x40a   : > { %8932 = vmatprep.subr.bf16.mxu0 %v16347_v46  ;;  %v16370_v61 = vld [vmem:[%s24126_s2 + $0x400] ss:$16 sps:$4 sm:$0xff]   ;;  %v16372_v46 = vld [vmem:[%s24126_s2 + $0x5e4] ss:$16 sps:$4 sm:$0xff]  }
 0x40c   : > { %v7861_v49 = vpop.f32.mrf.mxu0  ;;  %8875 = vmatmul.mubr.bf16.vlgmr.msra.gmra.mxu0 %v19410_v11  ;;  %8908 = vmatpush2.bf16.msra.mxu1 %v16101_v9  ;;  %v16371_v9 = vld [vmem:[%s24126_s2 + $0x664] ss:$16 sps:$4 sm:$0xff]  }
 0x40d   : > { %v7862_v48 = vadd.f32 %v7861_v49, %v20476_v18  ;;  %8933 = vmatpush1.bf16.msra.mxu0 %v16348_v63  ;;  %8964 = vmatprep.mubr.bf16.mxu0 %v19199_v10  ;;  %v16374_v49 = vld [vmem:[%s24126_s2 + $0x5e0] ss:$16 sps:$4 sm:$0xff]  }
 0x40e   : > { %v7863_v59 = vpop.f32.mrf.mxu0  ;;  %8909 = vmatprep.subr.bf16.mxu1 %v16106_v27  ;;  %8934 = vmatprep.subr.bf16.mxu0 %v16349_v29  ;;  %v16373_v27 = vld [vmem:[%s24126_s2 + $0x660] ss:$16 sps:$4 sm:$0xff]   ;;  %v16380_v29 = vld [vmem:[%s24126_s2 + $0x5a4] ss:$16 sps:$4 sm:$0xff]  }
 0x40f   : > { %v7864_v18 = vadd.f32 %v7863_v59, %v20488_v52  ;;  %v16351_v52 = vld [vmem:[%s24126_s2 + $0x4a4] ss:$16 sps:$4 sm:$0xff]   ;;  %v16377_v63 = vld [vmem:[%s24126_s2 + $0x640] ss:$16 sps:$4 sm:$0xff]  }
 0x410   : > { %v7865_v5 = vpop.f32.mrf.mxu0  ;;  %8910 = vmatpush2.bf16.msra.mxu1 %v16104_v0  ;;  %v16375_v0 = vld [vmem:[%s24126_s2 + $0x644] ss:$16 sps:$4 sm:$0xff]  }
 0x411   : > { %8935 = vmatpush1.bf16.msra.mxu0 %v16350_v28  ;;  %8911 = vmatprep.subr.bf16.mxu1 %v16109_v13  ;;  %v16378_v13 = vld [vmem:[%s24126_s2 + $0x5c0] ss:$16 sps:$4 sm:$0xff]   ;;  %v16379_v59 = vld [vmem:[%s24126_s2 + $0x624] ss:$16 sps:$4 sm:$0xff]  }
 0x412   : > { %v7866_v42 = vpop.f32.mrf.mxu0  ;;  %8936 = vmatprep.subr.bf16.mxu0 %v16351_v52  ;;  %v16382_v5 = vld [vmem:[%s24126_s2 + $0x5a0] ss:$16 sps:$4 sm:$0xff]   ;;  %v16384_v28 = vld [vmem:[%s24126_s2 + $0x584] ss:$16 sps:$4 sm:$0xff]  }
 0x413   : > { %v16386_v42 = vld [vmem:[%s24126_s2 + $0x580] ss:$16 sps:$4 sm:$0xff]   ;;  %v16387_v52 = vld [vmem:[%s24126_s2 + $0x7e4] ss:$16 sps:$4 sm:$0xff]  }
 0x414   : > { %8912 = vmatpush2.bf16.msra.mxu1 %v16107_v16  ;;  %v16383_v16 = vld [vmem:[%s24126_s2 + $0x604] ss:$16 sps:$4 sm:$0xff]  }
 0x415   : > { %8937 = vmatpush1.bf16.msra.mxu0 %v16352_v39  ;;  %8913 = vmatprep.subr.bf16.mxu1 %v16112_v41  ;;  %v16385_v41 = vld [vmem:[%s24126_s2 + $0x600] ss:$16 sps:$4 sm:$0xff]  }
 0x416   : > { %8938 = vmatprep.subr.bf16.mxu0 %v16353_v32  ;;  %v16389_v39 = vld [vmem:[%s24126_s2 + $0x7e0] ss:$16 sps:$4 sm:$0xff]  }
 0x417   : > { %v16390_v32 = vld [vmem:[%s24126_s2 + $0x560] ss:$16 sps:$4 sm:$0xff]  }
 0x418   : > { %8914 = vmatpush2.bf16.msra.mxu1 %v16110_v38  ;;  %v16388_v38 = vld [vmem:[%s24126_s2 + $0x564] ss:$16 sps:$4 sm:$0xff]  }
 0x419   : > { %8939 = vmatpush1.bf16.msra.mxu0 %v16354_v24  ;;  %8973 = vmatprep.subr.bf16.mxu1 %v16355_v25  ;;  %v16391_v24 = vld [vmem:[%s24126_s2 + $0x7c4] ss:$16 sps:$4 sm:$0xff]  }
 0x41a   : > { %8940 = vmatprep.subr.bf16.mxu0 %v16356_v45  ;;  %v16392_v25 = vld [vmem:[%s24126_s2 + $0x544] ss:$16 sps:$4 sm:$0xff]   ;;  %v16393_v45 = vld [vmem:[%s24126_s2 + $0x7c0] ss:$16 sps:$4 sm:$0xff]  }
 0x41b   : > { %v7902_v60 = vpop.f32.mrf.mxu1  ;;  %8916 = vmatmul.mubr.bf16.vlgmr.msra.gmra.mxu1 %v19465_v14 }
 0x41c   : > { %v20866_v44 = vadd.f32 %v7902_v60, %v7862_v48  ;;  %8974 = vmatpush1.bf16.msra.mxu1 %v16357_v53  ;;  %9005 = vmatprep.mubr.bf16.mxu1 %v19253_v34  ;;  %v16376_v48 = vld [vmem:[%s24126_s2 + $0x5c4] ss:$16 sps:$4 sm:$0xff]   ;;  %v16394_v60 = vld [vmem:[%s24126_s2 + $0x540] ss:$16 sps:$4 sm:$0xff]  }
 0x41d   : > { %8941 = vmatpush1.bf16.msra.mxu0 %v16358_v51  ;;  %v7904_v43 = vpop.f32.mrf.mxu1  ;;  %8975 = vmatprep.subr.bf16.mxu1 %v16359_v57  ;;  %v16395_v53 = vld [vmem:[%s24126_s2 + $0x7a4] ss:$16 sps:$4 sm:$0xff]   ;;  %v16398_v57 = vld [vmem:[%s24126_s2 + $0x520] ss:$16 sps:$4 sm:$0xff]  }
 0x41e   : > { %v20878_v3 = vadd.f32 %v7904_v43, %v7864_v18  ;;  %8942 = vmatprep.subr.bf16.mxu0 %v16360_v22  ;;  %v16381_v18 = vld [vmem:[%s24126_s2 + $0x620] ss:$16 sps:$4 sm:$0xff]   ;;  %v16396_v51 = vld [vmem:[%s24126_s2 + $0x524] ss:$16 sps:$4 sm:$0xff]  }
 0x41f   : > { %v7906_v62 = vpop.f32.mrf.mxu1  ;;  %v16397_v43 = vld [vmem:[%s24126_s2 + $0x7a0] ss:$16 sps:$4 sm:$0xff]   ;;  %v16399_v22 = vld [vmem:[%s24126_s2 + $0x784] ss:$16 sps:$4 sm:$0xff]  }
 0x420   : > { %8976 = vmatpush1.bf16.msra.mxu1 %v16361_v30  ;;  %v16400_v62 = vld [vmem:[%s24126_s2 + $0x504] ss:$16 sps:$4 sm:$0xff]   ;;  %v16401_v30 = vld [vmem:[%s24126_s2 + $0x780] ss:$16 sps:$4 sm:$0xff]  }
 0x421   : > { %8943 = vmatpush1.bf16.msra.mxu0 %v16362_v12  ;;  %v7907_v36 = vpop.f32.mrf.mxu1  ;;  %8977 = vmatprep.subr.bf16.mxu1 %v16363_v33  ;;  %v16402_v12 = vld [vmem:[%s24126_s2 + $0x500] ss:$16 sps:$4 sm:$0xff]   ;;  %v16404_v33 = vld [vmem:[%s24126_s2 + $0x4ec] ss:$16 sps:$4 sm:$0xff]  }
 0x422   : > { %8944 = vmatprep.subr.bf16.mxu0 %v16364_v37  ;;  %v16403_v36 = vld [vmem:[%s24126_s2 + $0x764] ss:$16 sps:$4 sm:$0xff]  }
 0x424   : > { %8978 = vmatpush1.bf16.msra.mxu1 %v16365_v54  ;;  %v16405_v54 = vld [vmem:[%s24126_s2 + $0x760] ss:$16 sps:$4 sm:$0xff]  }
 0x425   : > { %8945 = vmatpush1.bf16.msra.mxu0 %v16366_v23  ;;  %8979 = vmatprep.subr.bf16.mxu1 %v16367_v55  ;;  %v16406_v55 = vld [vmem:[%s24126_s2 + $0x4e8] ss:$16 sps:$4 sm:$0xff]  }
 0x426   : > { %8946 = vmatprep.subr.bf16.mxu0 %v16368_v20 }
 0x428   : > { %8980 = vmatpush1.bf16.msra.mxu1 %v16369_v15  ;;  %v16407_v15 = vld [vmem:[%s24126_s2 + $0x744] ss:$16 sps:$4 sm:$0xff]  }
 0x429   : > { %8947 = vmatpush1.bf16.msra.mxu0 %v16370_v61  ;;  %8981 = vmatprep.subr.bf16.mxu1 %v16371_v9  ;;  %v16408_v61 = vld [vmem:[%s24126_s2 + $0x4cc] ss:$16 sps:$4 sm:$0xff]  }
 0x42a   : > { %8948 = vmatprep.subr.bf16.mxu0 %v16372_v46  ;;  %v16409_v46 = vld [vmem:[%s24126_s2 + $0x740] ss:$16 sps:$4 sm:$0xff]  }
 0x42c   : > { %8982 = vmatpush1.bf16.msra.mxu1 %v16373_v27  ;;  %v16410_v27 = vld [vmem:[%s24126_s2 + $0x4c8] ss:$16 sps:$4 sm:$0xff]  }
 0x42d   : > { %8949 = vmatpush2.bf16.msra.mxu0 %v16374_v49  ;;  %8983 = vmatprep.subr.bf16.mxu1 %v16375_v0  ;;  %v16411_v49 = vld [vmem:[%s24126_s2 + $0x724] ss:$16 sps:$4 sm:$0xff]  }
 0x42e   : > { %8950 = vmatprep.subr.bf16.mxu0 %v16376_v48  ;;  %v16413_v48 = vld [vmem:[%s24126_s2 + $0x720] ss:$16 sps:$4 sm:$0xff]  }
 0x430   : > { %8984 = vmatpush1.bf16.msra.mxu1 %v16377_v63  ;;  %v16414_v63 = vld [vmem:[%s24126_s2 + $0x4a8] ss:$16 sps:$4 sm:$0xff]  }
 0x431   : > { %8951 = vmatpush2.bf16.msra.mxu0 %v16378_v13  ;;  %8985 = vmatprep.subr.bf16.mxu1 %v16379_v59  ;;  %v16415_v13 = vld [vmem:[%s24126_s2 + $0x704] ss:$16 sps:$4 sm:$0xff]   ;;  %v16416_v59 = vld [vmem:[%s24126_s2 + $0x48c] ss:$16 sps:$4 sm:$0xff]  }
 0x432   : > { %8952 = vmatprep.subr.bf16.mxu0 %v16380_v29  ;;  %v16417_v29 = vld [vmem:[%s24126_s2 + $0x700] ss:$16 sps:$4 sm:$0xff]  }
 0x434   : > { %8986 = vmatpush1.bf16.msra.mxu1 %v16381_v18  ;;  %v16418_v18 = vld [vmem:[%s24126_s2 + $0x488] ss:$16 sps:$4 sm:$0xff]  }
 0x435   : > { %8953 = vmatpush2.bf16.msra.mxu0 %v16382_v5  ;;  %8987 = vmatprep.subr.bf16.mxu1 %v16383_v16  ;;  %v16419_v5 = vld [vmem:[%s24126_s2 + $0x6ec] ss:$16 sps:$4 sm:$0xff]  }
 0x436   : > { %8954 = vmatprep.subr.bf16.mxu0 %v16384_v28  ;;  %v16420_v16 = vld [vmem:[%s24126_s2 + $0x46c] ss:$16 sps:$4 sm:$0xff]  }
 0x438   : > { %8988 = vmatpush1.bf16.msra.mxu1 %v16385_v41 }
 0x439   : > { %8955 = vmatpush2.bf16.msra.mxu0 %v16386_v42  ;;  %8989 = vmatprep.subr.bf16.mxu1 %v16387_v52  ;;  %v16421_v42 = vld [vmem:[%s24126_s2 + $0x6e8] ss:$16 sps:$4 sm:$0xff]  }
 0x43a   : > { %8956 = vmatprep.subr.bf16.mxu0 %v16388_v38  ;;  %v16422_v52 = vld [vmem:[%s24126_s2 + $0x468] ss:$16 sps:$4 sm:$0xff]  }
 0x43c   : > { %8990 = vmatpush2.bf16.msra.mxu1 %v16389_v39  ;;  %v16423_v39 = vld [vmem:[%s24126_s2 + $0x6cc] ss:$16 sps:$4 sm:$0xff]  }
 0x43d   : > { %8957 = vmatpush2.bf16.msra.mxu0 %v16390_v32  ;;  %8991 = vmatprep.subr.bf16.mxu1 %v16391_v24  ;;  %v16424_v24 = vld [vmem:[%s24126_s2 + $0x44c] ss:$16 sps:$4 sm:$0xff]  }
 0x43e   : > { %8958 = vmatprep.subr.bf16.mxu0 %v16392_v25 }
 0x440   : > { %8992 = vmatpush2.bf16.msra.mxu1 %v16393_v45  ;;  %v16425_v45 = vld [vmem:[%s24126_s2 + $0x6c8] ss:$16 sps:$4 sm:$0xff]  }
 0x441   : > { %8959 = vmatpush2.bf16.msra.mxu0 %v16394_v60  ;;  %8993 = vmatprep.subr.bf16.mxu1 %v16395_v53  ;;  %v16426_v60 = vld [vmem:[%s24126_s2 + $0x448] ss:$16 sps:$4 sm:$0xff]  }
 0x442   : > { %8960 = vmatprep.subr.bf16.mxu0 %v16396_v51  ;;  %v16427_v51 = vld [vmem:[%s24126_s2 + $0x6ac] ss:$16 sps:$4 sm:$0xff]  }
 0x444   : > { %8994 = vmatpush2.bf16.msra.mxu1 %v16397_v43  ;;  %v16428_v43 = vld [vmem:[%s24126_s2 + $0x42c] ss:$16 sps:$4 sm:$0xff]  }
 0x445   : > { %8961 = vmatpush2.bf16.msra.mxu0 %v16398_v57  ;;  %8995 = vmatprep.subr.bf16.mxu1 %v16399_v22  ;;  %v16429_v57 = vld [vmem:[%s24126_s2 + $0x6a8] ss:$16 sps:$4 sm:$0xff]  }
 0x446   : > { %8962 = vmatprep.subr.bf16.mxu0 %v16400_v62  ;;  %v16430_v22 = vld [vmem:[%s24126_s2 + $0x428] ss:$16 sps:$4 sm:$0xff]   ;;  %v16431_v62 = vld [vmem:[%s24126_s2 + $0x68c] ss:$16 sps:$4 sm:$0xff]  }
 0x448   : > { %8996 = vmatpush2.bf16.msra.mxu1 %v16401_v30  ;;  %v16432_v30 = vld [vmem:[%s24126_s2 + $0x40c] ss:$16 sps:$4 sm:$0xff]  }
 0x449   : > { %8963 = vmatpush2.bf16.msra.mxu0 %v16402_v12  ;;  %8997 = vmatprep.subr.bf16.mxu1 %v16403_v36  ;;  %v16433_v12 = vld [vmem:[%s24126_s2 + $0x688] ss:$16 sps:$4 sm:$0xff]  }
 0x44a   : > { %9014 = vmatprep.subr.bf16.mxu0 %v16404_v33  ;;  %v16434_v36 = vld [vmem:[%s24126_s2 + $0x408] ss:$16 sps:$4 sm:$0xff]   ;;  %v16435_v33 = vld [vmem:[%s24126_s2 + $0x66c] ss:$16 sps:$4 sm:$0xff]  }
 0x44c   : > { %v7943_v37 = vpop.f32.mrf.mxu0  ;;  %8965 = vmatmul.mubr.bf16.vlgmr.msra.gmra.mxu0 %v19410_v11  ;;  %8998 = vmatpush2.bf16.msra.mxu1 %v16405_v54  ;;  %v16437_v54 = vld [vmem:[%s24126_s2 + $0x668] ss:$16 sps:$4 sm:$0xff]  }
 0x44d   : > { %v7944_v23 = vadd.f32 %v7943_v37, %v20676_v47  ;;  %9015 = vmatpush1.bf16.msra.mxu0 %v16406_v55  ;;  %9046 = vmatprep.mubr.bf16.mxu0 %v19199_v10  ;;  %v16436_v37 = vld [vmem:[%s24126_s2 + $0x5ec] ss:$16 sps:$4 sm:$0xff]  }
 0x44e   : > { %v7945_v20 = vpop.f32.mrf.mxu0  ;;  %8999 = vmatprep.subr.bf16.mxu1 %v16407_v15  ;;  %9016 = vmatprep.subr.bf16.mxu0 %v16408_v61  ;;  %v16439_v55 = vld [vmem:[%s24126_s2 + $0x64c] ss:$16 sps:$4 sm:$0xff]   ;;  %v16441_v15 = vld [vmem:[%s24126_s2 + $0x648] ss:$16 sps:$4 sm:$0xff]  }
 0x44f   : > { %v7946_v47 = vadd.f32 %v7945_v20, %v20688_v19  ;;  %v16412_v19 = vld [vmem:[%s24126_s2 + $0x4ac] ss:$16 sps:$4 sm:$0xff]   ;;  %v16442_v61 = vld [vmem:[%s24126_s2 + $0x5c8] ss:$16 sps:$4 sm:$0xff]  }
 0x450   : > { %v7947_v9 = vpop.f32.mrf.mxu0  ;;  %9000 = vmatpush2.bf16.msra.mxu1 %v16409_v46  ;;  %v16440_v20 = vld [vmem:[%s24126_s2 + $0x5cc] ss:$16 sps:$4 sm:$0xff]   ;;  %v16445_v46 = vld [vmem:[%s24126_s2 + $0x628] ss:$16 sps:$4 sm:$0xff]  }
 0x451   : > { %9017 = vmatpush1.bf16.msra.mxu0 %v16410_v27  ;;  %9001 = vmatprep.subr.bf16.mxu1 %v16411_v49  ;;  %v16444_v9 = vld [vmem:[%s24126_s2 + $0x5ac] ss:$16 sps:$4 sm:$0xff]   ;;  %v16446_v27 = vld [vmem:[%s24126_s2 + $0x5a8] ss:$16 sps:$4 sm:$0xff]  }
 0x452   : > { %v7948_v0 = vpop.f32.mrf.mxu0  ;;  %9018 = vmatprep.subr.bf16.mxu0 %v16412_v19  ;;  %v16447_v49 = vld [vmem:[%s24126_s2 + $0x60c] ss:$16 sps:$4 sm:$0xff]   ;;  %v16449_v19 = vld [vmem:[%s24126_s2 + $0x608] ss:$16 sps:$4 sm:$0xff]  }
 0x453   : > { %v16448_v0 = vld [vmem:[%s24126_s2 + $0x58c] ss:$16 sps:$4 sm:$0xff]  }
 0x454   : > { %9002 = vmatpush2.bf16.msra.mxu1 %v16413_v48  ;;  %v16450_v48 = vld [vmem:[%s24126_s2 + $0x588] ss:$16 sps:$4 sm:$0xff]  }
 0x455   : > { %9019 = vmatpush1.bf16.msra.mxu0 %v16414_v63  ;;  %9003 = vmatprep.subr.bf16.mxu1 %v16415_v13  ;;  %v16451_v63 = vld [vmem:[%s24126_s2 + $0x7ec] ss:$16 sps:$4 sm:$0xff]  }
 0x456   : > { %9020 = vmatprep.subr.bf16.mxu0 %v16416_v59  ;;  %v16452_v13 = vld [vmem:[%s24126_s2 + $0x56c] ss:$16 sps:$4 sm:$0xff]   ;;  %v16453_v59 = vld [vmem:[%s24126_s2 + $0x7e8] ss:$16 sps:$4 sm:$0xff]  }
 0x458   : > { %9004 = vmatpush2.bf16.msra.mxu1 %v16417_v29  ;;  %v16454_v29 = vld [vmem:[%s24126_s2 + $0x568] ss:$16 sps:$4 sm:$0xff]  }
 0x459   : > { %9021 = vmatpush1.bf16.msra.mxu0 %v16418_v18  ;;  %9055 = vmatprep.subr.bf16.mxu1 %v16419_v5  ;;  %v16455_v18 = vld [vmem:[%s24126_s2 + $0x7cc] ss:$16 sps:$4 sm:$0xff]  }
 0x45a   : > { %9022 = vmatprep.subr.bf16.mxu0 %v16420_v16  ;;  %v16456_v5 = vld [vmem:[%s24126_s2 + $0x54c] ss:$16 sps:$4 sm:$0xff]   ;;  %v16457_v16 = vld [vmem:[%s24126_s2 + $0x7c8] ss:$16 sps:$4 sm:$0xff]  }
 0x45b   : > { %v7984_v28 = vpop.f32.mrf.mxu1  ;;  %9006 = vmatmul.mubr.bf16.vlgmr.msra.gmra.mxu1 %v19465_v14 }
 0x45c   : > { %v21068_v41 = vadd.f32 %v7984_v28, %v7944_v23  ;;  %9056 = vmatpush1.bf16.msra.mxu1 %v16421_v42  ;;  %9087 = vmatprep.mubr.bf16.mxu1 %v19253_v34  ;;  %v16438_v23 = vld [vmem:[%s24126_s2 + $0x5e8] ss:$16 sps:$4 sm:$0xff]   ;;  %v16459_v42 = vld [vmem:[%s24126_s2 + $0x7ac] ss:$16 sps:$4 sm:$0xff]  }
 0x45d   : > { %9023 = vmatpush1.bf16.msra.mxu0 %v16422_v52  ;;  %v7986_v38 = vpop.f32.mrf.mxu1  ;;  %9057 = vmatprep.subr.bf16.mxu1 %v16423_v39  ;;  %v16458_v28 = vld [vmem:[%s24126_s2 + $0x548] ss:$16 sps:$4 sm:$0xff]   ;;  %v16460_v52 = vld [vmem:[%s24126_s2 + $0x52c] ss:$16 sps:$4 sm:$0xff]  }
 0x45e   : > { %v21080_v32 = vadd.f32 %v7986_v38, %v7946_v47  ;;  %9024 = vmatprep.subr.bf16.mxu0 %v16424_v24  ;;  %v16443_v47 = vld [vmem:[%s24126_s2 + $0x62c] ss:$16 sps:$4 sm:$0xff]   ;;  %v16461_v38 = vld [vmem:[%s24126_s2 + $0x7a8] ss:$16 sps:$4 sm:$0xff]  }
 0x45f   : > { %v7988_v25 = vpop.f32.mrf.mxu1  ;;  %v16462_v39 = vld [vmem:[%s24126_s2 + $0x528] ss:$16 sps:$4 sm:$0xff]   ;;  %v16463_v24 = vld [vmem:[%s24126_s2 + $0x78c] ss:$16 sps:$4 sm:$0xff]  }
 0x460   : > { %9058 = vmatpush1.bf16.msra.mxu1 %v16425_v45  ;;  %v16464_v25 = vld [vmem:[%s24126_s2 + $0x50c] ss:$16 sps:$4 sm:$0xff]   ;;  %v16465_v45 = vld [vmem:[%s24126_s2 + $0x788] ss:$16 sps:$4 sm:$0xff]  }
 0x461   : > { %9025 = vmatpush1.bf16.msra.mxu0 %v16426_v60  ;;  %v7989_v53 = vpop.f32.mrf.mxu1  ;;  %9059 = vmatprep.subr.bf16.mxu1 %v16427_v51  ;;  %v16466_v60 = vld [vmem:[%s24126_s2 + $0x508] ss:$16 sps:$4 sm:$0xff]   ;;  %v16468_v51 = vld [vmem:[%s24126_s2 + $0xe4] ss:$16 sps:$4 sm:$0xff]  }
 0x462   : > { %9026 = vmatprep.subr.bf16.mxu0 %v16428_v43  ;;  %v16467_v53 = vld [vmem:[%s24126_s2 + $0x76c] ss:$16 sps:$4 sm:$0xff]  }
 0x464   : > { %9060 = vmatpush1.bf16.msra.mxu1 %v16429_v57  ;;  %v16469_v57 = vld [vmem:[%s24126_s2 + $0x768] ss:$16 sps:$4 sm:$0xff]  }
 0x465   : > { %9027 = vmatpush1.bf16.msra.mxu0 %v16430_v22  ;;  %9061 = vmatprep.subr.bf16.mxu1 %v16431_v62  ;;  %v16470_v22 = vld [vmem:[%s24126_s2 + $0xe0] ss:$16 sps:$4 sm:$0xff]   ;;  %v348_v62 = vld [vmem:[#allocation2 + $0x28] sm:$0x11] }
 0x466   : > { %9028 = vmatprep.subr.bf16.mxu0 %v16432_v30  ;;  %v351_v30 = vld [vmem:[#allocation2 + $0x38] sm:$0x11] }
 0x468   : > { %9062 = vmatpush1.bf16.msra.mxu1 %v16433_v12 }
 0x469   : > { %9029 = vmatpush1.bf16.msra.mxu0 %v16434_v36  ;;  %9063 = vmatprep.subr.bf16.mxu1 %v16435_v33  ;;  %v16471_v36 = vld [vmem:[%s24126_s2 + $0x74c] ss:$16 sps:$4 sm:$0xff]   ;;  %v16472_v33 = vld [vmem:[%s24126_s2 + $0xc4] ss:$16 sps:$4 sm:$0xff]  }
 0x46a   : > { %9030 = vmatprep.subr.bf16.mxu0 %v16436_v37  ;;  %v349_v37 = vsel %vm18732_vm15, 0, %v348_v62  ;;  %v16498_v62 = vld [vmem:[%s24126_s2] ss:$16 sps:$4 sm:$0xff]  }
 0x46b   : > { %350 = vst [vmem:[#allocation2 + $0x28] sm:$0x11] %v349_v37  ;;  %v16503_v37 = vld [vmem:[%s24126_s2 + $0x244] ss:$16 sps:$4 sm:$0xff]  }
 0x46c   : > { %9064 = vmatpush1.bf16.msra.mxu1 %v16437_v54  ;;  %v352_v54 = vsel %vm18732_vm15, 0, %v351_v30  ;;  %v16499_v30 = vld [vmem:[%s24126_s2 + $0x264] ss:$16 sps:$4 sm:$0xff]  }
 0x46d   : > { %9031 = vmatpush2.bf16.msra.mxu0 %v16438_v23  ;;  %9065 = vmatprep.subr.bf16.mxu1 %v16439_v55  ;;  %353 = vst [vmem:[#allocation2 + $0x38] sm:$0x11] %v352_v54  ;;  %v16473_v55 = vld [vmem:[%s24126_s2 + $0x748] ss:$16 sps:$4 sm:$0xff]   ;;  %v16504_v54 = vld [vmem:[%s24126_s2 + $0x1c4] ss:$16 sps:$4 sm:$0xff]  }
 0x46e   : > { %9032 = vmatprep.subr.bf16.mxu0 %v16440_v20  ;;  %v16474_v20 = vld [vmem:[%s24126_s2 + $0xc0] ss:$16 sps:$4 sm:$0xff]  }
 0x470   : > { %9066 = vmatpush1.bf16.msra.mxu1 %v16441_v15  ;;  %v16475_v15 = vld [vmem:[%s24126_s2 + $0x72c] ss:$16 sps:$4 sm:$0xff]  }
 0x471   : > { %9033 = vmatpush2.bf16.msra.mxu0 %v16442_v61  ;;  %9067 = vmatprep.subr.bf16.mxu1 %v16443_v47  ;;  %v16476_v61 = vld [vmem:[%s24126_s2 + $0xa4] ss:$16 sps:$4 sm:$0xff]   ;;  %v16477_v47 = vld [vmem:[%s24126_s2 + $0x728] ss:$16 sps:$4 sm:$0xff]  }
 0x472   : > { %9034 = vmatprep.subr.bf16.mxu0 %v16444_v9  ;;  %v16478_v9 = vld [vmem:[%s24126_s2 + $0xa0] ss:$16 sps:$4 sm:$0xff]  }
 0x474   : > { %9068 = vmatpush1.bf16.msra.mxu1 %v16445_v46  ;;  %v16479_v46 = vld [vmem:[%s24126_s2 + $0x70c] ss:$16 sps:$4 sm:$0xff]  }
 0x475   : > { %9035 = vmatpush2.bf16.msra.mxu0 %v16446_v27  ;;  %9069 = vmatprep.subr.bf16.mxu1 %v16447_v49  ;;  %v16480_v27 = vld [vmem:[%s24126_s2 + $0x84] ss:$16 sps:$4 sm:$0xff]   ;;  %v16481_v49 = vld [vmem:[%s24126_s2 + $0x708] ss:$16 sps:$4 sm:$0xff]  }
 0x476   : > { %9036 = vmatprep.subr.bf16.mxu0 %v16448_v0  ;;  %v16482_v0 = vld [vmem:[%s24126_s2 + $0x80] ss:$16 sps:$4 sm:$0xff]  }
 0x478   : > { %9070 = vmatpush1.bf16.msra.mxu1 %v16449_v19  ;;  %v16483_v19 = vld [vmem:[%s24126_s2 + $0x2e4] ss:$16 sps:$4 sm:$0xff]  }
 0x479   : > { %9037 = vmatpush2.bf16.msra.mxu0 %v16450_v48  ;;  %9071 = vmatprep.subr.bf16.mxu1 %v16451_v63  ;;  %v16484_v48 = vld [vmem:[%s24126_s2 + $0x64] ss:$16 sps:$4 sm:$0xff]  }
 0x47a   : > { %9038 = vmatprep.subr.bf16.mxu0 %v16452_v13 }
 0x47c   : > { %9072 = vmatpush2.bf16.msra.mxu1 %v16453_v59  ;;  %v16485_v59 = vld [vmem:[%s24126_s2 + $0x2e0] ss:$16 sps:$4 sm:$0xff]  }
 0x47d   : > { %9039 = vmatpush2.bf16.msra.mxu0 %v16454_v29  ;;  %9073 = vmatprep.subr.bf16.mxu1 %v16455_v18  ;;  %v16486_v29 = vld [vmem:[%s24126_s2 + $0x60] ss:$16 sps:$4 sm:$0xff]  }
 0x47e   : > { %9040 = vmatprep.subr.bf16.mxu0 %v16456_v5  ;;  %v16487_v5 = vld [vmem:[%s24126_s2 + $0x2c4] ss:$16 sps:$4 sm:$0xff]  }
 0x480   : > { %9074 = vmatpush2.bf16.msra.mxu1 %v16457_v16 }
 0x481   : > { %9041 = vmatpush2.bf16.msra.mxu0 %v16458_v28  ;;  %9075 = vmatprep.subr.bf16.mxu1 %v16459_v42  ;;  %v16488_v42 = vld [vmem:[%s24126_s2 + $0x44] ss:$16 sps:$4 sm:$0xff]  }
 0x482   : > { %9042 = vmatprep.subr.bf16.mxu0 %v16460_v52 }
 0x484   : > { %9076 = vmatpush2.bf16.msra.mxu1 %v16461_v38 }
 0x485   : > { %9043 = vmatpush2.bf16.msra.mxu0 %v16462_v39  ;;  %9077 = vmatprep.subr.bf16.mxu1 %v16463_v24  ;;  %v16489_v24 = vld [vmem:[%s24126_s2 + $0x2c0] ss:$16 sps:$4 sm:$0xff]  }
 0x486   : > { %9044 = vmatprep.subr.bf16.mxu0 %v16464_v25 }
 0x488   : > { %9078 = vmatpush2.bf16.msra.mxu1 %v16465_v45  ;;  %v16491_v45 = vld [vmem:[%s24126_s2 + $0x2a4] ss:$16 sps:$4 sm:$0xff]  }
 0x489   : > { %9045 = vmatpush2.bf16.msra.mxu0 %v16466_v60  ;;  %9079 = vmatprep.subr.bf16.mxu1 %v16467_v53  ;;  %v16492_v60 = vld [vmem:[%s24126_s2 + $0x24] ss:$16 sps:$4 sm:$0xff]   ;;  %v16493_v53 = vld [vmem:[%s24126_s2 + $0x2a0] ss:$16 sps:$4 sm:$0xff]  }
 0x48a   : > { %9096 = vmatprep.subr.bf16.mxu0 %v16468_v51  ;;  %v16494_v51 = vld [vmem:[%s24126_s2 + $0x20] ss:$16 sps:$4 sm:$0xff]  }
 0x48c   : > { %v8794_v43 = vpop.f32.mrf.mxu0  ;;  %9047 = vmatmul.mubr.bf16.vlgmr.msra.gmra.mxu0 %v19410_v11  ;;  %9080 = vmatpush2.bf16.msra.mxu1 %v16469_v57  ;;  %v16496_v57 = vld [vmem:[%s24126_s2 + $0x4] ss:$16 sps:$4 sm:$0xff]  }
 0x48d   : > { %9097 = vmatpush1.bf16.msra.mxu0 %v16470_v22  ;;  %9128 = vmatprep.mubr.bf16.mxu0 %v18487_v7  ;;  %v16497_v22 = vld [vmem:[%s24126_s2 + $0x280] ss:$16 sps:$4 sm:$0xff]  }
 0x48e   : > { %v8796_v12 = vpop.f32.mrf.mxu0  ;;  %9081 = vmatprep.subr.bf16.mxu1 %v16471_v36  ;;  %9098 = vmatprep.subr.bf16.mxu0 %v16472_v33  ;;  %v16501_v36 = vld [vmem:[%s24126_s2 + $0x260] ss:$16 sps:$4 sm:$0xff]  }
 0x48f   : > { %v16502_v33 = vld [vmem:[%s24126_s2 + $0x1e0] ss:$16 sps:$4 sm:$0xff]  }
 0x490   : > { %v8798_v23 = vpop.f32.mrf.mxu0  ;;  %9082 = vmatpush2.bf16.msra.mxu1 %v16473_v55  ;;  %v16506_v55 = vld [vmem:[%s24126_s2 + $0x1c0] ss:$16 sps:$4 sm:$0xff]  }
 0x491   : > { %9099 = vmatpush1.bf16.msra.mxu0 %v16474_v20  ;;  %9083 = vmatprep.subr.bf16.mxu1 %v16475_v15  ;;  %v16505_v23 = vld [vmem:[%s24126_s2 + $0x240] ss:$16 sps:$4 sm:$0xff]   ;;  %v16507_v20 = vld [vmem:[%s24126_s2 + $0x224] ss:$16 sps:$4 sm:$0xff]  }
 0x492   : > { %v8799_v31 = vpop.f32.mrf.mxu0  ;;  %9100 = vmatprep.subr.bf16.mxu0 %v16476_v61  ;;  %v16508_v15 = vld [vmem:[%s24126_s2 + $0x1a4] ss:$16 sps:$4 sm:$0xff]   ;;  %v16510_v61 = vld [vmem:[%s24126_s2 + $0x1a0] ss:$16 sps:$4 sm:$0xff]  }
 0x493   : > { %v16509_v31 = vld [vmem:[%s24126_s2 + $0x220] ss:$16 sps:$4 sm:$0xff]  }
 0x494   : > { %9084 = vmatpush2.bf16.msra.mxu1 %v16477_v47  ;;  %v16511_v47 = vld [vmem:[%s24126_s2 + $0x204] ss:$16 sps:$4 sm:$0xff]  }
 0x495   : > { %9101 = vmatpush1.bf16.msra.mxu0 %v16478_v9  ;;  %9085 = vmatprep.subr.bf16.mxu1 %v16479_v46  ;;  %v16512_v9 = vld [vmem:[%s24126_s2 + $0x184] ss:$16 sps:$4 sm:$0xff]   ;;  %v16513_v46 = vld [vmem:[%s24126_s2 + $0x200] ss:$16 sps:$4 sm:$0xff]  }
 0x496   : > { %9102 = vmatprep.subr.bf16.mxu0 %v16480_v27  ;;  %v16514_v27 = vld [vmem:[%s24126_s2 + $0x180] ss:$16 sps:$4 sm:$0xff]  }
 0x498   : > { %9086 = vmatpush2.bf16.msra.mxu1 %v16481_v49  ;;  %v16515_v49 = vld [vmem:[%s24126_s2 + $0x3e4] ss:$16 sps:$4 sm:$0xff]  }
 0x499   : > { %9103 = vmatpush1.bf16.msra.mxu0 %v16482_v0  ;;  %9137 = vmatprep.subr.bf16.mxu1 %v16483_v19  ;;  %v16516_v0 = vld [vmem:[%s24126_s2 + $0x164] ss:$16 sps:$4 sm:$0xff]   ;;  %v16517_v19 = vld [vmem:[%s24126_s2 + $0x3e0] ss:$16 sps:$4 sm:$0xff]  }
 0x49a   : > { %9104 = vmatprep.subr.bf16.mxu0 %v16484_v48  ;;  %v16518_v48 = vld [vmem:[%s24126_s2 + $0x160] ss:$16 sps:$4 sm:$0xff]  }
 0x49b   : > { %v8835_v63 = vpop.f32.mrf.mxu1  ;;  %9088 = vmatmul.mubr.bf16.vlgmr.msra.gmra.mxu1 %v19465_v14 }
 0x49c   : > { %v8836_v13 = vadd.f32 %v8835_v63, %v8794_v43  ;;  %9138 = vmatpush1.bf16.msra.mxu1 %v16485_v59  ;;  %9169 = vmatprep.mubr.bf16.mxu1 %v18536_v56  ;;  %v16495_v43 = vld [vmem:[%s24126_s2 + $0x284] ss:$16 sps:$4 sm:$0xff]   ;;  %v16521_v59 = vld [vmem:[%s24126_s2 + $0x3c0] ss:$16 sps:$4 sm:$0xff]  }
 0x49d   : > { %9105 = vmatpush1.bf16.msra.mxu0 %v16486_v29  ;;  %v8837_v18 = vpop.f32.mrf.mxu1  ;;  %9139 = vmatprep.subr.bf16.mxu1 %v16487_v5  ;;  %v16519_v63 = vld [vmem:[%s24126_s2 + $0x3c4] ss:$16 sps:$4 sm:$0xff]   ;;  %v16522_v29 = vld [vmem:[%s24126_s2 + $0x140] ss:$16 sps:$4 sm:$0xff]  }
 0x49e   : > { %v21283_v16 = vadd.f32 %v8836_v13, %v20866_v44  ;;  %v8838_v28 = vadd.f32 %v8837_v18, %v8796_v12  ;;  %9106 = vmatprep.subr.bf16.mxu0 %v16488_v42  ;;  %v16490_v44 = vld [vmem:[%s24126_s2 + $0x40] ss:$16 sps:$4 sm:$0xff]   ;;  %v16500_v12 = vld [vmem:[%s24126_s2 + $0x1e4] ss:$16 sps:$4 sm:$0xff]  }
 0x49f   : > { %v8839_v52 = vpop.f32.mrf.mxu1  ;;  %v16520_v13 = vld [vmem:[%s24126_s2 + $0x144] ss:$16 sps:$4 sm:$0xff]   ;;  %v16526_v42 = vld [vmem:[%s24126_s2 + $0x120] ss:$16 sps:$4 sm:$0xff]  }
 0x4a0   : > { %v8928_v38 = vmax.f32 %v20083_v21, %v21283_v16  ;;  %v21291_v39 = vadd.f32 %v8838_v28, %v20878_v3  ;;  %9140 = vmatpush1.bf16.msra.mxu1 %v16489_v24  ;;  %v16523_v18 = vld [vmem:[%s24126_s2 + $0x3a4] ss:$16 sps:$4 sm:$0xff]   ;;  %v16525_v28 = vld [vmem:[%s24126_s2 + $0x3a0] ss:$16 sps:$4 sm:$0xff]  }
 0x4a1   : > { %9107 = vmatpush1.bf16.msra.mxu0 %v16490_v44  ;;  %v8840_v25 = vpop.f32.mrf.mxu1  ;;  %9141 = vmatprep.subr.bf16.mxu1 %v16491_v45  ;;  %v16524_v5 = vld [vmem:[%s24126_s2 + $0x124] ss:$16 sps:$4 sm:$0xff]   ;;  %v16529_v44 = vld [vmem:[%s24126_s2 + $0x380] ss:$16 sps:$4 sm:$0xff]  }
 0x4a2   : > { %v8929_v3 = vmax.f32 %v20089_v1, %v21291_v39  ;;  %9108 = vmatprep.subr.bf16.mxu0 %v16492_v60  ;;  %v16527_v52 = vld [vmem:[%s24126_s2 + $0x384] ss:$16 sps:$4 sm:$0xff]   ;;  %v16530_v25 = vld [vmem:[%s24126_s2 + $0x100] ss:$16 sps:$4 sm:$0xff]   ;;  %v16532_v60 = vld [vmem:[%s24126_s2 + $0xec] ss:$16 sps:$4 sm:$0xff]  }
 0x4a3   : > { %v16528_v24 = vld [vmem:[%s24126_s2 + $0x104] ss:$16 sps:$4 sm:$0xff]  }
 0x4a4   : > { %9142 = vmatpush1.bf16.msra.mxu1 %v16493_v53  ;;  %v16531_v45 = vld [vmem:[%s24126_s2 + $0x364] ss:$16 sps:$4 sm:$0xff]  }
 0x4a5   : > { %9109 = vmatpush1.bf16.msra.mxu0 %v16494_v51  ;;  %9143 = vmatprep.subr.bf16.mxu1 %v16495_v43  ;;  %v16533_v51 = vld [vmem:[%s24126_s2 + $0x360] ss:$16 sps:$4 sm:$0xff]   ;;  %v16534_v43 = vld [vmem:[%s24126_s2 + $0xe8] ss:$16 sps:$4 sm:$0xff]   ;;  %v16876_v16 = vld [vmem:[%s24126_s2 + $0xc24] ss:$16 sps:$4 sm:$0xff]  }
 0x4a6   : > { %9110 = vmatprep.subr.bf16.mxu0 %v16496_v57  ;;  %v16879_v1 = vld [vmem:[%s24126_s2 + $0xe84] ss:$16 sps:$4 sm:$0xff]  }
 0x4a7   : > { %v16880_v39 = vld [vmem:[%s24126_s2 + $0xc04] ss:$16 sps:$4 sm:$0xff]  }
 0x4a8   : > { %9144 = vmatpush1.bf16.msra.mxu1 %v16497_v22  ;;  %v16535_v22 = vld [vmem:[%s24126_s2 + $0x344] ss:$16 sps:$4 sm:$0xff]  }
 0x4a9   : > { %9111 = vmatpush1.bf16.msra.mxu0 %v16498_v62  ;;  %9145 = vmatprep.subr.bf16.mxu1 %v16499_v30  ;;  %v16536_v62 = vld [vmem:[%s24126_s2 + $0xcc] ss:$16 sps:$4 sm:$0xff]  }
 0x4aa   : > { %9112 = vmatprep.subr.bf16.mxu0 %v16500_v12  ;;  %v16537_v12 = vld [vmem:[%s24126_s2 + $0x340] ss:$16 sps:$4 sm:$0xff]  }
 0x4ac   : > { %9146 = vmatpush1.bf16.msra.mxu1 %v16501_v36  ;;  %v16538_v36 = vld [vmem:[%s24126_s2 + $0xc8] ss:$16 sps:$4 sm:$0xff]  }
 0x4ad   : > { %9113 = vmatpush2.bf16.msra.mxu0 %v16502_v33  ;;  %9147 = vmatprep.subr.bf16.mxu1 %v16503_v37  ;;  %v16539_v33 = vld [vmem:[%s24126_s2 + $0x324] ss:$16 sps:$4 sm:$0xff]  }
 0x4ae   : > { %9114 = vmatprep.subr.bf16.mxu0 %v16504_v54  ;;  %v16540_v54 = vld [vmem:[%s24126_s2 + $0xac] ss:$16 sps:$4 sm:$0xff]  }
 0x4b0   : > { %9148 = vmatpush1.bf16.msra.mxu1 %v16505_v23  ;;  %v16541_v23 = vld [vmem:[%s24126_s2 + $0x320] ss:$16 sps:$4 sm:$0xff]  }
 0x4b1   : > { %9115 = vmatpush2.bf16.msra.mxu0 %v16506_v55  ;;  %9149 = vmatprep.subr.bf16.mxu1 %v16507_v20  ;;  %v16542_v55 = vld [vmem:[%s24126_s2 + $0xa8] ss:$16 sps:$4 sm:$0xff]   ;;  %v16543_v20 = vld [vmem:[%s24126_s2 + $0x304] ss:$16 sps:$4 sm:$0xff]  }
 0x4b2   : > { %9116 = vmatprep.subr.bf16.mxu0 %v16508_v15  ;;  %v16544_v15 = vld [vmem:[%s24126_s2 + $0x8c] ss:$16 sps:$4 sm:$0xff]  }
 0x4b4   : > { %9150 = vmatpush1.bf16.msra.mxu1 %v16509_v31  ;;  %v16545_v31 = vld [vmem:[%s24126_s2 + $0x300] ss:$16 sps:$4 sm:$0xff]  }
 0x4b5   : > { %9117 = vmatpush2.bf16.msra.mxu0 %v16510_v61  ;;  %9151 = vmatprep.subr.bf16.mxu1 %v16511_v47  ;;  %v16546_v61 = vld [vmem:[%s24126_s2 + $0x88] ss:$16 sps:$4 sm:$0xff]   ;;  %v16547_v47 = vld [vmem:[%s24126_s2 + $0x2ec] ss:$16 sps:$4 sm:$0xff]  }
 0x4b6   : > { %9118 = vmatprep.subr.bf16.mxu0 %v16512_v9  ;;  %v16548_v9 = vld [vmem:[%s24126_s2 + $0x6c] ss:$16 sps:$4 sm:$0xff]  }
 0x4b8   : > { %9152 = vmatpush1.bf16.msra.mxu1 %v16513_v46 }
 0x4b9   : > { %9119 = vmatpush2.bf16.msra.mxu0 %v16514_v27  ;;  %9153 = vmatprep.subr.bf16.mxu1 %v16515_v49  ;;  %v16549_v49 = vld [vmem:[%s24126_s2 + $0x2e8] ss:$16 sps:$4 sm:$0xff]  }
 0x4ba   : > { %9120 = vmatprep.subr.bf16.mxu0 %v16516_v0  ;;  %v16550_v0 = vld [vmem:[%s24126_s2 + $0x68] ss:$16 sps:$4 sm:$0xff]  }
 0x4bc   : > { %9154 = vmatpush2.bf16.msra.mxu1 %v16517_v19 }
 0x4bd   : > { %9121 = vmatpush2.bf16.msra.mxu0 %v16518_v48  ;;  %9155 = vmatprep.subr.bf16.mxu1 %v16519_v63  ;;  %v16551_v48 = vld [vmem:[%s24126_s2 + $0x2cc] ss:$16 sps:$4 sm:$0xff]  }
 0x4be   : > { %9122 = vmatprep.subr.bf16.mxu0 %v16520_v13 }
 0x4c0   : > { %9156 = vmatpush2.bf16.msra.mxu1 %v16521_v59  ;;  %v16552_v59 = vld [vmem:[%s24126_s2 + $0x4c] ss:$16 sps:$4 sm:$0xff]  }
 0x4c1   : > { %9123 = vmatpush2.bf16.msra.mxu0 %v16522_v29  ;;  %9157 = vmatprep.subr.bf16.mxu1 %v16523_v18 }
 0x4c2   : > { %9124 = vmatprep.subr.bf16.mxu0 %v16524_v5 }
 0x4c4   : > { %9158 = vmatpush2.bf16.msra.mxu1 %v16525_v28  ;;  %v16553_v28 = vld [vmem:[%s24126_s2 + $0x2c8] ss:$16 sps:$4 sm:$0xff]  }
 0x4c5   : > { %9125 = vmatpush2.bf16.msra.mxu0 %v16526_v42  ;;  %9159 = vmatprep.subr.bf16.mxu1 %v16527_v52  ;;  %v16555_v52 = vld [vmem:[%s24126_s2 + $0x2ac] ss:$16 sps:$4 sm:$0xff]  }
 0x4c6   : > { %9126 = vmatprep.subr.bf16.mxu0 %v16528_v24  ;;  %v16556_v24 = vld [vmem:[%s24126_s2 + $0x2c] ss:$16 sps:$4 sm:$0xff]  }
 0x4c8   : > { %9160 = vmatpush2.bf16.msra.mxu1 %v16529_v44  ;;  %v16557_v44 = vld [vmem:[%s24126_s2 + $0x2a8] ss:$16 sps:$4 sm:$0xff]  }
 0x4c9   : > { %9127 = vmatpush2.bf16.msra.mxu0 %v16530_v25  ;;  %9161 = vmatprep.subr.bf16.mxu1 %v16531_v45  ;;  %v16558_v25 = vld [vmem:[%s24126_s2 + $0x28] ss:$16 sps:$4 sm:$0xff]   ;;  %v16559_v45 = vld [vmem:[%s24126_s2 + $0x28c] ss:$16 sps:$4 sm:$0xff]  }
 0x4ca   : > { %9178 = vmatprep.subr.bf16.mxu0 %v16532_v60  ;;  %v16560_v60 = vld [vmem:[%s24126_s2 + $0xc] ss:$16 sps:$4 sm:$0xff]  }
 0x4cc   : > { %v8876_v53 = vpop.f32.mrf.mxu0  ;;  %9129 = vmatmul.mubr.bf16.vlgmr.msra.gmra.mxu0 %v18491_v26  ;;  %9162 = vmatpush2.bf16.msra.mxu1 %v16533_v51  ;;  %v16562_v51 = vld [vmem:[%s24126_s2 + $0x8] ss:$16 sps:$4 sm:$0xff]  }
 0x4cd   : > { %9179 = vmatpush1.bf16.msra.mxu0 %v16534_v43  ;;  %9210 = vmatprep.mubr.bf16.mxu0 %v18487_v7  ;;  %v16563_v43 = vld [vmem:[%s24126_s2 + $0x26c] ss:$16 sps:$4 sm:$0xff]  }
 0x4ce   : > { %v8878_v57 = vpop.f32.mrf.mxu0  ;;  %9163 = vmatprep.subr.bf16.mxu1 %v16535_v22  ;;  %9180 = vmatprep.subr.bf16.mxu0 %v16536_v62  ;;  %v16565_v22 = vld [vmem:[%s24126_s2 + $0x268] ss:$16 sps:$4 sm:$0xff]  }
 0x4cf   : > { %v16566_v62 = vld [vmem:[%s24126_s2 + $0x1e8] ss:$16 sps:$4 sm:$0xff]  }
 0x4d0   : > { %v8880_v30 = vpop.f32.mrf.mxu0  ;;  %9164 = vmatpush2.bf16.msra.mxu1 %v16537_v12  ;;  %v16568_v12 = vld [vmem:[%s24126_s2 + $0x1cc] ss:$16 sps:$4 sm:$0xff]  }
 0x4d1   : > { %9181 = vmatpush1.bf16.msra.mxu0 %v16538_v36  ;;  %9165 = vmatprep.subr.bf16.mxu1 %v16539_v33  ;;  %v16567_v30 = vld [vmem:[%s24126_s2 + $0x24c] ss:$16 sps:$4 sm:$0xff]   ;;  %v16569_v36 = vld [vmem:[%s24126_s2 + $0x248] ss:$16 sps:$4 sm:$0xff]  }
 0x4d2   : > { %v8881_v37 = vpop.f32.mrf.mxu0  ;;  %9182 = vmatprep.subr.bf16.mxu0 %v16540_v54  ;;  %v16570_v33 = vld [vmem:[%s24126_s2 + $0x1c8] ss:$16 sps:$4 sm:$0xff]   ;;  %v16572_v54 = vld [vmem:[%s24126_s2 + $0x1ac] ss:$16 sps:$4 sm:$0xff]  }
 0x4d3   : > { %v16571_v37 = vld [vmem:[%s24126_s2 + $0x22c] ss:$16 sps:$4 sm:$0xff]  }
 0x4d4   : > { %9166 = vmatpush2.bf16.msra.mxu1 %v16541_v23  ;;  %v16573_v23 = vld [vmem:[%s24126_s2 + $0x228] ss:$16 sps:$4 sm:$0xff]  }
 0x4d5   : > { %9183 = vmatpush1.bf16.msra.mxu0 %v16542_v55  ;;  %9167 = vmatprep.subr.bf16.mxu1 %v16543_v20  ;;  %v16574_v55 = vld [vmem:[%s24126_s2 + $0x1a8] ss:$16 sps:$4 sm:$0xff]   ;;  %v16575_v20 = vld [vmem:[%s24126_s2 + $0x20c] ss:$16 sps:$4 sm:$0xff]  }
 0x4d6   : > { %9184 = vmatprep.subr.bf16.mxu0 %v16544_v15  ;;  %v16576_v15 = vld [vmem:[%s24126_s2 + $0x18c] ss:$16 sps:$4 sm:$0xff]  }
 0x4d8   : > { %9168 = vmatpush2.bf16.msra.mxu1 %v16545_v31  ;;  %v16577_v31 = vld [vmem:[%s24126_s2 + $0x208] ss:$16 sps:$4 sm:$0xff]  }
 0x4d9   : > { %9185 = vmatpush1.bf16.msra.mxu0 %v16546_v61  ;;  %9219 = vmatprep.subr.bf16.mxu1 %v16547_v47  ;;  %v16578_v61 = vld [vmem:[%s24126_s2 + $0x188] ss:$16 sps:$4 sm:$0xff]   ;;  %v16579_v47 = vld [vmem:[%s24126_s2 + $0x3ec] ss:$16 sps:$4 sm:$0xff]  }
 0x4da   : > { %9186 = vmatprep.subr.bf16.mxu0 %v16548_v9  ;;  %v16580_v9 = vld [vmem:[%s24126_s2 + $0x16c] ss:$16 sps:$4 sm:$0xff]  }
 0x4db   : > { %v8917_v46 = vpop.f32.mrf.mxu1  ;;  %9170 = vmatmul.mubr.bf16.vlgmr.msra.gmra.mxu1 %v18538_v58 }
 0x4dc   : > { %v8918_v27 = vadd.f32 %v8917_v46, %v8876_v53  ;;  %9220 = vmatpush1.bf16.msra.mxu1 %v16549_v49  ;;  %9251 = vmatprep.mubr.bf16.mxu1 %v18536_v56  ;;  %v16561_v53 = vld [vmem:[%s24126_s2 + $0x288] ss:$16 sps:$4 sm:$0xff]   ;;  %v16583_v49 = vld [vmem:[%s24126_s2 + $0x3cc] ss:$16 sps:$4 sm:$0xff]  }
 0x4dd   : > { %9187 = vmatpush1.bf16.msra.mxu0 %v16550_v0  ;;  %v8919_v19 = vpop.f32.mrf.mxu1  ;;  %9221 = vmatprep.subr.bf16.mxu1 %v16551_v48  ;;  %v16581_v46 = vld [vmem:[%s24126_s2 + $0x3e8] ss:$16 sps:$4 sm:$0xff]   ;;  %v16584_v0 = vld [vmem:[%s24126_s2 + $0x14c] ss:$16 sps:$4 sm:$0xff]  }
 0x4de   : > { %v21489_v63 = vadd.f32 %v8918_v27, %v21068_v41  ;;  %v8920_v13 = vadd.f32 %v8919_v19, %v8878_v57  ;;  %9188 = vmatprep.subr.bf16.mxu0 %v16552_v59  ;;  %v16554_v41 = vld [vmem:[%s24126_s2 + $0x48] ss:$16 sps:$4 sm:$0xff]   ;;  %v16564_v57 = vld [vmem:[%s24126_s2 + $0x1ec] ss:$16 sps:$4 sm:$0xff]  }
 0x4df   : > { %v8921_v29 = vpop.f32.mrf.mxu1  ;;  %v16582_v27 = vld [vmem:[%s24126_s2 + $0x168] ss:$16 sps:$4 sm:$0xff]   ;;  %v16588_v59 = vld [vmem:[%s24126_s2 + $0x12c] ss:$16 sps:$4 sm:$0xff]  }
 0x4e0   : > { %v8930_v18 = vmax.f32 %v20285_v40, %v21489_v63  ;;  %v21497_v5 = vadd.f32 %v8920_v13, %v21080_v32  ;;  %9222 = vmatpush1.bf16.msra.mxu1 %v16553_v28  ;;  %v16585_v19 = vld [vmem:[%s24126_s2 + $0x3c8] ss:$16 sps:$4 sm:$0xff]   ;;  %v16587_v13 = vld [vmem:[%s24126_s2 + $0x3ac] ss:$16 sps:$4 sm:$0xff]  }
 0x4e1   : > { %9189 = vmatpush1.bf16.msra.mxu0 %v16554_v41  ;;  %v8922_v42 = vpop.f32.mrf.mxu1  ;;  %9223 = vmatprep.subr.bf16.mxu1 %v16555_v52  ;;  %v16586_v48 = vld [vmem:[%s24126_s2 + $0x148] ss:$16 sps:$4 sm:$0xff]   ;;  %v16591_v41 = vld [vmem:[%s24126_s2 + $0x38c] ss:$16 sps:$4 sm:$0xff]  }
 0x4e2   : > { %v8931_v32 = vmax.f32 %v20291_v8, %v21497_v5  ;;  %9190 = vmatprep.subr.bf16.mxu0 %v16556_v24  ;;  %v16589_v29 = vld [vmem:[%s24126_s2 + $0x3a8] ss:$16 sps:$4 sm:$0xff]   ;;  %v16592_v42 = vld [vmem:[%s24126_s2 + $0x10c] ss:$16 sps:$4 sm:$0xff]  }
 0x4e3   : > { %v16590_v28 = vld [vmem:[%s24126_s2 + $0x128] ss:$16 sps:$4 sm:$0xff]   ;;  %v16115_v52 = vld [vmem:[#allocation2 + $0x34] ss:$-24 sps:$4 sm:$0x1e]  }
 0x4e4   : > { %9224 = vmatpush1.bf16.msra.mxu1 %v16557_v44  ;;  %v16593_v24 = vld [vmem:[%s24126_s2 + $0x388] ss:$16 sps:$4 sm:$0xff]   ;;  %v16940_v63 = vld [vmem:[%s24126_s2 + $0xc2c] ss:$16 sps:$4 sm:$0xff]  }
 0x4e5   : > { %9191 = vmatpush1.bf16.msra.mxu0 %v16558_v25  ;;  %9225 = vmatprep.subr.bf16.mxu1 %v16559_v45  ;;  %v16594_v44 = vld [vmem:[%s24126_s2 + $0x108] ss:$16 sps:$4 sm:$0xff]   ;;  %v16595_v25 = vld [vmem:[%s24126_s2 + $0x36c] ss:$16 sps:$4 sm:$0xff]   ;;  %v16596_v45 = vld [vmem:[%s24126_s2 + $0x8e4] ss:$16 sps:$4 sm:$0xff]  }
 0x4e6   : > { %9192 = vmatprep.subr.bf16.mxu0 %v16560_v60  ;;  %v21633_v60 = vrot.slane %v16115_v52, 1  ;;  %v16618_v52 = vld [vmem:[%s24126_s2 + $0x840] ss:$16 sps:$4 sm:$0xff]   ;;  %v16943_v8 = vld [vmem:[%s24126_s2 + $0xe8c] ss:$16 sps:$4 sm:$0xff]  }
 0x4e7   : > { %v16944_v5 = vld [vmem:[%s24126_s2 + $0xc0c] ss:$16 sps:$4 sm:$0xff]  }
 0x4e8   : > { %9226 = vmatpush1.bf16.msra.mxu1 %v16561_v53 }
 0x4e9   : > { %9193 = vmatpush1.bf16.msra.mxu0 %v16562_v51  ;;  %9227 = vmatprep.subr.bf16.mxu1 %v16563_v43  ;;  %v16597_v51 = vld [vmem:[%s24126_s2 + $0x368] ss:$16 sps:$4 sm:$0xff]   ;;  %v16598_v43 = vld [vmem:[%s24126_s2 + $0x8e0] ss:$16 sps:$4 sm:$0xff]  }
 0x4ea   : > { %9194 = vmatprep.subr.bf16.mxu0 %v16564_v57 }
 0x4ec   : > { %9228 = vmatpush1.bf16.msra.mxu1 %v16565_v22  ;;  %v16599_v22 = vld [vmem:[%s24126_s2 + $0x34c] ss:$16 sps:$4 sm:$0xff]  }
 0x4ed   : > { %9195 = vmatpush2.bf16.msra.mxu0 %v16566_v62  ;;  %9229 = vmatprep.subr.bf16.mxu1 %v16567_v30  ;;  %v16600_v62 = vld [vmem:[%s24126_s2 + $0x8c4] ss:$16 sps:$4 sm:$0xff]  }
 0x4ee   : > { %9196 = vmatprep.subr.bf16.mxu0 %v16568_v12  ;;  %v16601_v12 = vld [vmem:[%s24126_s2 + $0x348] ss:$16 sps:$4 sm:$0xff]  }
 0x4f0   : > { %9230 = vmatpush1.bf16.msra.mxu1 %v16569_v36  ;;  %v16602_v36 = vld [vmem:[%s24126_s2 + $0x8c0] ss:$16 sps:$4 sm:$0xff]  }
 0x4f1   : > { %9197 = vmatpush2.bf16.msra.mxu0 %v16570_v33  ;;  %9231 = vmatprep.subr.bf16.mxu1 %v16571_v37  ;;  %v16603_v33 = vld [vmem:[%s24126_s2 + $0x32c] ss:$16 sps:$4 sm:$0xff]  }
 0x4f2   : > { %9198 = vmatprep.subr.bf16.mxu0 %v16572_v54  ;;  %v16604_v54 = vld [vmem:[%s24126_s2 + $0x8a4] ss:$16 sps:$4 sm:$0xff]  }
 0x4f4   : > { %9232 = vmatpush1.bf16.msra.mxu1 %v16573_v23  ;;  %v16605_v23 = vld [vmem:[%s24126_s2 + $0x328] ss:$16 sps:$4 sm:$0xff]  }
 0x4f5   : > { %9199 = vmatpush2.bf16.msra.mxu0 %v16574_v55  ;;  %9233 = vmatprep.subr.bf16.mxu1 %v16575_v20  ;;  %v16606_v55 = vld [vmem:[%s24126_s2 + $0x8a0] ss:$16 sps:$4 sm:$0xff]   ;;  %v16607_v20 = vld [vmem:[%s24126_s2 + $0x30c] ss:$16 sps:$4 sm:$0xff]  }
 0x4f6   : > { %9200 = vmatprep.subr.bf16.mxu0 %v16576_v15  ;;  %v16608_v15 = vld [vmem:[%s24126_s2 + $0x884] ss:$16 sps:$4 sm:$0xff]  }
 0x4f8   : > { %9234 = vmatpush1.bf16.msra.mxu1 %v16577_v31  ;;  %v16118_v31 = vld [vmem:[#allocation2 + $0x4] ss:$16 sps:$4 sm:$0x1e]  }
 0x4f9   : > { %9201 = vmatpush2.bf16.msra.mxu0 %v16578_v61  ;;  %9235 = vmatprep.subr.bf16.mxu1 %v16579_v47  ;;  %v16609_v61 = vld [vmem:[%s24126_s2 + $0x308] ss:$16 sps:$4 sm:$0xff]   ;;  %v16610_v47 = vld [vmem:[%s24126_s2 + $0x880] ss:$16 sps:$4 sm:$0xff]  }
 0x4fa   : > { %9202 = vmatprep.subr.bf16.mxu0 %v16580_v9  ;;  %v16611_v9 = vld [vmem:[%s24126_s2 + $0xae4] ss:$16 sps:$4 sm:$0xff]  }
 0x4fc   : > { %9236 = vmatpush2.bf16.msra.mxu1 %v16581_v46  ;;  %v16612_v46 = vld [vmem:[%s24126_s2 + $0x864] ss:$16 sps:$4 sm:$0xff]  }
 0x4fd   : > { %9203 = vmatpush2.bf16.msra.mxu0 %v16582_v27  ;;  %9237 = vmatprep.subr.bf16.mxu1 %v16583_v49  ;;  %v21685_v27 = vrot.slane %v16118_v31, 1  ;;  %v16638_v31 = vld [vmem:[%s24126_s2 + $0x9a0] ss:$16 sps:$4 sm:$0xff]  }
 0x4fe   : > { %9204 = vmatprep.subr.bf16.mxu0 %v16584_v0 }
 0x500   : > { %9238 = vmatpush2.bf16.msra.mxu1 %v16585_v19  ;;  %v16613_v19 = vld [vmem:[%s24126_s2 + $0xae0] ss:$16 sps:$4 sm:$0xff]  }
 0x501   : > { %9205 = vmatpush2.bf16.msra.mxu0 %v16586_v48  ;;  %9239 = vmatprep.subr.bf16.mxu1 %v16587_v13  ;;  %v16614_v48 = vld [vmem:[%s24126_s2 + $0x860] ss:$16 sps:$4 sm:$0xff]  }
 0x502   : > { %9206 = vmatprep.subr.bf16.mxu0 %v16588_v59  ;;  %v16615_v59 = vld [vmem:[%s24126_s2 + $0xac4] ss:$16 sps:$4 sm:$0xff]  }
 0x504   : > { %9240 = vmatpush2.bf16.msra.mxu1 %v16589_v29 }
 0x505   : > { %9207 = vmatpush2.bf16.msra.mxu0 %v16590_v28  ;;  %9241 = vmatprep.subr.bf16.mxu1 %v16591_v41  ;;  %v16616_v28 = vld [vmem:[%s24126_s2 + $0x844] ss:$16 sps:$4 sm:$0xff]  }
 0x506   : > { %9208 = vmatprep.subr.bf16.mxu0 %v16592_v42  ;;  %v16617_v42 = vld [vmem:[%s24126_s2 + $0xac0] ss:$16 sps:$4 sm:$0xff]  }
 0x508   : > { %9242 = vmatpush2.bf16.msra.mxu1 %v16593_v24 }
 0x509   : > { %9209 = vmatpush2.bf16.msra.mxu0 %v16594_v44  ;;  %9243 = vmatprep.subr.bf16.mxu1 %v16595_v25  ;;  %v16619_v44 = vld [vmem:[%s24126_s2 + $0xaa4] ss:$16 sps:$4 sm:$0xff]  }
 0x50a   : > { %9288 = vmatprep.subr.bf16.mxu0 %v16596_v45  ;;  %v16620_v25 = vld [vmem:[%s24126_s2 + $0x824] ss:$16 sps:$4 sm:$0xff]   ;;  %v16621_v45 = vld [vmem:[%s24126_s2 + $0xaa0] ss:$16 sps:$4 sm:$0xff]  }
 0x50c   : > { %v8966_v53 = vpop.f32.mrf.mxu0  ;;  %9211 = vmatmul.mubr.bf16.vlgmr.msra.gmra.mxu0 %v18491_v26  ;;  %9244 = vmatpush2.bf16.msra.mxu1 %v16597_v51  ;;  %v16623_v51 = vld [vmem:[%s24126_s2 + $0xa84] ss:$16 sps:$4 sm:$0xff]  }
 0x50d   : > { %9289 = vmatpush1.bf16.msra.mxu0 %v16598_v43  ;;  %9320 = vmatprep.mubr.bf16.mxu0 %v21633_v60  ;;  %v16624_v43 = vld [vmem:[%s24126_s2 + $0x804] ss:$16 sps:$4 sm:$0xff]  }
 0x50e   : > { %v8968_v57 = vpop.f32.mrf.mxu0  ;;  %9245 = vmatprep.subr.bf16.mxu1 %v16599_v22  ;;  %9290 = vmatprep.subr.bf16.mxu0 %v16600_v62  ;;  %v16626_v22 = vld [vmem:[%s24126_s2 + $0x800] ss:$16 sps:$4 sm:$0xff]   ;;  %v16627_v62 = vld [vmem:[%s24126_s2 + $0xa64] ss:$16 sps:$4 sm:$0xff]  }
 0x510   : > { %v8970_v30 = vpop.f32.mrf.mxu0  ;;  %9246 = vmatpush2.bf16.msra.mxu1 %v16601_v12  ;;  %v16629_v12 = vld [vmem:[%s24126_s2 + $0xa60] ss:$16 sps:$4 sm:$0xff]  }
 0x511   : > { %9291 = vmatpush1.bf16.msra.mxu0 %v16602_v36  ;;  %9247 = vmatprep.subr.bf16.mxu1 %v16603_v33  ;;  %v16628_v30 = vld [vmem:[%s24126_s2 + $0x9e4] ss:$16 sps:$4 sm:$0xff]   ;;  %v16630_v36 = vld [vmem:[%s24126_s2 + $0x9e0] ss:$16 sps:$4 sm:$0xff]  }
 0x512   : > { %v8971_v37 = vpop.f32.mrf.mxu0  ;;  %9292 = vmatprep.subr.bf16.mxu0 %v16604_v54  ;;  %v16631_v33 = vld [vmem:[%s24126_s2 + $0xa44] ss:$16 sps:$4 sm:$0xff]   ;;  %v16633_v54 = vld [vmem:[%s24126_s2 + $0xa40] ss:$16 sps:$4 sm:$0xff]  }
 0x513   : > { %v16632_v37 = vld [vmem:[%s24126_s2 + $0x9c4] ss:$16 sps:$4 sm:$0xff]  }
 0x514   : > { %9248 = vmatpush2.bf16.msra.mxu1 %v16605_v23  ;;  %v16634_v23 = vld [vmem:[%s24126_s2 + $0x9c0] ss:$16 sps:$4 sm:$0xff]  }
 0x515   : > { %9293 = vmatpush1.bf16.msra.mxu0 %v16606_v55  ;;  %9249 = vmatprep.subr.bf16.mxu1 %v16607_v20  ;;  %v16635_v55 = vld [vmem:[%s24126_s2 + $0xa24] ss:$16 sps:$4 sm:$0xff]  }
 0x516   : > { %9294 = vmatprep.subr.bf16.mxu0 %v16608_v15  ;;  %v16636_v20 = vld [vmem:[%s24126_s2 + $0x9a4] ss:$16 sps:$4 sm:$0xff]   ;;  %v16637_v15 = vld [vmem:[%s24126_s2 + $0xa20] ss:$16 sps:$4 sm:$0xff]  }
 0x518   : > { %9250 = vmatpush2.bf16.msra.mxu1 %v16609_v61  ;;  %v16639_v61 = vld [vmem:[%s24126_s2 + $0xa04] ss:$16 sps:$4 sm:$0xff]  }
 0x519   : > { %9295 = vmatpush1.bf16.msra.mxu0 %v16610_v47  ;;  %9329 = vmatprep.subr.bf16.mxu1 %v16611_v9  ;;  %v16640_v47 = vld [vmem:[%s24126_s2 + $0x984] ss:$16 sps:$4 sm:$0xff]   ;;  %v16641_v9 = vld [vmem:[%s24126_s2 + $0xa00] ss:$16 sps:$4 sm:$0xff]  }
 0x51a   : > { %9296 = vmatprep.subr.bf16.mxu0 %v16612_v46  ;;  %v16642_v46 = vld [vmem:[%s24126_s2 + $0x980] ss:$16 sps:$4 sm:$0xff]  }
 0x51b   : > { %v9007_v49 = vpop.f32.mrf.mxu1  ;;  %9252 = vmatmul.mubr.bf16.vlgmr.msra.gmra.mxu1 %v18538_v58 }
 0x51c   : > { %v21688_v0 = vadd.f32 %v9007_v49, %v8966_v53  ;;  %9330 = vmatpush1.bf16.msra.mxu1 %v16613_v19  ;;  %9361 = vmatprep.mubr.bf16.mxu1 %v21685_v27  ;;  %v16622_v53 = vld [vmem:[%s24126_s2 + $0x820] ss:$16 sps:$4 sm:$0xff]   ;;  %v16643_v49 = vld [vmem:[%s24126_s2 + $0xbe4] ss:$16 sps:$4 sm:$0xff]  }
 0x51d   : > { %9297 = vmatpush1.bf16.msra.mxu0 %v16614_v48  ;;  %v9009_v13 = vpop.f32.mrf.mxu1  ;;  %9331 = vmatprep.subr.bf16.mxu1 %v16615_v59  ;;  %v16644_v19 = vld [vmem:[%s24126_s2 + $0x964] ss:$16 sps:$4 sm:$0xff]   ;;  %v16645_v48 = vld [vmem:[%s24126_s2 + $0xbe0] ss:$16 sps:$4 sm:$0xff]  }
 0x51e   : > { %v21700_v29 = vadd.f32 %v9009_v13, %v8968_v57  ;;  %9298 = vmatprep.subr.bf16.mxu0 %v16616_v28  ;;  %v16625_v57 = vld [vmem:[%s24126_s2 + $0xa80] ss:$16 sps:$4 sm:$0xff]   ;;  %v16647_v59 = vld [vmem:[%s24126_s2 + $0xbc4] ss:$16 sps:$4 sm:$0xff]  }
 0x51f   : > { %v9011_v41 = vpop.f32.mrf.mxu1  ;;  %v16646_v13 = vld [vmem:[%s24126_s2 + $0x960] ss:$16 sps:$4 sm:$0xff]   ;;  %v16648_v28 = vld [vmem:[%s24126_s2 + $0x944] ss:$16 sps:$4 sm:$0xff]  }
 0x520   : > { %9332 = vmatpush1.bf16.msra.mxu1 %v16617_v42  ;;  %v16649_v41 = vld [vmem:[%s24126_s2 + $0xbc0] ss:$16 sps:$4 sm:$0xff]  }
 0x521   : > { %9299 = vmatpush1.bf16.msra.mxu0 %v16618_v52  ;;  %v9012_v24 = vpop.f32.mrf.mxu1  ;;  %9333 = vmatprep.subr.bf16.mxu1 %v16619_v44  ;;  %v16650_v42 = vld [vmem:[%s24126_s2 + $0x940] ss:$16 sps:$4 sm:$0xff]   ;;  %v16651_v52 = vld [vmem:[%s24126_s2 + $0xba4] ss:$16 sps:$4 sm:$0xff]  }
 0x522   : > { %9300 = vmatprep.subr.bf16.mxu0 %v16620_v25  ;;  %v16652_v24 = vld [vmem:[%s24126_s2 + $0x924] ss:$16 sps:$4 sm:$0xff]   ;;  %v16653_v44 = vld [vmem:[%s24126_s2 + $0xba0] ss:$16 sps:$4 sm:$0xff]  }
 0x523   : > { %v16654_v25 = vld [vmem:[%s24126_s2 + $0x920] ss:$16 sps:$4 sm:$0xff]  }
 0x524   : > { %9334 = vmatpush1.bf16.msra.mxu1 %v16621_v45  ;;  %v16655_v45 = vld [vmem:[%s24126_s2 + $0xb84] ss:$16 sps:$4 sm:$0xff]  }
 0x525   : > { %9301 = vmatpush1.bf16.msra.mxu0 %v16622_v53  ;;  %9335 = vmatprep.subr.bf16.mxu1 %v16623_v51  ;;  %v16113_v53 = vld [vmem:[#allocation2 + $0x30] ss:$-24 sps:$4 sm:$0x1e]   ;;  %v16656_v51 = vld [vmem:[%s24126_s2 + $0x904] ss:$16 sps:$4 sm:$0xff]  }
 0x526   : > { %9302 = vmatprep.subr.bf16.mxu0 %v16624_v43  ;;  %v16657_v43 = vld [vmem:[%s24126_s2 + $0xb80] ss:$16 sps:$4 sm:$0xff]  }
 0x528   : > { %9336 = vmatpush1.bf16.msra.mxu1 %v16625_v57  ;;  %v16658_v57 = vld [vmem:[%s24126_s2 + $0x900] ss:$16 sps:$4 sm:$0xff]  }
 0x529   : > { %9303 = vmatpush1.bf16.msra.mxu0 %v16626_v22  ;;  %9337 = vmatprep.subr.bf16.mxu1 %v16627_v62  ;;  %v16659_v22 = vld [vmem:[%s24126_s2 + $0xb64] ss:$16 sps:$4 sm:$0xff]   ;;  %v21834_v62 = vrot.slane %v16113_v53, 1  ;;  %v16679_v53 = vld [vmem:[%s24126_s2 + $0xacc] ss:$16 sps:$4 sm:$0xff]  }
 0x52a   : > { %9304 = vmatprep.subr.bf16.mxu0 %v16628_v30  ;;  %v16660_v30 = vld [vmem:[%s24126_s2 + $0x8ec] ss:$16 sps:$4 sm:$0xff]  }
 0x52c   : > { %9338 = vmatpush1.bf16.msra.mxu1 %v16629_v12 }
 0x52d   : > { %9305 = vmatpush2.bf16.msra.mxu0 %v16630_v36  ;;  %9339 = vmatprep.subr.bf16.mxu1 %v16631_v33  ;;  %v16661_v36 = vld [vmem:[%s24126_s2 + $0xb60] ss:$16 sps:$4 sm:$0xff]   ;;  %v16662_v33 = vld [vmem:[%s24126_s2 + $0x8e8] ss:$16 sps:$4 sm:$0xff]  }
 0x52e   : > { %9306 = vmatprep.subr.bf16.mxu0 %v16632_v37 }
 0x530   : > { %9340 = vmatpush1.bf16.msra.mxu1 %v16633_v54  ;;  %v16663_v54 = vld [vmem:[%s24126_s2 + $0xb44] ss:$16 sps:$4 sm:$0xff]  }
 0x531   : > { %9307 = vmatpush2.bf16.msra.mxu0 %v16634_v23  ;;  %9341 = vmatprep.subr.bf16.mxu1 %v16635_v55  ;;  %v16664_v23 = vld [vmem:[%s24126_s2 + $0x8cc] ss:$16 sps:$4 sm:$0xff]  }
 0x532   : > { %9308 = vmatprep.subr.bf16.mxu0 %v16636_v20  ;;  %v16665_v20 = vld [vmem:[%s24126_s2 + $0xb40] ss:$16 sps:$4 sm:$0xff]  }
 0x534   : > { %9342 = vmatpush1.bf16.msra.mxu1 %v16637_v15  ;;  %v16666_v15 = vld [vmem:[%s24126_s2 + $0x8c8] ss:$16 sps:$4 sm:$0xff]  }
 0x535   : > { %9309 = vmatpush2.bf16.msra.mxu0 %v16638_v31  ;;  %9343 = vmatprep.subr.bf16.mxu1 %v16639_v61  ;;  %v16667_v31 = vld [vmem:[%s24126_s2 + $0xb24] ss:$16 sps:$4 sm:$0xff]  }
 0x536   : > { %9310 = vmatprep.subr.bf16.mxu0 %v16640_v47  ;;  %v16668_v47 = vld [vmem:[%s24126_s2 + $0x8ac] ss:$16 sps:$4 sm:$0xff]  }
 0x538   : > { %9344 = vmatpush1.bf16.msra.mxu1 %v16641_v9  ;;  %v16669_v9 = vld [vmem:[%s24126_s2 + $0xb20] ss:$16 sps:$4 sm:$0xff]  }
 0x539   : > { %9311 = vmatpush2.bf16.msra.mxu0 %v16642_v46  ;;  %9345 = vmatprep.subr.bf16.mxu1 %v16643_v49  ;;  %v16116_v46 = vld [vmem:[#allocation2] ss:$16 sps:$4 sm:$0x1e]   ;;  %v16670_v49 = vld [vmem:[%s24126_s2 + $0x8a8] ss:$16 sps:$4 sm:$0xff]  }
 0x53a   : > { %9312 = vmatprep.subr.bf16.mxu0 %v16644_v19  ;;  %v16671_v19 = vld [vmem:[%s24126_s2 + $0xb04] ss:$16 sps:$4 sm:$0xff]  }
 0x53c   : > { %9346 = vmatpush2.bf16.msra.mxu1 %v16645_v48  ;;  %v16672_v48 = vld [vmem:[%s24126_s2 + $0x88c] ss:$16 sps:$4 sm:$0xff]  }
 0x53d   : > { %9313 = vmatpush2.bf16.msra.mxu0 %v16646_v13  ;;  %9347 = vmatprep.subr.bf16.mxu1 %v16647_v59  ;;  %v16673_v13 = vld [vmem:[%s24126_s2 + $0xb00] ss:$16 sps:$4 sm:$0xff]   ;;  %v21880_v59 = vrot.slane %v16116_v46, 1  ;;  %v16695_v46 = vld [vmem:[%s24126_s2 + $0xa4c] ss:$16 sps:$4 sm:$0xff]  }
 0x53e   : > { %9314 = vmatprep.subr.bf16.mxu0 %v16648_v28  ;;  %v16674_v28 = vld [vmem:[%s24126_s2 + $0x888] ss:$16 sps:$4 sm:$0xff]  }
 0x540   : > { %9348 = vmatpush2.bf16.msra.mxu1 %v16649_v41  ;;  %v16675_v41 = vld [vmem:[%s24126_s2 + $0xaec] ss:$16 sps:$4 sm:$0xff]  }
 0x541   : > { %9315 = vmatpush2.bf16.msra.mxu0 %v16650_v42  ;;  %9349 = vmatprep.subr.bf16.mxu1 %v16651_v52  ;;  %v16676_v42 = vld [vmem:[%s24126_s2 + $0x86c] ss:$16 sps:$4 sm:$0xff]  }
 0x542   : > { %9316 = vmatprep.subr.bf16.mxu0 %v16652_v24 }
 0x544   : > { %9350 = vmatpush2.bf16.msra.mxu1 %v16653_v44  ;;  %v16677_v44 = vld [vmem:[%s24126_s2 + $0xae8] ss:$16 sps:$4 sm:$0xff]  }
 0x545   : > { %9317 = vmatpush2.bf16.msra.mxu0 %v16654_v25  ;;  %9351 = vmatprep.subr.bf16.mxu1 %v16655_v45  ;;  %v16678_v25 = vld [vmem:[%s24126_s2 + $0x868] ss:$16 sps:$4 sm:$0xff]  }
 0x546   : > { %9318 = vmatprep.subr.bf16.mxu0 %v16656_v51 }
 0x548   : > { %9352 = vmatpush2.bf16.msra.mxu1 %v16657_v43  ;;  %v16680_v43 = vld [vmem:[%s24126_s2 + $0x84c] ss:$16 sps:$4 sm:$0xff]  }
 0x549   : > { %9319 = vmatpush2.bf16.msra.mxu0 %v16658_v57  ;;  %9353 = vmatprep.subr.bf16.mxu1 %v16659_v22  ;;  %v16681_v22 = vld [vmem:[%s24126_s2 + $0xac8] ss:$16 sps:$4 sm:$0xff]  }
 0x54a   : > { %9370 = vmatprep.subr.bf16.mxu0 %v16660_v30  ;;  %v16682_v30 = vld [vmem:[%s24126_s2 + $0x848] ss:$16 sps:$4 sm:$0xff]  }
 0x54c   : > { %v9048_v12 = vpop.f32.mrf.mxu0  ;;  %9321 = vmatmul.mubr.bf16.vlgmr.msra.gmra.mxu0 %v21834_v62  ;;  %9354 = vmatpush2.bf16.msra.mxu1 %v16661_v36  ;;  %v16683_v36 = vld [vmem:[%s24126_s2 + $0xaac] ss:$16 sps:$4 sm:$0xff]  }
 0x54d   : > { %9371 = vmatpush1.bf16.msra.mxu0 %v16662_v33  ;;  %9402 = vmatprep.mubr.bf16.mxu0 %v21633_v60  ;;  %v16684_v33 = vld [vmem:[%s24126_s2 + $0x82c] ss:$16 sps:$4 sm:$0xff]  }
 0x54e   : > { %v9050_v37 = vpop.f32.mrf.mxu0  ;;  %9355 = vmatprep.subr.bf16.mxu1 %v16663_v54  ;;  %9372 = vmatprep.subr.bf16.mxu0 %v16664_v23  ;;  %v16686_v54 = vld [vmem:[%s24126_s2 + $0x828] ss:$16 sps:$4 sm:$0xff]   ;;  %v16687_v23 = vld [vmem:[%s24126_s2 + $0xa8c] ss:$16 sps:$4 sm:$0xff]  }
 0x550   : > { %v9052_v55 = vpop.f32.mrf.mxu0  ;;  %9356 = vmatpush2.bf16.msra.mxu1 %v16665_v20  ;;  %v16689_v20 = vld [vmem:[%s24126_s2 + $0xa88] ss:$16 sps:$4 sm:$0xff]  }
 0x551   : > { %9373 = vmatpush1.bf16.msra.mxu0 %v16666_v15  ;;  %9357 = vmatprep.subr.bf16.mxu1 %v16667_v31  ;;  %v16688_v55 = vld [vmem:[%s24126_s2 + $0x80c] ss:$16 sps:$4 sm:$0xff]   ;;  %v16690_v15 = vld [vmem:[%s24126_s2 + $0x808] ss:$16 sps:$4 sm:$0xff]  }
 0x552   : > { %v9053_v61 = vpop.f32.mrf.mxu0  ;;  %9374 = vmatprep.subr.bf16.mxu0 %v16668_v47  ;;  %v16691_v31 = vld [vmem:[%s24126_s2 + $0xa6c] ss:$16 sps:$4 sm:$0xff]   ;;  %v16693_v47 = vld [vmem:[%s24126_s2 + $0xa68] ss:$16 sps:$4 sm:$0xff]  }
 0x553   : > { %v16692_v61 = vld [vmem:[%s24126_s2 + $0x9ec] ss:$16 sps:$4 sm:$0xff]  }
 0x554   : > { %9358 = vmatpush2.bf16.msra.mxu1 %v16669_v9  ;;  %v16694_v9 = vld [vmem:[%s24126_s2 + $0x9e8] ss:$16 sps:$4 sm:$0xff]  }
 0x555   : > { %9375 = vmatpush1.bf16.msra.mxu0 %v16670_v49  ;;  %9359 = vmatprep.subr.bf16.mxu1 %v16671_v19  ;;  %v16696_v49 = vld [vmem:[%s24126_s2 + $0x9cc] ss:$16 sps:$4 sm:$0xff]   ;;  %v16697_v19 = vld [vmem:[%s24126_s2 + $0xa48] ss:$16 sps:$4 sm:$0xff]  }
 0x556   : > { %9376 = vmatprep.subr.bf16.mxu0 %v16672_v48  ;;  %v16698_v48 = vld [vmem:[%s24126_s2 + $0x9c8] ss:$16 sps:$4 sm:$0xff]  }
 0x558   : > { %9360 = vmatpush2.bf16.msra.mxu1 %v16673_v13  ;;  %v16699_v13 = vld [vmem:[%s24126_s2 + $0xa2c] ss:$16 sps:$4 sm:$0xff]  }
 0x559   : > { %9377 = vmatpush1.bf16.msra.mxu0 %v16674_v28  ;;  %9411 = vmatprep.subr.bf16.mxu1 %v16675_v41  ;;  %v16700_v28 = vld [vmem:[%s24126_s2 + $0x9ac] ss:$16 sps:$4 sm:$0xff]   ;;  %v16701_v41 = vld [vmem:[%s24126_s2 + $0xa28] ss:$16 sps:$4 sm:$0xff]  }
 0x55a   : > { %9378 = vmatprep.subr.bf16.mxu0 %v16676_v42  ;;  %v16702_v42 = vld [vmem:[%s24126_s2 + $0x9a8] ss:$16 sps:$4 sm:$0xff]  }
 0x55b   : > { %v9089_v52 = vpop.f32.mrf.mxu1  ;;  %9362 = vmatmul.mubr.bf16.vlgmr.msra.gmra.mxu1 %v21880_v59 }
 0x55c   : > { %v21892_v24 = vadd.f32 %v9089_v52, %v9048_v12  ;;  %9412 = vmatpush1.bf16.msra.mxu1 %v16677_v44  ;;  %9443 = vmatprep.mubr.bf16.mxu1 %v21685_v27  ;;  %v16703_v52 = vld [vmem:[%s24126_s2 + $0xa0c] ss:$16 sps:$4 sm:$0xff]  }
 0x55d   : > { %9379 = vmatpush1.bf16.msra.mxu0 %v16678_v25  ;;  %v9091_v45 = vpop.f32.mrf.mxu1  ;;  %9413 = vmatprep.subr.bf16.mxu1 %v16679_v53  ;;  %v16704_v44 = vld [vmem:[%s24126_s2 + $0x98c] ss:$16 sps:$4 sm:$0xff]   ;;  %v16705_v25 = vld [vmem:[%s24126_s2 + $0xa08] ss:$16 sps:$4 sm:$0xff]  }
 0x55e   : > { %v21904_v51 = vadd.f32 %v9091_v45, %v9050_v37  ;;  %9380 = vmatprep.subr.bf16.mxu0 %v16680_v43  ;;  %v16685_v37 = vld [vmem:[%s24126_s2 + $0xaa8] ss:$16 sps:$4 sm:$0xff]   ;;  %v16707_v53 = vld [vmem:[%s24126_s2 + $0xbec] ss:$16 sps:$4 sm:$0xff]  }
 0x55f   : > { %v9093_v57 = vpop.f32.mrf.mxu1  ;;  %v16706_v45 = vld [vmem:[%s24126_s2 + $0x988] ss:$16 sps:$4 sm:$0xff]   ;;  %v16708_v43 = vld [vmem:[%s24126_s2 + $0x96c] ss:$16 sps:$4 sm:$0xff]  }
 0x560   : > { %9414 = vmatpush1.bf16.msra.mxu1 %v16681_v22  ;;  %v16709_v57 = vld [vmem:[%s24126_s2 + $0xbe8] ss:$16 sps:$4 sm:$0xff]  }
 0x561   : > { %9381 = vmatpush1.bf16.msra.mxu0 %v16682_v30  ;;  %v9094_v12 = vpop.f32.mrf.mxu1  ;;  %9415 = vmatprep.subr.bf16.mxu1 %v16683_v36  ;;  %v16710_v22 = vld [vmem:[%s24126_s2 + $0x968] ss:$16 sps:$4 sm:$0xff]   ;;  %v16711_v30 = vld [vmem:[%s24126_s2 + $0xbcc] ss:$16 sps:$4 sm:$0xff]  }
 0x562   : > { %9382 = vmatprep.subr.bf16.mxu0 %v16684_v33  ;;  %v16712_v12 = vld [vmem:[%s24126_s2 + $0x94c] ss:$16 sps:$4 sm:$0xff]   ;;  %v16713_v36 = vld [vmem:[%s24126_s2 + $0xbc8] ss:$16 sps:$4 sm:$0xff]  }
 0x563   : > { %v16714_v33 = vld [vmem:[%s24126_s2 + $0x948] ss:$16 sps:$4 sm:$0xff]  }
 0x564   : > { %9416 = vmatpush1.bf16.msra.mxu1 %v16685_v37  ;;  %v16715_v37 = vld [vmem:[%s24126_s2 + $0xbac] ss:$16 sps:$4 sm:$0xff]  }
 0x565   : > { %9383 = vmatpush1.bf16.msra.mxu0 %v16686_v54  ;;  %9417 = vmatprep.subr.bf16.mxu1 %v16687_v23  ;;  %v16716_v54 = vld [vmem:[%s24126_s2 + $0x92c] ss:$16 sps:$4 sm:$0xff]   ;;  %v16717_v23 = vld [vmem:[%s24126_s2 + $0xba8] ss:$16 sps:$4 sm:$0xff]  }
 0x566   : > { %9384 = vmatprep.subr.bf16.mxu0 %v16688_v55  ;;  %v16718_v55 = vld [vmem:[%s24126_s2 + $0x928] ss:$16 sps:$4 sm:$0xff]  }
 0x568   : > { %9418 = vmatpush1.bf16.msra.mxu1 %v16689_v20  ;;  %v16719_v20 = vld [vmem:[%s24126_s2 + $0xb8c] ss:$16 sps:$4 sm:$0xff]  }
 0x569   : > { %9385 = vmatpush1.bf16.msra.mxu0 %v16690_v15  ;;  %9419 = vmatprep.subr.bf16.mxu1 %v16691_v31  ;;  %v16720_v15 = vld [vmem:[%s24126_s2 + $0x90c] ss:$16 sps:$4 sm:$0xff]   ;;  %v16721_v31 = vld [vmem:[%s24126_s2 + $0xb88] ss:$16 sps:$4 sm:$0xff]  }
 0x56a   : > { %9386 = vmatprep.subr.bf16.mxu0 %v16692_v61  ;;  %v16722_v61 = vld [vmem:[%s24126_s2 + $0x908] ss:$16 sps:$4 sm:$0xff]  }
 0x56c   : > { %9420 = vmatpush1.bf16.msra.mxu1 %v16693_v47  ;;  %v16723_v47 = vld [vmem:[%s24126_s2 + $0xb6c] ss:$16 sps:$4 sm:$0xff]  }
 0x56d   : > { %9387 = vmatpush2.bf16.msra.mxu0 %v16694_v9  ;;  %9421 = vmatprep.subr.bf16.mxu1 %v16695_v46  ;;  %v16724_v9 = vld [vmem:[%s24126_s2 + $0x10e4] ss:$16 sps:$4 sm:$0xff]  }
 0x56e   : > { %9388 = vmatprep.subr.bf16.mxu0 %v16696_v49  ;;  %v16725_v49 = vld [vmem:[%s24126_s2 + $0xb68] ss:$16 sps:$4 sm:$0xff]  }
 0x570   : > { %9422 = vmatpush1.bf16.msra.mxu1 %v16697_v19 }
 0x571   : > { %9389 = vmatpush2.bf16.msra.mxu0 %v16698_v48  ;;  %9423 = vmatprep.subr.bf16.mxu1 %v16699_v13  ;;  %v16726_v48 = vld [vmem:[%s24126_s2 + $0x10e0] ss:$16 sps:$4 sm:$0xff]  }
 0x572   : > { %9390 = vmatprep.subr.bf16.mxu0 %v16700_v28  ;;  %v16727_v28 = vld [vmem:[%s24126_s2 + $0xb4c] ss:$16 sps:$4 sm:$0xff]  }
 0x574   : > { %9424 = vmatpush1.bf16.msra.mxu1 %v16701_v41  ;;  %v16728_v41 = vld [vmem:[%s24126_s2 + $0x10c4] ss:$16 sps:$4 sm:$0xff]  }
 0x575   : > { %9391 = vmatpush2.bf16.msra.mxu0 %v16702_v42  ;;  %9425 = vmatprep.subr.bf16.mxu1 %v16703_v52  ;;  %v16729_v52 = vld [vmem:[%s24126_s2 + $0xb48] ss:$16 sps:$4 sm:$0xff]  }
 0x576   : > { %9392 = vmatprep.subr.bf16.mxu0 %v16704_v44  ;;  %v16730_v44 = vld [vmem:[%s24126_s2 + $0x10c0] ss:$16 sps:$4 sm:$0xff]  }
 0x578   : > { %9426 = vmatpush1.bf16.msra.mxu1 %v16705_v25  ;;  %v16731_v25 = vld [vmem:[%s24126_s2 + $0xb2c] ss:$16 sps:$4 sm:$0xff]  }
 0x579   : > { %9393 = vmatpush2.bf16.msra.mxu0 %v16706_v45  ;;  %9427 = vmatprep.subr.bf16.mxu1 %v16707_v53  ;;  %v16733_v53 = vld [vmem:[%s24126_s2 + $0xb28] ss:$16 sps:$4 sm:$0xff]  }
 0x57a   : > { %9394 = vmatprep.subr.bf16.mxu0 %v16708_v43  ;;  %v16734_v43 = vld [vmem:[%s24126_s2 + $0x10a0] ss:$16 sps:$4 sm:$0xff]  }
 0x57c   : > { %9428 = vmatpush2.bf16.msra.mxu1 %v16709_v57  ;;  %v16735_v57 = vld [vmem:[%s24126_s2 + $0xb0c] ss:$16 sps:$4 sm:$0xff]  }
 0x57d   : > { %9395 = vmatpush2.bf16.msra.mxu0 %v16710_v22  ;;  %9429 = vmatprep.subr.bf16.mxu1 %v16711_v30  ;;  %v16736_v22 = vld [vmem:[%s24126_s2 + $0x1084] ss:$16 sps:$4 sm:$0xff]   ;;  %v16737_v30 = vld [vmem:[%s24126_s2 + $0xb08] ss:$16 sps:$4 sm:$0xff]  }
 0x57e   : > { %9396 = vmatprep.subr.bf16.mxu0 %v16712_v12  ;;  %v16738_v12 = vld [vmem:[%s24126_s2 + $0x1080] ss:$16 sps:$4 sm:$0xff]  }
 0x580   : > { %9430 = vmatpush2.bf16.msra.mxu1 %v16713_v36  ;;  %v16739_v36 = vld [vmem:[%s24126_s2 + $0x12e4] ss:$16 sps:$4 sm:$0xff]  }
 0x581   : > { %9397 = vmatpush2.bf16.msra.mxu0 %v16714_v33  ;;  %9431 = vmatprep.subr.bf16.mxu1 %v16715_v37  ;;  %v16740_v33 = vld [vmem:[%s24126_s2 + $0x1064] ss:$16 sps:$4 sm:$0xff]  }
 0x582   : > { %9398 = vmatprep.subr.bf16.mxu0 %v16716_v54 }
 0x584   : > { %9432 = vmatpush2.bf16.msra.mxu1 %v16717_v23  ;;  %v16741_v23 = vld [vmem:[%s24126_s2 + $0x12e0] ss:$16 sps:$4 sm:$0xff]  }
 0x585   : > { %9399 = vmatpush2.bf16.msra.mxu0 %v16718_v55  ;;  %9433 = vmatprep.subr.bf16.mxu1 %v16719_v20  ;;  %v16742_v55 = vld [vmem:[%s24126_s2 + $0x1060] ss:$16 sps:$4 sm:$0xff]  }
 0x586   : > { %9400 = vmatprep.subr.bf16.mxu0 %v16720_v15  ;;  %v16743_v15 = vld [vmem:[%s24126_s2 + $0x12c4] ss:$16 sps:$4 sm:$0xff]  }
 0x588   : > { %9434 = vmatpush2.bf16.msra.mxu1 %v16721_v31 }
 0x589   : > { %9401 = vmatpush2.bf16.msra.mxu0 %v16722_v61  ;;  %9435 = vmatprep.subr.bf16.mxu1 %v16723_v47  ;;  %v16744_v61 = vld [vmem:[%s24126_s2 + $0x1044] ss:$16 sps:$4 sm:$0xff]  }
 0x58a   : > { %9460 = vmatprep.subr.bf16.mxu0 %v16724_v9  ;;  %v16745_v9 = vld [vmem:[%s24126_s2 + $0x12c0] ss:$16 sps:$4 sm:$0xff]  }
 0x58c   : > { %v9130_v46 = vpop.f32.mrf.mxu0  ;;  %9403 = vmatmul.mubr.bf16.vlgmr.msra.gmra.mxu0 %v21834_v62  ;;  %9436 = vmatpush2.bf16.msra.mxu1 %v16725_v49 }
 0x58d   : > { %v9131_v19 = vadd.f32 %v9130_v46, %v21688_v0  ;;  %9461 = vmatpush1.bf16.msra.mxu0 %v16726_v48  ;;  %9492 = vmatprep.mubr.bf16.mxu0 %v19199_v10  ;;  %v16746_v46 = vld [vmem:[%s24126_s2 + $0x1040] ss:$16 sps:$4 sm:$0xff]   ;;  %v16748_v48 = vld [vmem:[%s24126_s2 + $0x1024] ss:$16 sps:$4 sm:$0xff]  }
 0x58e   : > { %v9132_v13 = vpop.f32.mrf.mxu0  ;;  %9437 = vmatprep.subr.bf16.mxu1 %v16727_v28  ;;  %9462 = vmatprep.subr.bf16.mxu0 %v16728_v41  ;;  %v16750_v28 = vld [vmem:[%s24126_s2 + $0x1020] ss:$16 sps:$4 sm:$0xff]   ;;  %v16751_v41 = vld [vmem:[%s24126_s2 + $0x1284] ss:$16 sps:$4 sm:$0xff]  }
 0x58f   : > { %v9133_v0 = vadd.f32 %v9132_v13, %v21700_v29  ;;  %v16732_v29 = vld [vmem:[%s24126_s2 + $0x10a4] ss:$16 sps:$4 sm:$0xff]   ;;  %v16749_v13 = vld [vmem:[%s24126_s2 + $0x12a0] ss:$16 sps:$4 sm:$0xff]  }
 0x590   : > { %v9134_v42 = vpop.f32.mrf.mxu0  ;;  %9438 = vmatpush2.bf16.msra.mxu1 %v16729_v52  ;;  %v16754_v52 = vld [vmem:[%s24126_s2 + $0x1000] ss:$16 sps:$4 sm:$0xff]  }
 0x591   : > { %9463 = vmatpush1.bf16.msra.mxu0 %v16730_v44  ;;  %9439 = vmatprep.subr.bf16.mxu1 %v16731_v25  ;;  %v16753_v42 = vld [vmem:[%s24126_s2 + $0x1280] ss:$16 sps:$4 sm:$0xff]   ;;  %v16755_v44 = vld [vmem:[%s24126_s2 + $0x1264] ss:$16 sps:$4 sm:$0xff]  }
 0x592   : > { %v9135_v45 = vpop.f32.mrf.mxu0  ;;  %9464 = vmatprep.subr.bf16.mxu0 %v16732_v29  ;;  %v16756_v25 = vld [vmem:[%s24126_s2 + $0x11e4] ss:$16 sps:$4 sm:$0xff]   ;;  %v16758_v29 = vld [vmem:[%s24126_s2 + $0x11e0] ss:$16 sps:$4 sm:$0xff]  }
 0x593   : > { %v16757_v45 = vld [vmem:[%s24126_s2 + $0x1260] ss:$16 sps:$4 sm:$0xff]  }
 0x594   : > { %9440 = vmatpush2.bf16.msra.mxu1 %v16733_v53  ;;  %v16759_v53 = vld [vmem:[%s24126_s2 + $0x1244] ss:$16 sps:$4 sm:$0xff]  }
 0x595   : > { %9465 = vmatpush1.bf16.msra.mxu0 %v16734_v43  ;;  %9441 = vmatprep.subr.bf16.mxu1 %v16735_v57  ;;  %v16760_v43 = vld [vmem:[%s24126_s2 + $0x11c4] ss:$16 sps:$4 sm:$0xff]   ;;  %v16761_v57 = vld [vmem:[%s24126_s2 + $0x1240] ss:$16 sps:$4 sm:$0xff]  }
 0x596   : > { %9466 = vmatprep.subr.bf16.mxu0 %v16736_v22  ;;  %v16762_v22 = vld [vmem:[%s24126_s2 + $0x11c0] ss:$16 sps:$4 sm:$0xff]  }
 0x598   : > { %9442 = vmatpush2.bf16.msra.mxu1 %v16737_v30  ;;  %v16763_v30 = vld [vmem:[%s24126_s2 + $0x1224] ss:$16 sps:$4 sm:$0xff]  }
 0x599   : > { %9467 = vmatpush1.bf16.msra.mxu0 %v16738_v12  ;;  %9501 = vmatprep.subr.bf16.mxu1 %v16739_v36  ;;  %v16764_v12 = vld [vmem:[%s24126_s2 + $0x11a4] ss:$16 sps:$4 sm:$0xff]   ;;  %v16765_v36 = vld [vmem:[%s24126_s2 + $0x1220] ss:$16 sps:$4 sm:$0xff]  }
 0x59a   : > { %9468 = vmatprep.subr.bf16.mxu0 %v16740_v33  ;;  %v16766_v33 = vld [vmem:[%s24126_s2 + $0x11a0] ss:$16 sps:$4 sm:$0xff]  }
 0x59b   : > { %v9171_v37 = vpop.f32.mrf.mxu1  ;;  %9444 = vmatmul.mubr.bf16.vlgmr.msra.gmra.mxu1 %v21880_v59 }
 0x59c   : > { %v22094_v54 = vadd.f32 %v9171_v37, %v9131_v19  ;;  %9502 = vmatpush1.bf16.msra.mxu1 %v16741_v23  ;;  %9533 = vmatprep.mubr.bf16.mxu1 %v19253_v34  ;;  %v16747_v19 = vld [vmem:[%s24126_s2 + $0x12a4] ss:$16 sps:$4 sm:$0xff]  }
 0x59d   : > { %9469 = vmatpush1.bf16.msra.mxu0 %v16742_v55  ;;  %v9173_v20 = vpop.f32.mrf.mxu1  ;;  %9503 = vmatprep.subr.bf16.mxu1 %v16743_v15  ;;  %v16767_v37 = vld [vmem:[%s24126_s2 + $0x1204] ss:$16 sps:$4 sm:$0xff]   ;;  %v16769_v55 = vld [vmem:[%s24126_s2 + $0x1200] ss:$16 sps:$4 sm:$0xff]  }
 0x59e   : > { %v22106_v31 = vadd.f32 %v9173_v20, %v9133_v0  ;;  %9470 = vmatprep.subr.bf16.mxu0 %v16744_v61  ;;  %v16752_v0 = vld [vmem:[%s24126_s2 + $0x1004] ss:$16 sps:$4 sm:$0xff]   ;;  %v16770_v20 = vld [vmem:[%s24126_s2 + $0x1180] ss:$16 sps:$4 sm:$0xff]  }
 0x59f   : > { %v9175_v47 = vpop.f32.mrf.mxu1  ;;  %v16768_v23 = vld [vmem:[%s24126_s2 + $0x1184] ss:$16 sps:$4 sm:$0xff]  }
 0x5a0   : > { %9504 = vmatpush1.bf16.msra.mxu1 %v16745_v9  ;;  %v16771_v15 = vld [vmem:[%s24126_s2 + $0x13e4] ss:$16 sps:$4 sm:$0xff]   ;;  %v16773_v47 = vld [vmem:[%s24126_s2 + $0x13e0] ss:$16 sps:$4 sm:$0xff]  }
 0x5a1   : > { %9471 = vmatpush1.bf16.msra.mxu0 %v16746_v46  ;;  %v9176_v49 = vpop.f32.mrf.mxu1  ;;  %9505 = vmatprep.subr.bf16.mxu1 %v16747_v19  ;;  %v16772_v61 = vld [vmem:[%s24126_s2 + $0x1164] ss:$16 sps:$4 sm:$0xff]   ;;  %v16774_v9 = vld [vmem:[%s24126_s2 + $0x1160] ss:$16 sps:$4 sm:$0xff]  }
 0x5a2   : > { %9472 = vmatprep.subr.bf16.mxu0 %v16748_v48  ;;  %v16775_v46 = vld [vmem:[%s24126_s2 + $0x13c4] ss:$16 sps:$4 sm:$0xff]   ;;  %v16777_v19 = vld [vmem:[%s24126_s2 + $0x13c0] ss:$16 sps:$4 sm:$0xff]  }
 0x5a3   : > { %v16776_v49 = vld [vmem:[%s24126_s2 + $0x1144] ss:$16 sps:$4 sm:$0xff]   ;;  %v16778_v48 = vld [vmem:[%s24126_s2 + $0x1140] ss:$16 sps:$4 sm:$0xff]  }
 0x5a4   : > { %9506 = vmatpush1.bf16.msra.mxu1 %v16749_v13  ;;  %v16779_v13 = vld [vmem:[%s24126_s2 + $0x13a4] ss:$16 sps:$4 sm:$0xff]  }
 0x5a5   : > { %9473 = vmatpush1.bf16.msra.mxu0 %v16750_v28  ;;  %9507 = vmatprep.subr.bf16.mxu1 %v16751_v41  ;;  %v16780_v28 = vld [vmem:[%s24126_s2 + $0x1124] ss:$16 sps:$4 sm:$0xff]   ;;  %v16781_v41 = vld [vmem:[%s24126_s2 + $0x13a0] ss:$16 sps:$4 sm:$0xff]  }
 0x5a6   : > { %9474 = vmatprep.subr.bf16.mxu0 %v16752_v0  ;;  %v16782_v0 = vld [vmem:[%s24126_s2 + $0x1120] ss:$16 sps:$4 sm:$0xff]  }
 0x5a8   : > { %9508 = vmatpush1.bf16.msra.mxu1 %v16753_v42  ;;  %v16783_v42 = vld [vmem:[%s24126_s2 + $0x1384] ss:$16 sps:$4 sm:$0xff]  }
 0x5a9   : > { %9475 = vmatpush1.bf16.msra.mxu0 %v16754_v52  ;;  %9509 = vmatprep.subr.bf16.mxu1 %v16755_v44  ;;  %v16784_v52 = vld [vmem:[%s24126_s2 + $0x1104] ss:$16 sps:$4 sm:$0xff]   ;;  %v16785_v44 = vld [vmem:[%s24126_s2 + $0x1380] ss:$16 sps:$4 sm:$0xff]  }
 0x5aa   : > { %9476 = vmatprep.subr.bf16.mxu0 %v16756_v25  ;;  %v16786_v25 = vld [vmem:[%s24126_s2 + $0x1100] ss:$16 sps:$4 sm:$0xff]  }
 0x5ac   : > { %9510 = vmatpush1.bf16.msra.mxu1 %v16757_v45  ;;  %v16787_v45 = vld [vmem:[%s24126_s2 + $0x1364] ss:$16 sps:$4 sm:$0xff]  }
 0x5ad   : > { %9477 = vmatpush2.bf16.msra.mxu0 %v16758_v29  ;;  %9511 = vmatprep.subr.bf16.mxu1 %v16759_v53  ;;  %v16788_v29 = vld [vmem:[%s24126_s2 + $0x10ec] ss:$16 sps:$4 sm:$0xff]  }
 0x5ae   : > { %9478 = vmatprep.subr.bf16.mxu0 %v16760_v43  ;;  %v16789_v43 = vld [vmem:[%s24126_s2 + $0x1360] ss:$16 sps:$4 sm:$0xff]  }
 0x5b0   : > { %9512 = vmatpush1.bf16.msra.mxu1 %v16761_v57 }
 0x5b1   : > { %9479 = vmatpush2.bf16.msra.mxu0 %v16762_v22  ;;  %9513 = vmatprep.subr.bf16.mxu1 %v16763_v30  ;;  %v16790_v22 = vld [vmem:[%s24126_s2 + $0x10e8] ss:$16 sps:$4 sm:$0xff]  }
 0x5b2   : > { %9480 = vmatprep.subr.bf16.mxu0 %v16764_v12  ;;  %v16791_v12 = vld [vmem:[%s24126_s2 + $0x1344] ss:$16 sps:$4 sm:$0xff]  }
 0x5b4   : > { %9514 = vmatpush1.bf16.msra.mxu1 %v16765_v36  ;;  %v16792_v36 = vld [vmem:[%s24126_s2 + $0x10cc] ss:$16 sps:$4 sm:$0xff]  }
 0x5b5   : > { %9481 = vmatpush2.bf16.msra.mxu0 %v16766_v33  ;;  %9515 = vmatprep.subr.bf16.mxu1 %v16767_v37  ;;  %v16793_v37 = vld [vmem:[%s24126_s2 + $0x1340] ss:$16 sps:$4 sm:$0xff]  }
 0x5b6   : > { %9482 = vmatprep.subr.bf16.mxu0 %v16768_v23  ;;  %v16795_v23 = vld [vmem:[%s24126_s2 + $0x1324] ss:$16 sps:$4 sm:$0xff]  }
 0x5b8   : > { %9516 = vmatpush1.bf16.msra.mxu1 %v16769_v55 }
 0x5b9   : > { %9483 = vmatpush2.bf16.msra.mxu0 %v16770_v20  ;;  %9517 = vmatprep.subr.bf16.mxu1 %v16771_v15  ;;  %v16797_v20 = vld [vmem:[%s24126_s2 + $0x1320] ss:$16 sps:$4 sm:$0xff]   ;;  %v16798_v15 = vld [vmem:[%s24126_s2 + $0x10a8] ss:$16 sps:$4 sm:$0xff]  }
 0x5ba   : > { %9484 = vmatprep.subr.bf16.mxu0 %v16772_v61  ;;  %v16799_v61 = vld [vmem:[%s24126_s2 + $0x1304] ss:$16 sps:$4 sm:$0xff]  }
 0x5bc   : > { %9518 = vmatpush2.bf16.msra.mxu1 %v16773_v47  ;;  %v16800_v47 = vld [vmem:[%s24126_s2 + $0x108c] ss:$16 sps:$4 sm:$0xff]  }
 0x5bd   : > { %9485 = vmatpush2.bf16.msra.mxu0 %v16774_v9  ;;  %9519 = vmatprep.subr.bf16.mxu1 %v16775_v46  ;;  %v16801_v9 = vld [vmem:[%s24126_s2 + $0x1300] ss:$16 sps:$4 sm:$0xff]   ;;  %v16802_v46 = vld [vmem:[%s24126_s2 + $0x1088] ss:$16 sps:$4 sm:$0xff]  }
 0x5be   : > { %9486 = vmatprep.subr.bf16.mxu0 %v16776_v49  ;;  %v16803_v49 = vld [vmem:[%s24126_s2 + $0x12ec] ss:$16 sps:$4 sm:$0xff]  }
 0x5c0   : > { %9520 = vmatpush2.bf16.msra.mxu1 %v16777_v19  ;;  %v16804_v19 = vld [vmem:[%s24126_s2 + $0x106c] ss:$16 sps:$4 sm:$0xff]  }
 0x5c1   : > { %9487 = vmatpush2.bf16.msra.mxu0 %v16778_v48  ;;  %9521 = vmatprep.subr.bf16.mxu1 %v16779_v13 }
 0x5c2   : > { %9488 = vmatprep.subr.bf16.mxu0 %v16780_v28  ;;  %v16805_v28 = vld [vmem:[%s24126_s2 + $0x12e8] ss:$16 sps:$4 sm:$0xff]  }
 0x5c4   : > { %9522 = vmatpush2.bf16.msra.mxu1 %v16781_v41  ;;  %v16806_v41 = vld [vmem:[%s24126_s2 + $0x1068] ss:$16 sps:$4 sm:$0xff]  }
 0x5c5   : > { %9489 = vmatpush2.bf16.msra.mxu0 %v16782_v0  ;;  %9523 = vmatprep.subr.bf16.mxu1 %v16783_v42  ;;  %v16807_v42 = vld [vmem:[%s24126_s2 + $0x12cc] ss:$16 sps:$4 sm:$0xff]  }
 0x5c6   : > { %9490 = vmatprep.subr.bf16.mxu0 %v16784_v52 }
 0x5c8   : > { %9524 = vmatpush2.bf16.msra.mxu1 %v16785_v44  ;;  %v16808_v44 = vld [vmem:[%s24126_s2 + $0x104c] ss:$16 sps:$4 sm:$0xff]  }
 0x5c9   : > { %9491 = vmatpush2.bf16.msra.mxu0 %v16786_v25  ;;  %9525 = vmatprep.subr.bf16.mxu1 %v16787_v45  ;;  %v16810_v45 = vld [vmem:[%s24126_s2 + $0x1048] ss:$16 sps:$4 sm:$0xff]  }
 0x5ca   : > { %9542 = vmatprep.subr.bf16.mxu0 %v16788_v29 }
 0x5cc   : > { %v9212_v53 = vpop.f32.mrf.mxu0  ;;  %9493 = vmatmul.mubr.bf16.vlgmr.msra.gmra.mxu0 %v19410_v11  ;;  %9526 = vmatpush2.bf16.msra.mxu1 %v16789_v43  ;;  %v16812_v43 = vld [vmem:[%s24126_s2 + $0x102c] ss:$16 sps:$4 sm:$0xff]  }
 0x5cd   : > { %v9213_v57 = vadd.f32 %v9212_v53, %v21892_v24  ;;  %9543 = vmatpush1.bf16.msra.mxu0 %v16790_v22  ;;  %9574 = vmatprep.mubr.bf16.mxu0 %v19199_v10  ;;  %v16794_v10 = vld [vmem:[%s24126_s2 + $0x10c8] ss:$16 sps:$4 sm:$0xff]   ;;  %v16811_v53 = vld [vmem:[%s24126_s2 + $0x12ac] ss:$16 sps:$4 sm:$0xff]  }
 0x5ce   : > { %v9214_v30 = vpop.f32.mrf.mxu0  ;;  %9527 = vmatprep.subr.bf16.mxu1 %v16791_v12  ;;  %9544 = vmatprep.subr.bf16.mxu0 %v16792_v36  ;;  %v16814_v22 = vld [vmem:[%s24126_s2 + $0x1028] ss:$16 sps:$4 sm:$0xff]   ;;  %v16816_v12 = vld [vmem:[%s24126_s2 + $0x100c] ss:$16 sps:$4 sm:$0xff]  }
 0x5cf   : > { %v9215_v24 = vadd.f32 %v9214_v30, %v21904_v51  ;;  %v16796_v51 = vld [vmem:[%s24126_s2 + $0x10ac] ss:$16 sps:$4 sm:$0xff]   ;;  %v16817_v36 = vld [vmem:[%s24126_s2 + $0x1288] ss:$16 sps:$4 sm:$0xff]  }
 0x5d0   : > { %v9216_v33 = vpop.f32.mrf.mxu0  ;;  %9528 = vmatpush2.bf16.msra.mxu1 %v16793_v37  ;;  %v16815_v30 = vld [vmem:[%s24126_s2 + $0x128c] ss:$16 sps:$4 sm:$0xff]  }
 0x5d1   : > { %9545 = vmatpush1.bf16.msra.mxu0 %v16794_v10  ;;  %9529 = vmatprep.subr.bf16.mxu1 %v16795_v23  ;;  %v16819_v33 = vld [vmem:[%s24126_s2 + $0x126c] ss:$16 sps:$4 sm:$0xff]   ;;  %v16821_v10 = vld [vmem:[%s24126_s2 + $0x1268] ss:$16 sps:$4 sm:$0xff]  }
 0x5d2   : > { %v9217_v55 = vpop.f32.mrf.mxu0  ;;  %9546 = vmatprep.subr.bf16.mxu0 %v16796_v51  ;;  %v16820_v37 = vld [vmem:[%s24126_s2 + $0x11ec] ss:$16 sps:$4 sm:$0xff]   ;;  %v16822_v23 = vld [vmem:[%s24126_s2 + $0x11e8] ss:$16 sps:$4 sm:$0xff]  }
 0x5d3   : > { %v16823_v55 = vld [vmem:[%s24126_s2 + $0x124c] ss:$16 sps:$4 sm:$0xff]  }
 0x5d4   : > { %9530 = vmatpush2.bf16.msra.mxu1 %v16797_v20  ;;  %v16824_v51 = vld [vmem:[%s24126_s2 + $0x11cc] ss:$16 sps:$4 sm:$0xff]   ;;  %v16825_v20 = vld [vmem:[%s24126_s2 + $0x1248] ss:$16 sps:$4 sm:$0xff]  }
 0x5d5   : > { %9547 = vmatpush1.bf16.msra.mxu0 %v16798_v15  ;;  %9531 = vmatprep.subr.bf16.mxu1 %v16799_v61  ;;  %v16826_v15 = vld [vmem:[%s24126_s2 + $0x11c8] ss:$16 sps:$4 sm:$0xff]   ;;  %v16827_v61 = vld [vmem:[%s24126_s2 + $0x122c] ss:$16 sps:$4 sm:$0xff]  }
 0x5d6   : > { %9548 = vmatprep.subr.bf16.mxu0 %v16800_v47  ;;  %v16828_v47 = vld [vmem:[%s24126_s2 + $0x11ac] ss:$16 sps:$4 sm:$0xff]  }
 0x5d8   : > { %9532 = vmatpush2.bf16.msra.mxu1 %v16801_v9  ;;  %v16829_v9 = vld [vmem:[%s24126_s2 + $0x1228] ss:$16 sps:$4 sm:$0xff]  }
 0x5d9   : > { %9549 = vmatpush1.bf16.msra.mxu0 %v16802_v46  ;;  %9583 = vmatprep.subr.bf16.mxu1 %v16803_v49  ;;  %v16830_v46 = vld [vmem:[%s24126_s2 + $0x11a8] ss:$16 sps:$4 sm:$0xff]   ;;  %v16831_v49 = vld [vmem:[%s24126_s2 + $0x120c] ss:$16 sps:$4 sm:$0xff]  }
 0x5da   : > { %9550 = vmatprep.subr.bf16.mxu0 %v16804_v19  ;;  %v16832_v19 = vld [vmem:[%s24126_s2 + $0x118c] ss:$16 sps:$4 sm:$0xff]  }
 0x5db   : > { %v9253_v48 = vpop.f32.mrf.mxu1  ;;  %9534 = vmatmul.mubr.bf16.vlgmr.msra.gmra.mxu1 %v19465_v14 }
 0x5dc   : > { %v22296_v13 = vadd.f32 %v9253_v48, %v9213_v57  ;;  %9584 = vmatpush1.bf16.msra.mxu1 %v16805_v28  ;;  %9615 = vmatprep.mubr.bf16.mxu1 %v19253_v34  ;;  %v16809_v34 = vld [vmem:[%s24126_s2 + $0x12c8] ss:$16 sps:$4 sm:$0xff]  }
 0x5dd   : > { %9551 = vmatpush1.bf16.msra.mxu0 %v16806_v41  ;;  %v9255_v0 = vpop.f32.mrf.mxu1  ;;  %9585 = vmatprep.subr.bf16.mxu1 %v16807_v42  ;;  %v16813_v57 = vld [vmem:[%s24126_s2 + $0x12a8] ss:$16 sps:$4 sm:$0xff]   ;;  %v16835_v41 = vld [vmem:[%s24126_s2 + $0x13ec] ss:$16 sps:$4 sm:$0xff]  }
 0x5de   : > { %v22308_v52 = vadd.f32 %v9255_v0, %v9215_v24  ;;  %9552 = vmatprep.subr.bf16.mxu0 %v16808_v44  ;;  %v16818_v24 = vld [vmem:[%s24126_s2 + $0x1008] ss:$16 sps:$4 sm:$0xff]   ;;  %v16836_v0 = vld [vmem:[%s24126_s2 + $0x116c] ss:$16 sps:$4 sm:$0xff]  }
 0x5df   : > { %v9257_v25 = vpop.f32.mrf.mxu1  ;;  %v16833_v48 = vld [vmem:[%s24126_s2 + $0x1208] ss:$16 sps:$4 sm:$0xff]  }
 0x5e0   : > { %9586 = vmatpush1.bf16.msra.mxu1 %v16809_v34  ;;  %v16834_v28 = vld [vmem:[%s24126_s2 + $0x1188] ss:$16 sps:$4 sm:$0xff]   ;;  %v16839_v25 = vld [vmem:[%s24126_s2 + $0x13cc] ss:$16 sps:$4 sm:$0xff]  }
 0x5e1   : > { %9553 = vmatpush1.bf16.msra.mxu0 %v16810_v45  ;;  %v9258_v29 = vpop.f32.mrf.mxu1  ;;  %9587 = vmatprep.subr.bf16.mxu1 %v16811_v53  ;;  %v16837_v42 = vld [vmem:[%s24126_s2 + $0x13e8] ss:$16 sps:$4 sm:$0xff]   ;;  %v16840_v34 = vld [vmem:[%s24126_s2 + $0x114c] ss:$16 sps:$4 sm:$0xff]  }
 0x5e2   : > { %9554 = vmatprep.subr.bf16.mxu0 %v16812_v43  ;;  %v16838_v44 = vld [vmem:[%s24126_s2 + $0x1168] ss:$16 sps:$4 sm:$0xff]   ;;  %v16843_v53 = vld [vmem:[%s24126_s2 + $0x13ac] ss:$16 sps:$4 sm:$0xff]  }
 0x5e3   : > { %v16841_v45 = vld [vmem:[%s24126_s2 + $0x13c8] ss:$16 sps:$4 sm:$0xff]   ;;  %v16844_v43 = vld [vmem:[%s24126_s2 + $0x112c] ss:$16 sps:$4 sm:$0xff]  }
 0x5e4   : > { %9588 = vmatpush1.bf16.msra.mxu1 %v16813_v57  ;;  %v16842_v29 = vld [vmem:[%s24126_s2 + $0x1148] ss:$16 sps:$4 sm:$0xff]  }
 0x5e5   : > { %9555 = vmatpush1.bf16.msra.mxu0 %v16814_v22  ;;  %9589 = vmatprep.subr.bf16.mxu1 %v16815_v30  ;;  %v16845_v57 = vld [vmem:[%s24126_s2 + $0x13a8] ss:$16 sps:$4 sm:$0xff]   ;;  %v16847_v30 = vld [vmem:[%s24126_s2 + $0x138c] ss:$16 sps:$4 sm:$0xff]  }
 0x5e6   : > { %9556 = vmatprep.subr.bf16.mxu0 %v16816_v12  ;;  %v16846_v22 = vld [vmem:[%s24126_s2 + $0x1128] ss:$16 sps:$4 sm:$0xff]   ;;  %v16848_v12 = vld [vmem:[%s24126_s2 + $0x110c] ss:$16 sps:$4 sm:$0xff]  }
 0x5e8   : > { %9590 = vmatpush1.bf16.msra.mxu1 %v16817_v36  ;;  %v16849_v36 = vld [vmem:[%s24126_s2 + $0x1388] ss:$16 sps:$4 sm:$0xff]  }
 0x5e9   : > { %9557 = vmatpush1.bf16.msra.mxu0 %v16818_v24  ;;  %9591 = vmatprep.subr.bf16.mxu1 %v16819_v33  ;;  %v16850_v24 = vld [vmem:[%s24126_s2 + $0x1108] ss:$16 sps:$4 sm:$0xff]   ;;  %v16851_v33 = vld [vmem:[%s24126_s2 + $0x136c] ss:$16 sps:$4 sm:$0xff]  }
 0x5ea   : > { %9558 = vmatprep.subr.bf16.mxu0 %v16820_v37  ;;  %v16852_v37 = vld [vmem:[%s24126_s2 + $0xce4] ss:$16 sps:$4 sm:$0xff]  }
 0x5ec   : > { %9592 = vmatpush1.bf16.msra.mxu1 %v16821_v10 }
 0x5ed   : > { %9559 = vmatpush2.bf16.msra.mxu0 %v16822_v23  ;;  %9593 = vmatprep.subr.bf16.mxu1 %v16823_v55  ;;  %v16853_v23 = vld [vmem:[%s24126_s2 + $0x1368] ss:$16 sps:$4 sm:$0xff]   ;;  %v16854_v55 = vld [vmem:[%s24126_s2 + $0xce0] ss:$16 sps:$4 sm:$0xff]  }
 0x5ee   : > { %9560 = vmatprep.subr.bf16.mxu0 %v16824_v51 }
 0x5f0   : > { %9594 = vmatpush1.bf16.msra.mxu1 %v16825_v20  ;;  %v16855_v20 = vld [vmem:[%s24126_s2 + $0x134c] ss:$16 sps:$4 sm:$0xff]  }
 0x5f1   : > { %9561 = vmatpush2.bf16.msra.mxu0 %v16826_v15  ;;  %9595 = vmatprep.subr.bf16.mxu1 %v16827_v61  ;;  %v16857_v61 = vld [vmem:[%s24126_s2 + $0x1348] ss:$16 sps:$4 sm:$0xff]  }
 0x5f2   : > { %9562 = vmatprep.subr.bf16.mxu0 %v16828_v47  ;;  %v16858_v47 = vld [vmem:[%s24126_s2 + $0xcc0] ss:$16 sps:$4 sm:$0xff]  }
 0x5f4   : > { %9596 = vmatpush1.bf16.msra.mxu1 %v16829_v9  ;;  %v16859_v9 = vld [vmem:[%s24126_s2 + $0x132c] ss:$16 sps:$4 sm:$0xff]  }
 0x5f5   : > { %9563 = vmatpush2.bf16.msra.mxu0 %v16830_v46  ;;  %9597 = vmatprep.subr.bf16.mxu1 %v16831_v49  ;;  %v16860_v49 = vld [vmem:[%s24126_s2 + $0xca4] ss:$16 sps:$4 sm:$0xff]  }
 0x5f6   : > { %9564 = vmatprep.subr.bf16.mxu0 %v16832_v19  ;;  %v16861_v19 = vld [vmem:[%s24126_s2 + $0x1328] ss:$16 sps:$4 sm:$0xff]  }
 0x5f8   : > { %9598 = vmatpush1.bf16.msra.mxu1 %v16833_v48  ;;  %v16862_v48 = vld [vmem:[%s24126_s2 + $0xca0] ss:$16 sps:$4 sm:$0xff]  }
 0x5f9   : > { %9565 = vmatpush2.bf16.msra.mxu0 %v16834_v28  ;;  %9599 = vmatprep.subr.bf16.mxu1 %v16835_v41  ;;  %v16863_v28 = vld [vmem:[%s24126_s2 + $0x130c] ss:$16 sps:$4 sm:$0xff]   ;;  %v16864_v41 = vld [vmem:[%s24126_s2 + $0xc84] ss:$16 sps:$4 sm:$0xff]  }
 0x5fa   : > { %9566 = vmatprep.subr.bf16.mxu0 %v16836_v0  ;;  %v16865_v0 = vld [vmem:[%s24126_s2 + $0x1308] ss:$16 sps:$4 sm:$0xff]  }
 0x5fc   : > { %9600 = vmatpush2.bf16.msra.mxu1 %v16837_v42  ;;  %v16866_v42 = vld [vmem:[%s24126_s2 + $0xc80] ss:$16 sps:$4 sm:$0xff]  }
 0x5fd   : > { %9567 = vmatpush2.bf16.msra.mxu0 %v16838_v44  ;;  %9601 = vmatprep.subr.bf16.mxu1 %v16839_v25  ;;  %v16867_v44 = vld [vmem:[%s24126_s2 + $0xee4] ss:$16 sps:$4 sm:$0xff]  }
 0x5fe   : > { %9568 = vmatprep.subr.bf16.mxu0 %v16840_v34  ;;  %v16868_v25 = vld [vmem:[%s24126_s2 + $0xc64] ss:$16 sps:$4 sm:$0xff]  }
 0x600   : > { %9602 = vmatpush2.bf16.msra.mxu1 %v16841_v45 }
 0x601   : > { %9569 = vmatpush2.bf16.msra.mxu0 %v16842_v29  ;;  %9603 = vmatprep.subr.bf16.mxu1 %v16843_v53  ;;  %v16869_v29 = vld [vmem:[%s24126_s2 + $0xee0] ss:$16 sps:$4 sm:$0xff]  }
 0x602   : > { %9570 = vmatprep.subr.bf16.mxu0 %v16844_v43  ;;  %v16870_v53 = vld [vmem:[%s24126_s2 + $0xc60] ss:$16 sps:$4 sm:$0xff]  }
 0x604   : > { %9604 = vmatpush2.bf16.msra.mxu1 %v16845_v57  ;;  %v16871_v57 = vld [vmem:[%s24126_s2 + $0xec4] ss:$16 sps:$4 sm:$0xff]  }
 0x605   : > { %9571 = vmatpush2.bf16.msra.mxu0 %v16846_v22  ;;  %9605 = vmatprep.subr.bf16.mxu1 %v16847_v30  ;;  %v16872_v30 = vld [vmem:[%s24126_s2 + $0xc44] ss:$16 sps:$4 sm:$0xff]  }
 0x606   : > { %9572 = vmatprep.subr.bf16.mxu0 %v16848_v12 }
 0x608   : > { %9606 = vmatpush2.bf16.msra.mxu1 %v16849_v36 }
 0x609   : > { %9573 = vmatpush2.bf16.msra.mxu0 %v16850_v24  ;;  %9607 = vmatprep.subr.bf16.mxu1 %v16851_v33  ;;  %v16873_v33 = vld [vmem:[%s24126_s2 + $0xec0] ss:$16 sps:$4 sm:$0xff]  }
 0x60a   : > { %9624 = vmatprep.subr.bf16.mxu0 %v16852_v37 }
 0x60c   : > { %v9322_v10 = vpop.f32.mrf.mxu0  ;;  %9575 = vmatmul.mubr.bf16.vlgmr.msra.gmra.mxu0 %v19410_v11  ;;  %9608 = vmatpush2.bf16.msra.mxu1 %v16853_v23  ;;  %v16856_v11 = vld [vmem:[%s24126_s2 + $0xcc4] ss:$16 sps:$4 sm:$0xff]   ;;  %v16882_v23 = vld [vmem:[%s24126_s2 + $0xc00] ss:$16 sps:$4 sm:$0xff]  }
 0x60d   : > { %9625 = vmatpush1.bf16.msra.mxu0 %v16854_v55  ;;  %9656 = vmatprep.mubr.bf16.mxu0 %v18487_v7  ;;  %v16883_v55 = vld [vmem:[%s24126_s2 + $0xe64] ss:$16 sps:$4 sm:$0xff]  }
 0x60e   : > { %v9324_v51 = vpop.f32.mrf.mxu0  ;;  %9609 = vmatprep.subr.bf16.mxu1 %v16855_v20  ;;  %9626 = vmatprep.subr.bf16.mxu0 %v16856_v11  ;;  %v16885_v20 = vld [vmem:[%s24126_s2 + $0xe60] ss:$16 sps:$4 sm:$0xff]  }
 0x60f   : > { %v16886_v11 = vld [vmem:[%s24126_s2 + $0xde0] ss:$16 sps:$4 sm:$0xff]  }
 0x610   : > { %v9326_v15 = vpop.f32.mrf.mxu0  ;;  %9610 = vmatpush2.bf16.msra.mxu1 %v16857_v61  ;;  %v16888_v61 = vld [vmem:[%s24126_s2 + $0xdc4] ss:$16 sps:$4 sm:$0xff]  }
 0x611   : > { %9627 = vmatpush1.bf16.msra.mxu0 %v16858_v47  ;;  %9611 = vmatprep.subr.bf16.mxu1 %v16859_v9  ;;  %v16887_v15 = vld [vmem:[%s24126_s2 + $0xe44] ss:$16 sps:$4 sm:$0xff]   ;;  %v16889_v47 = vld [vmem:[%s24126_s2 + $0xe40] ss:$16 sps:$4 sm:$0xff]  }
 0x612   : > { %v9327_v46 = vpop.f32.mrf.mxu0  ;;  %9628 = vmatprep.subr.bf16.mxu0 %v16860_v49  ;;  %v16890_v9 = vld [vmem:[%s24126_s2 + $0xdc0] ss:$16 sps:$4 sm:$0xff]   ;;  %v16892_v49 = vld [vmem:[%s24126_s2 + $0xda4] ss:$16 sps:$4 sm:$0xff]  }
 0x613   : > { %v16891_v46 = vld [vmem:[%s24126_s2 + $0xe24] ss:$16 sps:$4 sm:$0xff]  }
 0x614   : > { %9612 = vmatpush2.bf16.msra.mxu1 %v16861_v19  ;;  %v16893_v19 = vld [vmem:[%s24126_s2 + $0xe20] ss:$16 sps:$4 sm:$0xff]  }
 0x615   : > { %9629 = vmatpush1.bf16.msra.mxu0 %v16862_v48  ;;  %9613 = vmatprep.subr.bf16.mxu1 %v16863_v28  ;;  %v16894_v48 = vld [vmem:[%s24126_s2 + $0xda0] ss:$16 sps:$4 sm:$0xff]   ;;  %v16895_v28 = vld [vmem:[%s24126_s2 + $0xe04] ss:$16 sps:$4 sm:$0xff]  }
 0x616   : > { %9630 = vmatprep.subr.bf16.mxu0 %v16864_v41  ;;  %v16896_v41 = vld [vmem:[%s24126_s2 + $0xd84] ss:$16 sps:$4 sm:$0xff]  }
 0x618   : > { %9614 = vmatpush2.bf16.msra.mxu1 %v16865_v0  ;;  %v16897_v0 = vld [vmem:[%s24126_s2 + $0xe00] ss:$16 sps:$4 sm:$0xff]  }
 0x619   : > { %9631 = vmatpush1.bf16.msra.mxu0 %v16866_v42  ;;  %9665 = vmatprep.subr.bf16.mxu1 %v16867_v44  ;;  %v16898_v42 = vld [vmem:[%s24126_s2 + $0xd80] ss:$16 sps:$4 sm:$0xff]   ;;  %v16899_v44 = vld [vmem:[%s24126_s2 + $0xfe4] ss:$16 sps:$4 sm:$0xff]  }
 0x61a   : > { %9632 = vmatprep.subr.bf16.mxu0 %v16868_v25  ;;  %v16900_v25 = vld [vmem:[%s24126_s2 + $0xd64] ss:$16 sps:$4 sm:$0xff]  }
 0x61b   : > { %v9363_v34 = vpop.f32.mrf.mxu1  ;;  %9616 = vmatmul.mubr.bf16.vlgmr.msra.gmra.mxu1 %v19465_v14 }
 0x61c   : > { %v9364_v45 = vadd.f32 %v9363_v34, %v9322_v10  ;;  %9666 = vmatpush1.bf16.msra.mxu1 %v16869_v29  ;;  %9697 = vmatprep.mubr.bf16.mxu1 %v18536_v56  ;;  %v16875_v10 = vld [vmem:[%s24126_s2 + $0xea4] ss:$16 sps:$4 sm:$0xff]   ;;  %v16901_v34 = vld [vmem:[%s24126_s2 + $0xfe0] ss:$16 sps:$4 sm:$0xff]  }
 0x61d   : > { %9633 = vmatpush1.bf16.msra.mxu0 %v16870_v53  ;;  %v9365_v43 = vpop.f32.mrf.mxu1  ;;  %9667 = vmatprep.subr.bf16.mxu1 %v16871_v57  ;;  %v16903_v29 = vld [vmem:[%s24126_s2 + $0xfc4] ss:$16 sps:$4 sm:$0xff]   ;;  %v16906_v57 = vld [vmem:[%s24126_s2 + $0xd40] ss:$16 sps:$4 sm:$0xff]  }
 0x61e   : > { %v9452_v14 = vadd.f32 %v9364_v45, %v22094_v54  ;;  %v9366_v22 = vadd.f32 %v9365_v43, %v9324_v51  ;;  %9634 = vmatprep.subr.bf16.mxu0 %v16872_v30  ;;  %v16874_v54 = vld [vmem:[%s24126_s2 + $0xc40] ss:$16 sps:$4 sm:$0xff]   ;;  %v16884_v51 = vld [vmem:[%s24126_s2 + $0xde4] ss:$16 sps:$4 sm:$0xff]  }
 0x61f   : > { %v9367_v12 = vpop.f32.mrf.mxu1  ;;  %v16902_v45 = vld [vmem:[%s24126_s2 + $0xd60] ss:$16 sps:$4 sm:$0xff]   ;;  %v16904_v53 = vld [vmem:[%s24126_s2 + $0xd44] ss:$16 sps:$4 sm:$0xff]  }
 0x620   : > { %v22513_v36 = vmax.f32 %v8928_v38, %v9452_v14  ;;  %v9453_v24 = vadd.f32 %v9366_v22, %v22106_v31  ;;  %9668 = vmatpush1.bf16.msra.mxu1 %v16873_v33  ;;  %v16877_v38 = vld [vmem:[%s24126_s2 + $0xea0] ss:$16 sps:$4 sm:$0xff]   ;;  %v16907_v14 = vld [vmem:[%s24126_s2 + $0xfa4] ss:$16 sps:$4 sm:$0xff]  }
 0x621   : > { %9635 = vmatpush1.bf16.msra.mxu0 %v16874_v54  ;;  %v9368_v37 = vpop.f32.mrf.mxu1  ;;  %9669 = vmatprep.subr.bf16.mxu1 %v16875_v10  ;;  %v16878_v31 = vld [vmem:[%s24126_s2 + $0xc20] ss:$16 sps:$4 sm:$0xff]   ;;  %v16908_v22 = vld [vmem:[%s24126_s2 + $0xd24] ss:$16 sps:$4 sm:$0xff]  }
 0x622   : > { %v22528_v21 = vmax.f32 %v8929_v3, %v9453_v24  ;;  %9636 = vmatprep.subr.bf16.mxu0 %v16876_v16  ;;  %v16881_v3 = vld [vmem:[%s24126_s2 + $0xe80] ss:$16 sps:$4 sm:$0xff]   ;;  %v16911_v24 = vld [vmem:[%s24126_s2 + $0xf84] ss:$16 sps:$4 sm:$0xff]   ;;  %v16916_v16 = vld [vmem:[%s24126_s2 + $0xcec] ss:$16 sps:$4 sm:$0xff]  }
 0x623   : > { %v16905_v43 = vld [vmem:[%s24126_s2 + $0xfc0] ss:$16 sps:$4 sm:$0xff]   ;;  %v16912_v33 = vld [vmem:[%s24126_s2 + $0xd04] ss:$16 sps:$4 sm:$0xff]  }
 0x624   : > { %9670 = vmatpush1.bf16.msra.mxu1 %v16877_v38  ;;  %v16909_v30 = vld [vmem:[%s24126_s2 + $0xfa0] ss:$16 sps:$4 sm:$0xff]   ;;  %v16915_v10 = vld [vmem:[%s24126_s2 + $0xf64] ss:$16 sps:$4 sm:$0xff]  }
 0x625   : > { %9637 = vmatpush1.bf16.msra.mxu0 %v16878_v31  ;;  %9671 = vmatprep.subr.bf16.mxu1 %v16879_v1  ;;  %v16910_v12 = vld [vmem:[%s24126_s2 + $0xd20] ss:$16 sps:$4 sm:$0xff]   ;;  %v16918_v1 = vld [vmem:[%s24126_s2 + $0xce8] ss:$16 sps:$4 sm:$0xff]  }
 0x626   : > { %9638 = vmatprep.subr.bf16.mxu0 %v16880_v39  ;;  %v16913_v54 = vld [vmem:[%s24126_s2 + $0xf80] ss:$16 sps:$4 sm:$0xff]  }
 0x627   : > { %v16914_v37 = vld [vmem:[%s24126_s2 + $0xd00] ss:$16 sps:$4 sm:$0xff]  }
 0x628   : > { %9672 = vmatpush1.bf16.msra.mxu1 %v16881_v3  ;;  %v16917_v31 = vld [vmem:[%s24126_s2 + $0xf60] ss:$16 sps:$4 sm:$0xff]   ;;  %v16919_v3 = vld [vmem:[%s24126_s2 + $0xf44] ss:$16 sps:$4 sm:$0xff]  }
 0x629   : > { %9639 = vmatpush1.bf16.msra.mxu0 %v16882_v23  ;;  %9673 = vmatprep.subr.bf16.mxu1 %v16883_v55  ;;  %v16920_v23 = vld [vmem:[%s24126_s2 + $0xccc] ss:$16 sps:$4 sm:$0xff]  }
 0x62a   : > { %9640 = vmatprep.subr.bf16.mxu0 %v16884_v51  ;;  %v16921_v51 = vld [vmem:[%s24126_s2 + $0xf40] ss:$16 sps:$4 sm:$0xff]  }
 0x62c   : > { %9674 = vmatpush1.bf16.msra.mxu1 %v16885_v20  ;;  %v16923_v20 = vld [vmem:[%s24126_s2 + $0xf24] ss:$16 sps:$4 sm:$0xff]  }
 0x62d   : > { %9641 = vmatpush2.bf16.msra.mxu0 %v16886_v11  ;;  %9675 = vmatprep.subr.bf16.mxu1 %v16887_v15  ;;  %v16924_v15 = vld [vmem:[%s24126_s2 + $0xcac] ss:$16 sps:$4 sm:$0xff]  }
 0x62e   : > { %9642 = vmatprep.subr.bf16.mxu0 %v16888_v61  ;;  %v16925_v61 = vld [vmem:[%s24126_s2 + $0xf20] ss:$16 sps:$4 sm:$0xff]  }
 0x630   : > { %9676 = vmatpush1.bf16.msra.mxu1 %v16889_v47  ;;  %v16926_v47 = vld [vmem:[%s24126_s2 + $0xca8] ss:$16 sps:$4 sm:$0xff]  }
 0x631   : > { %9643 = vmatpush2.bf16.msra.mxu0 %v16890_v9  ;;  %9677 = vmatprep.subr.bf16.mxu1 %v16891_v46  ;;  %v16927_v9 = vld [vmem:[%s24126_s2 + $0xf04] ss:$16 sps:$4 sm:$0xff]   ;;  %v16928_v46 = vld [vmem:[%s24126_s2 + $0xc8c] ss:$16 sps:$4 sm:$0xff]  }
 0x632   : > { %9644 = vmatprep.subr.bf16.mxu0 %v16892_v49  ;;  %v16929_v49 = vld [vmem:[%s24126_s2 + $0xf00] ss:$16 sps:$4 sm:$0xff]  }
 0x634   : > { %9678 = vmatpush1.bf16.msra.mxu1 %v16893_v19  ;;  %v16930_v19 = vld [vmem:[%s24126_s2 + $0xc88] ss:$16 sps:$4 sm:$0xff]  }
 0x635   : > { %9645 = vmatpush2.bf16.msra.mxu0 %v16894_v48  ;;  %9679 = vmatprep.subr.bf16.mxu1 %v16895_v28  ;;  %v16931_v48 = vld [vmem:[%s24126_s2 + $0xeec] ss:$16 sps:$4 sm:$0xff]  }
 0x636   : > { %9646 = vmatprep.subr.bf16.mxu0 %v16896_v41  ;;  %v16932_v28 = vld [vmem:[%s24126_s2 + $0xc6c] ss:$16 sps:$4 sm:$0xff]  }
 0x638   : > { %9680 = vmatpush1.bf16.msra.mxu1 %v16897_v0 }
 0x639   : > { %9647 = vmatpush2.bf16.msra.mxu0 %v16898_v42  ;;  %9681 = vmatprep.subr.bf16.mxu1 %v16899_v44  ;;  %v16933_v42 = vld [vmem:[%s24126_s2 + $0xee8] ss:$16 sps:$4 sm:$0xff]  }
 0x63a   : > { %9648 = vmatprep.subr.bf16.mxu0 %v16900_v25  ;;  %v16934_v44 = vld [vmem:[%s24126_s2 + $0xc68] ss:$16 sps:$4 sm:$0xff]  }
 0x63c   : > { %9682 = vmatpush2.bf16.msra.mxu1 %v16901_v34  ;;  %v16935_v34 = vld [vmem:[%s24126_s2 + $0xecc] ss:$16 sps:$4 sm:$0xff]  }
 0x63d   : > { %9649 = vmatpush2.bf16.msra.mxu0 %v16902_v45  ;;  %9683 = vmatprep.subr.bf16.mxu1 %v16903_v29 }
 0x63e   : > { %9650 = vmatprep.subr.bf16.mxu0 %v16904_v53  ;;  %v16936_v53 = vld [vmem:[%s24126_s2 + $0xc4c] ss:$16 sps:$4 sm:$0xff]  }
 0x640   : > { %9684 = vmatpush2.bf16.msra.mxu1 %v16905_v43 }
 0x641   : > { %9651 = vmatpush2.bf16.msra.mxu0 %v16906_v57  ;;  %9685 = vmatprep.subr.bf16.mxu1 %v16907_v14  ;;  %v16937_v14 = vld [vmem:[%s24126_s2 + $0xec8] ss:$16 sps:$4 sm:$0xff]  }
 0x642   : > { %9652 = vmatprep.subr.bf16.mxu0 %v16908_v22 }
 0x644   : > { %9686 = vmatpush2.bf16.msra.mxu1 %v16909_v30  ;;  %v16939_v30 = vld [vmem:[%s24126_s2 + $0xeac] ss:$16 sps:$4 sm:$0xff]  }
 0x645   : > { %9653 = vmatpush2.bf16.msra.mxu0 %v16910_v12  ;;  %9687 = vmatprep.subr.bf16.mxu1 %v16911_v24  ;;  %v16946_v12 = vld [vmem:[%s24126_s2 + $0xc08] ss:$16 sps:$4 sm:$0xff]   ;;  %v16947_v24 = vld [vmem:[%s24126_s2 + $0xe6c] ss:$16 sps:$4 sm:$0xff]  }
 0x646   : > { %9654 = vmatprep.subr.bf16.mxu0 %v16912_v33  ;;  %v16948_v33 = vld [vmem:[%s24126_s2 + $0xdec] ss:$16 sps:$4 sm:$0xff]  }
 0x648   : > { %9688 = vmatpush2.bf16.msra.mxu1 %v16913_v54  ;;  %v16949_v54 = vld [vmem:[%s24126_s2 + $0xe68] ss:$16 sps:$4 sm:$0xff]  }
 0x649   : > { %9655 = vmatpush2.bf16.msra.mxu0 %v16914_v37  ;;  %9689 = vmatprep.subr.bf16.mxu1 %v16915_v10  ;;  %v16950_v37 = vld [vmem:[%s24126_s2 + $0xde8] ss:$16 sps:$4 sm:$0xff]   ;;  %v16951_v10 = vld [vmem:[%s24126_s2 + $0xe4c] ss:$16 sps:$4 sm:$0xff]  }
 0x64a   : > { %9706 = vmatprep.subr.bf16.mxu0 %v16916_v16  ;;  %v16952_v16 = vld [vmem:[%s24126_s2 + $0xdcc] ss:$16 sps:$4 sm:$0xff]  }
 0x64c   : > { %v9404_v38 = vpop.f32.mrf.mxu0  ;;  %9657 = vmatmul.mubr.bf16.vlgmr.msra.gmra.mxu0 %v18491_v26  ;;  %9690 = vmatpush2.bf16.msra.mxu1 %v16917_v31  ;;  %v16954_v31 = vld [vmem:[%s24126_s2 + $0xdc8] ss:$16 sps:$4 sm:$0xff]  }
 0x64d   : > { %9707 = vmatpush1.bf16.msra.mxu0 %v16918_v1  ;;  %9738 = vmatprep.mubr.bf16.mxu0 %v18487_v7  ;;  %v16922_v7 = vld [vmem:[%s24126_s2 + $0xcc8] ss:$16 sps:$4 sm:$0xff]   ;;  %v16955_v1 = vld [vmem:[%s24126_s2 + $0xe2c] ss:$16 sps:$4 sm:$0xff]  }
 0x64e   : > { %v9406_v39 = vpop.f32.mrf.mxu0  ;;  %9691 = vmatprep.subr.bf16.mxu1 %v16919_v3  ;;  %9708 = vmatprep.subr.bf16.mxu0 %v16920_v23  ;;  %v16957_v3 = vld [vmem:[%s24126_s2 + $0xe28] ss:$16 sps:$4 sm:$0xff]  }
 0x64f   : > { %v16958_v23 = vld [vmem:[%s24126_s2 + $0xda8] ss:$16 sps:$4 sm:$0xff]  }
 0x650   : > { %v9408_v55 = vpop.f32.mrf.mxu0  ;;  %9692 = vmatpush2.bf16.msra.mxu1 %v16921_v51  ;;  %v16960_v51 = vld [vmem:[%s24126_s2 + $0xd8c] ss:$16 sps:$4 sm:$0xff]  }
 0x651   : > { %9709 = vmatpush1.bf16.msra.mxu0 %v16922_v7  ;;  %9693 = vmatprep.subr.bf16.mxu1 %v16923_v20  ;;  %v16959_v55 = vld [vmem:[%s24126_s2 + $0xe0c] ss:$16 sps:$4 sm:$0xff]   ;;  %v16961_v7 = vld [vmem:[%s24126_s2 + $0xe08] ss:$16 sps:$4 sm:$0xff]  }
 0x652   : > { %v9409_v11 = vpop.f32.mrf.mxu0  ;;  %9710 = vmatprep.subr.bf16.mxu0 %v16924_v15  ;;  %v16962_v20 = vld [vmem:[%s24126_s2 + $0xd88] ss:$16 sps:$4 sm:$0xff]   ;;  %v16964_v15 = vld [vmem:[%s24126_s2 + $0xd6c] ss:$16 sps:$4 sm:$0xff]  }
 0x653   : > { %v16963_v11 = vld [vmem:[%s24126_s2 + $0xfec] ss:$16 sps:$4 sm:$0xff]  }
 0x654   : > { %9694 = vmatpush2.bf16.msra.mxu1 %v16925_v61  ;;  %v16965_v61 = vld [vmem:[%s24126_s2 + $0xfe8] ss:$16 sps:$4 sm:$0xff]  }
 0x655   : > { %9711 = vmatpush1.bf16.msra.mxu0 %v16926_v47  ;;  %9695 = vmatprep.subr.bf16.mxu1 %v16927_v9  ;;  %v16966_v47 = vld [vmem:[%s24126_s2 + $0xd68] ss:$16 sps:$4 sm:$0xff]   ;;  %v16967_v9 = vld [vmem:[%s24126_s2 + $0xfcc] ss:$16 sps:$4 sm:$0xff]  }
 0x656   : > { %9712 = vmatprep.subr.bf16.mxu0 %v16928_v46  ;;  %v16968_v46 = vld [vmem:[%s24126_s2 + $0xd4c] ss:$16 sps:$4 sm:$0xff]  }
 0x658   : > { %9696 = vmatpush2.bf16.msra.mxu1 %v16929_v49  ;;  %v16969_v49 = vld [vmem:[%s24126_s2 + $0xfc8] ss:$16 sps:$4 sm:$0xff]  }
 0x659   : > { %9713 = vmatpush1.bf16.msra.mxu0 %v16930_v19  ;;  %9747 = vmatprep.subr.bf16.mxu1 %v16931_v48  ;;  %v16970_v19 = vld [vmem:[%s24126_s2 + $0xd48] ss:$16 sps:$4 sm:$0xff]   ;;  %v16971_v48 = vld [vmem:[%s24126_s2 + $0xfac] ss:$16 sps:$4 sm:$0xff]  }
 0x65a   : > { %9714 = vmatprep.subr.bf16.mxu0 %v16932_v28  ;;  %v16972_v28 = vld [vmem:[%s24126_s2 + $0xd2c] ss:$16 sps:$4 sm:$0xff]  }
 0x65b   : > { %v9445_v41 = vpop.f32.mrf.mxu1  ;;  %9698 = vmatmul.mubr.bf16.vlgmr.msra.gmra.mxu1 %v18538_v58 }
 0x65c   : > { %v9446_v0 = vadd.f32 %v9445_v41, %v9404_v38  ;;  %9748 = vmatpush1.bf16.msra.mxu1 %v16933_v42  ;;  %9779 = vmatprep.mubr.bf16.mxu1 %v18536_v56  ;;  %v16953_v38 = vld [vmem:[%s24126_s2 + $0xe48] ss:$16 sps:$4 sm:$0xff]   ;;  %v16975_v42 = vld [vmem:[%s24126_s2 + $0xf8c] ss:$16 sps:$4 sm:$0xff]  }
 0x65d   : > { %9715 = vmatpush1.bf16.msra.mxu0 %v16934_v44  ;;  %v9447_v25 = vpop.f32.mrf.mxu1  ;;  %9749 = vmatprep.subr.bf16.mxu1 %v16935_v34  ;;  %v16973_v41 = vld [vmem:[%s24126_s2 + $0xfa8] ss:$16 sps:$4 sm:$0xff]   ;;  %v16976_v44 = vld [vmem:[%s24126_s2 + $0xd0c] ss:$16 sps:$4 sm:$0xff]  }
 0x65e   : > { %v9454_v45 = vadd.f32 %v9446_v0, %v22296_v13  ;;  %v9448_v29 = vadd.f32 %v9447_v25, %v9406_v39  ;;  %9716 = vmatprep.subr.bf16.mxu0 %v16936_v53  ;;  %v16938_v13 = vld [vmem:[%s24126_s2 + $0xc48] ss:$16 sps:$4 sm:$0xff]   ;;  %v16956_v39 = vld [vmem:[%s24126_s2 + $0xdac] ss:$16 sps:$4 sm:$0xff]  }
 0x65f   : > { %v9449_v56 = vpop.f32.mrf.mxu1  ;;  %v16974_v0 = vld [vmem:[%s24126_s2 + $0xd28] ss:$16 sps:$4 sm:$0xff]  }
 0x660   : > { %v22721_v43 = vmax.f32 %v8930_v18, %v9454_v45  ;;  %v9455_v57 = vadd.f32 %v9448_v29, %v22308_v52  ;;  %9750 = vmatpush1.bf16.msra.mxu1 %v16937_v14  ;;  %v16941_v18 = vld [vmem:[%s24126_s2 + $0xea8] ss:$16 sps:$4 sm:$0xff]   ;;  %v16979_v45 = vld [vmem:[%s24126_s2 + $0xf6c] ss:$16 sps:$4 sm:$0xff]   ;;  %v16980_v29 = vld [vmem:[%s24126_s2 + $0x14e4] ss:$16 sps:$4 sm:$0xff]  }
 0x661   : > { %9717 = vmatpush1.bf16.msra.mxu0 %v16938_v13  ;;  %v9450_v22 = vpop.f32.mrf.mxu1  ;;  %9751 = vmatprep.subr.bf16.mxu1 %v16939_v30  ;;  %v16942_v52 = vld [vmem:[%s24126_s2 + $0xc28] ss:$16 sps:$4 sm:$0xff]   ;;  %v16983_v13 = vld [vmem:[%s24126_s2 + $0xf4c] ss:$16 sps:$4 sm:$0xff]  }
 0x662   : > { %v22736_v40 = vmax.f32 %v8931_v32, %v9455_v57  ;;  %9718 = vmatprep.subr.bf16.mxu0 %v16940_v63  ;;  %v16945_v32 = vld [vmem:[%s24126_s2 + $0xe88] ss:$16 sps:$4 sm:$0xff]   ;;  %v16982_v57 = vld [vmem:[%s24126_s2 + $0x14e0] ss:$16 sps:$4 sm:$0xff]  }
 0x663   : > { %v16977_v25 = vld [vmem:[%s24126_s2 + $0xf88] ss:$16 sps:$4 sm:$0xff]   ;;  %v16986_v63 = vld [vmem:[%s24126_s2 + $0x14c0] ss:$16 sps:$4 sm:$0xff]  }
 0x664   : > { %9752 = vmatpush1.bf16.msra.mxu1 %v16941_v18  ;;  %v16978_v34 = vld [vmem:[%s24126_s2 + $0xd08] ss:$16 sps:$4 sm:$0xff]   ;;  %v16987_v18 = vld [vmem:[%s24126_s2 + $0xf2c] ss:$16 sps:$4 sm:$0xff]  }
 0x665   : > { %9719 = vmatpush1.bf16.msra.mxu0 %v16942_v52  ;;  %9753 = vmatprep.subr.bf16.mxu1 %v16943_v8  ;;  %v16981_v56 = vld [vmem:[%s24126_s2 + $0xf68] ss:$16 sps:$4 sm:$0xff]   ;;  %v16988_v8 = vld [vmem:[%s24126_s2 + $0x14a4] ss:$16 sps:$4 sm:$0xff]  }
 0x666   : > { %9720 = vmatprep.subr.bf16.mxu0 %v16944_v5  ;;  %v16985_v30 = vld [vmem:[%s24126_s2 + $0xf48] ss:$16 sps:$4 sm:$0xff]  }
 0x667   : > { %v16989_v5 = vld [vmem:[%s24126_s2 + $0xf28] ss:$16 sps:$4 sm:$0xff]  }
 0x668   : > { %9754 = vmatpush1.bf16.msra.mxu1 %v16945_v32  ;;  %v16990_v32 = vld [vmem:[%s24126_s2 + $0x14a0] ss:$16 sps:$4 sm:$0xff]  }
 0x669   : > { %9721 = vmatpush1.bf16.msra.mxu0 %v16946_v12  ;;  %9755 = vmatprep.subr.bf16.mxu1 %v16947_v24  ;;  %v16991_v12 = vld [vmem:[%s24126_s2 + $0xf0c] ss:$16 sps:$4 sm:$0xff]   ;;  %v16992_v24 = vld [vmem:[%s24126_s2 + $0x1484] ss:$16 sps:$4 sm:$0xff]  }
 0x66a   : > { %9722 = vmatprep.subr.bf16.mxu0 %v16948_v33  ;;  %v16993_v33 = vld [vmem:[%s24126_s2 + $0xf08] ss:$16 sps:$4 sm:$0xff]  }
 0x66c   : > { %9756 = vmatpush1.bf16.msra.mxu1 %v16949_v54  ;;  %v16994_v54 = vld [vmem:[%s24126_s2 + $0x1480] ss:$16 sps:$4 sm:$0xff]  }
 0x66d   : > { %9723 = vmatpush2.bf16.msra.mxu0 %v16950_v37  ;;  %9757 = vmatprep.subr.bf16.mxu1 %v16951_v10  ;;  %v16995_v37 = vld [vmem:[%s24126_s2 + $0x16e4] ss:$16 sps:$4 sm:$0xff]  }
 0x66e   : > { %9724 = vmatprep.subr.bf16.mxu0 %v16952_v16  ;;  %v16996_v10 = vld [vmem:[%s24126_s2 + $0x1464] ss:$16 sps:$4 sm:$0xff]  }
 0x670   : > { %9758 = vmatpush1.bf16.msra.mxu1 %v16953_v38 }
 0x671   : > { %9725 = vmatpush2.bf16.msra.mxu0 %v16954_v31  ;;  %9759 = vmatprep.subr.bf16.mxu1 %v16955_v1  ;;  %v16997_v31 = vld [vmem:[%s24126_s2 + $0x16e0] ss:$16 sps:$4 sm:$0xff]  }
 0x672   : > { %9726 = vmatprep.subr.bf16.mxu0 %v16956_v39  ;;  %v16998_v1 = vld [vmem:[%s24126_s2 + $0x1460] ss:$16 sps:$4 sm:$0xff]  }
 0x674   : > { %9760 = vmatpush1.bf16.msra.mxu1 %v16957_v3  ;;  %v16999_v3 = vld [vmem:[%s24126_s2 + $0x16c4] ss:$16 sps:$4 sm:$0xff]  }
 0x675   : > { %9727 = vmatpush2.bf16.msra.mxu0 %v16958_v23  ;;  %9761 = vmatprep.subr.bf16.mxu1 %v16959_v55  ;;  %v17000_v23 = vld [vmem:[%s24126_s2 + $0x1444] ss:$16 sps:$4 sm:$0xff]  }
 0x676   : > { %9728 = vmatprep.subr.bf16.mxu0 %v16960_v51  ;;  %v17001_v51 = vld [vmem:[%s24126_s2 + $0x16c0] ss:$16 sps:$4 sm:$0xff]  }
 0x678   : > { %9762 = vmatpush1.bf16.msra.mxu1 %v16961_v7  ;;  %v17002_v7 = vld [vmem:[%s24126_s2 + $0x1440] ss:$16 sps:$4 sm:$0xff]  }
 0x679   : > { %9729 = vmatpush2.bf16.msra.mxu0 %v16962_v20  ;;  %9763 = vmatprep.subr.bf16.mxu1 %v16963_v11  ;;  %v17003_v11 = vld [vmem:[%s24126_s2 + $0x16a4] ss:$16 sps:$4 sm:$0xff]  }
 0x67a   : > { %9730 = vmatprep.subr.bf16.mxu0 %v16964_v15  ;;  %v17004_v15 = vld [vmem:[%s24126_s2 + $0x1424] ss:$16 sps:$4 sm:$0xff]  }
 0x67c   : > { %9764 = vmatpush2.bf16.msra.mxu1 %v16965_v61  ;;  %v17005_v61 = vld [vmem:[%s24126_s2 + $0x16a0] ss:$16 sps:$4 sm:$0xff]  }
 0x67d   : > { %9731 = vmatpush2.bf16.msra.mxu0 %v16966_v47  ;;  %9765 = vmatprep.subr.bf16.mxu1 %v16967_v9  ;;  %v17006_v47 = vld [vmem:[%s24126_s2 + $0x1420] ss:$16 sps:$4 sm:$0xff]   ;;  %v17007_v9 = vld [vmem:[%s24126_s2 + $0x1684] ss:$16 sps:$4 sm:$0xff]  }
 0x67e   : > { %9732 = vmatprep.subr.bf16.mxu0 %v16968_v46  ;;  %v17008_v46 = vld [vmem:[%s24126_s2 + $0x1404] ss:$16 sps:$4 sm:$0xff]  }
 0x680   : > { %9766 = vmatpush2.bf16.msra.mxu1 %v16969_v49  ;;  %v17009_v49 = vld [vmem:[%s24126_s2 + $0x1680] ss:$16 sps:$4 sm:$0xff]  }
 0x681   : > { %9733 = vmatpush2.bf16.msra.mxu0 %v16970_v19  ;;  %9767 = vmatprep.subr.bf16.mxu1 %v16971_v48  ;;  %v17010_v19 = vld [vmem:[%s24126_s2 + $0x1400] ss:$16 sps:$4 sm:$0xff]   ;;  %v17011_v48 = vld [vmem:[%s24126_s2 + $0x1664] ss:$16 sps:$4 sm:$0xff]  }
 0x682   : > { %9734 = vmatprep.subr.bf16.mxu0 %v16972_v28  ;;  %v17012_v28 = vld [vmem:[%s24126_s2 + $0x15e4] ss:$16 sps:$4 sm:$0xff]  }
 0x684   : > { %9768 = vmatpush2.bf16.msra.mxu1 %v16973_v41  ;;  %v17013_v41 = vld [vmem:[%s24126_s2 + $0x1660] ss:$16 sps:$4 sm:$0xff]  }
 0x685   : > { %9735 = vmatpush2.bf16.msra.mxu0 %v16974_v0  ;;  %9769 = vmatprep.subr.bf16.mxu1 %v16975_v42  ;;  %v17014_v0 = vld [vmem:[%s24126_s2 + $0x15e0] ss:$16 sps:$4 sm:$0xff]   ;;  %v17015_v42 = vld [vmem:[%s24126_s2 + $0x1644] ss:$16 sps:$4 sm:$0xff]  }
 0x686   : > { %9736 = vmatprep.subr.bf16.mxu0 %v16976_v44  ;;  %v17016_v44 = vld [vmem:[%s24126_s2 + $0x15c4] ss:$16 sps:$4 sm:$0xff]  }
 0x688   : > { %9770 = vmatpush2.bf16.msra.mxu1 %v16977_v25  ;;  %v17017_v25 = vld [vmem:[%s24126_s2 + $0x1640] ss:$16 sps:$4 sm:$0xff]  }
 0x689   : > { %9737 = vmatpush2.bf16.msra.mxu0 %v16978_v34  ;;  %9771 = vmatprep.subr.bf16.mxu1 %v16979_v45  ;;  %v17018_v34 = vld [vmem:[%s24126_s2 + $0x15c0] ss:$16 sps:$4 sm:$0xff]   ;;  %v17019_v45 = vld [vmem:[%s24126_s2 + $0x1624] ss:$16 sps:$4 sm:$0xff]  }
 0x68a   : > { %9788 = vmatprep.subr.bf16.mxu0 %v16980_v29  ;;  %v17020_v29 = vld [vmem:[%s24126_s2 + $0x15a4] ss:$16 sps:$4 sm:$0xff]  }
 0x68c   : > { %v9494_v53 = vpop.f32.mrf.mxu0  ;;  %9739 = vmatmul.mubr.bf16.vlgmr.msra.gmra.mxu0 %v18491_v26  ;;  %9772 = vmatpush2.bf16.msra.mxu1 %v16981_v56  ;;  %v16984_v26 = vld [vmem:[%s24126_s2 + $0x14c4] ss:$16 sps:$4 sm:$0xff]   ;;  %v17022_v56 = vld [vmem:[%s24126_s2 + $0x15a0] ss:$16 sps:$4 sm:$0xff]  }
 0x68d   : > { %9789 = vmatpush1.bf16.msra.mxu0 %v16982_v57  ;;  %9820 = vmatprep.mubr.bf16.mxu0 %v21633_v60  ;;  %v17023_v57 = vld [vmem:[%s24126_s2 + $0x1604] ss:$16 sps:$4 sm:$0xff]  }
 0x68e   : > { %v9496_v14 = vpop.f32.mrf.mxu0  ;;  %9773 = vmatprep.subr.bf16.mxu1 %v16983_v13  ;;  %9790 = vmatprep.subr.bf16.mxu0 %v16984_v26  ;;  %v17025_v13 = vld [vmem:[%s24126_s2 + $0x1600] ss:$16 sps:$4 sm:$0xff]  }
 0x68f   : > { %v17026_v26 = vld [vmem:[%s24126_s2 + $0x1580] ss:$16 sps:$4 sm:$0xff]  }
 0x690   : > { %v9498_v22 = vpop.f32.mrf.mxu0  ;;  %9774 = vmatpush2.bf16.msra.mxu1 %v16985_v30  ;;  %v17028_v30 = vld [vmem:[%s24126_s2 + $0x1564] ss:$16 sps:$4 sm:$0xff]  }
 0x691   : > { %9791 = vmatpush1.bf16.msra.mxu0 %v16986_v63  ;;  %9775 = vmatprep.subr.bf16.mxu1 %v16987_v18  ;;  %v17027_v22 = vld [vmem:[%s24126_s2 + $0x17e4] ss:$16 sps:$4 sm:$0xff]   ;;  %v17029_v63 = vld [vmem:[%s24126_s2 + $0x17e0] ss:$16 sps:$4 sm:$0xff]  }
 0x692   : > { %v9499_v52 = vpop.f32.mrf.mxu0  ;;  %9792 = vmatprep.subr.bf16.mxu0 %v16988_v8  ;;  %v17030_v18 = vld [vmem:[%s24126_s2 + $0x1560] ss:$16 sps:$4 sm:$0xff]   ;;  %v17032_v8 = vld [vmem:[%s24126_s2 + $0x1544] ss:$16 sps:$4 sm:$0xff]  }
 0x693   : > { %v17031_v52 = vld [vmem:[%s24126_s2 + $0x17c4] ss:$16 sps:$4 sm:$0xff]  }
 0x694   : > { %9776 = vmatpush2.bf16.msra.mxu1 %v16989_v5  ;;  %v17033_v5 = vld [vmem:[%s24126_s2 + $0x17c0] ss:$16 sps:$4 sm:$0xff]  }
 0x695   : > { %9793 = vmatpush1.bf16.msra.mxu0 %v16990_v32  ;;  %9777 = vmatprep.subr.bf16.mxu1 %v16991_v12  ;;  %v17034_v32 = vld [vmem:[%s24126_s2 + $0x1540] ss:$16 sps:$4 sm:$0xff]   ;;  %v17035_v12 = vld [vmem:[%s24126_s2 + $0x17a4] ss:$16 sps:$4 sm:$0xff]  }
 0x696   : > { %9794 = vmatprep.subr.bf16.mxu0 %v16992_v24  ;;  %v17036_v24 = vld [vmem:[%s24126_s2 + $0x1524] ss:$16 sps:$4 sm:$0xff]  }
 0x698   : > { %9778 = vmatpush2.bf16.msra.mxu1 %v16993_v33  ;;  %v17037_v33 = vld [vmem:[%s24126_s2 + $0x17a0] ss:$16 sps:$4 sm:$0xff]  }
 0x699   : > { %9795 = vmatpush1.bf16.msra.mxu0 %v16994_v54  ;;  %9829 = vmatprep.subr.bf16.mxu1 %v16995_v37  ;;  %v17038_v54 = vld [vmem:[%s24126_s2 + $0x1520] ss:$16 sps:$4 sm:$0xff]   ;;  %v17039_v37 = vld [vmem:[%s24126_s2 + $0x1784] ss:$16 sps:$4 sm:$0xff]  }
 0x69a   : > { %9796 = vmatprep.subr.bf16.mxu0 %v16996_v10  ;;  %v17040_v10 = vld [vmem:[%s24126_s2 + $0x1504] ss:$16 sps:$4 sm:$0xff]  }
 0x69b   : > { %v9535_v16 = vpop.f32.mrf.mxu1  ;;  %9780 = vmatmul.mubr.bf16.vlgmr.msra.gmra.mxu1 %v18538_v58 }
 0x69c   : > { %v22912_v38 = vadd.f32 %v9535_v16, %v9494_v53  ;;  %9830 = vmatpush1.bf16.msra.mxu1 %v16997_v31  ;;  %9861 = vmatprep.mubr.bf16.mxu1 %v21685_v27  ;;  %v17021_v53 = vld [vmem:[%s24126_s2 + $0x1620] ss:$16 sps:$4 sm:$0xff]  }
 0x69d   : > { %9797 = vmatpush1.bf16.msra.mxu0 %v16998_v1  ;;  %v9537_v39 = vpop.f32.mrf.mxu1  ;;  %9831 = vmatprep.subr.bf16.mxu1 %v16999_v3  ;;  %v17041_v16 = vld [vmem:[%s24126_s2 + $0x1780] ss:$16 sps:$4 sm:$0xff]   ;;  %v17043_v1 = vld [vmem:[%s24126_s2 + $0x1764] ss:$16 sps:$4 sm:$0xff]  }
 0x69e   : > { %v22924_v58 = vadd.f32 %v9537_v39, %v9496_v14  ;;  %9798 = vmatprep.subr.bf16.mxu0 %v17000_v23  ;;  %v17024_v14 = vld [vmem:[%s24126_s2 + $0x1584] ss:$16 sps:$4 sm:$0xff]   ;;  %v17042_v31 = vld [vmem:[%s24126_s2 + $0x1500] ss:$16 sps:$4 sm:$0xff]   ;;  %v17044_v39 = vld [vmem:[%s24126_s2 + $0x14ec] ss:$16 sps:$4 sm:$0xff]  }
 0x69f   : > { %v9539_v55 = vpop.f32.mrf.mxu1  ;;  %v17045_v23 = vld [vmem:[%s24126_s2 + $0x1760] ss:$16 sps:$4 sm:$0xff]  }
 0x6a0   : > { %9832 = vmatpush1.bf16.msra.mxu1 %v17001_v51  ;;  %v17046_v55 = vld [vmem:[%s24126_s2 + $0x14e8] ss:$16 sps:$4 sm:$0xff]  }
 0x6a1   : > { %9799 = vmatpush1.bf16.msra.mxu0 %v17002_v7  ;;  %v9540_v20 = vpop.f32.mrf.mxu1  ;;  %9833 = vmatprep.subr.bf16.mxu1 %v17003_v11  ;;  %v17047_v7 = vld [vmem:[%s24126_s2 + $0x1744] ss:$16 sps:$4 sm:$0xff]  }
 0x6a2   : > { %9800 = vmatprep.subr.bf16.mxu0 %v17004_v15  ;;  %v17048_v20 = vld [vmem:[%s24126_s2 + $0x14cc] ss:$16 sps:$4 sm:$0xff]   ;;  %v17049_v15 = vld [vmem:[%s24126_s2 + $0x1740] ss:$16 sps:$4 sm:$0xff]  }
 0x6a4   : > { %9834 = vmatpush1.bf16.msra.mxu1 %v17005_v61  ;;  %v17051_v61 = vld [vmem:[%s24126_s2 + $0x1724] ss:$16 sps:$4 sm:$0xff]  }
 0x6a5   : > { %9801 = vmatpush1.bf16.msra.mxu0 %v17006_v47  ;;  %9835 = vmatprep.subr.bf16.mxu1 %v17007_v9  ;;  %v17052_v9 = vld [vmem:[%s24126_s2 + $0x14ac] ss:$16 sps:$4 sm:$0xff]  }
 0x6a6   : > { %9802 = vmatprep.subr.bf16.mxu0 %v17008_v46  ;;  %v17053_v46 = vld [vmem:[%s24126_s2 + $0x1720] ss:$16 sps:$4 sm:$0xff]  }
 0x6a8   : > { %9836 = vmatpush1.bf16.msra.mxu1 %v17009_v49  ;;  %v17054_v49 = vld [vmem:[%s24126_s2 + $0x14a8] ss:$16 sps:$4 sm:$0xff]  }
 0x6a9   : > { %9803 = vmatpush1.bf16.msra.mxu0 %v17010_v19  ;;  %9837 = vmatprep.subr.bf16.mxu1 %v17011_v48  ;;  %v17055_v19 = vld [vmem:[%s24126_s2 + $0x1704] ss:$16 sps:$4 sm:$0xff]   ;;  %v17056_v48 = vld [vmem:[%s24126_s2 + $0x148c] ss:$16 sps:$4 sm:$0xff]  }
 0x6aa   : > { %9804 = vmatprep.subr.bf16.mxu0 %v17012_v28  ;;  %v17057_v28 = vld [vmem:[%s24126_s2 + $0x1700] ss:$16 sps:$4 sm:$0xff]  }
 0x6ac   : > { %9838 = vmatpush1.bf16.msra.mxu1 %v17013_v41  ;;  %v17058_v41 = vld [vmem:[%s24126_s2 + $0x1488] ss:$16 sps:$4 sm:$0xff]  }
 0x6ad   : > { %9805 = vmatpush2.bf16.msra.mxu0 %v17014_v0  ;;  %9839 = vmatprep.subr.bf16.mxu1 %v17015_v42  ;;  %v17059_v0 = vld [vmem:[%s24126_s2 + $0x16ec] ss:$16 sps:$4 sm:$0xff]  }
 0x6ae   : > { %9806 = vmatprep.subr.bf16.mxu0 %v17016_v44  ;;  %v17060_v42 = vld [vmem:[%s24126_s2 + $0x146c] ss:$16 sps:$4 sm:$0xff]  }
 0x6b0   : > { %9840 = vmatpush1.bf16.msra.mxu1 %v17017_v25 }
 0x6b1   : > { %9807 = vmatpush2.bf16.msra.mxu0 %v17018_v34  ;;  %9841 = vmatprep.subr.bf16.mxu1 %v17019_v45  ;;  %v17061_v34 = vld [vmem:[%s24126_s2 + $0x16e8] ss:$16 sps:$4 sm:$0xff]  }
 0x6b2   : > { %9808 = vmatprep.subr.bf16.mxu0 %v17020_v29  ;;  %v17062_v45 = vld [vmem:[%s24126_s2 + $0x1468] ss:$16 sps:$4 sm:$0xff]  }
 0x6b4   : > { %9842 = vmatpush1.bf16.msra.mxu1 %v17021_v53  ;;  %v17063_v53 = vld [vmem:[%s24126_s2 + $0x16cc] ss:$16 sps:$4 sm:$0xff]  }
 0x6b5   : > { %9809 = vmatpush2.bf16.msra.mxu0 %v17022_v56  ;;  %9843 = vmatprep.subr.bf16.mxu1 %v17023_v57  ;;  %v17064_v57 = vld [vmem:[%s24126_s2 + $0x144c] ss:$16 sps:$4 sm:$0xff]  }
 0x6b6   : > { %9810 = vmatprep.subr.bf16.mxu0 %v17024_v14 }
 0x6b8   : > { %9844 = vmatpush1.bf16.msra.mxu1 %v17025_v13  ;;  %v17066_v13 = vld [vmem:[%s24126_s2 + $0x1448] ss:$16 sps:$4 sm:$0xff]  }
 0x6b9   : > { %9811 = vmatpush2.bf16.msra.mxu0 %v17026_v26  ;;  %9845 = vmatprep.subr.bf16.mxu1 %v17027_v22  ;;  %v17067_v22 = vld [vmem:[%s24126_s2 + $0x16ac] ss:$16 sps:$4 sm:$0xff]  }
 0x6ba   : > { %9812 = vmatprep.subr.bf16.mxu0 %v17028_v30  ;;  %v17068_v30 = vld [vmem:[%s24126_s2 + $0x142c] ss:$16 sps:$4 sm:$0xff]  }
 0x6bc   : > { %9846 = vmatpush2.bf16.msra.mxu1 %v17029_v63  ;;  %v17069_v63 = vld [vmem:[%s24126_s2 + $0x16a8] ss:$16 sps:$4 sm:$0xff]  }
 0x6bd   : > { %9813 = vmatpush2.bf16.msra.mxu0 %v17030_v18  ;;  %9847 = vmatprep.subr.bf16.mxu1 %v17031_v52  ;;  %v17070_v18 = vld [vmem:[%s24126_s2 + $0x1428] ss:$16 sps:$4 sm:$0xff]   ;;  %v17071_v52 = vld [vmem:[%s24126_s2 + $0x168c] ss:$16 sps:$4 sm:$0xff]  }
 0x6be   : > { %9814 = vmatprep.subr.bf16.mxu0 %v17032_v8  ;;  %v17072_v8 = vld [vmem:[%s24126_s2 + $0x140c] ss:$16 sps:$4 sm:$0xff]  }
 0x6c0   : > { %9848 = vmatpush2.bf16.msra.mxu1 %v17033_v5  ;;  %v17073_v5 = vld [vmem:[%s24126_s2 + $0x1688] ss:$16 sps:$4 sm:$0xff]  }
 0x6c1   : > { %9815 = vmatpush2.bf16.msra.mxu0 %v17034_v32  ;;  %9849 = vmatprep.subr.bf16.mxu1 %v17035_v12  ;;  %v17074_v32 = vld [vmem:[%s24126_s2 + $0x1408] ss:$16 sps:$4 sm:$0xff]   ;;  %v17075_v12 = vld [vmem:[%s24126_s2 + $0x166c] ss:$16 sps:$4 sm:$0xff]  }
 0x6c2   : > { %9816 = vmatprep.subr.bf16.mxu0 %v17036_v24  ;;  %v17076_v24 = vld [vmem:[%s24126_s2 + $0x15ec] ss:$16 sps:$4 sm:$0xff]  }
 0x6c4   : > { %9850 = vmatpush2.bf16.msra.mxu1 %v17037_v33  ;;  %v17077_v33 = vld [vmem:[%s24126_s2 + $0x1668] ss:$16 sps:$4 sm:$0xff]  }
 0x6c5   : > { %9817 = vmatpush2.bf16.msra.mxu0 %v17038_v54  ;;  %9851 = vmatprep.subr.bf16.mxu1 %v17039_v37  ;;  %v17078_v54 = vld [vmem:[%s24126_s2 + $0x15e8] ss:$16 sps:$4 sm:$0xff]   ;;  %v17079_v37 = vld [vmem:[%s24126_s2 + $0x164c] ss:$16 sps:$4 sm:$0xff]  }
 0x6c6   : > { %9818 = vmatprep.subr.bf16.mxu0 %v17040_v10  ;;  %v17080_v10 = vld [vmem:[%s24126_s2 + $0x15cc] ss:$16 sps:$4 sm:$0xff]  }
 0x6c8   : > { %9852 = vmatpush2.bf16.msra.mxu1 %v17041_v16  ;;  %v17081_v16 = vld [vmem:[%s24126_s2 + $0x1648] ss:$16 sps:$4 sm:$0xff]  }
 0x6c9   : > { %9819 = vmatpush2.bf16.msra.mxu0 %v17042_v31  ;;  %9853 = vmatprep.subr.bf16.mxu1 %v17043_v1  ;;  %v17082_v31 = vld [vmem:[%s24126_s2 + $0x15c8] ss:$16 sps:$4 sm:$0xff]   ;;  %v17083_v1 = vld [vmem:[%s24126_s2 + $0x162c] ss:$16 sps:$4 sm:$0xff]  }
 0x6ca   : > { %9870 = vmatprep.subr.bf16.mxu0 %v17044_v39  ;;  %v17084_v39 = vld [vmem:[%s24126_s2 + $0x15ac] ss:$16 sps:$4 sm:$0xff]  }
 0x6cc   : > { %v9576_v3 = vpop.f32.mrf.mxu0  ;;  %9821 = vmatmul.mubr.bf16.vlgmr.msra.gmra.mxu0 %v21834_v62  ;;  %9854 = vmatpush2.bf16.msra.mxu1 %v17045_v23  ;;  %v17086_v23 = vld [vmem:[%s24126_s2 + $0x15a8] ss:$16 sps:$4 sm:$0xff]  }
 0x6cd   : > { %9871 = vmatpush1.bf16.msra.mxu0 %v17046_v55  ;;  %9902 = vmatprep.mubr.bf16.mxu0 %v21633_v60  ;;  %v17050_v60 = vld [vmem:[%s24126_s2 + $0x14c8] ss:$16 sps:$4 sm:$0xff]   ;;  %v17087_v55 = vld [vmem:[%s24126_s2 + $0x160c] ss:$16 sps:$4 sm:$0xff]  }
 0x6ce   : > { %v9578_v51 = vpop.f32.mrf.mxu0  ;;  %9855 = vmatprep.subr.bf16.mxu1 %v17047_v7  ;;  %9872 = vmatprep.subr.bf16.mxu0 %v17048_v20  ;;  %v17089_v7 = vld [vmem:[%s24126_s2 + $0x1608] ss:$16 sps:$4 sm:$0xff]  }
 0x6cf   : > { %v17090_v20 = vld [vmem:[%s24126_s2 + $0x1588] ss:$16 sps:$4 sm:$0xff]  }
 0x6d0   : > { %v9580_v11 = vpop.f32.mrf.mxu0  ;;  %9856 = vmatpush2.bf16.msra.mxu1 %v17049_v15  ;;  %v17092_v15 = vld [vmem:[%s24126_s2 + $0x156c] ss:$16 sps:$4 sm:$0xff]  }
 0x6d1   : > { %9873 = vmatpush1.bf16.msra.mxu0 %v17050_v60  ;;  %9857 = vmatprep.subr.bf16.mxu1 %v17051_v61  ;;  %v17091_v11 = vld [vmem:[%s24126_s2 + $0x17ec] ss:$16 sps:$4 sm:$0xff]   ;;  %v17093_v60 = vld [vmem:[%s24126_s2 + $0x17e8] ss:$16 sps:$4 sm:$0xff]  }
 0x6d2   : > { %v9581_v47 = vpop.f32.mrf.mxu0  ;;  %9874 = vmatprep.subr.bf16.mxu0 %v17052_v9  ;;  %v17094_v61 = vld [vmem:[%s24126_s2 + $0x1568] ss:$16 sps:$4 sm:$0xff]   ;;  %v17096_v9 = vld [vmem:[%s24126_s2 + $0x154c] ss:$16 sps:$4 sm:$0xff]  }
 0x6d3   : > { %v17095_v47 = vld [vmem:[%s24126_s2 + $0x17cc] ss:$16 sps:$4 sm:$0xff]  }
 0x6d4   : > { %9858 = vmatpush2.bf16.msra.mxu1 %v17053_v46  ;;  %v17097_v46 = vld [vmem:[%s24126_s2 + $0x17c8] ss:$16 sps:$4 sm:$0xff]  }
 0x6d5   : > { %9875 = vmatpush1.bf16.msra.mxu0 %v17054_v49  ;;  %9859 = vmatprep.subr.bf16.mxu1 %v17055_v19  ;;  %v17098_v49 = vld [vmem:[%s24126_s2 + $0x1548] ss:$16 sps:$4 sm:$0xff]   ;;  %v17099_v19 = vld [vmem:[%s24126_s2 + $0x17ac] ss:$16 sps:$4 sm:$0xff]  }
 0x6d6   : > { %9876 = vmatprep.subr.bf16.mxu0 %v17056_v48  ;;  %v17100_v48 = vld [vmem:[%s24126_s2 + $0x152c] ss:$16 sps:$4 sm:$0xff]  }
 0x6d8   : > { %9860 = vmatpush2.bf16.msra.mxu1 %v17057_v28  ;;  %v17101_v28 = vld [vmem:[%s24126_s2 + $0x17a8] ss:$16 sps:$4 sm:$0xff]  }
 0x6d9   : > { %9877 = vmatpush1.bf16.msra.mxu0 %v17058_v41  ;;  %9911 = vmatprep.subr.bf16.mxu1 %v17059_v0  ;;  %v17102_v41 = vld [vmem:[%s24126_s2 + $0x1528] ss:$16 sps:$4 sm:$0xff]   ;;  %v17103_v0 = vld [vmem:[%s24126_s2 + $0x178c] ss:$16 sps:$4 sm:$0xff]  }
 0x6da   : > { %9878 = vmatprep.subr.bf16.mxu0 %v17060_v42  ;;  %v17104_v42 = vld [vmem:[%s24126_s2 + $0x150c] ss:$16 sps:$4 sm:$0xff]  }
 0x6db   : > { %v9617_v44 = vpop.f32.mrf.mxu1  ;;  %9862 = vmatmul.mubr.bf16.vlgmr.msra.gmra.mxu1 %v21880_v59 }
 0x6dc   : > { %v23112_v25 = vadd.f32 %v9617_v44, %v9576_v3  ;;  %9912 = vmatpush1.bf16.msra.mxu1 %v17061_v34  ;;  %9943 = vmatprep.mubr.bf16.mxu1 %v21685_v27  ;;  %v17065_v27 = vld [vmem:[%s24126_s2 + $0x16c8] ss:$16 sps:$4 sm:$0xff]  }
 0x6dd   : > { %9879 = vmatpush1.bf16.msra.mxu0 %v17062_v45  ;;  %v9619_v29 = vpop.f32.mrf.mxu1  ;;  %9913 = vmatprep.subr.bf16.mxu1 %v17063_v53  ;;  %v17085_v3 = vld [vmem:[%s24126_s2 + $0x1628] ss:$16 sps:$4 sm:$0xff]   ;;  %v17107_v45 = vld [vmem:[%s24126_s2 + $0x176c] ss:$16 sps:$4 sm:$0xff]  }
 0x6de   : > { %v23124_v56 = vadd.f32 %v9619_v29, %v9578_v51  ;;  %9880 = vmatprep.subr.bf16.mxu0 %v17064_v57  ;;  %v17088_v51 = vld [vmem:[%s24126_s2 + $0x158c] ss:$16 sps:$4 sm:$0xff]   ;;  %v17105_v44 = vld [vmem:[%s24126_s2 + $0x1788] ss:$16 sps:$4 sm:$0xff]  }
 0x6df   : > { %v9621_v14 = vpop.f32.mrf.mxu1  ;;  %v17106_v34 = vld [vmem:[%s24126_s2 + $0x1508] ss:$16 sps:$4 sm:$0xff]  }
 0x6e0   : > { %9914 = vmatpush1.bf16.msra.mxu1 %v17065_v27  ;;  %v17108_v53 = vld [vmem:[%s24126_s2 + $0x1768] ss:$16 sps:$4 sm:$0xff]   ;;  %v17109_v27 = vld [vmem:[%s24126_s2 + $0x174c] ss:$16 sps:$4 sm:$0xff]  }
 0x6e1   : > { %9881 = vmatpush1.bf16.msra.mxu0 %v17066_v13  ;;  %v9622_v26 = vpop.f32.mrf.mxu1  ;;  %9915 = vmatprep.subr.bf16.mxu1 %v17067_v22  ;;  %v16119_v57 = vld [vmem:[%s24129_s5 + $0x158] sm:$0xff]  }
 0x6e2   : > { %9882 = vmatprep.subr.bf16.mxu0 %v17068_v30  ;;  %v17110_v30 = vld [vmem:[%s24126_s2 + $0x1748] ss:$16 sps:$4 sm:$0xff]  }
 0x6e4   : > { %9916 = vmatpush1.bf16.msra.mxu1 %v17069_v63  ;;  %v17111_v63 = vld [vmem:[%s24126_s2 + $0x172c] ss:$16 sps:$4 sm:$0xff]  }
 0x6e5   : > { %9883 = vmatpush1.bf16.msra.mxu0 %v17070_v18  ;;  %9917 = vmatprep.subr.bf16.mxu1 %v17071_v52  ;;  %v16123_v52 = vld [vmem:[%s24129_s5 + $0x148] sm:$0xff]  }
 0x6e6   : > { %9884 = vmatprep.subr.bf16.mxu0 %v17072_v8  ;;  %v17112_v8 = vld [vmem:[%s24126_s2 + $0x1728] ss:$16 sps:$4 sm:$0xff]  }
 0x6e8   : > { %9918 = vmatpush1.bf16.msra.mxu1 %v17073_v5  ;;  %v16124_v5 = vld [vmem:[%s24129_s5 + $0x108] sm:$0xff]  }
 0x6e9   : > { %9885 = vmatpush1.bf16.msra.mxu0 %v17074_v32  ;;  %9919 = vmatprep.subr.bf16.mxu1 %v17075_v12  ;;  %v17113_v32 = vld [vmem:[%s24126_s2 + $0x170c] ss:$16 sps:$4 sm:$0xff]   ;;  %v16125_v12 = vld [vmem:[%s24129_s5 + $0x140] sm:$0xff]  }
 0x6ea   : > { %9886 = vmatprep.subr.bf16.mxu0 %v17076_v24  ;;  %v17114_v24 = vld [vmem:[%s24126_s2 + $0x1708] ss:$16 sps:$4 sm:$0xff]  }
 0x6ec   : > { %9920 = vmatpush1.bf16.msra.mxu1 %v17077_v33  ;;  %v16126_v33 = vld [vmem:[%s24129_s5 + $0x100] sm:$0xff]  }
 0x6ed   : > { %9887 = vmatpush2.bf16.msra.mxu0 %v17078_v54  ;;  %9921 = vmatprep.subr.bf16.mxu1 %v17079_v37 }
 0x6ee   : > { %9888 = vmatprep.subr.bf16.mxu0 %v17080_v10 }
 0x6f0   : > { %9922 = vmatpush1.bf16.msra.mxu1 %v17081_v16 }
 0x6f1   : > { %9889 = vmatpush2.bf16.msra.mxu0 %v17082_v31  ;;  %9923 = vmatprep.subr.bf16.mxu1 %v17083_v1 }
 0x6f2   : > { %9890 = vmatprep.subr.bf16.mxu0 %v17084_v39  ;;  %v16127_v39 = vld [vmem:[%s24129_s5 + $0x138] sm:$0xff]  }
 0x6f4   : > { %9924 = vmatpush1.bf16.msra.mxu1 %v17085_v3  ;;  %v16128_v3 = vld [vmem:[%s24129_s5 + $0xf8] sm:$0xff]  }
 0x6f5   : > { %9891 = vmatpush2.bf16.msra.mxu0 %v17086_v23  ;;  %9925 = vmatprep.subr.bf16.mxu1 %v17087_v55  ;;  %v16130_v23 = vld [vmem:[%s24129_s5 + $0xf0] sm:$0xff]   ;;  %v16131_v55 = vld [vmem:[%s24129_s5 + $0x128] sm:$0xff]  }
 0x6f6   : > { %9892 = vmatprep.subr.bf16.mxu0 %v17088_v51  ;;  %v16132_v51 = vld [vmem:[%s24129_s5 + $0xe8] sm:$0xff]  }
 0x6f8   : > { %9926 = vmatpush1.bf16.msra.mxu1 %v17089_v7  ;;  %v16133_v7 = vld [vmem:[%s24129_s5 + $0x120] sm:$0xff]  }
 0x6f9   : > { %9893 = vmatpush2.bf16.msra.mxu0 %v17090_v20  ;;  %9927 = vmatprep.subr.bf16.mxu1 %v17091_v11  ;;  %v16134_v20 = vld [vmem:[%s24129_s5 + $0xe0] sm:$0xff]   ;;  %v16135_v11 = vld [vmem:[%s24129_s5 + $0x78] sm:$0xff]  }
 0x6fa   : > { %9894 = vmatprep.subr.bf16.mxu0 %v17092_v15  ;;  %v16144_v15 = vld [vmem:[%s24129_s5 + $0x198] sm:$0xff]  }
 0x6fc   : > { %9928 = vmatpush2.bf16.msra.mxu1 %v17093_v60  ;;  %v16147_v60 = vld [vmem:[%s24129_s5 + $0x190] sm:$0xff]  }
 0x6fd   : > { %9895 = vmatpush2.bf16.msra.mxu0 %v17094_v61  ;;  %9929 = vmatprep.subr.bf16.mxu1 %v17095_v47  ;;  %v16150_v61 = vld [vmem:[%s24129_s5 + $0x188] sm:$0xff]   ;;  %v16153_v47 = vld [vmem:[%s24129_s5 + $0x180] sm:$0xff]  }
 0x6fe   : > { %9896 = vmatprep.subr.bf16.mxu0 %v17096_v9 }
 0x700   : > { %9930 = vmatpush2.bf16.msra.mxu1 %v17097_v46 }
 0x701   : > { %9897 = vmatpush2.bf16.msra.mxu0 %v17098_v49  ;;  %9931 = vmatprep.subr.bf16.mxu1 %v17099_v19  ;;  %v16156_v19 = vld [vmem:[%s24129_s5 + $0x178] sm:$0xff]  }
 0x702   : > { %9898 = vmatprep.subr.bf16.mxu0 %v17100_v48 }
 0x704   : > { %9932 = vmatpush2.bf16.msra.mxu1 %v17101_v28 }
 0x705   : > { %9899 = vmatpush2.bf16.msra.mxu0 %v17102_v41  ;;  %9933 = vmatprep.subr.bf16.mxu1 %v17103_v0  ;;  %v16159_v0 = vld [vmem:[%s24129_s5 + $0x170] sm:$0xff]  }
 0x706   : > { %9900 = vmatprep.subr.bf16.mxu0 %v17104_v42 }
 0x708   : > { %9934 = vmatpush2.bf16.msra.mxu1 %v17105_v44 }
 0x709   : > { %9901 = vmatpush2.bf16.msra.mxu0 %v17106_v34  ;;  %9935 = vmatprep.subr.bf16.mxu1 %v17107_v45 }
 0x70a   : > { %14650 = vmatprep.subr.bf16.mxu0 %v16119_v57  ;;  %v16168_v57 = vld [vmem:[%s24129_s5 + $0x1b8] sm:$0xff]  }
 0x70c   : > { %v9658_v29 = vpop.f32.mrf.mxu0  ;;  %9903 = vmatmul.mubr.bf16.vlgmr.msra.gmra.mxu0 %v21834_v62  ;;  %9936 = vmatpush2.bf16.msra.mxu1 %v17108_v53  ;;  %v16120_v62 = vld [vmem:[%s24129_s5 + $0x118] sm:$0xff]  }
 0x70d   : > { %v9659_v14 = vadd.f32 %v9658_v29, %v22912_v38  ;;  %9937 = vmatprep.subr.bf16.mxu1 %v17109_v27  ;;  %14651 = vmatpush3.bf16.msra.mxu0 %v16120_v62  ;;  %v16121_v38 = vld [vmem:[%s24129_s5 + $0x150] sm:$0xff]   ;;  %v16174_v27 = vld [vmem:[%s24129_s5 + $0x1a8] sm:$0xff]  }
 0x70e   : > { %v9660_v13 = vpop.f32.mrf.mxu0  ;;  %14652 = vmatprep.subr.bf16.mxu0 %v16121_v38  ;;  %v23396_v38 = vld [vmem:[%s24128_s4] sm:$0xf] }
 0x70f   : > { %v9661_v26 = vadd.f32 %v9660_v13, %v22924_v58  ;;  %v16122_v58 = vld [vmem:[%s24129_s5 + $0x110] sm:$0xff]   ;;  %v16177_v13 = vld [vmem:[%s24129_s5 + $0x1a0] sm:$0xff]  }
 0x710   : > { %v9662_v22 = vpop.f32.mrf.mxu0  ;;  %9938 = vmatpush2.bf16.msra.mxu1 %v17110_v30 }
 0x711   : > { %9939 = vmatprep.subr.bf16.mxu1 %v17111_v63  ;;  %14653 = vmatpush3.bf16.msra.mxu0 %v16122_v58 }
 0x712   : > { %v9663_v18 = vpop.f32.mrf.mxu0  ;;  %14654 = vmatprep.subr.bf16.mxu0 %v16123_v52 }
 0x714   : > { %9940 = vmatpush2.bf16.msra.mxu1 %v17112_v8  ;;  %v9964_v8 = vrot.slane %v23396_v38, %v1732_v2 }
 0x715   : > { %9941 = vmatprep.subr.bf16.mxu1 %v17113_v32  ;;  %14655 = vmatpush3.bf16.msra.mxu0 %v16124_v5 }
 0x716   : > { %14656 = vmatprep.subr.bf16.mxu0 %v16125_v12 }
 0x718   : > { %9942 = vmatpush2.bf16.msra.mxu1 %v17114_v24 }
 0x719   : > { %10333 = vmatprep.subr.bf16.mxu1 %v17177_v6  ;;  %14657 = vmatpush3.bf16.msra.mxu0 %v16126_v33  ;;  %v9968_v33 = vrot.slane %v23396_v38, %v1736_v50 }
 0x71a   : > { %14658 = vmatprep.subr.bf16.mxu0 %v16127_v39 }
 0x71b   : > { %v9699_v54 = vpop.f32.mrf.mxu1  ;;  %9944 = vmatmul.mubr.bf16.vlgmr.msra.gmra.mxu1 %v21880_v59  ;;  %v16129_v59 = vld [vmem:[%s24129_s5 + $0x130] sm:$0xff]  }
 0x71c   : > { %v23308_v37 = vadd.f32 %v9699_v54, %v9659_v14  ;;  %10334 = vmatpush1.bf16.msra.mxu1 %v16144_v15  ;;  %v16171_v14 = vld [vmem:[%s24129_s5 + $0x1b0] sm:$0xff]  }
 0x71d   : > { %v9701_v10 = vpop.f32.mrf.mxu1  ;;  %14659 = vmatpush3.bf16.msra.mxu0 %v16128_v3  ;;  %10335 = vmatprep.subr.bf16.mxu1 %v17177_v6  ;;  %v16146_v15 = vld [vmem:[%s24129_s5 + $0x50] sm:$0xff]  }
 0x71e   : > { %v23310_v16 = vadd.f32 %v9701_v10, %v9661_v26  ;;  %14660 = vmatprep.subr.bf16.mxu0 %v16129_v59 }
 0x71f   : > { %v9703_v31 = vpop.f32.mrf.mxu1 }
 0x720   : > { %10336 = vmatpush1.bf16.msra.mxu1 %v16147_v60  ;;  %v16148_v60 = vld [vmem:[%s24129_s5 + $0x10] sm:$0xff]  }
 0x721   : > { %v9704_v1 = vpop.f32.mrf.mxu1  ;;  %14661 = vmatpush3.bf16.msra.mxu0 %v16130_v23  ;;  %10337 = vmatprep.subr.bf16.mxu1 %v17177_v6  ;;  %v16139_v23 = vld [vmem:[%s24129_s5 + $0x68] sm:$0xff]  }
 0x722   : > { %14662 = vmatprep.subr.bf16.mxu0 %v16131_v55  ;;  %v16140_v55 = vld [vmem:[%s24129_s5 + $0x28] sm:$0xff]  }
 0x724   : > { %10338 = vmatpush1.bf16.msra.mxu1 %v16150_v61  ;;  %v16149_v61 = vld [vmem:[%s24129_s5 + $0x48] sm:$0xff]  }
 0x725   : > { %14663 = vmatpush3.bf16.msra.mxu0 %v16132_v51  ;;  %10339 = vmatprep.subr.bf16.mxu1 %v17177_v6  ;;  %v16141_v51 = vld [vmem:[%s24129_s5 + $0x60] sm:$0xff]  }
 0x726   : > { %14664 = vmatprep.subr.bf16.mxu0 %v16133_v7  ;;  %v16142_v7 = vld [vmem:[%s24129_s5 + $0x20] sm:$0xff]  }
 0x728   : > { %10340 = vmatpush1.bf16.msra.mxu1 %v16153_v47  ;;  %v16151_v47 = vld [vmem:[%s24129_s5 + $0x8] sm:$0xff]  }
 0x729   : > { %14665 = vmatpush3.bf16.msra.mxu0 %v16134_v20  ;;  %10341 = vmatprep.subr.bf16.mxu1 %v17177_v6  ;;  %v16143_v20 = vld [vmem:[%s24129_s5 + $0x58] sm:$0xff]  }
 0x72a   : > { %14672 = vmatprep.subr.bf16.mxu0 %v16135_v11  ;;  %v16145_v11 = vld [vmem:[%s24129_s5 + $0x18] sm:$0xff]  }
 0x72c   : > { %10342 = vmatpush1.bf16.msra.mxu1 %v16156_v19  ;;  %v16157_v19 = vld [vmem:[%s24129_s5 + $0x1f8] sm:$0xff]  }
 0x72d   : > { %10343 = vmatprep.subr.bf16.mxu1 %v17177_v6 }
 0x730   : > { %10344 = vmatpush1.bf16.msra.mxu1 %v16159_v0 }
 0x731   : > { %10345 = vmatprep.subr.bf16.mxu1 %v17177_v6 }
 0x74c   : > { %v9740_v9 = vpop.f32.mrf.mxu0 }
 0x74d   : > { %v9741_v46 = vadd.f32 %v9740_v9, %v23112_v25  ;;  %v16162_v25 = vld [vmem:[%s24129_s5 + $0x168] sm:$0xff]   ;;  %v16152_v9 = vld [vmem:[%s24129_s5 + $0x40] sm:$0xff]  }
 0x74e   : > { %v9742_v49 = vpop.f32.mrf.mxu0  ;;  %10346 = vmatpush1.bf16.msra.mxu1 %v16162_v25  ;;  %v16160_v25 = vld [vmem:[%s24129_s5 + $0x1f0] sm:$0xff]  }
 0x74f   : > { %v9743_v48 = vadd.f32 %v9742_v49, %v23124_v56  ;;  %v16165_v56 = vld [vmem:[%s24129_s5 + $0x160] sm:$0xff]   ;;  %10347 = vmatprep.subr.bf16.mxu1 %v17177_v6  ;;  %v16155_v49 = vld [vmem:[%s24129_s5 + $0x238] sm:$0xff]  }
 0x750   : > { %v9744_v28 = vpop.f32.mrf.mxu0 }
 0x752   : > { %v9745_v41 = vpop.f32.mrf.mxu0  ;;  %10348 = vmatpush1.bf16.msra.mxu1 %v16165_v56  ;;  %v16161_v56 = vld [vmem:[%s24129_s5 + $0x228] sm:$0xff]  }
 0x753   : > { %10357 = vmatprep.subr.bf16.mxu1 %v17177_v6 }
 0x756   : > { %10358 = vmatpush2.bf16.msra.mxu1 %v16168_v57  ;;  %v16166_v57 = vld [vmem:[%s24129_s5 + $0x1e0] sm:$0xff]  }
 0x757   : > { %10359 = vmatprep.subr.bf16.mxu1 %v17177_v6 }
 0x75a   : > { %10360 = vmatpush2.bf16.msra.mxu1 %v16171_v14  ;;  %v16167_v14 = vld [vmem:[%s24129_s5 + $0x218] sm:$0xff]  }
 0x75b   : > { %v9781_v42 = vpop.f32.mrf.mxu1  ;;  %10361 = vmatprep.subr.bf16.mxu1 %v17177_v6 }
 0x75c   : > { %v23372_v44 = vadd.f32 %v9781_v42, %v9741_v46  ;;  %v16154_v46 = vld [vmem:[%s24129_s5] sm:$0xff]  }
 0x75d   : > { %v9783_v34 = vpop.f32.mrf.mxu1 }
 0x75e   : > { %v23375_v45 = vadd.f32 %v9783_v34, %v9743_v48  ;;  %10362 = vmatpush2.bf16.msra.mxu1 %v16174_v27  ;;  %v16158_v48 = vld [vmem:[%s24129_s5 + $0x230] sm:$0xff]   ;;  %v16169_v27 = vld [vmem:[%s24129_s5 + $0x1d8] sm:$0xff]  }
 0x75f   : > { %v9785_v29 = vpop.f32.mrf.mxu1  ;;  %10363 = vmatprep.subr.bf16.mxu1 %v17177_v6 }
 0x760   : > { %v16163_v29 = vld [vmem:[%s24129_s5 + $0x1e8] sm:$0xff]  }
 0x761   : > { %v9786_v53 = vpop.f32.mrf.mxu1 }
 0x762   : > { %10364 = vmatpush2.bf16.msra.mxu1 %v16177_v13  ;;  %v16164_v53 = vld [vmem:[%s24129_s5 + $0x220] sm:$0xff]  }
 0x763   : > { %10583 = vmatprep.subr.bf16.mxu1 %v17177_v6 }
 0x78c   : > { %v9822_v62 = vpop.f32.mrf.mxu0 }
 0x78e   : > { %v9824_v26 = vpop.f32.mrf.mxu0 }
 0x790   : > { %v9826_v22 = vpop.f32.mrf.mxu0 }
 0x792   : > { %v9827_v30 = vpop.f32.mrf.mxu0 }
 0x79b   : > { %v9863_v63 = vpop.f32.mrf.mxu1 }
 0x79c   : > { %v9864_v18 = vadd.f32 %v9863_v63, %v9822_v62  ;;  %v16170_v62 = vld [vmem:[%s24129_s5 + $0x210] sm:$0xff]   ;;  %v9972_v63 = vrot.slane %v23396_v38, %v1740_v4  ;;  %v9976_v4 = vrot.slane %v23396_v38, %v1744_v35 }
 0x79d   : > { %v9865_v58 = vpop.f32.mrf.mxu1 }
 0x79e   : > { %v9952_v52 = vadd.f32 %v9864_v18, %v23308_v37  ;;  %v9866_v5 = vadd.f32 %v9865_v58, %v9824_v26  ;;  %v16172_v58 = vld [vmem:[%s24129_s5 + $0x1d0] sm:$0xff]  }
 0x79f   : > { %v9867_v32 = vpop.f32.mrf.mxu1 }
 0x7a0   : > { %v9956_v12 = vmax.f32 %v22513_v36, %v9952_v52  ;;  %v9953_v24 = vadd.f32 %v9866_v5, %v23310_v16  ;;  %v16136_v36 = vld [vmem:[%s24129_s5 + $0x38] sm:$0xff]   ;;  %v16138_v16 = vld [vmem:[%s24129_s5 + $0x30] sm:$0xff]  }
 0x7a1   : > { %v9868_v54 = vpop.f32.mrf.mxu1 }
 0x7a2   : > { %v9981_v10 = vadd.f32 %v9964_v8, %v9956_v12  ;;  %v9957_v31 = vmax.f32 %v22528_v21, %v9953_v24  ;;  %v16137_v21 = vld [vmem:[%s24129_s5 + $0x70] sm:$0xff]   ;;  %v16173_v8 = vld [vmem:[%s24129_s5 + $0x208] sm:$0xff]  }
 0x7a4   : > { %v9985_v1 = vmax.f32 %v9981_v10, 0.0  ;;  %v9982_v37 = vadd.f32 %v9968_v33, %v9957_v31  ;;  %v16175_v33 = vld [vmem:[%s24129_s5 + $0x1c8] sm:$0xff]   ;;  %v16179_v31 = vld [vmem:[%s24129_s5 + $0xb8] sm:$0xff]  }
 0x7a6   : > { %v9986_v39 = vmax.f32 %v9982_v37, 0.0  ;;  %v23408_v3 = vpack.c.bf16 %v9985_v1, %v9985_v1  ;;  %v16180_v1 = vld [vmem:[%s24129_s5 + $0x278] sm:$0xff]  }
 0x7a8   : > { %v23410_v2 = vpack.c.bf16 %v9986_v39, %v9986_v39  ;;  %v23419_v50 = vshrl.u32 %v23408_v3, 16  ;;  %v10684_v37 = vrot.slane %v23408_v3, 1 }
 0x7aa   : > { %v23413_v59 = vshrl.u32 %v23410_v2, 16  ;;  %v10685_v41 = vrot.slane %v23410_v2, 1 }
 0x7ac   : > { %10325 = vmatprep.mubr.bf16.mxu0 %v23413_v59 }
 0x7ad   : > { %10326 = vmatmul.mubr.bf16.vlgmr.msra.gmra.mxu0 %v23419_v50 }
 0x7ae   : > { %14673 = vmatpush3.bf16.msra.mxu0 %v16136_v36  ;;  %10575 = vmatprep.mubr.bf16.mxu0 %v23410_v2 }
 0x7af   : > { %14674 = vmatprep.subr.bf16.mxu0 %v16137_v21  ;;  %v16181_v21 = vld [vmem:[%s24129_s5 + $0xb0] sm:$0xff]  }
 0x7b2   : > { %14675 = vmatpush3.bf16.msra.mxu0 %v16138_v16  ;;  %v16182_v16 = vld [vmem:[%s24129_s5 + $0x270] sm:$0xff]  }
 0x7b3   : > { %14676 = vmatprep.subr.bf16.mxu0 %v16139_v23  ;;  %v16183_v23 = vld [vmem:[%s24129_s5 + $0xa8] sm:$0xff]  }
 0x7b6   : > { %14677 = vmatpush3.bf16.msra.mxu0 %v16140_v55  ;;  %v16184_v55 = vld [vmem:[%s24129_s5 + $0x268] sm:$0xff]  }
 0x7b7   : > { %14678 = vmatprep.subr.bf16.mxu0 %v16141_v51  ;;  %v16185_v51 = vld [vmem:[%s24129_s5 + $0xa0] sm:$0xff]  }
 0x7ba   : > { %14679 = vmatpush3.bf16.msra.mxu0 %v16142_v7  ;;  %v16186_v7 = vld [vmem:[%s24129_s5 + $0x260] sm:$0xff]  }
 0x7bb   : > { %14680 = vmatprep.subr.bf16.mxu0 %v16143_v20  ;;  %v16187_v20 = vld [vmem:[%s24129_s5 + $0x98] sm:$0xff]  }
 0x7be   : > { %14681 = vmatpush3.bf16.msra.mxu0 %v16145_v11  ;;  %v16188_v11 = vld [vmem:[%s24129_s5 + $0x258] sm:$0xff]  }
 0x7bf   : > { %14682 = vmatprep.subr.bf16.mxu0 %v16146_v15  ;;  %v16189_v15 = vld [vmem:[%s24129_s5 + $0x90] sm:$0xff]  }
 0x7c2   : > { %14683 = vmatpush3.bf16.msra.mxu0 %v16148_v60  ;;  %v16190_v60 = vld [vmem:[%s24129_s5 + $0x250] sm:$0xff]  }
 0x7c3   : > { %14684 = vmatprep.subr.bf16.mxu0 %v16149_v61  ;;  %v16191_v61 = vld [vmem:[%s24129_s5 + $0x88] sm:$0xff]  }
 0x7c6   : > { %14685 = vmatpush3.bf16.msra.mxu0 %v16151_v47  ;;  %v16192_v47 = vld [vmem:[%s24129_s5 + $0x248] sm:$0xff]  }
 0x7c7   : > { %14686 = vmatprep.subr.bf16.mxu0 %v16152_v9  ;;  %v16193_v9 = vld [vmem:[%s24129_s5 + $0x80] sm:$0xff]  }
 0x7ca   : > { %14687 = vmatpush3.bf16.msra.mxu0 %v16154_v46  ;;  %v16194_v46 = vld [vmem:[%s24129_s5 + $0x240] sm:$0xff]  }
 0x7cb   : > { %14694 = vmatprep.subr.bf16.mxu0 %v16155_v49  ;;  %v16195_v49 = vld [vmem:[%s24129_s5 + $0xd8] sm:$0xff]  }
 0x7cc   : > { %v9904_v28 = vpop.f32.mrf.mxu0 }
 0x7cd   : > { %10576 = vmatmul.mubr.bf16.vlgmr.msra.gmra.mxu0 %v23408_v3 }
 0x7ce   : > { %v9906_v0 = vpop.f32.mrf.mxu0  ;;  %14695 = vmatpush3.bf16.msra.mxu0 %v16157_v19  ;;  %10894 = vmatprep.mubr.bf16.mxu0 %v10685_v41  ;;  %v16196_v19 = vld [vmem:[%s24129_s5 + $0x298] sm:$0xff]   ;;  %v16199_v41 = vld [vmem:[%s24129_s5 + $0xc8] sm:$0xff]  }
 0x7cf   : > { %14696 = vmatprep.subr.bf16.mxu0 %v16158_v48  ;;  %v16197_v48 = vld [vmem:[%s24129_s5 + $0xd0] sm:$0xff]  }
 0x7d0   : > { %v9908_v42 = vpop.f32.mrf.mxu0 }
 0x7d1   : > { %v16203_v42 = vld [vmem:[%s24129_s5 + $0x318] sm:$0xff]  }
 0x7d2   : > { %v9909_v34 = vpop.f32.mrf.mxu0  ;;  %14697 = vmatpush3.bf16.msra.mxu0 %v16160_v25  ;;  %v16201_v25 = vld [vmem:[%s24129_s5 + $0xc0] sm:$0xff]  }
 0x7d3   : > { %14698 = vmatprep.subr.bf16.mxu0 %v16161_v56  ;;  %v16202_v56 = vld [vmem:[%s24129_s5 + $0x280] sm:$0xff]   ;;  %v16204_v34 = vld [vmem:[%s24129_s5 + $0x3f8] sm:$0xff]  }
 0x7d6   : > { %14699 = vmatpush3.bf16.msra.mxu0 %v16163_v29  ;;  %v16205_v29 = vld [vmem:[%s24129_s5 + $0x2d8] sm:$0xff]  }
 0x7d7   : > { %14700 = vmatprep.subr.bf16.mxu0 %v16164_v53 }
 0x7da   : > { %14701 = vmatpush3.bf16.msra.mxu0 %v16166_v57  ;;  %v16206_v57 = vld [vmem:[%s24129_s5 + $0x3b8] sm:$0xff]  }
 0x7db   : > { %v9945_v13 = vpop.f32.mrf.mxu1  ;;  %14702 = vmatprep.subr.bf16.mxu0 %v16167_v14  ;;  %v11001_v14 = vrot.slane %v23413_v59, 1 }
 0x7dc   : > { %v9946_v26 = vadd.f32 %v9945_v13, %v9904_v28  ;;  %v16198_v28 = vld [vmem:[%s24129_s5 + $0x290] sm:$0xff]  }
 0x7dd   : > { %v9947_v22 = vpop.f32.mrf.mxu1  ;;  %v16208_v13 = vld [vmem:[%s24129_s5 + $0x3f0] sm:$0xff]  }
 0x7de   : > { %v9954_v30 = vadd.f32 %v9946_v26, %v23372_v44  ;;  %v9948_v18 = vadd.f32 %v9947_v22, %v9906_v0  ;;  %14703 = vmatpush3.bf16.msra.mxu0 %v16169_v27  ;;  %v16200_v0 = vld [vmem:[%s24129_s5 + $0x288] sm:$0xff]   ;;  %v16207_v27 = vld [vmem:[%s24129_s5 + $0x310] sm:$0xff]  }
 0x7df   : > { %v9949_v52 = vpop.f32.mrf.mxu1  ;;  %14704 = vmatprep.subr.bf16.mxu0 %v16170_v62  ;;  %v11317_v62 = vrot.slane %v23410_v2, 2  ;;  %v16209_v26 = vld [vmem:[%s24129_s5 + $0x2d0] sm:$0xff]  }
 0x7e0   : > { %v9958_v5 = vmax.f32 %v22721_v43, %v9954_v30  ;;  %v9955_v44 = vadd.f32 %v9948_v18, %v23375_v45  ;;  %v16176_v43 = vld [vmem:[%s24129_s5 + $0x200] sm:$0xff]   ;;  %v16210_v22 = vld [vmem:[%s24129_s5 + $0x3b0] sm:$0xff]   ;;  %v16211_v30 = vld [vmem:[%s24129_s5 + $0x308] sm:$0xff]  }
 0x7e1   : > { %v9950_v32 = vpop.f32.mrf.mxu1  ;;  %v16213_v18 = vld [vmem:[%s24129_s5 + $0x2c8] sm:$0xff]   ;;  %v16215_v52 = vld [vmem:[%s24129_s5 + $0x300] sm:$0xff]  }
 0x7e2   : > { %v9983_v12 = vadd.f32 %v9972_v63, %v9958_v5  ;;  %v9959_v24 = vmax.f32 %v22736_v40, %v9955_v44  ;;  %14705 = vmatpush3.bf16.msra.mxu0 %v16172_v58  ;;  %v16212_v63 = vld [vmem:[%s24129_s5 + $0x3e8] sm:$0xff]   ;;  %v16217_v5 = vld [vmem:[%s24129_s5 + $0x2c0] sm:$0xff]   ;;  %v16220_v32 = vld [vmem:[%s24129_s5 + $0x3d8] sm:$0xff]  }
 0x7e3   : > { %14706 = vmatprep.subr.bf16.mxu0 %v16173_v8  ;;  %v16214_v58 = vld [vmem:[%s24129_s5 + $0x3a8] sm:$0xff]   ;;  %v16216_v8 = vld [vmem:[%s24129_s5 + $0x3e0] sm:$0xff]  }
 0x7e4   : > { %v9987_v54 = vmax.f32 %v9983_v12, 0.0  ;;  %v9984_v45 = vadd.f32 %v9976_v4, %v9959_v24  ;;  %v16218_v44 = vld [vmem:[%s24129_s5 + $0x3a0] sm:$0xff]   ;;  %v16219_v4 = vld [vmem:[%s24129_s5 + $0x2f8] sm:$0xff]  }
 0x7e5   : > { %v16221_v12 = vld [vmem:[%s24129_s5 + $0x2b8] sm:$0xff]  }
 0x7e6   : > { %v9988_v10 = vmax.f32 %v9984_v45, 0.0  ;;  %14707 = vmatpush3.bf16.msra.mxu0 %v16175_v33  ;;  %v23526_v35 = vpack.c.bf16 %v9987_v54, %v9987_v54  ;;  %v16222_v24 = vld [vmem:[%s24129_s5 + $0x398] sm:$0xff]   ;;  %v16223_v33 = vld [vmem:[%s24129_s5 + $0x2f0] sm:$0xff]  }
 0x7e7   : > { %14708 = vmatprep.subr.bf16.mxu0 %v16176_v43  ;;  %v16224_v43 = vld [vmem:[%s24129_s5 + $0x3d0] sm:$0xff]  }
 0x7e8   : > { %v23528_v40 = vpack.c.bf16 %v9988_v10, %v9988_v10  ;;  %v23542_v39 = vshrl.u32 %v23526_v35, 16  ;;  %v10686_v53 = vrot.slane %v23526_v35, 1  ;;  %v16225_v54 = vld [vmem:[%s24129_s5 + $0x2b0] sm:$0xff]   ;;  %v16227_v10 = vld [vmem:[%s24129_s5 + $0x2e8] sm:$0xff]  }
 0x7e9   : > { %v16226_v45 = vld [vmem:[%s24129_s5 + $0x390] sm:$0xff]  }
 0x7ea   : > { %14709 = vmatpush3.bf16.msra.mxu0 %v16178_v17  ;;  %v23531_v38 = vshrl.u32 %v23528_v40, 16  ;;  %v10687_v36 = vrot.slane %v23528_v40, 1  ;;  %v16228_v17 = vld [vmem:[%s24129_s5 + $0x3c8] sm:$0xff]  }
 0x7eb   : > { %10902 = vmatprep.subr.bf16.mxu0 %v17177_v6 }
 0x7ec   : > { %14179 = vmatprep.mubr.msk.bf16.mxu1 %vm10289_vm0, %v23531_v38 }
 0x7ed   : > { %10895 = vmatmul.mubr.bf16.vlgmr.msra.gmra.mxu0 %v10684_v37  ;;  %10366 = vmatmul.mubr.bf16.vlgmr.msra.gmra.mxu1 %v23542_v39  ;;  %v16231_v37 = vld [vmem:[%s24129_s5 + $0x2e0] sm:$0xff]  }
 0x7ee   : > { %10584 = vmatpush1.bf16.msra.mxu1 %v16179_v31  ;;  %10903 = vmatpush1.bf16.msra.mxu0 %v16180_v1  ;;  %v16229_v31 = vld [vmem:[%s24129_s5 + $0x2a8] sm:$0xff]  }
 0x7ef   : > { %14293 = vmatprep.mubr.msk.bf16.mxu0 %vm10289_vm0, %v10687_v36  ;;  %14208 = vmatprep.mubr.msk.bf16.mxu1 %vm10289_vm0, %v23528_v40  ;;  %v16230_v1 = vld [vmem:[%s24129_s5 + $0x388] sm:$0xff]   ;;  %v16232_v36 = vld [vmem:[%s24129_s5 + $0x3c0] sm:$0xff]  }
 0x7f0   : > { %10585 = vmatprep.subr.bf16.mxu1 %v17177_v6  ;;  %10904 = vmatprep.subr.bf16.mxu0 %v17177_v6 }
 0x7f2   : > { %10586 = vmatpush1.bf16.msra.mxu1 %v16181_v21  ;;  %10905 = vmatpush1.bf16.msra.mxu0 %v16182_v16  ;;  %v16233_v21 = vld [vmem:[%s24129_s5 + $0x2a0] sm:$0xff]  }
 0x7f3   : > { %10587 = vmatprep.subr.bf16.mxu1 %v17177_v6  ;;  %10906 = vmatprep.subr.bf16.mxu0 %v17177_v6  ;;  %v16234_v16 = vld [vmem:[%s24129_s5 + $0x380] sm:$0xff]  }
 0x7f6   : > { %10588 = vmatpush1.bf16.msra.mxu1 %v16183_v23  ;;  %10907 = vmatpush1.bf16.msra.mxu0 %v16184_v55  ;;  %v16235_v23 = vld [vmem:[%s24129_s5 + $0x358] sm:$0xff]   ;;  %v11000_v55 = vrot.slane %v23419_v50, 1 }
 0x7f7   : > { %10589 = vmatprep.subr.bf16.mxu1 %v17177_v6  ;;  %10908 = vmatprep.subr.bf16.mxu0 %v17177_v6 }
 0x7fa   : > { %10590 = vmatpush1.bf16.msra.mxu1 %v16185_v51  ;;  %10909 = vmatpush1.bf16.msra.mxu0 %v16186_v7  ;;  %v16236_v51 = vld [vmem:[%s24129_s5 + $0x438] sm:$0xff]   ;;  %v11316_v7 = vrot.slane %v23408_v3, 2 }
 0x7fb   : > { %10591 = vmatprep.subr.bf16.mxu1 %v17177_v6  ;;  %10910 = vmatprep.subr.bf16.mxu0 %v17177_v6 }
 0x7fe   : > { %10592 = vmatpush1.bf16.msra.mxu1 %v16187_v20  ;;  %10911 = vmatpush1.bf16.msra.mxu0 %v16188_v11  ;;  %v11003_v20 = vrot.slane %v23531_v38, 1  ;;  %v11319_v11 = vrot.slane %v23528_v40, 2 }
 0x7ff   : > { %10593 = vmatprep.subr.bf16.mxu1 %v17177_v6  ;;  %10912 = vmatprep.subr.bf16.mxu0 %v17177_v6 }
 0x802   : > { %10594 = vmatpush1.bf16.msra.mxu1 %v16189_v15  ;;  %10913 = vmatpush1.bf16.msra.mxu0 %v16190_v60  ;;  %v16237_v15 = vld [vmem:[%s24129_s5 + $0x350] sm:$0xff]  }
 0x803   : > { %10595 = vmatprep.subr.bf16.mxu1 %v17177_v6  ;;  %10914 = vmatprep.subr.bf16.mxu0 %v17177_v6  ;;  %v16238_v60 = vld [vmem:[%s24129_s5 + $0x430] sm:$0xff]  }
 0x806   : > { %10596 = vmatpush1.bf16.msra.mxu1 %v16191_v61  ;;  %10915 = vmatpush1.bf16.msra.mxu0 %v16192_v47  ;;  %v16239_v61 = vld [vmem:[%s24129_s5 + $0x348] sm:$0xff]  }
 0x807   : > { %10597 = vmatprep.subr.bf16.mxu1 %v17177_v6  ;;  %10916 = vmatprep.subr.bf16.mxu0 %v17177_v6  ;;  %v16240_v47 = vld [vmem:[%s24129_s5 + $0x428] sm:$0xff]  }
 0x80a   : > { %10598 = vmatpush1.bf16.msra.mxu1 %v16193_v9  ;;  %10917 = vmatpush1.bf16.msra.mxu0 %v16194_v46  ;;  %v16241_v9 = vld [vmem:[%s24129_s5 + $0x340] sm:$0xff]  }
 0x80b   : > { %10607 = vmatprep.subr.bf16.mxu1 %v17177_v6  ;;  %10926 = vmatprep.subr.bf16.mxu0 %v17177_v6  ;;  %v16242_v46 = vld [vmem:[%s24129_s5 + $0x420] sm:$0xff]  }
 0x80e   : > { %10608 = vmatpush2.bf16.msra.mxu1 %v16195_v49  ;;  %10927 = vmatpush2.bf16.msra.mxu0 %v16196_v19  ;;  %v16243_v49 = vld [vmem:[%s24129_s5 + $0x338] sm:$0xff]  }
 0x80f   : > { %10609 = vmatprep.subr.bf16.mxu1 %v17177_v6  ;;  %10928 = vmatprep.subr.bf16.mxu0 %v17177_v6  ;;  %v16244_v19 = vld [vmem:[%s24129_s5 + $0x418] sm:$0xff]  }
 0x812   : > { %10610 = vmatpush2.bf16.msra.mxu1 %v16197_v48  ;;  %10929 = vmatpush2.bf16.msra.mxu0 %v16198_v28  ;;  %v16245_v48 = vld [vmem:[%s24129_s5 + $0x330] sm:$0xff]  }
 0x813   : > { %10611 = vmatprep.subr.bf16.mxu1 %v17177_v6  ;;  %10930 = vmatprep.subr.bf16.mxu0 %v17177_v6  ;;  %v16246_v28 = vld [vmem:[%s24129_s5 + $0x410] sm:$0xff]  }
 0x816   : > { %10612 = vmatpush2.bf16.msra.mxu1 %v16199_v41  ;;  %10931 = vmatpush2.bf16.msra.mxu0 %v16200_v0  ;;  %v16247_v41 = vld [vmem:[%s24129_s5 + $0x328] sm:$0xff]  }
 0x817   : > { %10613 = vmatprep.subr.bf16.mxu1 %v17177_v6  ;;  %10932 = vmatprep.subr.bf16.mxu0 %v17177_v6  ;;  %v16248_v0 = vld [vmem:[%s24129_s5 + $0x408] sm:$0xff]  }
 0x81a   : > { %10614 = vmatpush2.bf16.msra.mxu1 %v16201_v25  ;;  %10933 = vmatpush2.bf16.msra.mxu0 %v16202_v56  ;;  %v16249_v25 = vld [vmem:[%s24129_s5 + $0x320] sm:$0xff]  }
 0x81b   : > { %14716 = vmatprep.subr.bf16.mxu1 %v16203_v42  ;;  %14738 = vmatprep.subr.bf16.mxu0 %v16204_v34  ;;  %v16250_v56 = vld [vmem:[%s24129_s5 + $0x400] sm:$0xff]   ;;  %v16251_v42 = vld [vmem:[%s24129_s5 + $0x378] sm:$0xff]  }
 0x81c   : > { %v16252_v34 = vld [vmem:[%s24129_s5 + $0x458] sm:$0xff]  }
 0x81d   : > { %10616 = vmatmul.mubr.bf16.vlgmr.msra.gmra.mxu1 %v23526_v35  ;;  %10935 = vmatmul.mubr.bf16.vlgmr.msra.gmra.mxu0 %v10686_v53  ;;  %v16254_v53 = vld [vmem:[%s24129_s5 + $0x450] sm:$0xff]  }
 0x81e   : > { %14717 = vmatpush3.bf16.msra.mxu1 %v16205_v29  ;;  %11210 = vmatprep.mubr.bf16.mxu1 %v11001_v14  ;;  %v16253_v29 = vld [vmem:[%s24129_s5 + $0x370] sm:$0xff]   ;;  %v16256_v14 = vld [vmem:[%s24129_s5 + $0x448] sm:$0xff]  }
 0x81f   : > { %14739 = vmatpush3.bf16.msra.mxu0 %v16206_v57  ;;  %11526 = vmatprep.mubr.bf16.mxu0 %v11317_v62  ;;  %v16255_v57 = vld [vmem:[%s24129_s5 + $0x368] sm:$0xff]   ;;  %v16259_v62 = vld [vmem:[%s24129_s5 + $0x4d8] sm:$0xff]  }
 0x820   : > { %14718 = vmatprep.subr.bf16.mxu1 %v16207_v27  ;;  %14740 = vmatprep.subr.bf16.mxu0 %v16208_v13  ;;  %v16257_v27 = vld [vmem:[%s24129_s5 + $0x360] sm:$0xff]  }
 0x821   : > { %v16258_v13 = vld [vmem:[%s24129_s5 + $0x440] sm:$0xff]  }
 0x822   : > { %14719 = vmatpush3.bf16.msra.mxu1 %v16209_v26  ;;  %v16260_v26 = vld [vmem:[%s24129_s5 + $0x5b8] sm:$0xff]  }
 0x823   : > { %14741 = vmatpush3.bf16.msra.mxu0 %v16210_v22  ;;  %14720 = vmatprep.subr.bf16.mxu1 %v16211_v30  ;;  %v16261_v22 = vld [vmem:[%s24129_s5 + $0x498] sm:$0xff]   ;;  %v11002_v30 = vrot.slane %v23542_v39, 1 }
 0x824   : > { %14742 = vmatprep.subr.bf16.mxu0 %v16212_v63  ;;  %v16262_v63 = vld [vmem:[%s24129_s5 + $0x578] sm:$0xff]  }
 0x826   : > { %14721 = vmatpush3.bf16.msra.mxu1 %v16213_v18  ;;  %v11318_v18 = vrot.slane %v23526_v35, 2 }
 0x827   : > { %14743 = vmatpush3.bf16.msra.mxu0 %v16214_v58  ;;  %14722 = vmatprep.subr.bf16.mxu1 %v16215_v52  ;;  %v16263_v58 = vld [vmem:[%s24129_s5 + $0x4d0] sm:$0xff]  }
 0x828   : > { %14744 = vmatprep.subr.bf16.mxu0 %v16216_v8  ;;  %v11633_v8 = vrot.slane %v23413_v59, 2  ;;  %v16267_v59 = vld [vmem:[%s24129_s5 + $0x4c8] sm:$0xff]  }
 0x82a   : > { %14723 = vmatpush3.bf16.msra.mxu1 %v16217_v5  ;;  %v16264_v5 = vld [vmem:[%s24129_s5 + $0x5b0] sm:$0xff]  }
 0x82b   : > { %14745 = vmatpush3.bf16.msra.mxu0 %v16218_v44  ;;  %14724 = vmatprep.subr.bf16.mxu1 %v16219_v4  ;;  %v11949_v44 = vrot.slane %v23410_v2, 3  ;;  %v16265_v4 = vld [vmem:[%s24129_s5 + $0x490] sm:$0xff]   ;;  %v16268_v2 = vld [vmem:[%s24129_s5 + $0x5a8] sm:$0xff]  }
 0x82c   : > { %14746 = vmatprep.subr.bf16.mxu0 %v16220_v32 }
 0x82e   : > { %14725 = vmatpush3.bf16.msra.mxu1 %v16221_v12  ;;  %v16266_v12 = vld [vmem:[%s24129_s5 + $0x570] sm:$0xff]  }
 0x82f   : > { %14747 = vmatpush3.bf16.msra.mxu0 %v16222_v24  ;;  %14726 = vmatprep.subr.bf16.mxu1 %v16223_v33 }
 0x830   : > { %14748 = vmatprep.subr.bf16.mxu0 %v16224_v43  ;;  %v16269_v43 = vld [vmem:[%s24129_s5 + $0x488] sm:$0xff]  }
 0x832   : > { %14727 = vmatpush3.bf16.msra.mxu1 %v16225_v54 }
 0x833   : > { %14749 = vmatpush3.bf16.msra.mxu0 %v16226_v45  ;;  %14728 = vmatprep.subr.bf16.mxu1 %v16227_v10  ;;  %v16270_v45 = vld [vmem:[%s24129_s5 + $0x568] sm:$0xff]   ;;  %v16271_v10 = vld [vmem:[%s24129_s5 + $0x4c0] sm:$0xff]  }
 0x834   : > { %14750 = vmatprep.subr.bf16.mxu0 %v16228_v17  ;;  %v16272_v17 = vld [vmem:[%s24129_s5 + $0x5a0] sm:$0xff]  }
 0x836   : > { %14729 = vmatpush3.bf16.msra.mxu1 %v16229_v31  ;;  %v16273_v31 = vld [vmem:[%s24129_s5 + $0x480] sm:$0xff]  }
 0x837   : > { %14751 = vmatpush3.bf16.msra.mxu0 %v16230_v1  ;;  %14730 = vmatprep.subr.bf16.mxu1 %v16231_v37  ;;  %v16274_v1 = vld [vmem:[%s24129_s5 + $0x560] sm:$0xff]   ;;  %v16275_v37 = vld [vmem:[%s24129_s5 + $0x4b8] sm:$0xff]  }
 0x838   : > { %14752 = vmatprep.subr.bf16.mxu0 %v16232_v36  ;;  %v16276_v36 = vld [vmem:[%s24129_s5 + $0x598] sm:$0xff]  }
 0x83a   : > { %14731 = vmatpush3.bf16.msra.mxu1 %v16233_v21  ;;  %v16277_v21 = vld [vmem:[%s24129_s5 + $0x478] sm:$0xff]  }
 0x83b   : > { %14753 = vmatpush3.bf16.msra.mxu0 %v16234_v16  ;;  %11218 = vmatprep.subr.bf16.mxu1 %v17177_v6  ;;  %v16278_v16 = vld [vmem:[%s24129_s5 + $0x558] sm:$0xff]  }
 0x83c   : > { %11534 = vmatprep.subr.bf16.mxu0 %v17177_v6 }
 0x83d   : > { %11211 = vmatmul.mubr.bf16.vlgmr.msra.gmra.mxu1 %v11000_v55  ;;  %v16280_v55 = vld [vmem:[%s24129_s5 + $0x590] sm:$0xff]  }
 0x83e   : > { %11527 = vmatmul.mubr.bf16.vlgmr.msra.gmra.mxu0 %v11316_v7  ;;  %11219 = vmatpush1.bf16.msra.mxu1 %v16235_v23  ;;  %v16279_v23 = vld [vmem:[%s24129_s5 + $0x4b0] sm:$0xff]  }
 0x83f   : > { %14378 = vmatprep.mubr.msk.bf16.mxu1 %vm10289_vm0, %v11003_v20  ;;  %11535 = vmatpush1.bf16.msra.mxu0 %v16236_v51  ;;  %v16281_v51 = vld [vmem:[%s24129_s5 + $0x470] sm:$0xff]   ;;  %v16283_v20 = vld [vmem:[%s24129_s5 + $0x4a8] sm:$0xff]  }
 0x840   : > { %14463 = vmatprep.mubr.msk.bf16.mxu0 %vm10289_vm0, %v11319_v11  ;;  %11220 = vmatprep.subr.bf16.mxu1 %v17177_v6  ;;  %v16282_v7 = vld [vmem:[%s24129_s5 + $0x550] sm:$0xff]   ;;  %v16284_v11 = vld [vmem:[%s24129_s5 + $0x588] sm:$0xff]  }
 0x841   : > { %11536 = vmatprep.subr.bf16.mxu0 %v17177_v6 }
 0x842   : > { %11221 = vmatpush1.bf16.msra.mxu1 %v16237_v15  ;;  %v16285_v15 = vld [vmem:[%s24129_s5 + $0x468] sm:$0xff]  }
 0x843   : > { %11537 = vmatpush1.bf16.msra.mxu0 %v16238_v60  ;;  %11222 = vmatprep.subr.bf16.mxu1 %v17177_v6  ;;  %v16286_v60 = vld [vmem:[%s24129_s5 + $0x548] sm:$0xff]  }
 0x844   : > { %11538 = vmatprep.subr.bf16.mxu0 %v17177_v6 }
 0x846   : > { %11223 = vmatpush1.bf16.msra.mxu1 %v16239_v61  ;;  %v16287_v61 = vld [vmem:[%s24129_s5 + $0x4a0] sm:$0xff]  }
 0x847   : > { %11539 = vmatpush1.bf16.msra.mxu0 %v16240_v47  ;;  %11224 = vmatprep.subr.bf16.mxu1 %v17177_v6  ;;  %v16288_v47 = vld [vmem:[%s24129_s5 + $0x580] sm:$0xff]  }
 0x848   : > { %11540 = vmatprep.subr.bf16.mxu0 %v17177_v6 }
 0x84a   : > { %11225 = vmatpush1.bf16.msra.mxu1 %v16241_v9  ;;  %v16289_v9 = vld [vmem:[%s24129_s5 + $0x460] sm:$0xff]  }
 0x84b   : > { %11541 = vmatpush1.bf16.msra.mxu0 %v16242_v46  ;;  %11226 = vmatprep.subr.bf16.mxu1 %v17177_v6  ;;  %v16290_v46 = vld [vmem:[%s24129_s5 + $0x540] sm:$0xff]  }
 0x84c   : > { %11542 = vmatprep.subr.bf16.mxu0 %v17177_v6 }
 0x84e   : > { %11227 = vmatpush1.bf16.msra.mxu1 %v16243_v49  ;;  %v16291_v49 = vld [vmem:[%s24129_s5 + $0x518] sm:$0xff]  }
 0x84f   : > { %11543 = vmatpush1.bf16.msra.mxu0 %v16244_v19  ;;  %11228 = vmatprep.subr.bf16.mxu1 %v17177_v6  ;;  %v11632_v19 = vrot.slane %v23419_v50, 2  ;;  %v16293_v50 = vld [vmem:[%s24129_s5 + $0x510] sm:$0xff]  }
 0x850   : > { %11544 = vmatprep.subr.bf16.mxu0 %v17177_v6 }
 0x852   : > { %11229 = vmatpush1.bf16.msra.mxu1 %v16245_v48  ;;  %v16292_v48 = vld [vmem:[%s24129_s5 + $0x5f8] sm:$0xff]  }
 0x853   : > { %11545 = vmatpush1.bf16.msra.mxu0 %v16246_v28  ;;  %11230 = vmatprep.subr.bf16.mxu1 %v17177_v6  ;;  %v11948_v28 = vrot.slane %v23408_v3, 3  ;;  %v16294_v3 = vld [vmem:[%s24129_s5 + $0x5f0] sm:$0xff]  }
 0x854   : > { %11546 = vmatprep.subr.bf16.mxu0 %v17177_v6 }
 0x856   : > { %11231 = vmatpush1.bf16.msra.mxu1 %v16247_v41 }
 0x857   : > { %11547 = vmatpush1.bf16.msra.mxu0 %v16248_v0  ;;  %11232 = vmatprep.subr.bf16.mxu1 %v17177_v6  ;;  %v11635_v0 = vrot.slane %v23531_v38, 2 }
 0x858   : > { %11548 = vmatprep.subr.bf16.mxu0 %v17177_v6 }
 0x85a   : > { %11233 = vmatpush1.bf16.msra.mxu1 %v16249_v25  ;;  %v11951_v25 = vrot.slane %v23528_v40, 3  ;;  %v16295_v40 = vld [vmem:[%s24129_s5 + $0x508] sm:$0xff]  }
 0x85b   : > { %11549 = vmatpush1.bf16.msra.mxu0 %v16250_v56  ;;  %11242 = vmatprep.subr.bf16.mxu1 %v17177_v6 }
 0x85c   : > { %11558 = vmatprep.subr.bf16.mxu0 %v17177_v6 }
 0x85e   : > { %11243 = vmatpush2.bf16.msra.mxu1 %v16251_v42 }
 0x85f   : > { %11559 = vmatpush2.bf16.msra.mxu0 %v16252_v34  ;;  %11244 = vmatprep.subr.bf16.mxu1 %v17177_v6 }
 0x860   : > { %11560 = vmatprep.subr.bf16.mxu0 %v17177_v6 }
 0x862   : > { %11245 = vmatpush2.bf16.msra.mxu1 %v16253_v29  ;;  %v16296_v29 = vld [vmem:[%s24129_s5 + $0x5e8] sm:$0xff]  }
 0x863   : > { %11561 = vmatpush2.bf16.msra.mxu0 %v16254_v53  ;;  %11246 = vmatprep.subr.bf16.mxu1 %v17177_v6  ;;  %v16297_v53 = vld [vmem:[%s24129_s5 + $0x500] sm:$0xff]  }
 0x864   : > { %11562 = vmatprep.subr.bf16.mxu0 %v17177_v6 }
 0x866   : > { %11247 = vmatpush2.bf16.msra.mxu1 %v16255_v57  ;;  %v16298_v57 = vld [vmem:[%s24129_s5 + $0x5e0] sm:$0xff]  }
 0x867   : > { %11563 = vmatpush2.bf16.msra.mxu0 %v16256_v14  ;;  %11248 = vmatprep.subr.bf16.mxu1 %v17177_v6  ;;  %v16299_v14 = vld [vmem:[%s24129_s5 + $0x4f8] sm:$0xff]  }
 0x868   : > { %11564 = vmatprep.subr.bf16.mxu0 %v17177_v6 }
 0x86a   : > { %11249 = vmatpush2.bf16.msra.mxu1 %v16257_v27  ;;  %v16300_v27 = vld [vmem:[%s24129_s5 + $0x5d8] sm:$0xff]  }
 0x86b   : > { %11565 = vmatpush2.bf16.msra.mxu0 %v16258_v13  ;;  %14760 = vmatprep.subr.bf16.mxu1 %v16259_v62  ;;  %v16301_v13 = vld [vmem:[%s24129_s5 + $0x4f0] sm:$0xff]  }
 0x86c   : > { %14782 = vmatprep.subr.bf16.mxu0 %v16260_v26  ;;  %v16302_v62 = vld [vmem:[%s24129_s5 + $0x5d0] sm:$0xff]   ;;  %v16303_v26 = vld [vmem:[%s24129_s5 + $0x4e8] sm:$0xff]  }
 0x86d   : > { %11251 = vmatmul.mubr.bf16.vlgmr.msra.gmra.mxu1 %v11002_v30  ;;  %v14666_v52 = vpop.f32.mrf.mxu0  ;;  %v16305_v30 = vld [vmem:[%s24129_s5 + $0x4e0] sm:$0xff]  }
 0x86e   : > { %11567 = vmatmul.mubr.bf16.vlgmr.msra.gmra.mxu0 %v11318_v18  ;;  %14761 = vmatpush3.bf16.msra.mxu1 %v16261_v22  ;;  %v16304_v22 = vld [vmem:[%s24129_s5 + $0x5c8] sm:$0xff]   ;;  %v16307_v18 = vld [vmem:[%s24129_s5 + $0x538] sm:$0xff]  }
 0x86f   : > { %11842 = vmatprep.mubr.bf16.mxu1 %v11633_v8  ;;  %14783 = vmatpush3.bf16.msra.mxu0 %v16262_v63  ;;  %v14667_v32 = vpop.f32.mrf.mxu0  ;;  %v16306_v63 = vld [vmem:[%s24129_s5 + $0x5c0] sm:$0xff]  }
 0x870   : > { %12158 = vmatprep.mubr.bf16.mxu0 %v11949_v44  ;;  %v23872_v24 = vadd.f32 %v14667_v32, %v14666_v52  ;;  %14762 = vmatprep.subr.bf16.mxu1 %v16263_v58  ;;  %v16308_v58 = vld [vmem:[%s24129_s5 + $0x618] sm:$0xff]   ;;  %v16309_v44 = vld [vmem:[%s24129_s5 + $0x530] sm:$0xff]  }
 0x871   : > { %14784 = vmatprep.subr.bf16.mxu0 %v16264_v5  ;;  %v14669_v33 = vpop.f32.mrf.mxu0 }
 0x872   : > { %14763 = vmatpush3.bf16.msra.mxu1 %v16265_v4 }
 0x873   : > { %14785 = vmatpush3.bf16.msra.mxu0 %v16266_v12  ;;  %v14670_v54 = vpop.f32.mrf.mxu0  ;;  %14764 = vmatprep.subr.bf16.mxu1 %v16267_v59  ;;  %v16310_v12 = vld [vmem:[%s24129_s5 + $0x610] sm:$0xff]  }
 0x874   : > { %14786 = vmatprep.subr.bf16.mxu0 %v16268_v2 }
 0x876   : > { %14765 = vmatpush3.bf16.msra.mxu1 %v16269_v43  ;;  %v16311_v43 = vld [vmem:[%s24129_s5 + $0x528] sm:$0xff]  }
 0x877   : > { %14787 = vmatpush3.bf16.msra.mxu0 %v16270_v45  ;;  %14766 = vmatprep.subr.bf16.mxu1 %v16271_v10  ;;  %v16312_v10 = vld [vmem:[%s24129_s5 + $0x608] sm:$0xff]  }
 0x878   : > { %14788 = vmatprep.subr.bf16.mxu0 %v16272_v17  ;;  %v16313_v17 = vld [vmem:[%s24129_s5 + $0x520] sm:$0xff]  }
 0x87a   : > { %14767 = vmatpush3.bf16.msra.mxu1 %v16273_v31  ;;  %v16314_v31 = vld [vmem:[%s24129_s5 + $0x600] sm:$0xff]  }
 0x87b   : > { %14789 = vmatpush3.bf16.msra.mxu0 %v16274_v1  ;;  %14768 = vmatprep.subr.bf16.mxu1 %v16275_v37  ;;  %v11634_v1 = vrot.slane %v23542_v39, 2  ;;  %v11950_v37 = vrot.slane %v23526_v35, 3 }
 0x87c   : > { %14790 = vmatprep.subr.bf16.mxu0 %v16276_v36  ;;  %v16315_v36 = vld [vmem:[%s24131_s7 + $0x38] sm:$0xff]  }
 0x87e   : > { %14769 = vmatpush3.bf16.msra.mxu1 %v16277_v21  ;;  %v17178_v21 = vmov 0.0  }
 0x87f   : > { %14791 = vmatpush3.bf16.msra.mxu0 %v16278_v16  ;;  %14770 = vmatprep.subr.bf16.mxu1 %v16279_v23  ;;  %v16316_v16 = vld [vmem:[%s24131_s7 + $0x30] sm:$0xff]  }
 0x880   : > { %14792 = vmatprep.subr.bf16.mxu0 %v16280_v55 }
 0x882   : > { %14771 = vmatpush3.bf16.msra.mxu1 %v16281_v51  ;;  %v16318_v51 = vld [vmem:[%s24131_s7 + $0x20] sm:$0xff]  }
 0x883   : > { %14793 = vmatpush3.bf16.msra.mxu0 %v16282_v7  ;;  %14772 = vmatprep.subr.bf16.mxu1 %v16283_v20 }
 0x884   : > { %14794 = vmatprep.subr.bf16.mxu0 %v16284_v11 }
 0x886   : > { %14773 = vmatpush3.bf16.msra.mxu1 %v16285_v15 }
 0x887   : > { %14795 = vmatpush3.bf16.msra.mxu0 %v16286_v60  ;;  %14774 = vmatprep.subr.bf16.mxu1 %v16287_v61  ;;  %v16319_v61 = vld [vmem:[%s24131_s7 + $0x18] sm:$0xff]  }
 0x888   : > { %14796 = vmatprep.subr.bf16.mxu0 %v16288_v47 }
 0x88a   : > { %14775 = vmatpush3.bf16.msra.mxu1 %v16289_v9 }
 0x88b   : > { %14797 = vmatpush3.bf16.msra.mxu0 %v16290_v46  ;;  %11850 = vmatprep.subr.bf16.mxu1 %v17177_v6 }
 0x88c   : > { %12166 = vmatprep.subr.bf16.mxu0 %v17177_v6 }
 0x88d   : > { %v14688_v41 = vpop.f32.mrf.mxu0  ;;  %11843 = vmatmul.mubr.bf16.vlgmr.msra.gmra.mxu1 %v11632_v19 }
 0x88e   : > { %12159 = vmatmul.mubr.bf16.vlgmr.msra.gmra.mxu0 %v11948_v28  ;;  %11851 = vmatpush1.bf16.msra.mxu1 %v16291_v49 }
 0x88f   : > { %14548 = vmatprep.mubr.msk.bf16.mxu1 %vm10289_vm0, %v11635_v0  ;;  %12167 = vmatpush1.bf16.msra.mxu0 %v16292_v48  ;;  %v14689_v56 = vpop.f32.mrf.mxu0 }
 0x890   : > { %14633 = vmatprep.mubr.msk.bf16.mxu0 %vm10289_vm0, %v11951_v25  ;;  %v14690_v42 = vadd.f32 %v14689_v56, %v14688_v41  ;;  %11852 = vmatprep.subr.bf16.mxu1 %v17177_v6 }
 0x891   : > { %v14691_v38 = vpop.f32.mrf.mxu0  ;;  %12168 = vmatprep.subr.bf16.mxu0 %v17177_v6 }
 0x892   : > { %11853 = vmatpush1.bf16.msra.mxu1 %v16293_v50  ;;  %v16322_v38 = vld [vmem:[%s24131_s7] sm:$0xff]  }
 0x893   : > { %12169 = vmatpush1.bf16.msra.mxu0 %v16294_v3  ;;  %v14692_v34 = vpop.f32.mrf.mxu0  ;;  %11854 = vmatprep.subr.bf16.mxu1 %v17177_v6  ;;  %v16320_v3 = vld [vmem:[%s24131_s7 + $0x10] sm:$0xff]  }
 0x894   : > { %12170 = vmatprep.subr.bf16.mxu0 %v17177_v6 }
 0x896   : > { %11855 = vmatpush1.bf16.msra.mxu1 %v16295_v40 }
 0x897   : > { %12171 = vmatpush1.bf16.msra.mxu0 %v16296_v29  ;;  %11856 = vmatprep.subr.bf16.mxu1 %v17177_v6 }
 0x898   : > { %12172 = vmatprep.subr.bf16.mxu0 %v17177_v6 }
 0x89a   : > { %11857 = vmatpush1.bf16.msra.mxu1 %v16297_v53 }
 0x89b   : > { %12173 = vmatpush1.bf16.msra.mxu0 %v16298_v57  ;;  %11858 = vmatprep.subr.bf16.mxu1 %v17177_v6 }
 0x89c   : > { %12174 = vmatprep.subr.bf16.mxu0 %v17177_v6 }
 0x89e   : > { %11859 = vmatpush1.bf16.msra.mxu1 %v16299_v14 }
 0x89f   : > { %12175 = vmatpush1.bf16.msra.mxu0 %v16300_v27  ;;  %11860 = vmatprep.subr.bf16.mxu1 %v17177_v6 }
 0x8a0   : > { %12176 = vmatprep.subr.bf16.mxu0 %v17177_v6 }
 0x8a2   : > { %11861 = vmatpush1.bf16.msra.mxu1 %v16301_v13 }
 0x8a3   : > { %12177 = vmatpush1.bf16.msra.mxu0 %v16302_v62  ;;  %11862 = vmatprep.subr.bf16.mxu1 %v17177_v6 }
 0x8a4   : > { %12178 = vmatprep.subr.bf16.mxu0 %v17177_v6 }
 0x8a6   : > { %11863 = vmatpush1.bf16.msra.mxu1 %v16303_v26 }
 0x8a7   : > { %12179 = vmatpush1.bf16.msra.mxu0 %v16304_v22  ;;  %11864 = vmatprep.subr.bf16.mxu1 %v17177_v6 }
 0x8a8   : > { %12180 = vmatprep.subr.bf16.mxu0 %v17177_v6 }
 0x8aa   : > { %11865 = vmatpush1.bf16.msra.mxu1 %v16305_v30 }
 0x8ab   : > { %12181 = vmatpush1.bf16.msra.mxu0 %v16306_v63  ;;  %11874 = vmatprep.subr.bf16.mxu1 %v17177_v6 }
 0x8ac   : > { %12190 = vmatprep.subr.bf16.mxu0 %v17177_v6 }
 0x8ad   : > { %v14710_v52 = vpop.f32.mrf.mxu0  ;;  %v10367_v8 = vpop.f32.mrf.mxu1 }
 0x8ae   : > { %v10368_v5 = vadd.f32 %v23872_v24, %v10367_v8  ;;  %11875 = vmatpush2.bf16.msra.mxu1 %v16307_v18 }
 0x8af   : > { %12191 = vmatpush2.bf16.msra.mxu0 %v16308_v58  ;;  %v14711_v4 = vpop.f32.mrf.mxu0  ;;  %v10369_v32 = vpop.f32.mrf.mxu1  ;;  %11876 = vmatprep.subr.bf16.mxu1 %v17177_v6 }
 0x8b0   : > { %v14712_v59 = vadd.f32 %v14711_v4, %v14710_v52  ;;  %12192 = vmatprep.subr.bf16.mxu0 %v17177_v6  ;;  %v10578_v2 = vadd.f32 %v14690_v42, %v10368_v5  ;;  %v16321_v42 = vld [vmem:[%s24131_s7 + $0x8] sm:$0xff]  }
 0x8b1   : > { %v14713_v33 = vpop.f32.mrf.mxu0  ;;  %v10370_v24 = vpop.f32.mrf.mxu1 }
 0x8b2   : > { %11877 = vmatpush2.bf16.msra.mxu1 %v16309_v44 }
 0x8b3   : > { %12193 = vmatpush2.bf16.msra.mxu0 %v16310_v12  ;;  %v14714_v54 = vpop.f32.mrf.mxu0  ;;  %v10371_v45 = vpop.f32.mrf.mxu1  ;;  %11878 = vmatprep.subr.bf16.mxu1 %v17177_v6 }
 0x8b4   : > { %12194 = vmatprep.subr.bf16.mxu0 %v17177_v6 }
 0x8b6   : > { %11879 = vmatpush2.bf16.msra.mxu1 %v16311_v43 }
 0x8b7   : > { %12195 = vmatpush2.bf16.msra.mxu0 %v16312_v10  ;;  %11880 = vmatprep.subr.bf16.mxu1 %v17177_v6  ;;  %v12207_v10 = vld [vmem:[%s24130_s6] sm:$0x1] }
 0x8b8   : > { %12196 = vmatprep.subr.bf16.mxu0 %v17177_v6  ;;  %v16317_v6 = vld [vmem:[%s24131_s7 + $0x28] sm:$0xff]  }
 0x8ba   : > { %11881 = vmatpush2.bf16.msra.mxu1 %v16313_v17 }
 0x8bb   : > { %12197 = vmatpush2.bf16.msra.mxu0 %v16314_v31  ;;  %14813 = vmatprep.subr.bf16.mxu1 %v17178_v21 }
 0x8bd   : > { %11883 = vmatmul.mubr.bf16.vlgmr.msra.gmra.mxu1 %v11634_v1 }
 0x8be   : > { %12199 = vmatmul.mubr.bf16.vlgmr.msra.gmra.mxu0 %v11950_v37  ;;  %14814 = vmatpush3.bf16.msra.mxu1 %v16315_v36 }
 0x8bf   : > { %14815 = vmatprep.subr.bf16.mxu1 %v17178_v21  ;;  %14829 = vmatprep.mubr.msk.bf16.mxu1 %vm17179_vm1, %v17178_v21 }
 0x8c2   : > { %14816 = vmatpush3.bf16.msra.mxu1 %v16316_v16 }
 0x8c3   : > { %14817 = vmatprep.subr.bf16.mxu1 %v17178_v21 }
 0x8c6   : > { %14818 = vmatpush3.bf16.msra.mxu1 %v16317_v6 }
 0x8c7   : > { %14819 = vmatprep.subr.bf16.mxu1 %v17178_v21 }
 0x8ca   : > { %14820 = vmatpush3.bf16.msra.mxu1 %v16318_v51 }
 0x8cb   : > { %14821 = vmatprep.subr.bf16.mxu1 %v17178_v21 }
 0x8ce   : > { %14822 = vmatpush3.bf16.msra.mxu1 %v16319_v61 }
 0x8cf   : > { %14823 = vmatprep.subr.bf16.mxu1 %v17178_v21 }
 0x8d2   : > { %14824 = vmatpush3.bf16.msra.mxu1 %v16320_v3 }
 0x8d3   : > { %14825 = vmatprep.subr.bf16.mxu1 %v17178_v21 }
 0x8d6   : > { %14826 = vmatpush3.bf16.msra.mxu1 %v16321_v42 }
 0x8d7   : > { %14827 = vmatprep.subr.bf16.mxu1 %v17178_v21 }
 0x8da   : > { %14828 = vmatpush3.bf16.msra.mxu1 %v16322_v38 }
 0x8dd   : > { %v10617_v35 = vpop.f32.mrf.mxu1  ;;  %v10936_v39 = vpop.f32.mrf.mxu0 }
 0x8de   : > { %v10618_v23 = vadd.f32 %v10617_v35, %v10578_v2  ;;  %v10937_v55 = vadd.f32 %v14712_v59, %v10936_v39  ;;  %v12227_v35 = vld [vmem:[%s24132_s8] sm:$0x1] }
 0x8df   : > { %v10619_v7 = vpop.f32.mrf.mxu1  ;;  %v10938_v20 = vpop.f32.mrf.mxu0 }
 0x8e0   : > { %v10942_v11 = vadd.f32 %v10937_v55, %v10618_v23 }
 0x8e1   : > { %v10620_v15 = vpop.f32.mrf.mxu1  ;;  %v10939_v60 = vpop.f32.mrf.mxu0 }
 0x8e3   : > { %v10621_v47 = vpop.f32.mrf.mxu1  ;;  %v10940_v9 = vpop.f32.mrf.mxu0 }
 0x8fd   : > { %v14732_v46 = vpop.f32.mrf.mxu1 }
 0x8fe   : > { %v14754_v49 = vpop.f32.mrf.mxu0 }
 0x8ff   : > { %v14733_v19 = vpop.f32.mrf.mxu1 }
 0x900   : > { %v14734_v48 = vadd.f32 %v14733_v19, %v14732_v46  ;;  %v14755_v28 = vpop.f32.mrf.mxu0 }
 0x901   : > { %v14756_v41 = vadd.f32 %v14755_v28, %v14754_v49  ;;  %v14735_v0 = vpop.f32.mrf.mxu1 }
 0x902   : > { %v14757_v25 = vpop.f32.mrf.mxu0 }
 0x903   : > { %v14736_v50 = vpop.f32.mrf.mxu1 }
 0x904   : > { %v14758_v56 = vpop.f32.mrf.mxu0 }
 0x92d   : > { %v11252_v40 = vpop.f32.mrf.mxu1 }
 0x92e   : > { %v11253_v34 = vadd.f32 %v14734_v48, %v11252_v40  ;;  %v11568_v29 = vpop.f32.mrf.mxu0 }
 0x92f   : > { %v11569_v53 = vadd.f32 %v14756_v41, %v11568_v29  ;;  %v11254_v57 = vpop.f32.mrf.mxu1 }
 0x930   : > { %v11258_v14 = vadd.f32 %v11253_v34, %v10942_v11  ;;  %v11570_v27 = vpop.f32.mrf.mxu0 }
 0x931   : > { %v11255_v13 = vpop.f32.mrf.mxu1 }
 0x932   : > { %v11574_v62 = vadd.f32 %v11569_v53, %v11258_v14  ;;  %v11571_v26 = vpop.f32.mrf.mxu0 }
 0x933   : > { %v11256_v22 = vpop.f32.mrf.mxu1 }
 0x934   : > { %v11572_v30 = vpop.f32.mrf.mxu0 }
 0x94d   : > { %v14776_v63 = vpop.f32.mrf.mxu1 }
 0x94e   : > { %v14798_v18 = vpop.f32.mrf.mxu0 }
 0x94f   : > { %v14777_v58 = vpop.f32.mrf.mxu1 }
 0x950   : > { %v14799_v52 = vpop.f32.mrf.mxu0  ;;  %v14778_v32 = vadd.f32 %v14777_v58, %v14776_v63 }
 0x951   : > { %v14779_v8 = vpop.f32.mrf.mxu1  ;;  %v14800_v59 = vadd.f32 %v14799_v52, %v14798_v18 }
 0x952   : > { %v14801_v5 = vpop.f32.mrf.mxu0 }
 0x953   : > { %v14780_v44 = vpop.f32.mrf.mxu1 }
 0x954   : > { %v14802_v4 = vpop.f32.mrf.mxu0 }
 0x97d   : > { %v11884_v12 = vpop.f32.mrf.mxu1 }
 0x97e   : > { %v11885_v2 = vadd.f32 %v14778_v32, %v11884_v12  ;;  %v12200_v33 = vpop.f32.mrf.mxu0 }
 0x97f   : > { %v11886_v24 = vpop.f32.mrf.mxu1  ;;  %v12201_v54 = vadd.f32 %v14800_v59, %v12200_v33 }
 0x980   : > { %v11890_v43 = vadd.f32 %v11885_v2, %v11574_v62  ;;  %v12202_v45 = vpop.f32.mrf.mxu0 }
 0x981   : > { %v11887_v17 = vpop.f32.mrf.mxu1 }
 0x982   : > { %v12206_v31 = vadd.f32 %v12201_v54, %v11890_v43  ;;  %v12203_v1 = vpop.f32.mrf.mxu0 }
 0x983   : > { %v11888_v37 = vpop.f32.mrf.mxu1 }
 0x984   : > { %v12208_v36 = vadd.f32 %v12207_v10, %v12206_v31  ;;  %v12204_v21 = vpop.f32.mrf.mxu0 }
 0x986   : > { %v12209_v16 = vmax.f32 %v12208_v36, 0.0 }
 0x988   : > { %v12210_v6 = vpack.c.bf16 %v12209_v16, %v12209_v16 }
 0x98a   : > { %14830 = vmatmul.mubr.bf16.vlgmr.msra.gmra.mxu1 %v12210_v6 }
 0xa4a   : > { %v12310_v39 = vpop.f32.mrf.mxu1 }
 0xa4b   : > { %v12311_v23 = vadd.f32 %v12310_v39, %v12227_v35 }
 0xa4c   : > { %v14831_v55 = vpop.f32.mrf.mxu1 }
 0xa4d   : > { %12316 = vst [vmem:[%s324_s17] sm:$0x1] %v12311_v23 }
 0xa4e   : > { %v12313_v51 = vpop.f32.mrf.mxu1 }
 0xa4f   : > { %17128 = shalt.err (!%p17125_p3)
}
 0xa50   : > { %s17129_s23 = scalar_lea.hbm %s24083_s25, 16  ;;  %s17133_s17 = scalar_lea.hbm %s24133_s9, 32 }
 0xa51   : > { %p17130_p4 = scmp.ne.s32.totalorder %s24083_s25, %s17129_s23  ;;  %p17134_p9 = scmp.lt.s32.totalorder %s24083_s25, %s24133_s9 }
 0xa52   : > { %p17135_p10 = scmp.lt.s32.totalorder %s17133_s17, %s17129_s23 }
 0xa53   : > { %p17131_p7 = pnand %p17130_p4, %p17269_p5 }
 0xa54   : > { %p17136_p11 = por %p17135_p10, %p17134_p9 }
 0xa55   : > { %p17132_p8 = pneg %p17131_p7 }
 0xa57   : > { %p17137_p12 = pnand %p17136_p11, %p17132_p8 }
 0xa59   : > { %17140 = shalt.err (!%p17137_p12)
}
 0xa5a   : > { %14833 = dma.vmem_to_hbm [thread:$0]  (%p17269_p5), %s24085_s21, 16, %s24083_s25, %s12318_s26   ;;  %v14832_v7 = vpop.f32.mrf.mxu1 }
 0xa5b PF: > { %p14839_p13 = scmp.ge.s32.totalorder %s17175_s12, 2  ;;  %s12342_s27 = sand.u32 1, %s17163_s30  }
 0xa5c   : > { %s12343_s13 = scalar_lea.sflag [#allocation4], %s12342_s27 }
 0xa5d   : > { %p14836_p0 = pnand %p14839_p13, %p17273_p6 }
 0xa5f   : > { %p14837_p1 = pneg %p14836_p0 }
 0xa61   : > { %17158 = dma.done.wait (%p14837_p1), %s12343_s13, 16  }
 0xa62   : > { %17160 = vsyncadd (%p14837_p1), %s12343_s13, 4294967280  ;;  %p19_p2 = scmp.ge.s32.totalorder %s17256_s15, 4   ;;  %s24146_s30 = smov %s17167_s10 }
 0xa63   : > { %s24147_s10 = smov %s17171_s11  ;;  %s24148_s11 = smov %s17267_s18 }
 0xa64   : > { %s24149_s12 = smov %s17256_s15  ;;  %21 = sbr.rel (!%p19_p2) target bundleno = 3 (0x3), region = 111 }
 0xa69   :  { %12347 = vsyncpa [#allocation4], 1 }
 0xa6a   :  { %12349 = vsyncpa [#allocation4 + $0x1], 1 }

</bundles_post_ra>
